<compile_context>
chip_gen: v5e
topology: v5e:2x2
jax: 0.10.0
libtpu: 0.0.40
codegen_flags: <defaults>
</compile_context>

<pallas_src>
import functools

import jax
import jax.numpy as jnp
from jax.experimental import pallas as pl
from jax.experimental.pallas import tpu as pltpu

D_HID = 10   # matches qNN1(D_hid=10)
R_SUB = 8    # batch rows per tile (exact sublane multiple; D*R = 80)


def _qnn1_kernel(t_ref, m1_ref, c1_ref, w2k_ref, b2_ref, wok_ref, bo_ref,
                 out_ref):
    # t block: (R, BL) -- batch spread over 8 sublanes, lane-dense columns.
    t = t_ref[...]                                            # (R, BL)

    # Layer 1 (Ein/bias already folded): L1 = (a1 (x) I_R) @ t + c1
    l1 = jnp.dot(m1_ref[...], t,
                 preferred_element_type=jnp.float32) + c1_ref[...]
    h1 = jnp.sin(l1)                                          # (D*R, BL)

    # Layer 2: block-diagonal (W2^T (x) I_R) @ h1 + b2 on the MXU.
    l2 = jnp.dot(w2k_ref[...], h1,
                 preferred_element_type=jnp.float32) + b2_ref[...]
    h2 = jnp.sin(l2)                                          # (D*R, BL)

    # Output projection: (wout^T (x) I_R) @ h2 + bout -> (R, BL), dense store.
    out_ref[...] = jnp.dot(wok_ref[...], h2,
                           preferred_element_type=jnp.float32) + bo_ref[...]


@functools.partial(jax.jit, static_argnames=("block_n",))
def qnn1_forward(t, params, *, block_n=8192):
    """t: (N, 1) float32.  Returns (out (N,1), In1 (N,1)) — same as qNN1.forward."""
    wein, bein, w1, b1, w2, b2, wout, bout = params
    N = t.shape[0]
    D = w2.shape[0]
    R = R_SUB
    DR = D * R

    # ---- Fold constants (exact: Ein's input is all-ones). ------------------
    in1_c = wein[0, 0] + bein[0, 0]                 # Ein(1) = w*1 + b (scalar)
    a1 = w1[0, :]                                   # (D,) coefficient of t
    c1 = in1_c * w1[1, :] + b1[0, :]                # (D,) folded bias

    # ---- Kronecker-expanded parameters (tiny, built once per call). --------
    eye = jnp.eye(R, dtype=jnp.float32)
    m1 = jnp.kron(a1.reshape(D, 1), eye)            # (DR, R)
    c1t = jnp.repeat(c1, R).reshape(DR, 1)          # (DR, 1)
    w2k = jnp.kron(w2.T, eye)                       # (DR, DR) block-diagonal
    b2t = jnp.repeat(b2[0, :], R).reshape(DR, 1)    # (DR, 1)
    wok = jnp.kron(wout[:, 0].reshape(1, D), eye)   # (R, DR)
    bo = jnp.full((R, 1), bout[0, 0], jnp.float32)  # (R, 1)

    # ---- Batch tiling: (R, block_l) lane-dense tiles, clamp for small N. ---
    chunk = R * 128                                 # 1024: minimal legal tile
    bn = min(block_n, ((N + chunk - 1) // chunk) * chunk)
    bn = ((bn + chunk - 1) // chunk) * chunk        # multiple of 8*128
    n_pad = ((N + bn - 1) // bn) * bn
    block_l = bn // R
    cols = n_pad // R
    grid = (n_pad // bn,)

    t2d = jnp.pad(t[:, 0], (0, n_pad - N)).reshape(R, cols)

    out2d = pl.pallas_call(
        _qnn1_kernel,
        out_shape=jax.ShapeDtypeStruct((R, cols), jnp.float32),
        grid_spec=pltpu.PrefetchScalarGridSpec(
            num_scalar_prefetch=0,
            grid=grid,
            in_specs=[
                pl.BlockSpec((R, block_l), lambda i: (0, i)),   # t batch tile
                pl.BlockSpec((DR, R), lambda i: (0, 0)),        # m1
                pl.BlockSpec((DR, 1), lambda i: (0, 0)),        # c1
                pl.BlockSpec((DR, DR), lambda i: (0, 0)),       # W2 kron
                pl.BlockSpec((DR, 1), lambda i: (0, 0)),        # b2
                pl.BlockSpec((R, DR), lambda i: (0, 0)),        # wout kron
                pl.BlockSpec((R, 1), lambda i: (0, 0)),         # bout
            ],
            out_specs=pl.BlockSpec((R, block_l), lambda i: (0, i)),
        ),
        compiler_params=pltpu.CompilerParams(
            dimension_semantics=("parallel",)),
    )(t2d, m1, c1t, w2k, b2t, wok, bo)

    out = out2d.reshape(n_pad)[:N].reshape(N, 1)
    # In1 is independent of t: constant fill (identical to PyTorch's Ein(ones)).
    in1 = jnp.full((N, 1), in1_c, jnp.float32)
    return out, in1


def init_params(key, d_hid=D_HID):
    """Deterministic synthetic init. Weights stored as (in, out) — i.e. the
    transpose of torch.nn.Linear.weight — so the math is x @ W + b."""
    ks = jax.random.split(key, 8)
    f32 = jnp.float32
    wein = jax.random.normal(ks[0], (1, 1), f32) * 0.5
    bein = jax.random.normal(ks[1], (1, 1), f32) * 0.5
    w1 = jax.random.normal(ks[2], (2, d_hid), f32) * 0.5
    b1 = jax.random.normal(ks[3], (1, d_hid), f32) * 0.5
    w2 = jax.random.normal(ks[4], (d_hid, d_hid), f32) * 0.5
    b2 = jax.random.normal(ks[5], (1, d_hid), f32) * 0.5
    wout = jax.random.normal(ks[6], (d_hid, 1), f32) * 0.5
    bout = jax.random.normal(ks[7], (1, 1), f32) * 0.5
    return (wein, bein, w1, b1, w2, b2, wout, bout)


def qnn1_reference(t, params):
    """Pure-JAX reference matching the PyTorch forward."""
    wein, bein, w1, b1, w2, b2, wout, bout = params
    in1 = jnp.ones_like(t) @ wein + bein
    l1 = jnp.concatenate([t, in1], axis=1) @ w1 + b1
    h1 = jnp.sin(l1)
    h2 = jnp.sin(h1 @ w2 + b2)
    out = h2 @ wout + bout
    return out, in1


if __name__ == "__main__":
    key = jax.random.PRNGKey(0)
    kp, kt = jax.random.split(key)

    params = init_params(kp)
    # Ragged N on purpose: exercises the pad-and-slice path.
    N = 3000
    t = jax.random.uniform(kt, (N, 1), jnp.float32, minval=0.0, maxval=2.0)

    out_ref, in1_ref = qnn1_reference(t, params)

    # Small block -> multi-step batch grid + ragged tail.
    out, in1 = qnn1_forward(t, params, block_n=2048)
    jax.block_until_ready((out, in1))
    assert out.shape == (N, 1) and in1.shape == (N, 1)
    assert jnp.allclose(out, out_ref, atol=1e-4, rtol=1e-4)
    assert jnp.allclose(in1, in1_ref, atol=1e-5, rtol=1e-5)

    # Default (large) block -> single clamped tile.
    out2, in12 = qnn1_forward(t, params)
    jax.block_until_ready((out2, in12))
    assert jnp.allclose(out2, out_ref, atol=1e-4, rtol=1e-4)
    assert jnp.allclose(in12, in1_ref, atol=1e-5, rtol=1e-5)

    print("KERNEL_OK")
</pallas_src>

<mosaic_0001>
module attributes {stable_mosaic.version = 11 : i64} {
  func.func @_qnn1_kernel(%arg0: i32, %arg1: memref<8x256xf32, #tpu.memory_space<vmem>>, %arg2: memref<80x8xf32, #tpu.memory_space<vmem>>, %arg3: memref<80x1xf32, #tpu.memory_space<vmem>>, %arg4: memref<80x80xf32, #tpu.memory_space<vmem>>, %arg5: memref<80x1xf32, #tpu.memory_space<vmem>>, %arg6: memref<8x80xf32, #tpu.memory_space<vmem>>, %arg7: memref<8x1xf32, #tpu.memory_space<vmem>>, %arg8: memref<8x256xf32, #tpu.memory_space<vmem>>) attributes {dimension_semantics = [#tpu.dimension_semantics<parallel>], iteration_bounds = array<i64: 2>, scalar_prefetch = 0 : i64, scratch_operands = 0 : i64, tpu.core_type = #tpu.core_type<tc>, window_params = [{transform_indices = @transform_0, window_bounds = array<i64: 8, 256>}, {pipeline_mode = #tpu.pipeline_mode<synchronous>, transform_indices = @transform_1, window_bounds = array<i64: 80, 8>}, {pipeline_mode = #tpu.pipeline_mode<synchronous>, transform_indices = @transform_2, window_bounds = array<i64: 80, 1>}, {pipeline_mode = #tpu.pipeline_mode<synchronous>, transform_indices = @transform_3, window_bounds = array<i64: 80, 80>}, {pipeline_mode = #tpu.pipeline_mode<synchronous>, transform_indices = @transform_4, window_bounds = array<i64: 80, 1>}, {pipeline_mode = #tpu.pipeline_mode<synchronous>, transform_indices = @transform_5, window_bounds = array<i64: 8, 80>}, {pipeline_mode = #tpu.pipeline_mode<synchronous>, transform_indices = @transform_6, window_bounds = array<i64: 8, 1>}, {transform_indices = @transform_7, window_bounds = array<i64: 8, 256>}]} {
    %c0 = arith.constant 0 : index
    %c0_0 = arith.constant 0 : index
    %0 = vector.load %arg1[%c0, %c0_0] : memref<8x256xf32, #tpu.memory_space<vmem>>, vector<8x256xf32>
    %c0_1 = arith.constant 0 : index
    %c0_2 = arith.constant 0 : index
    %1 = vector.load %arg2[%c0_1, %c0_2] : memref<80x8xf32, #tpu.memory_space<vmem>>, vector<80x8xf32>
    %cst = arith.constant dense<0.000000e+00> : vector<80x256xf32>
    %2 = tpu.matmul %1, %0, %cst {dimension_numbers = #tpu.dot_dimension_numbers<[1], [0], [0], [1], [0, 0, 1, 1], [], []>} : vector<80x8xf32>, vector<8x256xf32>, vector<80x256xf32> -> vector<80x256xf32>
    %c0_3 = arith.constant 0 : index
    %c0_4 = arith.constant 0 : index
    %3 = vector.load %arg3[%c0_3, %c0_4] : memref<80x1xf32, #tpu.memory_space<vmem>>, vector<80x1xf32>
    %4 = vector.broadcast %3 : vector<80x1xf32> to vector<80x256xf32>
    %5 = arith.addf %2, %4 : vector<80x256xf32>
    %6 = math.sin %5 : vector<80x256xf32>
    %c0_5 = arith.constant 0 : index
    %c0_6 = arith.constant 0 : index
    %7 = vector.load %arg4[%c0_5, %c0_6] : memref<80x80xf32, #tpu.memory_space<vmem>>, vector<80x80xf32>
    %cst_7 = arith.constant dense<0.000000e+00> : vector<80x256xf32>
    %8 = tpu.matmul %7, %6, %cst_7 {dimension_numbers = #tpu.dot_dimension_numbers<[1], [0], [0], [1], [0, 0, 1, 1], [], []>} : vector<80x80xf32>, vector<80x256xf32>, vector<80x256xf32> -> vector<80x256xf32>
    %c0_8 = arith.constant 0 : index
    %c0_9 = arith.constant 0 : index
    %9 = vector.load %arg5[%c0_8, %c0_9] : memref<80x1xf32, #tpu.memory_space<vmem>>, vector<80x1xf32>
    %10 = vector.broadcast %9 : vector<80x1xf32> to vector<80x256xf32>
    %11 = arith.addf %8, %10 : vector<80x256xf32>
    %12 = math.sin %11 : vector<80x256xf32>
    %c0_10 = arith.constant 0 : index
    %c0_11 = arith.constant 0 : index
    %13 = vector.load %arg6[%c0_10, %c0_11] : memref<8x80xf32, #tpu.memory_space<vmem>>, vector<8x80xf32>
    %cst_12 = arith.constant dense<0.000000e+00> : vector<8x256xf32>
    %14 = tpu.matmul %13, %12, %cst_12 {dimension_numbers = #tpu.dot_dimension_numbers<[1], [0], [0], [1], [0, 0, 1, 1], [], []>} : vector<8x80xf32>, vector<80x256xf32>, vector<8x256xf32> -> vector<8x256xf32>
    %c0_13 = arith.constant 0 : index
    %c0_14 = arith.constant 0 : index
    %15 = vector.load %arg7[%c0_13, %c0_14] : memref<8x1xf32, #tpu.memory_space<vmem>>, vector<8x1xf32>
    %16 = vector.broadcast %15 : vector<8x1xf32> to vector<8x256xf32>
    %17 = arith.addf %14, %16 : vector<8x256xf32>
    %c0_15 = arith.constant 0 : index
    %c0_16 = arith.constant 0 : index
    %18 = vector.load %arg8[%c0_15, %c0_16] : memref<8x256xf32, #tpu.memory_space<vmem>>, vector<8x256xf32>
    tpu.vector_store %arg8[%c0_15, %c0_16], %17 {strides = array<i32>} : memref<8x256xf32, #tpu.memory_space<vmem>>, vector<8x256xf32>,
    return
  }
  func.func @transform_0(%arg0: i32) -> (i32, i32) {
    %c0_i32 = arith.constant 0 : i32
    %c0_i32_0 = arith.constant 0 : i32
    return %c0_i32, %arg0 : i32, i32
  }
  func.func @transform_1(%arg0: i32) -> (i32, i32) {
    %c0_i32 = arith.constant 0 : i32
    %c0_i32_0 = arith.constant 0 : i32
    %c0_i32_1 = arith.constant 0 : i32
    return %c0_i32, %c0_i32_0 : i32, i32
  }
  func.func @transform_2(%arg0: i32) -> (i32, i32) {
    %c0_i32 = arith.constant 0 : i32
    %c0_i32_0 = arith.constant 0 : i32
    %c0_i32_1 = arith.constant 0 : i32
    return %c0_i32, %c0_i32_0 : i32, i32
  }
  func.func @transform_3(%arg0: i32) -> (i32, i32) {
    %c0_i32 = arith.constant 0 : i32
    %c0_i32_0 = arith.constant 0 : i32
    %c0_i32_1 = arith.constant 0 : i32
    return %c0_i32, %c0_i32_0 : i32, i32
  }
  func.func @transform_4(%arg0: i32) -> (i32, i32) {
    %c0_i32 = arith.constant 0 : i32
    %c0_i32_0 = arith.constant 0 : i32
    %c0_i32_1 = arith.constant 0 : i32
    return %c0_i32, %c0_i32_0 : i32, i32
  }
  func.func @transform_5(%arg0: i32) -> (i32, i32) {
    %c0_i32 = arith.constant 0 : i32
    %c0_i32_0 = arith.constant 0 : i32
    %c0_i32_1 = arith.constant 0 : i32
    return %c0_i32, %c0_i32_0 : i32, i32
  }
  func.func @transform_6(%arg0: i32) -> (i32, i32) {
    %c0_i32 = arith.constant 0 : i32
    %c0_i32_0 = arith.constant 0 : i32
    %c0_i32_1 = arith.constant 0 : i32
    return %c0_i32, %c0_i32_0 : i32, i32
  }
  func.func @transform_7(%arg0: i32) -> (i32, i32) {
    %c0_i32 = arith.constant 0 : i32
    %c0_i32_0 = arith.constant 0 : i32
    return %c0_i32, %arg0 : i32, i32
  }
}

</mosaic_0001>

<bundles_post_ra>
// kernel: qnn1_forward.1
= control target key start
LH: loop header
LB: loop body
LE: loop exit
PB: predicated region body
PF: predicated region fallthrough
CT: control target
= control target key end

     0   :  { %s7228_s24 = smov 0   ;;  %s13520_s0 = inlined_call_operand.vmem [shape: f32[8,512], index: 0, kind: input, shape index: {}]   ;;  %s13521_s1 = inlined_call_operand.vmem [shape: f32[80,8], index: 1, kind: input, shape index: {}]   ;;  %s13522_s2 = inlined_call_operand.vmem [shape: f32[80,1], index: 2, kind: input, shape index: {}]   ;;  %s13523_s3 = inlined_call_operand.vmem [shape: f32[80,80], index: 3, kind: input, shape index: {}]   ;;  %s13524_s4 = inlined_call_operand.vmem [shape: f32[80,1], index: 4, kind: input, shape index: {}]   ;;  %s13525_s5 = inlined_call_operand.vmem [shape: f32[8,80], index: 5, kind: input, shape index: {}]   ;;  %s13526_s6 = inlined_call_operand.vmem [shape: f32[8,1], index: 6, kind: input, shape index: {}]   ;;  %s13527_s7 = inlined_call_operand.vmem [shape: f32[8,512], index: 7, kind: output, shape index: {}]  }
   0x1 LB: > { %s6982_s25 = sadd.s32 4294967295, %s7179_s24   ;;  %p6986_p0 = scmp.ge.s32.totalorder %s7179_s24, 1  ;;  %s7179_s24 = sphi %s7228_s24, %s17_s24  }
   0x2   : > { %p238_p1 = scmp.lt.s32.totalorder %s7179_s24, 3 }
   0x4   : > { %p239_p2 = pnand %p6986_p0, %p238_p1 }
   0x6   : > { %242 = sbr.rel (%p239_p2) target bundleno = 2015 (0x7df), region = 48 }
   0xb   : > { %v303_v0 = vld [vmem:[%s13522_s2 + $0x48] sm:$0xff]  ;;  %s6987_s28 = sshll.u32 %s6982_s25, 1  ;;  %v13528_v1 = vmov 0   ;;  %v301_v2 = vld [vmem:[%s13522_s2 + $0x38] sm:$0xff]  ;;  %v284_v4 = vld [vmem:[%s13521_s1] sm:$0xff]  ;;  %vm354_vm0 = vcmask 64512  }
   0xc   : > { %7170 = vset.pattern.permute.xlu0 %v13528_v1  ;;  %p271_p3 = scmp.lt.s32.totalorder %s6987_s28, 3  ;;  %7171 = vset.pattern.permute.xlu1 %v13528_v1  ;;  %v299_v3 = vld [vmem:[%s13522_s2 + $0x28] sm:$0xff]  ;;  %v302_v5 = vld [vmem:[%s13522_s2 + $0x40] sm:$0xff]  ;;  %v300_v8 = vld [vmem:[%s13522_s2 + $0x30] sm:$0xff] }
   0xd   : > { %351 = vperm.xlu0 %7170, %v303_v0   ;;  %341 = vperm.xlu1 %7171, %v301_v2   ;;  %v298_v9 = vld [vmem:[%s13522_s2 + $0x20] sm:$0xff]  ;;  %v285_v10 = vld [vmem:[%s13521_s1 + $0x8] sm:$0xff]  ;;  %v297_v11 = vld [vmem:[%s13522_s2 + $0x18] sm:$0xff] }
   0xe   : > { %s14204_s28 = smov (!%p271_p3, %s6987_s28), 3  ;;  %7172 = vset.pattern.permute.xlu2 %v13528_v1  ;;  %v296_v12 = vld [vmem:[%s13522_s2 + $0x10] sm:$0xff]  ;;  %v295_v13 = vld [vmem:[%s13522_s2 + $0x8] sm:$0xff]  ;;  %v294_v15 = vld [vmem:[%s13522_s2] sm:$0xff] }
   0xf   : > { %331 = vperm.xlu2 %7172, %v299_v3   ;;  %s6988_s10 = sshll.u32 %s14204_s28, 3  ;;  %v286_v14 = vld [vmem:[%s13521_s1 + $0x10] sm:$0xff]  ;;  %v287_v16 = vld [vmem:[%s13521_s1 + $0x18] sm:$0xff]  ;;  %v3598_v17 = vld [vmem:[%s13524_s4 + $0x48] sm:$0xff] }
  0x10   : > { %s274_s13 = scalar_lea.vmem %s13520_s0, %s6988_s10  ;;  %v3596_v18 = vld [vmem:[%s13524_s4 + $0x38] sm:$0xff]  ;;  %v288_v19 = vld [vmem:[%s13521_s1 + $0x20] sm:$0xff]  ;;  %v3595_v20 = vld [vmem:[%s13524_s4 + $0x30] sm:$0xff]  ;;  %s280_s14 = scalar_lea.vmem %s13527_s7, %s6988_s10 }
  0x11   : > { %v282_v6 = vld [vmem:[%s274_s13] sm:$0xff]  ;;  %v283_v7 = vld [vmem:[%s274_s13 + $0x8] sm:$0xff]  ;;  %v3592_v23 = vld [vmem:[%s13524_s4 + $0x18] sm:$0xff] }
  0x12   : > { %400 = vmatpush.msra.mxu0 %v282_v6  ;;  %447 = vmatpush.msra.mxu1 %v283_v7  ;;  %v3593_v21 = vld [vmem:[%s13524_s4 + $0x20] sm:$0xff]  ;;  %v289_v22 = vld [vmem:[%s13521_s1 + $0x28] sm:$0xff]  ;;  %v290_v26 = vld [vmem:[%s13521_s1 + $0x30] sm:$0xff] }
  0x13   : > { %6991 = vmatmul.msk.f32.vlgmr.msra.gmra.mxu0 %vm354_vm0, %v284_v4  ;;  %7001 = vmatmul.msk.f32.vlgmr.msra.gmra.mxu1 %vm354_vm0, %v284_v4  ;;  %v3590_v24 = vld [vmem:[%s13524_s4 + $0x8] sm:$0xff]  ;;  %v3597_v25 = vld [vmem:[%s13524_s4 + $0x40] sm:$0xff]  ;;  %v291_v29 = vld [vmem:[%s13521_s1 + $0x38] sm:$0xff] }
  0x14   : > { %v3589_v27 = vld [vmem:[%s13524_s4] sm:$0xff]  ;;  %v3594_v28 = vld [vmem:[%s13524_s4 + $0x28] sm:$0xff]  ;;  %v3591_v30 = vld [vmem:[%s13524_s4 + $0x10] sm:$0xff] }
  0x15   : > { %346 = vperm.xlu0 %7170, %v302_v5   ;;  %336 = vperm.xlu1 %7171, %v300_v8   ;;  %v292_v31 = vld [vmem:[%s13521_s1 + $0x40] sm:$0xff]  ;;  %v293_v32 = vld [vmem:[%s13521_s1 + $0x48] sm:$0xff] }
  0x16   : > { %v6875_v33 = vld [vmem:[%s13526_s6] sm:$0xff] }
  0x17   : > { %326 = vperm.xlu2 %7172, %v298_v9  }
  0x1b   : > { %6992 = vmatmul.msk.f32.gmra.mxu0 %vm354_vm0, %v285_v10  ;;  %7002 = vmatmul.msk.f32.gmra.mxu1 %vm354_vm0, %v285_v10 }
  0x1d   : > { %321 = vperm.xlu0 %7170, %v297_v11   ;;  %316 = vperm.xlu1 %7171, %v296_v12  }
  0x1f   : > { %311 = vperm.xlu2 %7172, %v295_v13  }
  0x23   : > { %6993 = vmatmul.msk.f32.gmra.mxu0 %vm354_vm0, %v286_v14  ;;  %7003 = vmatmul.msk.f32.gmra.mxu1 %vm354_vm0, %v286_v14 }
  0x25   : > { %306 = vperm.xlu0 %7170, %v294_v15   ;;  %3646 = vperm.xlu1 %7171, %v3598_v17  }
  0x27   : > { %3641 = vperm.xlu2 %7172, %v3597_v25  }
  0x2b   : > { %6994 = vmatmul.msk.f32.gmra.mxu0 %vm354_vm0, %v287_v16  ;;  %7004 = vmatmul.msk.f32.gmra.mxu1 %vm354_vm0, %v287_v16 }
  0x2d   : > { %3636 = vperm.xlu0 %7170, %v3596_v18   ;;  %3631 = vperm.xlu1 %7171, %v3595_v20  }
  0x2f   : > { %3626 = vperm.xlu2 %7172, %v3594_v28  }
  0x33   : > { %6995 = vmatmul.msk.f32.gmra.mxu0 %vm354_vm0, %v288_v19  ;;  %7005 = vmatmul.msk.f32.gmra.mxu1 %vm354_vm0, %v288_v19 }
  0x35   : > { %3621 = vperm.xlu0 %7170, %v3593_v21   ;;  %3616 = vperm.xlu1 %7171, %v3592_v23  }
  0x37   : > { %3611 = vperm.xlu2 %7172, %v3591_v30  }
  0x3b   : > { %6996 = vmatmul.msk.f32.gmra.mxu0 %vm354_vm0, %v289_v22  ;;  %7006 = vmatmul.msk.f32.gmra.mxu1 %vm354_vm0, %v289_v22 }
  0x3d   : > { %3606 = vperm.xlu0 %7170, %v3590_v24   ;;  %3601 = vperm.xlu1 %7171, %v3589_v27  }
  0x3f   : > { %6878 = vperm.xlu2 %7172, %v6875_v33  }
  0x43   : > { %6997 = vmatmul.msk.f32.gmra.mxu0 %vm354_vm0, %v290_v26  ;;  %7007 = vmatmul.msk.f32.gmra.mxu1 %vm354_vm0, %v290_v26 }
  0x4b   : > { %6998 = vmatmul.msk.f32.gmra.mxu0 %vm354_vm0, %v291_v29  ;;  %7008 = vmatmul.msk.f32.gmra.mxu1 %vm354_vm0, %v291_v29 }
  0x53   : > { %6999 = vmatmul.msk.f32.gmra.mxu0 %vm354_vm0, %v292_v31  ;;  %7009 = vmatmul.msk.f32.gmra.mxu1 %vm354_vm0, %v292_v31 }
  0x5b   : > { %7000 = vmatmul.msk.f32.gmra.mxu0 %vm354_vm0, %v293_v32  ;;  %7010 = vmatmul.msk.f32.gmra.mxu1 %vm354_vm0, %v293_v32 }
  0x69   : > { %v7360_v36 = vpop.permute.xlu2 %331 }
  0x71   : > { %v327_v41 = vpop.permute.xlu2 %326 }
  0x79   : > { %v312_v46 = vpop.permute.xlu2 %311 }
  0x7f   : > { %v7362_v37 = vpop.permute.xlu0 %351  ;;  %v7364_v38 = vpop.permute.xlu1 %341 }
  0x87   : > { %v7366_v42 = vpop.permute.xlu0 %346  ;;  %v7368_v43 = vpop.permute.xlu1 %336 }
  0x8f   : > { %v322_v47 = vpop.permute.xlu0 %321  ;;  %v317_v48 = vpop.permute.xlu1 %316 }
  0x90   : > { %v402_v34 = vpop.f32.mrf.mxu0  ;;  %v449_v35 = vpop.f32.mrf.mxu1 }
  0x97   : > { %v307_v61 = vpop.permute.xlu0 %306 }
  0x98   : > { %v405_v39 = vpop.f32.mrf.mxu0  ;;  %v452_v40 = vpop.f32.mrf.mxu1  ;;  %v7385_v3 = vadd.f32 %v402_v34, %v307_v61  ;;  %v7390_v9 = vadd.f32 %v449_v35, %v307_v61  ;;  %v13530_v61 = vmov 920167782  }
  0x99   : > { %v7370_v49 = vadd.f32 %v405_v39, %v312_v46  ;;  %v7372_v52 = vadd.f32 %v452_v40, %v312_v46 }
  0x9a   : > { %13764 = vst [vmem:[#allocation8_spill] sm:$0xff] %v7385_v3  ;;  %v482_v11 = vand.u32 2139095040, %v7385_v3  ;;  %v637_v19 = vand.u32 2139095040, %v7390_v9 }
  0x9b   : > { %13758 = vst [vmem:[#allocation2_spill] sm:$0xff] %v7370_v49  ;;  %v792_v54 = vand.u32 2139095040, %v7370_v49  ;;  %v947_v55 = vand.u32 2139095040, %v7372_v52 }
  0x9c   : > { %13759 = vst [vmem:[#allocation3_spill] sm:$0xff] %v7372_v52  ;;  %v483_v21 = vshrl.u32 %v482_v11, 23  ;;  %v638_v27 = vshrl.u32 %v637_v19, 23 }
  0x9d   : > { %v793_v57 = vshrl.u32 %v792_v54, 23  ;;  %v948_v62 = vshrl.u32 %v947_v55, 23  ;;  %13765 = vst [vmem:[#allocation9_spill] sm:$0xff] %v7390_v9 }
  0x9e   : > { %v7011_v29 = vadd.s32 4294967169, %v483_v21  ;;  %v7402_v46 = vadd.s32 4294967169, %v638_v27 }
  0x9f   : > { %v7017_v4 = vadd.s32 4294967169, %v793_v57  ;;  %v7020_v6 = vadd.s32 4294967169, %v948_v62 }
  0xa0   : > { %v408_v44 = vpop.f32.mrf.mxu0  ;;  %v455_v45 = vpop.f32.mrf.mxu1  ;;  %13769 = vst [vmem:[#allocation13_spill] sm:$0xff] %v7402_v46  ;;  %v13803_v46 = vmov 2102212464  }
  0xa1   : > { %v7374_v53 = vadd.f32 %v408_v44, %v317_v48  ;;  %v7379_v58 = vadd.f32 %v455_v45, %v317_v48  ;;  %v799_v12 = vadd.s32 1, %v7017_v4  ;;  %v954_v16 = vadd.s32 1, %v7020_v6 }
  0xa3   : > { %13760 = vst [vmem:[#allocation4_spill] sm:$0xff] %v7374_v53  ;;  %v1102_v56 = vand.u32 2139095040, %v7374_v53  ;;  %v1257_v5 = vand.u32 2139095040, %v7379_v58  ;;  %vm800_vm1 = vcmp.gt.s32.totalorder %v799_v12, 0  ;;  %vm955_vm2 = vcmp.gt.s32.totalorder %v954_v16, 0 }
  0xa4   : > { %13761 = vst [vmem:[#allocation5_spill] sm:$0xff] %v7379_v58  ;;  %v801_v28 = vsel %vm800_vm1, %v799_v12, 0  ;;  %v956_v30 = vsel %vm955_vm2, %v954_v16, 0 }
  0xa5   : > { %v1103_v2 = vshrl.u32 %v1102_v56, 23  ;;  %v1258_v13 = vshrl.u32 %v1257_v5, 23  ;;  %v7399_v40 = vand.u32 31, %v801_v28  ;;  %v7408_v48 = vshrl.u32 %v801_v28, 5 }
  0xa6   : > { %v13532_v56 = vmov 2102212464  }
  0xa7   : > { %v7023_v10 = vadd.s32 4294967169, %v1103_v2  ;;  %v7026_v22 = vadd.s32 4294967169, %v1258_v13  ;;  %13768 = vst [vmem:[#allocation12_spill] sm:$0xff] %v7399_v40  ;;  %v7416_v55 = vsub.s32 32, %v7399_v40  ;;  %v7420_v57 = vshll.u32 %v13532_v56, %v7399_v40 }
  0xa8   : > { %v411_v50 = vpop.f32.mrf.mxu0  ;;  %v458_v51 = vpop.f32.mrf.mxu1  ;;  %13772 = vst [vmem:[#allocation16_spill] sm:$0xff] %v7408_v48  ;;  %v7426_v62 = vshll.u32 %v13530_v61, %v7399_v40 }
  0xa9   : > { %v7381_v63 = vadd.f32 %v411_v50, %v322_v47  ;;  %v7383_v0 = vadd.f32 %v458_v51, %v322_v47  ;;  %v1109_v20 = vadd.s32 1, %v7023_v10  ;;  %v1264_v31 = vadd.s32 1, %v7026_v22  ;;  %13775 = vst [vmem:[#allocation19_spill] sm:$0xff] %v7416_v55 }
  0xaa   : > { %v7406_v47 = vadd.s32 1, %v7011_v29  ;;  %13776 = vst [vmem:[#allocation20_spill] sm:$0xff] %v7420_v57 }
  0xab   : > { %13762 = vst [vmem:[#allocation6_spill] sm:$0xff] %v7381_v63  ;;  %v1412_v7 = vand.u32 2139095040, %v7381_v63  ;;  %v1567_v8 = vand.u32 2139095040, %v7383_v0  ;;  %vm1110_vm3 = vcmp.gt.s32.totalorder %v1109_v20, 0  ;;  %vm1265_vm4 = vcmp.gt.s32.totalorder %v1264_v31, 0 }
  0xac   : > { %13763 = vst [vmem:[#allocation7_spill] sm:$0xff] %v7383_v0  ;;  %v1111_v44 = vsel %vm1110_vm3, %v1109_v20, 0  ;;  %v1266_v4 = vsel %vm1265_vm4, %v1264_v31, 0 }
  0xad   : > { %v1413_v17 = vshrl.u32 %v1412_v7, 23  ;;  %v1568_v18 = vshrl.u32 %v1567_v8, 23  ;;  %13771 = vst [vmem:[#allocation15_spill] sm:$0xff] %v7406_v47  ;;  %v7410_v51 = vand.u32 31, %v1111_v44  ;;  %v7464_v22 = vand.u32 31, %v1266_v4 }
  0xae   : > { %13778 = vst [vmem:[#allocation22_spill] sm:$0xff] %v7426_v62  ;;  %v7479_v31 = vshrl.u32 %v1111_v44, 5 }
  0xaf   : > { %v7029_v24 = vadd.s32 4294967169, %v1413_v17  ;;  %v7032_v25 = vadd.s32 4294967169, %v1568_v18  ;;  %13773 = vst [vmem:[#allocation17_spill] sm:$0xff] %v7410_v51  ;;  %v7448_v16 = vsub.s32 32, %v7410_v51  ;;  %v7453_v18 = vshrl.u32 %v13530_v61, %v7416_v55 }
  0xb0   : > { %v414_v59 = vpop.f32.mrf.mxu0  ;;  %v461_v60 = vpop.f32.mrf.mxu1  ;;  %13788 = vst [vmem:[#allocation32_spill] sm:$0xff] %v7464_v22 }
  0xb1   : > { %v7394_v23 = vadd.f32 %v414_v59, %v327_v41  ;;  %v7396_v26 = vadd.f32 %v461_v60, %v327_v41  ;;  %v1419_v35 = vadd.s32 1, %v7029_v24  ;;  %v1574_v39 = vadd.s32 1, %v7032_v25  ;;  %13784 = vst [vmem:[#allocation28_spill] sm:$0xff] %v7448_v16 }
  0xb2   : > { %v7404_v41 = vand.u32 31, %v956_v30  ;;  %v7422_v59 = vshrl.u32 %v956_v30, 5  ;;  %13785 = vst [vmem:[#allocation29_spill] sm:$0xff] %v7453_v18 }
  0xb3   : > { %13766 = vst [vmem:[#allocation10_spill] sm:$0xff] %v7394_v23  ;;  %v1722_v32 = vand.u32 2139095040, %v7394_v23  ;;  %v1877_v45 = vand.u32 2139095040, %v7396_v26  ;;  %vm1420_vm5 = vcmp.gt.s32.totalorder %v1419_v35, 0  ;;  %vm1575_vm6 = vcmp.gt.s32.totalorder %v1574_v39, 0 }
  0xb4   : > { %13767 = vst [vmem:[#allocation11_spill] sm:$0xff] %v7396_v26  ;;  %v7429_v2 = vsub.s32 32, %v7404_v41  ;;  %v1421_v6 = vsel %vm1420_vm5, %v1419_v35, 0  ;;  %v7434_v7 = vsel %vm1575_vm6, %v1574_v39, 0  ;;  %v7441_v13 = vshll.u32 %v13532_v56, %v7404_v41 }
  0xb5   : > { %13770 = vst [vmem:[#allocation14_spill] sm:$0xff] %v7404_v41  ;;  %v1723_v50 = vshrl.u32 %v1722_v32, 23  ;;  %v1878_v60 = vshrl.u32 %v1877_v45, 23  ;;  %v7466_v24 = vand.u32 31, %v1421_v6  ;;  %v7469_v25 = vand.u32 31, %v7434_v7 }
  0xb6   : > { %13777 = vst [vmem:[#allocation21_spill] sm:$0xff] %v7422_v59  ;;  %v7462_v21 = vshrl.u32 %v13530_v61, %v7429_v2  ;;  %v1126_v32 = vshrl.u32 %v13530_v61, %v7448_v16  ;;  %v1125_v39 = vshll.u32 %v13532_v56, %v7410_v51  ;;  %v7489_v45 = vshll.u32 %v13530_v61, %v7410_v51 }
  0xb7   : > { %13779 = vst [vmem:[#allocation23_spill] sm:$0xff] %v7429_v2  ;;  %v7035_v8 = vadd.s32 4294967169, %v1723_v50  ;;  %v7038_v19 = vadd.s32 4294967169, %v1878_v60  ;;  %v7499_v44 = vsub.s32 32, %v7466_v24  ;;  %v7511_v1 = vshrl.u32 %v1421_v6, 5 }
  0xb8   : > { %v417_v14 = vpop.f32.mrf.mxu0  ;;  %v464_v15 = vpop.f32.mrf.mxu1  ;;  %13782 = vst [vmem:[#allocation26_spill] sm:$0xff] %v7441_v13  ;;  %v13806_v6 = vmov 1326507024   ;;  %v1590_v47 = vshll.u32 %v13803_v46, %v7469_v25 }
  0xb9   : > { %v7413_v54 = vadd.f32 %v417_v14, %v7360_v36  ;;  %v7437_v10 = vadd.f32 %v464_v15, %v7360_v36  ;;  %v7445_v14 = vshll.u32 %v13530_v61, %v7404_v41  ;;  %v13540_v36 = vmov 1326507024   ;;  %13787 = vst [vmem:[#allocation31_spill] sm:$0xff] %v7462_v21 }
  0xba   : > { %v7457_v15 = vshrl.u32 %v13540_v36, %v7416_v55  ;;  %13789 = vst [vmem:[#allocation33_spill] sm:$0xff] %v7466_v24  ;;  %v7473_v27 = vshrl.u32 %v13540_v36, %v7429_v2  ;;  %v1729_v28 = vadd.s32 1, %v7035_v8  ;;  %v1884_v50 = vadd.s32 1, %v7038_v19 }
  0xbb   : > { %13774 = vst [vmem:[#allocation18_spill] sm:$0xff] %v7413_v54  ;;  %v2032_v17 = vand.u32 2139095040, %v7413_v54  ;;  %v2187_v29 = vand.u32 2139095040, %v7437_v10  ;;  %v7506_v8 = vshrl.u32 %v13540_v36, %v7448_v16  ;;  %v1435_v2 = vshll.u32 %v13803_v46, %v7466_v24 }
  0xbc   : > { %13781 = vst [vmem:[#allocation25_spill] sm:$0xff] %v7437_v10  ;;  %vm1730_vm7 = vcmp.gt.s32.totalorder %v1729_v28, 0  ;;  %vm1885_vm8 = vcmp.gt.s32.totalorder %v1884_v50, 0 }
  0xbd   : > { %13783 = vst [vmem:[#allocation27_spill] sm:$0xff] %v7445_v14  ;;  %v2033_v35 = vshrl.u32 %v2032_v17, 23  ;;  %v2188_v17 = vshrl.u32 %v2187_v29, 23  ;;  %v13805_v29 = vmov 920167782  }
  0xbe   : > { %13786 = vst [vmem:[#allocation30_spill] sm:$0xff] %v7457_v15  ;;  %v7532_v52 = vshll.u32 %v13805_v29, %v7466_v24 }
  0xbf   : > { %13790 = vst [vmem:[#allocation34_spill] sm:$0xff] %v7469_v25  ;;  %v7041_v61 = vadd.s32 4294967169, %v2033_v35  ;;  %v1731_v35 = vsel %vm1730_vm7, %v1729_v28, 0  ;;  %v7543_v28 = vshll.u32 %v13805_v29, %v7469_v25 }
  0xc0   : > { %v420_v33 = vpop.f32.mrf.mxu0  ;;  %v467_v34 = vpop.f32.mrf.mxu1  ;;  %13791 = vst [vmem:[#allocation35_spill] sm:$0xff] %v7473_v27  ;;  %v1886_v27 = vsel %vm1885_vm8, %v1884_v50, 0  ;;  %v7545_v55 = vand.u32 31, %v1731_v35 }
  0xc1   : > { %v7432_v5 = vadd.f32 %v420_v33, %v7368_v43  ;;  %v7477_v30 = vadd.f32 %v467_v34, %v7368_v43  ;;  %13793 = vst [vmem:[#allocation37_spill] sm:$0xff] %v7479_v31  ;;  %v7483_v33 = vshrl.u32 %v1266_v4, 5  ;;  %v7492_v43 = vsub.s32 32, %v7464_v22 }
  0xc2   : > { %13795 = vst [vmem:[#allocation39_spill] sm:$0xff] %v7489_v45  ;;  %v7496_v34 = vshll.u32 %v13532_v56, %v7464_v22  ;;  %v7502_v4 = vsub.s32 32, %v7469_v25  ;;  %v2039_v14 = vadd.s32 1, %v7041_v61  ;;  %v7559_v13 = vand.u32 31, %v1886_v27 }
  0xc3   : > { %13780 = vst [vmem:[#allocation24_spill] sm:$0xff] %v7432_v5  ;;  %v2342_v20 = vand.u32 2139095040, %v7432_v5  ;;  %v2497_v19 = vand.u32 2139095040, %v7477_v30  ;;  %v7563_v18 = vshrl.u32 %v1886_v27, 5 }
  0xc4   : > { %13792 = vst [vmem:[#allocation36_spill] sm:$0xff] %v7477_v30  ;;  %vm2040_vm9 = vcmp.gt.s32.totalorder %v2039_v14, 0  ;;  %v7581_v50 = vsub.s32 32, %v7559_v13 }
  0xc5   : > { %13794 = vst [vmem:[#allocation38_spill] sm:$0xff] %v7483_v33  ;;  %v2343_v60 = vshrl.u32 %v2342_v20, 23  ;;  %v7509_v20 = vor.u32 %v1126_v32, %v1125_v39  ;;  %v1436_v32 = vshrl.u32 %v13805_v29, %v7499_v44  ;;  %v7525_v39 = vshrl.u32 %v13806_v6, %v7499_v44 }
  0xc6   : > { %13796 = vst [vmem:[#allocation40_spill] sm:$0xff] %v7492_v43  ;;  %v7609_v51 = vshrl.u32 %v13805_v29, %v7581_v50 }
  0xc7   : > { %13797 = vst [vmem:[#allocation41_spill] sm:$0xff] %v7496_v34  ;;  %v7047_v36 = vadd.s32 4294967169, %v2343_v60  ;;  %v2498_v60 = vshrl.u32 %v2497_v19, 23  ;;  %v7548_v21 = vor.u32 %v1436_v32, %v1435_v2  ;;  %v7553_v19 = vshrl.u32 %v7434_v7, 5 }
  0xc8   : > { %v423_v11 = vpop.f32.mrf.mxu0  ;;  %v470_v12 = vpop.f32.mrf.mxu1  ;;  %13798 = vst [vmem:[#allocation42_spill] sm:$0xff] %v7499_v44  ;;  %v7566_v32 = vsub.s32 32, %v7545_v55 }
  0xc9   : > { %13799 = vst [vmem:[#allocation43_spill] sm:$0xff] %v7502_v4  ;;  %v7514_v56 = vadd.f32 %v423_v11, %v7364_v38  ;;  %v7519_v41 = vadd.f32 %v470_v12, %v7364_v38  ;;  %v1591_v11 = vshrl.u32 %v13805_v29, %v7502_v4  ;;  %v7536_v38 = vshrl.u32 %v13806_v6, %v7502_v4 }
  0xca   : > { %13800 = vst [vmem:[#allocation44_spill] sm:$0xff] %v7506_v8  ;;  %v7044_v12 = vadd.s32 4294967169, %v2188_v17  ;;  %v2349_v40 = vadd.s32 1, %v7047_v36  ;;  %v7050_v62 = vadd.s32 4294967169, %v2498_v60  ;;  %v7561_v36 = vshrl.u32 %v1731_v35, 5 }
  0xcb   : > { %13801 = vst [vmem:[#allocation45_spill] sm:$0xff] %v7509_v20  ;;  %v2652_v59 = vand.u32 2139095040, %v7514_v56  ;;  %v2807_v49 = vand.u32 2139095040, %v7519_v41  ;;  %v7555_v61 = vor.u32 %v1591_v11, %v1590_v47  ;;  %v1745_v47 = vshll.u32 %v13803_v46, %v7545_v55 }
  0xcc   : > { %13802 = vst [vmem:[#allocation46_spill] sm:$0xff] %v7511_v1  ;;  %v2194_v15 = vadd.s32 1, %v7044_v12  ;;  %vm2350_vm10 = vcmp.gt.s32.totalorder %v2349_v40, 0  ;;  %v7572_v11 = vshll.u32 %v13805_v29, %v7545_v55  ;;  %v2041_v17 = vsel %vm2040_vm9, %v2039_v14, 0 }
  0xcd   : > { %13804 = vst [vmem:[#allocation47_spill] sm:$0xff] %v7519_v41  ;;  %v2653_v2 = vshrl.u32 %v2652_v59, 23  ;;  %v2808_v7 = vshrl.u32 %v2807_v49, 23  ;;  %v2504_v57 = vadd.s32 1, %v7050_v62  ;;  %v2351_v49 = vsel %vm2350_vm10, %v2349_v40, 0 }
  0xce   : > { %13807 = vst [vmem:[#allocation48_spill] sm:$0xff] %v7525_v39  ;;  %vm2195_vm11 = vcmp.gt.s32.totalorder %v2194_v15, 0  ;;  %v1746_v62 = vshrl.u32 %v13805_v29, %v7566_v32  ;;  %v7597_v40 = vand.u32 31, %v2041_v17  ;;  %v7599_v34 = vand.u32 31, %v2351_v49 }
  0xcf   : > { %13808 = vst [vmem:[#allocation49_spill] sm:$0xff] %v7532_v52  ;;  %v7053_v12 = vadd.s32 4294967169, %v2653_v2  ;;  %vm2505_vm13 = vcmp.gt.s32.totalorder %v2504_v57, 0  ;;  %v7624_v8 = vshrl.u32 %v2041_v17, 5  ;;  %v7659_v0 = vshrl.u32 %v2351_v49, 5 }
  0xd0   : > { %v426_v9 = vpop.f32.mrf.mxu0  ;;  %v473_v3 = vpop.f32.mrf.mxu1  ;;  %13809 = vst [vmem:[#allocation50_spill] sm:$0xff] %v7536_v38  ;;  %v7622_v43 = vor.u32 %v1746_v62, %v1745_v47  ;;  %v7629_v31 = vsub.s32 32, %v7599_v34  ;;  %v7676_v49 = vshll.u32 %v13805_v29, %v7599_v34 }
  0xd1   : > { %13810 = vst [vmem:[#allocation51_spill] sm:$0xff] %v7543_v28  ;;  %v7575_v35 = vadd.f32 %v426_v9, %v7366_v42  ;;  %v7578_v27 = vadd.f32 %v473_v3, %v7366_v42  ;;  %v2659_v48 = vadd.s32 1, %v7053_v12  ;;  %v7587_v9 = vshll.u32 %v13805_v29, %v7559_v13 }
  0xd2   : > { %13811 = vst [vmem:[#allocation52_spill] sm:$0xff] %v7545_v55  ;;  %v7056_v42 = vadd.s32 4294967169, %v2808_v7  ;;  %v2196_v12 = vsel %vm2195_vm11, %v2194_v15, 0  ;;  %v7603_v7 = vshrl.u32 %v13806_v6, %v7566_v32  ;;  %v7669_v63 = vshrl.u32 %v13806_v6, %v7629_v31 }
  0xd3   : > { %13812 = vst [vmem:[#allocation53_spill] sm:$0xff] %v7548_v21  ;;  %v2962_v58 = vand.u32 2139095040, %v7575_v35  ;;  %v3117_v2 = vand.u32 2139095040, %v7578_v27  ;;  %vm2660_vm12 = vcmp.gt.s32.totalorder %v2659_v48, 0  ;;  %v7618_v20 = vand.u32 31, %v2196_v12 }
  0xd4   : > { %13813 = vst [vmem:[#allocation54_spill] sm:$0xff] %v7553_v19  ;;  %v2661_v16 = vsel %vm2660_vm12, %v2659_v48, 0  ;;  %v2814_v15 = vadd.s32 1, %v7056_v42  ;;  %v7616_v48 = vsub.s32 32, %v7597_v40  ;;  %v7626_v45 = vshrl.u32 %v2196_v12, 5 }
  0xd5   : > { %13814 = vst [vmem:[#allocation55_spill] sm:$0xff] %v7555_v61  ;;  %v2963_v14 = vshrl.u32 %v2962_v58, 23  ;;  %v7613_v58 = vshrl.u32 %v13806_v6, %v7581_v50  ;;  %v7620_v22 = vand.u32 31, %v2661_v16  ;;  %v7633_v42 = vshll.u32 %v13803_v46, %v7597_v40 }
  0xd6   : > { %13815 = vst [vmem:[#allocation56_spill] sm:$0xff] %v7559_v13  ;;  %vm2815_vm14 = vcmp.gt.s32.totalorder %v2814_v15, 0  ;;  %v7643_v62 = vshrl.u32 %v13805_v29, %v7616_v48  ;;  %v7646_v12 = vsub.s32 32, %v7618_v20  ;;  %v2365_v19 = vshll.u32 %v13803_v46, %v7599_v34 }
  0xd7   : > { %13816 = vst [vmem:[#allocation57_spill] sm:$0xff] %v7561_v36  ;;  %v7059_v53 = vadd.s32 4294967169, %v2963_v14  ;;  %v2816_v38 = vsel %vm2815_vm14, %v2814_v15, 0  ;;  %v2675_v39 = vshll.u32 %v13803_v46, %v7620_v22 }
  0xd8   : > { %13817 = vst [vmem:[#allocation58_spill] sm:$0xff] %v7563_v18  ;;  %v429_v59 = vpop.f32.mrf.mxu0  ;;  %v476_v60 = vpop.f32.mrf.mxu1 }
  0xd9   : > { %13818 = vst [vmem:[#allocation59_spill] sm:$0xff] %v7566_v32  ;;  %v7590_v3 = vadd.f32 %v429_v59, %v7362_v37  ;;  %v7593_v33 = vadd.f32 %v476_v60, %v7362_v37  ;;  %v3118_v59 = vshrl.u32 %v3117_v2, 23  ;;  %v2506_v2 = vsel %vm2505_vm13, %v2504_v57, 0 }
  0xda   : > { %13819 = vst [vmem:[#allocation60_spill] sm:$0xff] %v7572_v11  ;;  %v7637_v57 = vshll.u32 %v13805_v29, %v7597_v40  ;;  %v7639_v47 = vand.u32 31, %v2506_v2  ;;  %v2969_v17 = vadd.s32 1, %v7059_v53  ;;  %v2366_v53 = vshrl.u32 %v13805_v29, %v7629_v31 }
  0xdb   : > { %13820 = vst [vmem:[#allocation61_spill] sm:$0xff] %v7581_v50  ;;  %v3272_v37 = vand.u32 2139095040, %v7590_v3  ;;  %v3427_v60 = vand.u32 2139095040, %v7593_v33  ;;  %v7062_v14 = vadd.s32 4294967169, %v3118_v59  ;;  %v7650_v59 = vshll.u32 %v13803_v46, %v7618_v20 }
  0xdc   : > { %13821 = vst [vmem:[#allocation62_spill] sm:$0xff] %v7587_v9  ;;  %v7663_v28 = vshrl.u32 %v2506_v2, 5  ;;  %v7672_v52 = vsub.s32 32, %v7639_v47  ;;  %vm2970_vm15 = vcmp.gt.s32.totalorder %v2969_v17, 0  ;;  %v7680_v15 = vshll.u32 %v13803_v46, %v7639_v47 }
  0xdd   : > { %13822 = vst [vmem:[#allocation63_spill] sm:$0xff] %v7597_v40  ;;  %v3273_v4 = vshrl.u32 %v3272_v37, 23  ;;  %v3428_v25 = vshrl.u32 %v3427_v60, 23  ;;  %v7653_v37 = vsub.s32 32, %v7620_v22  ;;  %v7657_v60 = vshrl.u32 %v13806_v6, %v7616_v48 }
  0xde   : > { %13823 = vst [vmem:[#allocation64_spill] sm:$0xff] %v7599_v34  ;;  %v3124_v61 = vadd.s32 1, %v7062_v14  ;;  %v7688_v2 = vor.u32 %v2366_v53, %v2365_v19  ;;  %v7690_v14 = vshrl.u32 %v2661_v16, 5  ;;  %v7694_v50 = vand.u32 31, %v2816_v38 }
  0xdf   : > { %13824 = vst [vmem:[#allocation65_spill] sm:$0xff] %v7603_v7  ;;  %v7065_v24 = vadd.s32 4294967169, %v3273_v4  ;;  %v7068_v44 = vadd.s32 4294967169, %v3428_v25  ;;  %v7684_v25 = vshll.u32 %v13805_v29, %v7639_v47  ;;  %v2676_v4 = vshrl.u32 %v13805_v29, %v7653_v37 }
  0xe0   : > { %13825 = vst [vmem:[#allocation66_spill] sm:$0xff] %v7609_v51  ;;  %v2971_v26 = vsel %vm2970_vm15, %v2969_v17, 0  ;;  %vm3125_vm0 = vcmp.gt.s32.totalorder %v3124_v61, 0  ;;  %v7700_v13 = vshrl.u32 %v13805_v29, %v7672_v52  ;;  %v7704_v16 = vshrl.u32 %v13806_v6, %v7672_v52 }
  0xe1   : > { %13826 = vst [vmem:[#allocation67_spill] sm:$0xff] %v7613_v58  ;;  %v3279_v51 = vadd.s32 1, %v7065_v24  ;;  %v3434_v18 = vadd.s32 1, %v7068_v44  ;;  %v7706_v19 = vshrl.u32 %v2816_v38, 5  ;;  %v7708_v53 = vor.u32 %v2676_v4, %v2675_v39 }
  0xe2   : > { %13827 = vst [vmem:[#allocation68_spill] sm:$0xff] %v7616_v48  ;;  %v7712_v17 = vshll.u32 %v13805_v29, %v7620_v22  ;;  %v7714_v24 = vand.u32 31, %v2971_v26  ;;  %v3126_v44 = vsel %vm3125_vm0, %v3124_v61, 0  ;;  %vm2684_vm3 = vcmp.lt.s32.totalorder %v7690_v14, 4 }
  0xe3   : > { %13828 = vst [vmem:[#allocation69_spill] sm:$0xff] %v7618_v20  ;;  %vm3280_vm1 = vcmp.gt.s32.totalorder %v3279_v51, 0  ;;  %vm3435_vm2 = vcmp.gt.s32.totalorder %v3434_v18, 0  ;;  %v7718_v9 = vsub.s32 32, %v7694_v50  ;;  %v7723_v4 = vshrl.u32 %v13806_v6, %v7653_v37 }
  0xe4   : > { %13829 = vst [vmem:[#allocation70_spill] sm:$0xff] %v7622_v43  ;;  %v3281_v21 = vsel %vm3280_vm1, %v3279_v51, 0  ;;  %v3436_v58 = vsel %vm3435_vm2, %v3434_v18, 0  ;;  %v7727_v1 = vshll.u32 %v13803_v46, %v7694_v50  ;;  %v7736_v18 = vsel %vm2684_vm3, %v7708_v53, 920167782 }
  0xe5   : > { %13830 = vst [vmem:[#allocation71_spill] sm:$0xff] %v7624_v8  ;;  %v3283_v38 = vand.u32 31, %v3281_v21  ;;  %v7729_v32 = vshrl.u32 %v3281_v21, 5  ;;  %v7731_v51 = vand.u32 31, %v3436_v58  ;;  %v7738_v61 = vshrl.u32 %v2971_v26, 5 }
  0xe6   : > { %13831 = vst [vmem:[#allocation72_spill] sm:$0xff] %v7626_v45  ;;  %v7740_v39 = vshrl.u32 %v3126_v44, 5  ;;  %v7743_v23 = vsub.s32 32, %v7714_v24  ;;  %v7745_v43 = vand.u32 31, %v3126_v44  ;;  %v13854_v26 = vand.u32 2147483647, %v7590_v3 }
  0xe7   : > { %13832 = vst [vmem:[#allocation73_spill] sm:$0xff] %v7629_v31  ;;  %v3284_v55 = vsub.s32 32, %v3283_v38  ;;  %v3295_v21 = vshll.u32 %v13803_v46, %v3283_v38  ;;  %v3298_v36 = vshll.u32 %v13805_v29, %v3283_v38  ;;  %v7752_v11 = vsub.s32 32, %v7731_v51 }
  0xe8   : > { %13833 = vst [vmem:[#allocation74_spill] sm:$0xff] %v7633_v42  ;;  %v7758_v45 = vshll.u32 %v13803_v46, %v7714_v24  ;;  %vm3304_vm4 = vcmp.lt.s32.totalorder %v7729_v32, 4  ;;  %v7761_v44 = vshrl.u32 %v3436_v58, 5  ;;  %v13619_v40 = vmov 683565275  }
  0xe9   : > { %13834 = vst [vmem:[#allocation75_spill] sm:$0xff] %v7637_v57  ;;  %v3296_v10 = vshrl.u32 %v13805_v29, %v3284_v55  ;;  %v3299_v7 = vshrl.u32 %v13806_v6, %v3284_v55  ;;  %v3286_v48 = vshll.u32 %v13619_v40, %v3283_v38  ;;  %v13631_v8 = vmov 2131351028  }
  0xea   : > { %13835 = vst [vmem:[#allocation76_spill] sm:$0xff] %v7639_v47  ;;  %v3290_v58 = vshrl.u32 %v13631_v8, %v3284_v55  ;;  %v3292_v47 = vshll.u32 %v13631_v8, %v3283_v38  ;;  %vm3301_vm5 = vcmp.lt.s32.totalorder %v7729_v32, 1  ;;  %vm3303_vm6 = vcmp.lt.s32.totalorder %v7729_v32, 3 }
  0xeb   : > { %13836 = vst [vmem:[#allocation77_spill] sm:$0xff] %v7643_v62  ;;  %v3297_v54 = vor.u32 %v3296_v10, %v3295_v21  ;;  %v3300_v20 = vor.u32 %v3299_v7, %v3298_v36  ;;  %v3453_v62 = vshll.u32 %v13805_v29, %v7731_v51  ;;  %v3451_v10 = vshrl.u32 %v13805_v29, %v7752_v11 }
  0xec   : > { %13837 = vst [vmem:[#allocation78_spill] sm:$0xff] %v7646_v12  ;;  %v3454_v36 = vshrl.u32 %v13806_v6, %v7752_v11  ;;  %vm3459_vm7 = vcmp.lt.s32.totalorder %v7761_v44, 4  ;;  %vm3302_vm8 = vcmp.lt.s32.totalorder %v7729_v32, 2  ;;  %v13643_v34 = vand.u32 2147483647, %v7593_v33 }
  0xed   : > { %13838 = vst [vmem:[#allocation79_spill] sm:$0xff] %v7650_v59  ;;  %v3276_v59 = vand.u32 8388607, %v13854_v26  ;;  %v3450_v26 = vshll.u32 %v13803_v46, %v7731_v51  ;;  %v3314_v40 = vsel %vm3304_vm4, %v3300_v20, 1326507024  ;;  %vm3456_vm13 = vcmp.lt.s32.totalorder %v7761_v44, 1 }
  0xee   : > { %13839 = vst [vmem:[#allocation80_spill] sm:$0xff] %v7657_v60  ;;  %v13625_v60 = vmov 2475754826   ;;  %v3310_v30 = vsel %vm3304_vm4, %v3297_v54, 920167782  ;;  %vm3458_vm14 = vcmp.lt.s32.totalorder %v7761_v44, 3 }
  0xef   : > { %13840 = vst [vmem:[#allocation81_spill] sm:$0xff] %v7659_v0  ;;  %v3277_v12 = vor.u32 8388608, %v3276_v59  ;;  %v3287_v57 = vshrl.u32 %v13625_v60, %v3284_v55  ;;  %v3289_v42 = vshll.u32 %v13625_v60, %v3283_v38  ;;  %v13855_v59 = vmov 683565275  }
  0xf0   : > { %13841 = vst [vmem:[#allocation82_spill] sm:$0xff] %v7663_v28  ;;  %v3285_v21 = vshrl.u32 %v13855_v59, %v3284_v55  ;;  %v3293_v60 = vshrl.u32 %v13803_v46, %v3284_v55  ;;  %v3455_v38 = vor.u32 %v3454_v36, %v3453_v62  ;;  %vm3457_vm15 = vcmp.lt.s32.totalorder %v7761_v44, 2 }
  0xf1   : > { %13842 = vst [vmem:[#allocation83_spill] sm:$0xff] %v7669_v63  ;;  %v3288_v7 = vor.u32 %v3287_v57, %v3286_v48  ;;  %v7784_v20 = vshll.u32 %v3277_v12, 8  ;;  %v7789_v57 = vor.u32 %v3451_v10, %v3450_v26  ;;  %vm2994_vm1 = vcmp.lt.s32.totalorder %v7738_v61, 4 }
  0xf2   : > { %13843 = vst [vmem:[#allocation84_spill] sm:$0xff] %v7672_v52  ;;  %v3291_v52 = vor.u32 %v3290_v58, %v3289_v42  ;;  %v3294_v31 = vor.u32 %v3293_v60, %v3292_v47  ;;  %v3315_v42 = vsel %vm3303_vm6, %v3297_v54, %v3314_v40 }
  0xf3   : > { %13844 = vst [vmem:[#allocation85_spill] sm:$0xff] %v7676_v49  ;;  %v3305_v55 = vsel %vm3301_vm5, %v3285_v21, %v3288_v7  ;;  %v3318_v40 = vand.u32 65535, %v7784_v20  ;;  %v3319_v62 = vshrl.u32 %v7784_v20, 16  ;;  %v3469_v21 = vsel %vm3459_vm7, %v3455_v38, 1326507024 }
  0xf4   : > { %13845 = vst [vmem:[#allocation86_spill] sm:$0xff] %v7680_v15  ;;  %v3309_v48 = vsel %vm3301_vm5, %v3288_v7, %v3291_v52  ;;  %v3306_v58 = vsel %vm3304_vm4, %v3294_v31, 2102212464  ;;  %v3311_v12 = vsel %vm3303_vm6, %v3294_v31, %v3310_v30  ;;  %v3313_v8 = vsel %vm3301_vm5, %v3291_v52, %v3294_v31 }
  0xf5   : > { %13846 = vst [vmem:[#allocation87_spill] sm:$0xff] %v7684_v25  ;;  %v3312_v47 = vsel %vm3302_vm8, %v3309_v48, %v3311_v12  ;;  %v3316_v54 = vsel %vm3302_vm8, %v3313_v8, %v3315_v42  ;;  %v3307_v60 = vsel %vm3303_vm6, %v3291_v52, %v3306_v58  ;;  %v7807_v30 = vshll.u32 %v13805_v29, %v7714_v24 }
  0xf6   : > { %13847 = vst [vmem:[#allocation88_spill] sm:$0xff] %v7688_v2  ;;  %v3320_v26 = vand.u32 65535, %v3316_v54  ;;  %v3321_v10 = vshrl.u32 %v3316_v54, 16  ;;  %v3342_v36 = vand.u32 65535, %v3312_v47  ;;  %v7810_v31 = vsub.s32 32, %v7745_v43 }
  0xf7   : > { %13848 = vst [vmem:[#allocation89_spill] sm:$0xff] %v7694_v50  ;;  %v3465_v8 = vsel %vm3459_vm7, %v7789_v57, 920167782  ;;  %v3343_v7 = vshrl.u32 %v3312_v47, 16  ;;  %v3431_v42 = vand.u32 8388607, %v13643_v34  ;;  %v7821_v58 = vsel %vm3302_vm8, %v3305_v55, %v3307_v60 }
  0xf8   : > { %13849 = vst [vmem:[#allocation90_spill] sm:$0xff] %v7700_v13  ;;  %v3323_v48 = vmul.u32 %v3321_v10, %v3318_v40  ;;  %v3324_v52 = vmul.u32 %v3320_v26, %v3319_v62  ;;  %v3322_v12 = vmul.u32 %v3320_v26, %v3318_v40  ;;  %v3346_v28 = vmul.u32 %v3342_v36, %v3319_v62 }
  0xf9   : > { %13850 = vst [vmem:[#allocation91_spill] sm:$0xff] %v7704_v16  ;;  %v3345_v54 = vmul.u32 %v3343_v7, %v3318_v40  ;;  %v3325_v5 = vmul.u32 %v3321_v10, %v3319_v62  ;;  %v3344_v25 = vmul.u32 %v3342_v36, %v3318_v40  ;;  %v3347_v13 = vmul.u32 %v3343_v7, %v3319_v62 }
  0xfa   : > { %13851 = vst [vmem:[#allocation92_spill] sm:$0xff] %v7706_v19  ;;  %v3326_v16 = vshll.u32 %v3323_v48, 16  ;;  %v3327_v47 = vshrl.u32 %v3323_v48, 16  ;;  %v3328_v15 = vshll.u32 %v3324_v52, 16  ;;  %v3329_v49 = vshrl.u32 %v3324_v52, 16 }
  0xfb   : > { %13852 = vst [vmem:[#allocation93_spill] sm:$0xff] %v7718_v9  ;;  %v3348_v38 = vshll.u32 %v3345_v54, 16  ;;  %v3350_v2 = vshll.u32 %v3346_v28, 16  ;;  %v13856_v34 = vmov 0   ;;  %v13857_v55 = vmov 2475754826  }
  0xfc   : > { %13853 = vst [vmem:[#allocation94_spill] sm:$0xff] %v7727_v1  ;;  %vm3330_vm9 = vc.u32 %v3322_v12, %v3326_v16  ;;  %v3332_v63 = vadd.s32 %v3326_v16, %v3322_v12  ;;  %v3432_v1 = vor.u32 8388608, %v3431_v42  ;;  %v3442_v60 = vshrl.u32 %v13857_v55, %v7752_v11 }
  0xfd   : > { %v3331_v0 = vsel %vm3330_vm9, 1, %v13856_v34  ;;  %vm3352_vm10 = vc.u32 %v3344_v25, %v3348_v38  ;;  %v3354_v32 = vadd.s32 %v3348_v38, %v3344_v25  ;;  %v3441_v62 = vshll.u32 %v13855_v59, %v7731_v51 }
  0xfe   : > { %v3333_v26 = vadd.s32 %v3331_v0, %v3325_v5  ;;  %vm3334_vm11 = vc.u32 %v3332_v63, %v3328_v15  ;;  %v3353_v40 = vsel %vm3352_vm10, 1, %v13856_v34  ;;  %v3444_v16 = vshll.u32 %v13857_v55, %v7731_v51 }
  0xff   : > { %v3335_v10 = vsel %vm3334_vm11, 1, %v13856_v34  ;;  %v3355_v36 = vadd.s32 %v3353_v40, %v3347_v13  ;;  %vm3356_vm12 = vc.u32 %v3354_v32, %v3350_v2  ;;  %v7833_v48 = vor.u32 %v3442_v60, %v3441_v62 }
 0x100   : > { %v3337_v7 = vadd.s32 %v3335_v10, %v3333_v26  ;;  %v3357_v25 = vsel %vm3356_vm12, 1, %v13856_v34  ;;  %v13858_v0 = vmov 2131351028   ;;  %v3349_v5 = vshrl.u32 %v3345_v54, 16 }
 0x101   : > { %v3445_v63 = vshrl.u32 %v13858_v0, %v7752_v11  ;;  %v3359_v15 = vadd.s32 %v3357_v25, %v3355_v36  ;;  %v3447_v52 = vshll.u32 %v13858_v0, %v7731_v51  ;;  %v3448_v13 = vshrl.u32 %v13803_v46, %v7752_v11 }
 0x102   : > { %v3338_v42 = vadd.s32 %v3337_v7, %v3327_v47  ;;  %v3351_v12 = vshrl.u32 %v3346_v28, 16  ;;  %v7841_v38 = vadd.s32 %v3354_v32, %v3350_v2  ;;  %v3470_v28 = vsel %vm3458_vm14, %v7789_v57, %v3469_v21 }
 0x103   : > { %v7843_v26 = vor.u32 %v3445_v63, %v3444_v16  ;;  %v3360_v40 = vadd.s32 %v3359_v15, %v3349_v5  ;;  %v3449_v60 = vor.u32 %v3448_v13, %v3447_v52  ;;  %v7856_v2 = vshll.u32 %v3432_v1, 8 }
 0x104   : > { %v7847_v54 = vadd.s32 %v3338_v42, %v3329_v49  ;;  %v2986_v62 = vshrl.u32 %v13805_v29, %v7743_v23  ;;  %v7868_v10 = vshrl.u32 %v13806_v6, %v7743_v23  ;;  %v3362_v57 = vmul.u32 %v7784_v20, %v7821_v58 }
 0x105   : > { %v3464_v51 = vsel %vm3456_vm13, %v7833_v48, %v7843_v26  ;;  %v3361_v47 = vadd.s32 %v3360_v40, %v3351_v12  ;;  %v3466_v32 = vsel %vm3458_vm14, %v3449_v60, %v3465_v8  ;;  %v3468_v49 = vsel %vm3456_vm13, %v7843_v26, %v3449_v60 }
 0x106   : > { %vm3364_vm0 = vc.u32 %v7847_v54, %v7841_v38  ;;  %v3467_v1 = vsel %vm3457_vm15, %v3464_v51, %v3466_v32  ;;  %v3471_v21 = vsel %vm3457_vm15, %v3468_v49, %v3470_v28  ;;  %v3473_v36 = vand.u32 65535, %v7856_v2 }
 0x107   : > { %v3365_v8 = vadd.s32 1, %v3361_v47  ;;  %v3474_v16 = vshrl.u32 %v7856_v2, 16  ;;  %v3475_v7 = vand.u32 65535, %v3471_v21  ;;  %v3476_v25 = vshrl.u32 %v3471_v21, 16 }
 0x108   : > { %v3497_v63 = vand.u32 65535, %v3467_v1  ;;  %v7882_v5 = vshll.u32 %v13803_v46, %v7745_v43  ;;  %v7886_v15 = vshrl.u32 %v13806_v6, %v7810_v31  ;;  %v3498_v58 = vshrl.u32 %v3467_v1, 16 }
 0x109   : > { %v3366_v20 = vsel %vm3364_vm0, %v3365_v8, %v3361_v47  ;;  %v7891_v52 = vshll.u32 %v13805_v29, %v7745_v43  ;;  %v3478_v42 = vmul.u32 %v3476_v25, %v3473_v36  ;;  %v3479_v12 = vmul.u32 %v3475_v7, %v3474_v16 }
 0x10a   : > { %v3367_v13 = vadd.s32 %v3366_v20, %v3362_v57  ;;  %v7894_v40 = vor.u32 %v2986_v62, %v7758_v45  ;;  %v7898_v51 = vshrl.u32 %v13805_v29, %v7810_v31  ;;  %v3500_v28 = vmul.u32 %v3498_v58, %v3473_v36 }
 0x10b   : > { %v3501_v32 = vmul.u32 %v3497_v63, %v3474_v16  ;;  %v2990_v47 = vor.u32 %v7868_v10, %v7807_v30  ;;  %v3477_v1 = vmul.u32 %v3475_v7, %v3473_v36  ;;  %v3481_v8 = vshll.u32 %v3478_v42, 16 }
 0x10c   : > { %v3368_v49 = vadd.s32 536870912, %v3367_v13  ;;  %v3145_v57 = vor.u32 %v7886_v15, %v7891_v52  ;;  %v3480_v21 = vmul.u32 %v3476_v25, %v3474_v16  ;;  %v3499_v20 = vmul.u32 %v3497_v63, %v3473_v36 }
 0x10d   : > { %v3503_v41 = vshll.u32 %v3500_v28, 16  ;;  %v3483_v62 = vshll.u32 %v3479_v12, 16  ;;  %vm3485_vm2 = vc.u32 %v3477_v1, %v3481_v8  ;;  %v3487_v19 = vadd.s32 %v3481_v8, %v3477_v1 }
 0x10e   : > { %v3369_v45 = vshrl.u32 %v3368_v49, 30  ;;  %v3486_v6 = vsel %vm3485_vm2, 1, %v13856_v34  ;;  %v3505_v9 = vshll.u32 %v3501_v32, 16  ;;  %v3502_v10 = vmul.u32 %v3498_v58, %v3474_v16 }
 0x10f   : > { %vm3507_vm4 = vc.u32 %v3499_v20, %v3503_v41  ;;  %v3509_v29 = vadd.s32 %v3503_v41, %v3499_v20  ;;  %v3488_v30 = vadd.s32 %v3486_v6, %v3480_v21  ;;  %vm3489_vm5 = vc.u32 %v3487_v19, %v3483_v62 }
 0x110   : > { %v3370_v50 = vshll.u32 %v3369_v45, 30  ;;  %v3461_v7 = vsel %vm3459_vm7, %v3449_v60, 2102212464  ;;  %v3490_v25 = vsel %vm3489_vm5, 1, %v13856_v34  ;;  %v3508_v36 = vsel %vm3507_vm4, 1, %v13856_v34 }
 0x111   : > { %vm3511_vm6 = vc.u32 %v3509_v29, %v3505_v9  ;;  %v3482_v49 = vshrl.u32 %v3478_v42, 16  ;;  %v3492_v1 = vadd.s32 %v3490_v25, %v3488_v30  ;;  %v3510_v8 = vadd.s32 %v3508_v36, %v3502_v10 }
 0x112   : > { %v7909_v63 = vsub.s32 %v3367_v13, %v3370_v50  ;;  %v3000_v41 = vsel %vm2994_vm1, %v7894_v40, 920167782  ;;  %vm3271_vm8 = vcmp.lt.s32.totalorder %v7590_v3, 0  ;;  %v3440_v6 = vshrl.u32 %v13855_v59, %v7752_v11 }
 0x113   : > { %v3512_v19 = vsel %vm3511_vm6, 1, %v13856_v34  ;;  %v2959_v60 = vand.u32 2147483647, %v7575_v35  ;;  %v3484_v16 = vshrl.u32 %v3479_v12, 16  ;;  %v3493_v58 = vadd.s32 %v3492_v1, %v3482_v49 }
 0x114   : > { %vm3372_vm7 = vcmp.lt.s32.totalorder %v7909_v63, 0  ;;  %v3373_v50 = vsub.s32 0, %v7909_v63  ;;  %v3460_v13 = vsel %vm3456_vm13, %v3440_v6, %v7833_v48  ;;  %v3462_v42 = vsel %vm3458_vm14, %v7843_v26, %v3461_v7 }
 0x115   : > { %v3504_v21 = vshrl.u32 %v3500_v28, 16  ;;  %v3514_v11 = vadd.s32 %v3512_v19, %v3510_v8  ;;  %v3004_v20 = vsel %vm2994_vm1, %v2990_v47, 1326507024  ;;  %v3363_v62 = vadd.s32 %v7841_v38, %v7847_v54 }
 0x116   : > { %v3374_v30 = vsel %vm3372_vm7, %v3373_v50, %v7909_v63  ;;  %v7932_v12 = vadd.s32 %v3493_v58, %v3484_v16  ;;  %v3506_v25 = vshrl.u32 %v3501_v32, 16  ;;  %v2977_v48 = vshrl.u32 %v13857_v55, %v7743_v23 }
 0x117   : > { %v3375_v10 = vclz %v3374_v30  ;;  %v3515_v36 = vadd.s32 %v3514_v11, %v3504_v21  ;;  %v3393_v49 = vsub.s32 4, %v3369_v45  ;;  %v3463_v26 = vsel %vm3457_vm15, %v3460_v13, %v3462_v42 }
 0x118   : > { %v7938_v28 = vadd.s32 %v3509_v29, %v3505_v9  ;;  %v2966_v47 = vand.u32 8388607, %v2959_v60  ;;  %v13859_v38 = vand.u32 2147483647, %v7590_v3  ;;  %v2976_v1 = vshll.u32 %v13855_v59, %v7714_v24 }
 0x119   : > { %v7066_v32 = vadd.s32 4294967294, %v3375_v10  ;;  %v3516_v7 = vadd.s32 %v3515_v36, %v3506_v25  ;;  %v2979_v44 = vshll.u32 %v13857_v55, %v7714_v24  ;;  %v2980_v29 = vshrl.u32 %v13858_v0, %v7743_v23 }
 0x11a   : > { %vm7944_vm9 = vcmp.le.f32.partialorder %v13859_v38, 0.7853982  ;;  %vm3519_vm10 = vc.u32 %v7932_v12, %v7938_v28  ;;  %v2982_v9 = vshll.u32 %v13858_v0, %v7714_v24  ;;  %v2983_v8 = vshrl.u32 %v13803_v46, %v7743_v23 }
 0x11b   : > { %vm3149_vm11 = vcmp.lt.s32.totalorder %v7740_v39, 4  ;;  %vm7067_vm12 = vcmp.lt.s32.totalorder %v7066_v32, 0  ;;  %v3517_v6 = vmul.u32 %v7856_v2, %v3463_v26  ;;  %v3520_v19 = vadd.s32 1, %v3516_v7 }
 0x11c   : > { %v2978_v50 = vor.u32 %v2977_v48, %v2976_v1  ;;  %v3378_v16 = vsel %vm7067_vm12, 0, %v7066_v32  ;;  %v3394_v58 = vsel %vm3271_vm8, %v3393_v49, %v3369_v45  ;;  %v2981_v13 = vor.u32 %v2980_v29, %v2979_v44 }
 0x11d   : > { %v2984_v42 = vor.u32 %v2983_v8, %v2982_v9  ;;  %v3379_v21 = vsub.s32 32, %v3378_v16  ;;  %v3383_v11 = vsub.s32 4294967266, %v3378_v16  ;;  %v3521_v30 = vsel %vm3519_vm10, %v3520_v19, %v3516_v7 }
 0x11e   : > { %v2967_v24 = vor.u32 8388608, %v2966_v47  ;;  %v3522_v10 = vadd.s32 %v3521_v30, %v3517_v6  ;;  %vm2991_vm13 = vcmp.lt.s32.totalorder %v7738_v61, 1  ;;  %vm2992_vm14 = vcmp.lt.s32.totalorder %v7738_v61, 2 }
 0x11f   : > { %vm2993_vm15 = vcmp.lt.s32.totalorder %v7738_v61, 3  ;;  %v3380_v2 = vshll.u32 %v7909_v63, %v3378_v16  ;;  %v3381_v25 = vshrl.u32 %v3363_v62, %v3379_v21  ;;  %v3384_v36 = vadd.s32 127, %v3383_v11 }
 0x120   : > { %v2999_v45 = vsel %vm2991_vm13, %v2978_v50, %v2981_v13  ;;  %v3523_v48 = vadd.s32 536870912, %v3522_v10  ;;  %v3001_v49 = vsel %vm2993_vm15, %v2984_v42, %v3000_v41  ;;  %v3003_v26 = vsel %vm2991_vm13, %v2981_v13, %v2984_v42 }
 0x121   : > { %v3005_v47 = vsel %vm2993_vm15, %v7894_v40, %v3004_v20  ;;  %v3382_v38 = vor.u32 %v3381_v25, %v3380_v2  ;;  %v3385_v32 = vshll.u32 %v3384_v36, 23  ;;  %v7979_v62 = vshll.u32 %v2967_v24, 8 }
 0x122   : > { %v3006_v63 = vsel %vm2992_vm14, %v3003_v26, %v3005_v47  ;;  %v3396_v7 = vsel %vm7944_vm9, 0, %v3394_v58  ;;  %v7983_v1 = vshrl.u32 %v3523_v48, 30  ;;  %v3002_v9 = vsel %vm2992_vm14, %v2999_v45, %v3001_v49 }
 0x123   : > { %v3010_v41 = vand.u32 65535, %v3006_v63  ;;  %v3011_v44 = vshrl.u32 %v3006_v63, 16  ;;  %v3386_v29 = vor.u32 4788187, %v3385_v32  ;;  %v3008_v40 = vand.u32 65535, %v7979_v62 }
 0x124   : > { %v3009_v20 = vshrl.u32 %v7979_v62, 16  ;;  %v7991_v8 = vor.u32 %v7898_v51, %v7882_v5  ;;  %v7998_v6 = vsel %vm3149_vm11, %v3145_v57, 1326507024  ;;  %v3525_v19 = vshll.u32 %v7983_v1, 30 }
 0x125   : > { %v2975_v16 = vshrl.u32 %v13855_v59, %v7743_v23  ;;  %v3387_v58 = vand.u32 2147483647, %v3386_v29  ;;  %v3389_v21 = vcvt.s32.f32 %v3382_v38  ;;  %v3013_v11 = vmul.u32 %v3011_v44, %v3008_v40 }
 0x126   : > { %v8003_v30 = vmul.u32 %v3010_v41, %v3009_v20  ;;  %v3413_v24 = vadd.s32 3, %v3396_v7  ;;  %v8005_v5 = vsub.s32 %v3522_v10, %v3525_v19  ;;  %v3033_v52 = vshrl.u32 %v3002_v9, 16 }
 0x127   : > { %v2995_v15 = vsel %vm2991_vm13, %v2975_v16, %v2978_v50  ;;  %v3390_v51 = vmul.f32 %v3389_v21, %v3387_v58  ;;  %v2996_v57 = vsel %vm2994_vm1, %v2984_v42, 2102212464  ;;  %v3012_v2 = vmul.u32 %v3010_v41, %v3008_v40 }
 0x128   : > { %v3016_v25 = vshll.u32 %v3013_v11, 16  ;;  %vm3527_vm0 = vcmp.lt.s32.totalorder %v8005_v5, 0  ;;  %v3528_v23 = vsub.s32 0, %v8005_v5  ;;  %v3015_v36 = vmul.u32 %v3011_v44, %v3009_v20 }
 0x129   : > { %v3032_v45 = vand.u32 65535, %v3002_v9  ;;  %v3391_v48 = vxor.u32 2147483648, %v3390_v51  ;;  %v3018_v10 = vshll.u32 %v8003_v30, 16  ;;  %v2997_v26 = vsel %vm2993_vm15, %v2981_v13, %v2996_v57 }
 0x12a   : > { %vm3020_vm2 = vc.u32 %v3012_v2, %v3016_v25  ;;  %v3022_v49 = vadd.s32 %v3016_v25, %v3012_v2  ;;  %v3529_v50 = vsel %vm3527_vm0, %v3528_v23, %v8005_v5  ;;  %v3035_v47 = vmul.u32 %v3033_v52, %v3008_v40 }
 0x12b   : > { %v3021_v42 = vsel %vm3020_vm2, 1, %v13856_v34  ;;  %v3392_v38 = vsel %vm3271_vm8, %v3391_v48, %v3390_v51  ;;  %v3530_v32 = vclz %v3529_v50  ;;  %v8025_v41 = vand.u32 3, %v3413_v24 }
 0x12c   : > { %v3023_v63 = vadd.s32 %v3021_v42, %v3015_v36  ;;  %vm3024_vm1 = vc.u32 %v3022_v49, %v3018_v10  ;;  %v8023_v7 = vsel %vm7944_vm9, %v7590_v3, %v3392_v38  ;;  %vm3426_vm4 = vcmp.lt.s32.totalorder %v7593_v33, 0 }
 0x12d   : > { %v3518_v13 = vadd.s32 %v7938_v28, %v7932_v12  ;;  %v3397_v44 = vmul.f32 %v8023_v7, %v8023_v7  ;;  %v7069_v29 = vadd.s32 4294967294, %v3530_v32  ;;  %v3025_v9 = vsel %vm3024_vm1, 1, %v13856_v34 }
 0x12e   : > { %v3036_v19 = vmul.u32 %v3032_v45, %v3009_v20  ;;  %v8035_v16 = vsel %vm2992_vm14, %v2995_v15, %v2997_v26  ;;  %v3027_v54 = vadd.s32 %v3025_v9, %v3023_v63  ;;  %v3034_v58 = vmul.u32 %v3032_v45, %v3008_v40 }
 0x12f   : > { %v3038_v21 = vshll.u32 %v3035_v47, 16  ;;  %v3398_v24 = vmul.f32 -0.001358992, %v3397_v44  ;;  %v3405_v51 = vmul.f32 -0.00019511016, %v3397_v44  ;;  %vm7070_vm5 = vcmp.lt.s32.totalorder %v7069_v29, 0 }
 0x130   : > { %v3548_v57 = vsub.s32 4, %v7983_v1  ;;  %v3533_v12 = vsel %vm7070_vm5, 0, %v7069_v29  ;;  %v3017_v28 = vshrl.u32 %v3013_v11, 16  ;;  %v3037_v2 = vmul.u32 %v3033_v52, %v3009_v20 }
 0x131   : > { %vm3042_vm6 = vc.u32 %v3034_v58, %v3038_v21  ;;  %v3399_v25 = vadd.f32 0.041655596, %v3398_v24  ;;  %v3406_v23 = vadd.f32 0.008332121, %v3405_v51  ;;  %v13862_v36 = vand.u32 2147483647, %v7593_v33 }
 0x132   : > { %v3534_v15 = vsub.s32 32, %v3533_v12  ;;  %v3040_v40 = vshll.u32 %v3036_v19, 16  ;;  %v3538_v45 = vsub.s32 4294967266, %v3533_v12  ;;  %v3028_v48 = vadd.s32 %v3027_v54, %v3017_v28 }
 0x133   : > { %vm8040_vm8 = vcmp.le.f32.partialorder %v13862_v36, 0.7853982  ;;  %v3043_v10 = vsel %vm3042_vm6, 1, %v13856_v34  ;;  %v3044_v49 = vadd.s32 %v3038_v21, %v3034_v58  ;;  %v3400_v50 = vmul.f32 %v3399_v25, %v3397_v44 }
 0x134   : > { %v3407_v26 = vmul.f32 %v3406_v23, %v3397_v44  ;;  %v3536_v11 = vshrl.u32 %v3518_v13, %v3534_v15  ;;  %v3045_v20 = vadd.s32 %v3043_v10, %v3037_v2  ;;  %v3535_v52 = vshll.u32 %v8005_v5, %v3533_v12 }
 0x135   : > { %v3539_v42 = vadd.s32 127, %v3538_v45  ;;  %v3549_v38 = vsel %vm3426_vm4, %v3548_v57, %v7983_v1  ;;  %vm3046_vm7 = vc.u32 %v3044_v49, %v3040_v40  ;;  %v3401_v32 = vadd.f32 -0.4999988, %v3400_v50 }
 0x136   : > { %v3408_v63 = vadd.f32 -0.16666654, %v3407_v26  ;;  %v3019_v29 = vshrl.u32 %v8003_v30, 16  ;;  %v3047_v9 = vsel %vm3046_vm7, 1, %v13856_v34  ;;  %vm3416_vm9 = vcmp.eq.s32.totalorder %v8025_v41, 0 }
 0x137   : > { %v3537_v54 = vor.u32 %v3536_v11, %v3535_v52  ;;  %v3540_v58 = vshll.u32 %v3539_v42, 23  ;;  %v3039_v13 = vshrl.u32 %v3035_v47, 16  ;;  %v3049_v21 = vadd.s32 %v3047_v9, %v3045_v20 }
 0x138   : > { %v3402_v24 = vmul.f32 %v3401_v32, %v3397_v44  ;;  %v3409_v5 = vmul.f32 %v3408_v63, %v3397_v44  ;;  %vm3415_vm10 = vcmp.lt.s32.totalorder %v8025_v41, 2  ;;  %v8053_v51 = vadd.s32 %v3028_v48, %v3019_v29 }
 0x139   : > { %v3114_v1 = vand.u32 2147483647, %v7578_v27  ;;  %vm3419_vm12 = vcmp.eq.s32.totalorder %v8025_v41, 2  ;;  %v3541_v57 = vor.u32 4788187, %v3540_v58  ;;  %v3041_v30 = vshrl.u32 %v3036_v19, 16 }
 0x13a   : > { %v3050_v12 = vadd.s32 %v3049_v21, %v3039_v13  ;;  %v3403_v28 = vadd.f32 1.0, %v3402_v24  ;;  %v3410_v2 = vadd.f32 1.0, %v3409_v5  ;;  %v3048_v25 = vadd.s32 %v3044_v49, %v3040_v40 }
 0x13b   : > { %v3052_v47 = vmul.u32 %v7979_v62, %v8035_v16  ;;  %v3542_v23 = vand.u32 2147483647, %v3541_v57  ;;  %v3544_v36 = vcvt.s32.f32 %v3537_v54  ;;  %v3551_v44 = vsel %vm8040_vm8, 0, %v3549_v38 }
 0x13c   : > { %v3051_v15 = vadd.s32 %v3050_v12, %v3041_v30  ;;  %v3411_v45 = vmul.f32 %v3410_v2, %v8023_v7  ;;  %v3420_v48 = vxor.u32 2147483648, %v3403_v28  ;;  %vm3054_vm13 = vc.u32 %v8053_v51, %v3048_v25 }
 0x13d   : > { %v3121_v19 = vand.u32 8388607, %v3114_v1  ;;  %v3545_v10 = vmul.f32 %v3544_v36, %v3542_v23  ;;  %v3132_v40 = vshrl.u32 %v13857_v55, %v7810_v31  ;;  %v3135_v62 = vshrl.u32 %v13858_v0, %v7810_v31 }
 0x13e   : > { %v3055_v50 = vadd.s32 1, %v3051_v15  ;;  %v3417_v16 = vxor.u32 2147483648, %v3411_v45  ;;  %v3134_v49 = vshll.u32 %v13857_v55, %v7745_v43  ;;  %v3137_v7 = vshll.u32 %v13858_v0, %v7745_v43 }
 0x13f   : > { %v3138_v26 = vshrl.u32 %v13803_v46, %v7810_v31  ;;  %v3421_v11 = vsel %vm3419_vm12, %v3420_v48, %v3411_v45  ;;  %v3546_v20 = vxor.u32 2147483648, %v3545_v10  ;;  %v3131_v42 = vshll.u32 %v13855_v59, %v7745_v43 }
 0x140   : > { %v3056_v52 = vsel %vm3054_vm13, %v3055_v50, %v3051_v15  ;;  %v3418_v38 = vsel %vm3416_vm9, %v3403_v28, %v3417_v16  ;;  %v3136_v63 = vor.u32 %v3135_v62, %v3134_v49  ;;  %vm3412_vm14 = vweird.f32 %v7590_v3 }
 0x141   : > { %v3057_v32 = vadd.s32 %v3056_v52, %v3052_v47  ;;  %v3139_v29 = vor.u32 %v3138_v26, %v3137_v7  ;;  %v3422_v9 = vsel %vm3415_vm10, %v3418_v38, %v3421_v11  ;;  %v3547_v54 = vsel %vm3426_vm4, %v3546_v20, %v3545_v10 }
 0x142   : > { %v3122_v58 = vor.u32 8388608, %v3121_v19  ;;  %v3423_v13 = vsel %vm3412_vm14, nan, %v3422_v9  ;;  %v8089_v43 = vsel %vm8040_vm8, %v7593_v33, %v3547_v54  ;;  %v3133_v24 = vor.u32 %v3132_v40, %v3131_v42 }
 0x143   : > { %v3058_v21 = vadd.s32 536870912, %v3057_v32  ;;  %v3155_v5 = vsel %vm3149_vm11, %v7991_v8, 920167782  ;;  %3686 = vmatpush.msra.mxu2 %v3423_v13  ;;  %v3552_v3 = vmul.f32 %v8089_v43, %v8089_v43  ;;  %v3568_v41 = vadd.s32 3, %v3551_v44 }
 0x144   : > { %vm3146_vm15 = vcmp.lt.s32.totalorder %v7740_v39, 1  ;;  %vm3147_vm0 = vcmp.lt.s32.totalorder %v7740_v39, 2  ;;  %vm3148_vm2 = vcmp.lt.s32.totalorder %v7740_v39, 3  ;;  %v8107_v2 = vshll.u32 %v3122_v58, 8 }
 0x145   : > { %v8097_v57 = vshrl.u32 %v3058_v21, 30  ;;  %v3158_v61 = vsel %vm3146_vm15, %v3136_v63, %v3139_v29  ;;  %v3553_v30 = vmul.f32 -0.001358992, %v3552_v3  ;;  %v3560_v12 = vmul.f32 -0.00019511016, %v3552_v3 }
 0x146   : > { %v3160_v28 = vsel %vm3148_vm2, %v7991_v8, %v7998_v6  ;;  %v3154_v23 = vsel %vm3146_vm15, %v3133_v24, %v3136_v63  ;;  %v3156_v36 = vsel %vm3148_vm2, %v3139_v29, %v3155_v5  ;;  %v2680_v15 = vor.u32 %v7723_v4, %v7712_v17 }
 0x147   : > { %v3060_v47 = vshll.u32 %v8097_v57, 30  ;;  %v3161_v44 = vsel %vm3147_vm0, %v3158_v61, %v3160_v28  ;;  %v3554_v45 = vadd.f32 0.041655596, %v3553_v30  ;;  %v3561_v48 = vadd.f32 0.008332121, %v3560_v12 }
 0x148   : > { %v8118_v19 = vand.u32 3, %v3568_v41  ;;  %v3053_v8 = vadd.s32 %v3048_v25, %v8053_v51  ;;  %v3165_v10 = vand.u32 65535, %v3161_v44  ;;  %v3166_v50 = vshrl.u32 %v3161_v44, 16 }
 0x149   : > { %v8121_v6 = vsub.s32 %v3057_v32, %v3060_v47  ;;  %v3555_v40 = vmul.f32 %v3554_v45, %v3552_v3  ;;  %v3562_v62 = vmul.f32 %v3561_v48, %v3552_v3  ;;  %vm2961_vm1 = vcmp.lt.s32.totalorder %v7575_v35, 0 }
 0x14a   : > { %v3157_v16 = vsel %vm3147_vm0, %v3154_v23, %v3156_v36  ;;  %v3163_v49 = vand.u32 65535, %v8107_v2  ;;  %v3130_v51 = vshrl.u32 %v13855_v59, %v7810_v31  ;;  %v3164_v25 = vshrl.u32 %v8107_v2, 16 }
 0x14b   : > { %vm3062_vm4 = vcmp.lt.s32.totalorder %v8121_v6, 0  ;;  %v3063_v7 = vsub.s32 0, %v8121_v6  ;;  %v3556_v26 = vadd.f32 -0.4999988, %v3555_v40  ;;  %v3563_v11 = vadd.f32 -0.16666654, %v3562_v62 }
 0x14c   : > { %vm3574_vm5 = vcmp.eq.s32.totalorder %v8118_v19, 2  ;;  %v3151_v20 = vsel %vm3149_vm11, %v3139_v29, 2102212464  ;;  %v3168_v52 = vmul.u32 %v3166_v50, %v3163_v49  ;;  %vm3571_vm6 = vcmp.eq.s32.totalorder %v8118_v19, 0 }
 0x14d   : > { %v3064_v42 = vsel %vm3062_vm4, %v3063_v7, %v8121_v6  ;;  %v3150_v38 = vsel %vm3146_vm15, %v3130_v51, %v3133_v24  ;;  %v8139_v32 = vmul.u32 %v3165_v10, %v3164_v25  ;;  %v3188_v31 = vshrl.u32 %v3157_v16, 16 }
 0x14e   : > { %v3557_v9 = vmul.f32 %v3556_v26, %v3552_v3  ;;  %v3564_v54 = vmul.f32 %v3563_v11, %v3552_v3  ;;  %vm3570_vm8 = vcmp.lt.s32.totalorder %v8118_v19, 2  ;;  %v3065_v58 = vclz %v3064_v42 }
 0x14f   : > { %v3171_v13 = vshll.u32 %v3168_v52, 16  ;;  %vm3567_vm7 = vweird.f32 %v7593_v33  ;;  %v3083_v29 = vsub.s32 4, %v8097_v57  ;;  %v3152_v21 = vsel %vm3148_vm2, %v3136_v63, %v3151_v20 }
 0x150   : > { %v3167_v5 = vmul.u32 %v3165_v10, %v3163_v49  ;;  %v3187_v41 = vand.u32 65535, %v3157_v16  ;;  %v3558_v61 = vadd.f32 1.0, %v3557_v9  ;;  %v3565_v24 = vadd.f32 1.0, %v3564_v54 }
 0x151   : > { %v7060_v30 = vadd.s32 4294967294, %v3065_v58  ;;  %v3170_v12 = vmul.u32 %v3166_v50, %v3164_v25  ;;  %v3173_v28 = vshll.u32 %v8139_v32, 16  ;;  %v3190_v47 = vmul.u32 %v3188_v31, %v3163_v49 }
 0x152   : > { %vm3175_vm11 = vc.u32 %v3167_v5, %v3171_v13  ;;  %v3177_v3 = vadd.s32 %v3171_v13, %v3167_v5  ;;  %v3566_v23 = vmul.f32 %v3565_v24, %v8089_v43  ;;  %v3575_v36 = vxor.u32 2147483648, %v3558_v61 }
 0x153   : > { %vm7061_vm9 = vcmp.lt.s32.totalorder %v7060_v30, 0  ;;  %v3176_v44 = vsel %vm3175_vm11, 1, %v13856_v34  ;;  %v8152_v63 = vsel %vm2961_vm1, %v3083_v29, %v8097_v57  ;;  %v3189_v40 = vmul.u32 %v3187_v41, %v3163_v49 }
 0x154   : > { %v3068_v45 = vsel %vm7061_vm9, 0, %v7060_v30  ;;  %v3178_v48 = vadd.s32 %v3176_v44, %v3170_v12  ;;  %vm3179_vm10 = vc.u32 %v3177_v3, %v3173_v28  ;;  %v3572_v10 = vxor.u32 2147483648, %v3566_v23 }
 0x155   : > { %v3069_v50 = vsub.s32 32, %v3068_v45  ;;  %v3191_v62 = vmul.u32 %v3187_v41, %v3164_v25  ;;  %v3576_v16 = vsel %vm3574_vm5, %v3575_v36, %v3566_v23  ;;  %v3073_v43 = vsub.s32 4294967266, %v3068_v45 }
 0x156   : > { %v3180_v7 = vsel %vm3179_vm10, 1, %v13856_v34  ;;  %v3193_v51 = vshll.u32 %v3190_v47, 16  ;;  %v3573_v26 = vsel %vm3571_vm6, %v3558_v61, %v3572_v10  ;;  %v3070_v11 = vshll.u32 %v8121_v6, %v3068_v45 }
 0x157   : > { %v3071_v57 = vshrl.u32 %v3053_v8, %v3069_v50  ;;  %v3182_v20 = vadd.s32 %v3180_v7, %v3178_v48  ;;  %v3577_v42 = vsel %vm3570_vm8, %v3573_v26, %v3576_v16  ;;  %v3074_v9 = vadd.s32 127, %v3073_v43 }
 0x158   : > { %v3172_v49 = vshrl.u32 %v3168_v52, 16  ;;  %v3192_v54 = vmul.u32 %v3188_v31, %v3164_v25  ;;  %v3578_v58 = vsel %vm3567_vm7, nan, %v3577_v42  ;;  %v3195_v29 = vshll.u32 %v3191_v62, 16 }
 0x159   : > { %v3072_v13 = vor.u32 %v3071_v57, %v3070_v11  ;;  %vm3197_vm12 = vc.u32 %v3189_v40, %v3193_v51  ;;  %3733 = vmatpush.msra.mxu3 %v3578_v58  ;;  %v3075_v5 = vshll.u32 %v3074_v9, 23  ;;  %v3199_v6 = vadd.s32 %v3193_v51, %v3189_v40 }
 0x15a   : > { %v3183_v41 = vadd.s32 %v3182_v20, %v3172_v49  ;;  %v3198_v61 = vsel %vm3197_vm12, 1, %v13856_v34  ;;  %v2694_v19 = vsel %vm2684_vm3, %v2680_v15, 1326507024  ;;  %vm8172_vm13 = vcmp.le.f32.partialorder %v2959_v60, 0.7853982  ;;  %v13867_v49 = vld [vmem:[#allocation89_spill] sm:$0xff] }
 0x15b   : > { %v3153_v8 = vsel %vm3147_vm0, %v3150_v38, %v3152_v21  ;;  %v3200_v25 = vadd.s32 %v3198_v61, %v3192_v54  ;;  %v3076_v52 = vor.u32 4788187, %v3075_v5  ;;  %v3174_v31 = vshrl.u32 %v8139_v32, 16 }
 0x15c   : > { %vm3201_vm14 = vc.u32 %v3199_v6, %v3195_v29  ;;  %v2649_v24 = vand.u32 2147483647, %v7514_v56  ;;  %v3086_v17 = vsel %vm8172_vm13, 0, %v8152_v63  ;;  %v3194_v4 = vshrl.u32 %v3190_v47, 16 }
 0x15d   : > { %v3196_v15 = vshrl.u32 %v3191_v62, 16  ;;  %v3202_v60 = vsel %vm3201_vm14, 1, %v13856_v34  ;;  %v3077_v30 = vand.u32 2147483647, %v3076_v52  ;;  %v3079_v12 = vcvt.s32.f32 %v3072_v13  ;;  %v13869_v13 = vld [vmem:[#allocation93_spill] sm:$0xff] }
 0x15e   : > { %v8184_v28 = vadd.s32 %v3183_v41, %v3174_v31  ;;  %v3204_v39 = vadd.s32 %v3202_v60, %v3200_v25  ;;  %v8186_v38 = vadd.s32 %v3199_v6, %v3195_v29  ;;  %v2656_v32 = vand.u32 8388607, %v2649_v24 }
 0x15f   : > { %v2666_v21 = vshll.u32 %v13855_v59, %v7620_v22  ;;  %v2667_v3 = vshrl.u32 %v13857_v55, %v7653_v37  ;;  %v3080_v47 = vmul.f32 %v3079_v12, %v3077_v30  ;;  %v2669_v36 = vshll.u32 %v13857_v55, %v7620_v22 }
 0x160   : > { %v3205_v23 = vadd.s32 %v3204_v39, %v3194_v4  ;;  %v2670_v44 = vshrl.u32 %v13858_v0, %v7653_v37  ;;  %v2657_v45 = vor.u32 8388608, %v2656_v32  ;;  %v2672_v48 = vshll.u32 %v13858_v0, %v7620_v22 }
 0x161   : > { %v8198_v63 = vor.u32 %v2667_v3, %v2666_v21  ;;  %v2673_v10 = vshrl.u32 %v13803_v46, %v7653_v37  ;;  %v3081_v50 = vxor.u32 2147483648, %v3080_v47  ;;  %v3207_v62 = vmul.u32 %v8107_v2, %v3153_v8 }
 0x162   : > { %v3206_v40 = vadd.s32 %v3205_v23, %v3196_v15  ;;  %v8205_v16 = vor.u32 %v2670_v44, %v2669_v36  ;;  %vm3209_vm15 = vc.u32 %v8184_v28, %v8186_v38  ;;  %vm2681_vm0 = vcmp.lt.s32.totalorder %v7690_v14, 1 }
 0x163   : > { %v2674_v43 = vor.u32 %v2673_v10, %v2672_v48  ;;  %vm2683_vm2 = vcmp.lt.s32.totalorder %v7690_v14, 3  ;;  %v3082_v22 = vsel %vm2961_vm1, %v3081_v50, %v3080_v47  ;;  %v8216_v26 = vshll.u32 %v2657_v45, 8 }
 0x164   : > { %v3210_v7 = vadd.s32 1, %v3206_v40  ;;  %v2695_v51 = vsel %vm2683_vm2, %v7708_v53, %v2694_v19  ;;  %v8221_v2 = vsel %vm8172_vm13, %v7575_v35, %v3082_v22  ;;  %v2689_v11 = vsel %vm2681_vm0, %v8198_v63, %v8205_v16 }
 0x165   : > { %v2691_v57 = vsel %vm2683_vm2, %v2674_v43, %v7736_v18  ;;  %v2693_v53 = vsel %vm2681_vm0, %v8205_v16, %v2674_v43  ;;  %v3087_v20 = vmul.f32 %v8221_v2, %v8221_v2  ;;  %v3103_v42 = vadd.s32 3, %v3086_v17 }
 0x166   : > { %v3211_v9 = vsel %vm3209_vm15, %v3210_v7, %v3206_v40  ;;  %vm2682_vm1 = vcmp.lt.s32.totalorder %v7690_v14, 2  ;;  %v13868_v54 = vmov 920167782   ;;  %v13870_v29 = vmov 1326507024  }
 0x167   : > { %v8238_v58 = vshll.u32 %v13868_v54, %v13867_v49  ;;  %v8242_v5 = vshrl.u32 %v13870_v29, %v13869_v13  ;;  %v3212_v18 = vadd.s32 %v3211_v9, %v3207_v62  ;;  %v2696_v41 = vsel %vm2682_vm1, %v2693_v53, %v2695_v51 }
 0x168   : > { %v3088_v61 = vmul.f32 -0.001358992, %v3087_v20  ;;  %v3095_v6 = vmul.f32 -0.00019511016, %v3087_v20  ;;  %v8248_v19 = vsel %vm2682_vm1, %v2689_v11, %v2691_v57  ;;  %v2700_v33 = vand.u32 65535, %v2696_v41 }
 0x169   : > { %v8252_v8 = vshrl.u32 %v13868_v54, %v13869_v13  ;;  %v3213_v25 = vadd.s32 536870912, %v3212_v18  ;;  %v2698_v52 = vand.u32 65535, %v8216_v26  ;;  %v2701_v31 = vshrl.u32 %v2696_v41, 16 }
 0x16a   : > { %v3089_v17 = vadd.f32 0.041655596, %v3088_v61  ;;  %v3096_v4 = vadd.f32 0.008332121, %v3095_v6  ;;  %v8255_v15 = vand.u32 3, %v3103_v42  ;;  %v2699_v60 = vshrl.u32 %v8216_v26, 16 }
 0x16b   : > { %v2835_v30 = vor.u32 %v8242_v5, %v8238_v58  ;;  %v8260_v12 = vshrl.u32 %v3213_v25, 30  ;;  %v2703_v39 = vmul.u32 %v2701_v31, %v2698_v52  ;;  %v2723_v32 = vshrl.u32 %v8248_v19, 16  ;;  %v13871_v25 = vld [vmem:[#allocation92_spill] sm:$0xff] }
 0x16c   : > { %v3090_v21 = vmul.f32 %v3089_v17, %v3087_v20  ;;  %v3097_v3 = vmul.f32 %v3096_v4, %v3087_v20  ;;  %v2665_v47 = vshrl.u32 %v13855_v59, %v7653_v37  ;;  %v8265_v23 = vmul.u32 %v2700_v33, %v2699_v60 }
 0x16d   : > { %v3215_v36 = vshll.u32 %v8260_v12, 30  ;;  %v2686_v44 = vsel %vm2684_vm3, %v2674_v43, 2102212464  ;;  %v2702_v45 = vmul.u32 %v2700_v33, %v2698_v52  ;;  %v2706_v48 = vshll.u32 %v2703_v39, 16 }
 0x16e   : > { %v3091_v10 = vadd.f32 -0.4999988, %v3090_v21  ;;  %v3098_v50 = vadd.f32 -0.16666654, %v3097_v3  ;;  %vm3109_vm4 = vcmp.eq.s32.totalorder %v8255_v15, 2  ;;  %v2705_v40 = vmul.u32 %v2701_v31, %v2699_v60 }
 0x16f   : > { %v2722_v62 = vand.u32 65535, %v8248_v19  ;;  %vm3106_vm5 = vcmp.eq.s32.totalorder %v8255_v15, 0  ;;  %v8273_v22 = vsub.s32 %v3212_v18, %v3215_v36  ;;  %vm2710_vm6 = vc.u32 %v2702_v45, %v2706_v48 }
 0x170   : > { %v2712_v37 = vadd.s32 %v2706_v48, %v2702_v45  ;;  %v8275_v7 = vmul.u32 %v2723_v32, %v2698_v52  ;;  %v3092_v51 = vmul.f32 %v3091_v10, %v3087_v20  ;;  %v3099_v11 = vmul.f32 %v3098_v50, %v3087_v20 }
 0x171   : > { %vm3105_vm3 = vcmp.lt.s32.totalorder %v8255_v15, 2  ;;  %v2708_v43 = vshll.u32 %v8265_v23, 16  ;;  %v2711_v57 = vsel %vm2710_vm6, 1, %v13856_v34  ;;  %vm3102_vm8 = vweird.f32 %v7575_v35  ;;  %v13874_v35 = vld [vmem:[#allocation47_spill] sm:$0xff] }
 0x172   : > { %vm3116_vm7 = vcmp.lt.s32.totalorder %v7578_v27, 0  ;;  %vm3217_vm11 = vcmp.lt.s32.totalorder %v8273_v22, 0  ;;  %v3218_v53 = vsub.s32 0, %v8273_v22  ;;  %v2685_v42 = vsel %vm2681_vm0, %v2665_v47, %v8198_v63 }
 0x173   : > { %v2713_v9 = vadd.s32 %v2711_v57, %v2705_v40  ;;  %v3093_v20 = vadd.f32 1.0, %v3092_v51  ;;  %v3100_v18 = vadd.f32 1.0, %v3099_v11  ;;  %v2687_v41 = vsel %vm2683_vm2, %v8205_v16, %v2686_v44 }
 0x174   : > { %vm2714_vm9 = vc.u32 %v2712_v37, %v2708_v43  ;;  %v3219_v61 = vsel %vm3217_vm11, %v3218_v53, %v8273_v22  ;;  %v2726_v19 = vmul.u32 %v2722_v62, %v2699_v60  ;;  %v2728_v33 = vshll.u32 %v8275_v7, 16 }
 0x175   : > { %v2715_v6 = vsel %vm2714_vm9, 1, %v13856_v34  ;;  %vm2839_vm10 = vcmp.lt.s32.totalorder %v13871_v25, 4  ;;  %v3101_v31 = vmul.f32 %v3100_v18, %v8221_v2  ;;  %v3110_v63 = vxor.u32 2147483648, %v3093_v20  ;;  %v13876_v18 = vld [vmem:[#allocation94_spill] sm:$0xff] }
 0x176   : > { %vm8297_vm12 = vcmp.le.f32.partialorder %v3114_v1, 0.7853982  ;;  %v3220_v16 = vclz %v3219_v61  ;;  %v2717_v4 = vadd.s32 %v2715_v6, %v2713_v9  ;;  %v3208_v21 = vadd.s32 %v8186_v38, %v8184_v28 }
 0x177   : > { %v3238_v3 = vsub.s32 4, %v8260_v12  ;;  %v8306_v47 = vsel %vm2682_vm1, %v2685_v42, %v2687_v41  ;;  %v2724_v36 = vmul.u32 %v2722_v62, %v2698_v52  ;;  %v3107_v2 = vxor.u32 2147483648, %v3101_v31 }
 0x178   : > { %v7063_v44 = vadd.s32 4294967294, %v3220_v16  ;;  %v2707_v45 = vshrl.u32 %v2703_v39, 16  ;;  %v2727_v48 = vmul.u32 %v2723_v32, %v2699_v60  ;;  %v3111_v1 = vsel %vm3109_vm4, %v3110_v63, %v3101_v31 }
 0x179   : > { %v2730_v10 = vshll.u32 %v2726_v19, 16  ;;  %vm2732_vm13 = vc.u32 %v2724_v36, %v2728_v33  ;;  %v2734_v50 = vadd.s32 %v2728_v33, %v2724_v36  ;;  %v3108_v28 = vsel %vm3106_vm5, %v3093_v20, %v3107_v2  ;;  %v13875_v20 = vld [vmem:[#allocation81_spill] sm:$0xff] }
 0x17a   : > { %vm7064_vm14 = vcmp.lt.s32.totalorder %v7063_v44, 0  ;;  %v2718_v38 = vadd.s32 %v2717_v4, %v2707_v45  ;;  %v2733_v14 = vsel %vm2732_vm13, 1, %v13856_v34  ;;  %v3112_v52 = vsel %vm3105_vm3, %v3108_v28, %v3111_v1 }
 0x17b   : > { %v3223_v40 = vsel %vm7064_vm14, 0, %v7063_v44  ;;  %v2735_v62 = vadd.s32 %v2733_v14, %v2727_v48  ;;  %vm2736_vm15 = vc.u32 %v2734_v50, %v2730_v10  ;;  %v3113_v60 = vsel %vm3102_vm8, nan, %v3112_v52  ;;  %v13877_v14 = vld [vmem:[#allocation88_spill] sm:$0xff] }
 0x17c   : > { %v3224_v39 = vsub.s32 32, %v3223_v40  ;;  %v3228_v32 = vsub.s32 4294967266, %v3223_v40  ;;  %v3239_v37 = vsel %vm3116_vm7, %v3238_v3, %v8260_v12  ;;  %3687 = vmatpush.msra.mxu2 %v3113_v60  ;;  %v3225_v51 = vshll.u32 %v8273_v22, %v3223_v40 }
 0x17d   : > { %v2709_v11 = vshrl.u32 %v8265_v23, 16  ;;  %v2729_v15 = vshrl.u32 %v8275_v7, 16  ;;  %v2737_v43 = vsel %vm2736_vm15, 1, %v13856_v34  ;;  %v2804_v9 = vand.u32 2147483647, %v13874_v35 }
 0x17e   : > { %v3226_v57 = vshrl.u32 %v3208_v21, %v3224_v39  ;;  %v3229_v53 = vadd.s32 127, %v3228_v32  ;;  %v2739_v42 = vadd.s32 %v2737_v43, %v2735_v62  ;;  %vm2374_vm0 = vcmp.lt.s32.totalorder %v13875_v20, 4 }
 0x17f   : > { %v2832_v41 = vor.u32 %v8252_v8, %v13876_v18  ;;  %v2849_v12 = vsel %vm2839_vm10, %v2835_v30, 1326507024  ;;  %v3241_v23 = vsel %vm8297_vm12, 0, %v3239_v37  ;;  %v8335_v22 = vadd.s32 %v2718_v38, %v2709_v11 }
 0x180   : > { %v3227_v7 = vor.u32 %v3226_v57, %v3225_v51  ;;  %v3230_v61 = vshll.u32 %v3229_v53, 23  ;;  %v2731_v6 = vshrl.u32 %v2726_v19, 16  ;;  %v2740_v33 = vadd.s32 %v2739_v42, %v2729_v15 }
 0x181   : > { %v8337_v31 = vadd.s32 %v2734_v50, %v2730_v10  ;;  %v2742_v8 = vmul.u32 %v8216_v26, %v8306_v47  ;;  %v2811_v58 = vand.u32 8388607, %v2804_v9  ;;  %v2822_v5 = vshrl.u32 %v13857_v55, %v13869_v13 }
 0x182   : > { %v3231_v30 = vor.u32 4788187, %v3230_v61  ;;  %v2741_v63 = vadd.s32 %v2740_v33, %v2731_v6  ;;  %v2824_v16 = vshll.u32 %v13857_v55, %v13867_v49  ;;  %v2825_v19 = vshrl.u32 %v13858_v0, %v13869_v13  ;;  %v13881_v61 = vld [vmem:[#allocation86_spill] sm:$0xff] }
 0x183   : > { %vm2744_vm2 = vc.u32 %v8335_v22, %v8337_v31  ;;  %v2821_v26 = vshll.u32 %v13855_v59, %v13867_v49  ;;  %v2827_v4 = vshll.u32 %v13858_v0, %v13867_v49  ;;  %v2828_v21 = vshrl.u32 %v13803_v46, %v13869_v13  ;;  %v13882_v6 = vld [vmem:[#allocation90_spill] sm:$0xff] }
 0x184   : > { %v3232_v3 = vand.u32 2147483647, %v3231_v30  ;;  %v3234_v47 = vcvt.s32.f32 %v3227_v7  ;;  %v2745_v36 = vadd.s32 1, %v2741_v63  ;;  %v2826_v2 = vor.u32 %v2825_v19, %v2824_v16  ;;  %v13883_v16 = vld [vmem:[#allocation87_spill] sm:$0xff] }
 0x185   : > { %v2812_v44 = vor.u32 8388608, %v2811_v58  ;;  %v2823_v45 = vor.u32 %v2822_v5, %v2821_v26  ;;  %v2829_v48 = vor.u32 %v2828_v21, %v2827_v4  ;;  %vm2838_vm1 = vcmp.lt.s32.totalorder %v13871_v25, 3  ;;  %v13884_v19 = vld [vmem:[#allocation91_spill] sm:$0xff] }
 0x186   : > { %v3235_v1 = vmul.f32 %v3234_v47, %v3232_v3  ;;  %v2746_v10 = vsel %vm2744_vm2, %v2745_v36, %v2741_v63  ;;  %vm2836_vm4 = vcmp.lt.s32.totalorder %v13871_v25, 1  ;;  %v2850_v50 = vsel %vm2838_vm1, %v2832_v41, %v2849_v12  ;;  %v13879_v12 = vld [vmem:[#allocation85_spill] sm:$0xff] }
 0x187   : > { %v2845_v49 = vsel %vm2839_vm10, %v2832_v41, 920167782  ;;  %v2747_v28 = vadd.s32 %v2746_v10, %v2742_v8  ;;  %vm2837_vm5 = vcmp.lt.s32.totalorder %v13871_v25, 2  ;;  %v2848_v38 = vsel %vm2836_vm4, %v2826_v2, %v2829_v48  ;;  %v13878_v41 = vld [vmem:[#allocation83_spill] sm:$0xff] }
 0x188   : > { %v8369_v52 = vsel %vm2374_vm0, %v13877_v14, 920167782  ;;  %v3236_v40 = vxor.u32 2147483648, %v3235_v1  ;;  %v3258_v62 = vadd.s32 3, %v3241_v23  ;;  %v2851_v60 = vsel %vm2837_vm5, %v2848_v38, %v2850_v50 }
 0x189   : > { %v2748_v39 = vadd.s32 536870912, %v2747_v28  ;;  %v2820_v32 = vshrl.u32 %v13855_v59, %v13869_v13  ;;  %v2844_v37 = vsel %vm2836_vm4, %v2823_v45, %v2826_v2  ;;  %v8377_v51 = vshll.u32 %v2812_v44, 8 }
 0x18a   : > { %v3237_v11 = vsel %vm3116_vm7, %v3236_v40, %v3235_v1  ;;  %v2841_v15 = vsel %vm2839_vm10, %v2829_v48, 2102212464  ;;  %v2846_v43 = vsel %vm2838_vm1, %v2829_v48, %v2845_v49  ;;  %v2856_v57 = vshrl.u32 %v2851_v60, 16 }
 0x18b   : > { %v8388_v53 = vsel %vm8297_vm12, %v7578_v27, %v3237_v11  ;;  %v8390_v13 = vshrl.u32 %v2748_v39, 30  ;;  %v8393_v42 = vand.u32 65535, %v8377_v51  ;;  %v2855_v18 = vand.u32 65535, %v2851_v60 }
 0x18c   : > { %v13880_v23 = vor.u32 %v13878_v41, %v13879_v12  ;;  %v8404_v33 = vor.u32 %v13882_v6, %v13881_v61  ;;  %v3242_v17 = vmul.f32 %v8388_v53, %v8388_v53  ;;  %v2840_v8 = vsel %vm2836_vm4, %v2820_v32, %v2823_v45 }
 0x18d   : > { %v2750_v58 = vshll.u32 %v8390_v13, 30  ;;  %v2842_v5 = vsel %vm2838_vm1, %v2826_v2, %v2841_v15  ;;  %v2854_v30 = vshrl.u32 %v8377_v51, 16  ;;  %v2858_v63 = vmul.u32 %v2856_v57, %v8393_v42 }
 0x18e   : > { %v8400_v7 = vsel %vm2374_vm0, %v13880_v23, 1326507024  ;;  %v2525_v26 = vor.u32 %v13884_v19, %v13883_v16  ;;  %v3243_v4 = vmul.f32 -0.001358992, %v3242_v17  ;;  %v3250_v21 = vmul.f32 -0.00019511016, %v3242_v17 }
 0x18f   : > { %v2847_v3 = vsel %vm2837_vm5, %v2844_v37, %v2846_v43  ;;  %v8419_v47 = vand.u32 3, %v3258_v62  ;;  %v8421_v36 = vsub.s32 %v2747_v28, %v2750_v58  ;;  %v8423_v44 = vmul.u32 %v2855_v18, %v2854_v30  ;;  %v13885_v58 = vld [vmem:[#allocation24_spill] sm:$0xff] }
 0x190   : > { %v2861_v45 = vshll.u32 %v2858_v63, 16  ;;  %v3244_v2 = vadd.f32 0.041655596, %v3243_v4  ;;  %v3251_v48 = vadd.f32 0.008332121, %v3250_v21  ;;  %v8427_v1 = vsel %vm2837_vm5, %v2840_v8, %v2842_v5 }
 0x191   : > { %v2857_v10 = vmul.u32 %v2855_v18, %v8393_v42  ;;  %vm2752_vm6 = vcmp.lt.s32.totalorder %v8421_v36, 0  ;;  %v2753_v50 = vsub.s32 0, %v8421_v36  ;;  %v2860_v49 = vmul.u32 %v2856_v57, %v2854_v30 }
 0x192   : > { %v2877_v38 = vand.u32 65535, %v2847_v3  ;;  %v3245_v40 = vmul.f32 %v3244_v2, %v3242_v17  ;;  %v3252_v28 = vmul.f32 %v3251_v48, %v3242_v17  ;;  %v2863_v39 = vshll.u32 %v8423_v44, 16 }
 0x193   : > { %vm2865_vm3 = vc.u32 %v2857_v10, %v2861_v45  ;;  %v2867_v62 = vadd.s32 %v2861_v45, %v2857_v10  ;;  %v2754_v60 = vsel %vm2752_vm6, %v2753_v50, %v8421_v36  ;;  %v2878_v32 = vshrl.u32 %v2847_v3, 16 }
 0x194   : > { %v2866_v25 = vsel %vm2865_vm3, 1, %v13856_v34  ;;  %v3246_v37 = vadd.f32 -0.4999988, %v3245_v40  ;;  %v3253_v11 = vadd.f32 -0.16666654, %v3252_v28  ;;  %v2755_v15 = vclz %v2754_v60 }
 0x195   : > { %v2868_v43 = vadd.s32 %v2866_v25, %v2860_v49  ;;  %vm3261_vm8 = vcmp.eq.s32.totalorder %v8419_v47, 0  ;;  %vm3264_vm7 = vcmp.eq.s32.totalorder %v8419_v47, 2  ;;  %v2743_v57 = vadd.s32 %v8337_v31, %v8335_v22 }
 0x196   : > { %vm2869_vm11 = vc.u32 %v2867_v62, %v2863_v39  ;;  %v3247_v18 = vmul.f32 %v3246_v37, %v3242_v17  ;;  %v3254_v41 = vmul.f32 %v3253_v11, %v3242_v17  ;;  %vm3260_vm9 = vcmp.lt.s32.totalorder %v8419_v47, 2 }
 0x197   : > { %v7054_v12 = vadd.s32 4294967294, %v2755_v15  ;;  %v2870_v23 = vsel %vm2869_vm11, 1, %v13856_v34  ;;  %vm3257_vm10 = vweird.f32 %v7578_v27  ;;  %vm2651_vm12 = vcmp.lt.s32.totalorder %v7514_v56, 0  ;;  %v13890_v27 = vld [vmem:[#allocation73_spill] sm:$0xff] }
 0x198   : > { %v2872_v61 = vadd.s32 %v2870_v23, %v2868_v43  ;;  %v2880_v6 = vmul.u32 %v2878_v32, %v8393_v42  ;;  %v2897_v8 = vmul.u32 %v8377_v51, %v8427_v1  ;;  %v2339_v22 = vand.u32 2147483647, %v13885_v58 }
 0x199   : > { %v3248_v31 = vadd.f32 1.0, %v3247_v18  ;;  %v3255_v5 = vadd.f32 1.0, %v3254_v41  ;;  %vm7055_vm13 = vcmp.lt.s32.totalorder %v7054_v12, 0  ;;  %v2881_v17 = vmul.u32 %v2877_v38, %v2854_v30 }
 0x19a   : > { %v2758_v4 = vsel %vm7055_vm13, 0, %v7054_v12  ;;  %v2773_v21 = vsub.s32 4, %v8390_v13  ;;  %v2862_v3 = vshrl.u32 %v2858_v63, 16  ;;  %v2883_v45 = vshll.u32 %v2880_v6, 16 }
 0x19b   : > { %v3256_v2 = vmul.f32 %v3255_v5, %v8388_v53  ;;  %v3265_v48 = vxor.u32 2147483648, %v3248_v31  ;;  %v2759_v10 = vsub.s32 32, %v2758_v4  ;;  %v2879_v50 = vmul.u32 %v2877_v38, %v8393_v42 }
 0x19c   : > { %v2760_v49 = vshll.u32 %v8421_v36, %v2758_v4  ;;  %v2763_v40 = vsub.s32 4294967266, %v2758_v4  ;;  %v2873_v28 = vadd.s32 %v2872_v61, %v2862_v3  ;;  %v2882_v62 = vmul.u32 %v2878_v32, %v2854_v30  ;;  %v13889_v3 = vld [vmem:[#allocation64_spill] sm:$0xff] }
 0x19d   : > { %v3262_v60 = vxor.u32 2147483648, %v3256_v2  ;;  %vm8453_vm14 = vcmp.le.f32.partialorder %v2649_v24, 0.7853982  ;;  %v2761_v63 = vshrl.u32 %v2743_v57, %v2759_v10  ;;  %v2885_v25 = vshll.u32 %v2881_v17, 16  ;;  %v13888_v57 = vld [vmem:[#allocation82_spill] sm:$0xff] }
 0x19e   : > { %vm2887_vm15 = vc.u32 %v2879_v50, %v2883_v45  ;;  %v3266_v53 = vsel %vm3264_vm7, %v3265_v48, %v3256_v2  ;;  %v2764_v37 = vadd.s32 127, %v2763_v40  ;;  %v2889_v36 = vadd.s32 %v2883_v45, %v2879_v50 }
 0x19f   : > { %v2888_v42 = vsel %vm2887_vm15, 1, %v13856_v34  ;;  %v3263_v30 = vsel %vm3261_vm8, %v3248_v31, %v3262_v60  ;;  %v2762_v38 = vor.u32 %v2761_v63, %v2760_v49  ;;  %v2346_v24 = vand.u32 8388607, %v2339_v22 }
 0x1a0   : > { %v2890_v32 = vadd.s32 %v2888_v42, %v2882_v62  ;;  %v3267_v11 = vsel %vm3260_vm9, %v3263_v30, %v3266_v53  ;;  %v2765_v15 = vshll.u32 %v2764_v37, 23  ;;  %v2864_v43 = vshrl.u32 %v8423_v44, 16 }
 0x1a1   : > { %vm2891_vm2 = vc.u32 %v2889_v36, %v2885_v25  ;;  %vm2529_vm1 = vcmp.lt.s32.totalorder %v13888_v57, 4  ;;  %v3268_v18 = vsel %vm3257_vm10, nan, %v3267_v11  ;;  %v2774_v41 = vsel %vm2651_vm12, %v2773_v21, %v8390_v13 }
 0x1a2   : > { %v2884_v12 = vshrl.u32 %v2880_v6, 16  ;;  %v2892_v23 = vsel %vm2891_vm2, 1, %v13856_v34  ;;  %3734 = vmatpush.msra.mxu3 %v3268_v18  ;;  %v2766_v61 = vor.u32 4788187, %v2765_v15  ;;  %v8474_v47 = vadd.s32 %v2873_v28, %v2864_v43 }
 0x1a3   : > { %v2886_v31 = vshrl.u32 %v2881_v17, 16  ;;  %v2894_v5 = vadd.s32 %v2892_v23, %v2890_v32  ;;  %v2769_v44 = vcvt.s32.f32 %v2762_v38  ;;  %v2347_v4 = vor.u32 8388608, %v2346_v24 }
 0x1a4   : > { %v2356_v45 = vshll.u32 %v13855_v59, %v13889_v3  ;;  %v2357_v2 = vshrl.u32 %v13857_v55, %v13890_v27  ;;  %v2767_v48 = vand.u32 2147483647, %v2766_v61  ;;  %v2359_v13 = vshll.u32 %v13857_v55, %v13889_v3 }
 0x1a5   : > { %v2895_v10 = vadd.s32 %v2894_v5, %v2884_v12  ;;  %v2360_v6 = vshrl.u32 %v13858_v0, %v13890_v27  ;;  %v8484_v21 = vadd.s32 %v2889_v36, %v2885_v25  ;;  %v2362_v50 = vshll.u32 %v13858_v0, %v13889_v3 }
 0x1a6   : > { %v2358_v17 = vor.u32 %v2357_v2, %v2356_v45  ;;  %v2363_v49 = vshrl.u32 %v13803_v46, %v13890_v27  ;;  %v2770_v40 = vmul.f32 %v2769_v44, %v2767_v48  ;;  %v2776_v28 = vsel %vm8453_vm14, 0, %v2774_v41 }
 0x1a7   : > { %v2896_v62 = vadd.s32 %v2895_v10, %v2886_v31  ;;  %v2361_v60 = vor.u32 %v2360_v6, %v2359_v13  ;;  %vm2899_vm4 = vc.u32 %v8474_v47, %v8484_v21  ;;  %vm2373_vm5 = vcmp.lt.s32.totalorder %v13875_v20, 3 }
 0x1a8   : > { %v2364_v63 = vor.u32 %v2363_v49, %v2362_v50  ;;  %v8495_v25 = vshll.u32 %v2347_v4, 8  ;;  %v2771_v53 = vxor.u32 2147483648, %v2770_v40  ;;  %vm2371_vm6 = vcmp.lt.s32.totalorder %v13875_v20, 1 }
 0x1a9   : > { %v2900_v37 = vadd.s32 1, %v2896_v62  ;;  %v2385_v42 = vsel %vm2373_vm5, %v13877_v14, %v8400_v7  ;;  %v2793_v36 = vadd.s32 3, %v2776_v28  ;;  %v2379_v30 = vsel %vm2371_vm6, %v2358_v17, %v2361_v60 }
 0x1aa   : > { %v2381_v38 = vsel %vm2373_vm5, %v2364_v63, %v8369_v52  ;;  %v2383_v32 = vsel %vm2371_vm6, %v2361_v60, %v2364_v63  ;;  %v8512_v24 = vsel %vm2529_vm1, %v8404_v33, 920167782  ;;  %v2772_v11 = vsel %vm2651_vm12, %v2771_v53, %v2770_v40 }
 0x1ab   : > { %v2901_v14 = vsel %vm2899_vm4, %v2900_v37, %v2896_v62  ;;  %vm2372_vm3 = vcmp.lt.s32.totalorder %v13875_v20, 2  ;;  %v8520_v7 = vsel %vm8453_vm14, %v7514_v56, %v2772_v11  ;;  %v2388_v43 = vand.u32 65535, %v8495_v25 }
 0x1ac   : > { %v2902_v52 = vadd.s32 %v2901_v14, %v2897_v8  ;;  %v2386_v15 = vsel %vm2372_vm3, %v2383_v32, %v2385_v42  ;;  %v2777_v18 = vmul.f32 %v8520_v7, %v8520_v7  ;;  %v8532_v41 = vsel %vm2372_vm3, %v2379_v30, %v2381_v38 }
 0x1ad   : > { %v2390_v12 = vand.u32 65535, %v2386_v15  ;;  %v2391_v39 = vshrl.u32 %v2386_v15, 16  ;;  %v8539_v51 = vsel %vm2529_vm1, %v2525_v26, 1326507024  ;;  %v8541_v1 = vand.u32 3, %v2793_v36 }
 0x1ae   : > { %v2903_v8 = vadd.s32 536870912, %v2902_v52  ;;  %v2389_v23 = vshrl.u32 %v8495_v25, 16  ;;  %v2778_v61 = vmul.f32 -0.001358992, %v2777_v18  ;;  %v2785_v31 = vmul.f32 -0.00019511016, %v2777_v18 }
 0x1af   : > { %v2376_v5 = vsel %vm2374_vm0, %v2364_v63, 2102212464  ;;  %v2393_v44 = vmul.u32 %v2391_v39, %v2388_v43  ;;  %v2355_v3 = vshrl.u32 %v13855_v59, %v13890_v27  ;;  %v2413_v19 = vshrl.u32 %v8532_v41, 16 }
 0x1b0   : > { %v2904_v4 = vshrl.u32 %v2903_v8, 30  ;;  %v8548_v16 = vmul.u32 %v2390_v12, %v2389_v23  ;;  %v2779_v26 = vadd.f32 0.041655596, %v2778_v61  ;;  %v2786_v45 = vadd.f32 0.008332121, %v2785_v31 }
 0x1b1   : > { %v2392_v2 = vmul.u32 %v2390_v12, %v2388_v43  ;;  %v2396_v48 = vshll.u32 %v2393_v44, 16  ;;  %v2375_v13 = vsel %vm2371_vm6, %v2355_v3, %v2358_v17  ;;  %v2377_v6 = vsel %vm2373_vm5, %v2361_v60, %v2376_v5 }
 0x1b2   : > { %v2905_v10 = vshll.u32 %v2904_v4, 30  ;;  %v2395_v50 = vmul.u32 %v2391_v39, %v2389_v23  ;;  %v2780_v49 = vmul.f32 %v2779_v26, %v2777_v18  ;;  %v2787_v40 = vmul.f32 %v2786_v45, %v2777_v18 }
 0x1b3   : > { %vm2806_vm0 = vcmp.lt.s32.totalorder %v13874_v35, 0  ;;  %vm2400_vm8 = vc.u32 %v2392_v2, %v2396_v48  ;;  %v2402_v27 = vadd.s32 %v2396_v48, %v2392_v2  ;;  %v2398_v62 = vshll.u32 %v8548_v16, 16 }
 0x1b4   : > { %v8556_v28 = vsub.s32 %v2902_v52, %v2905_v10  ;;  %v2401_v63 = vsel %vm2400_vm8, 1, %v13856_v34  ;;  %v2412_v53 = vand.u32 65535, %v8532_v41  ;;  %v2781_v37 = vadd.f32 -0.4999988, %v2780_v49 }
 0x1b5   : > { %v2788_v17 = vadd.f32 -0.16666654, %v2787_v40  ;;  %v2403_v42 = vadd.s32 %v2401_v63, %v2395_v50  ;;  %v8561_v36 = vmul.u32 %v2413_v19, %v2388_v43  ;;  %vm2796_vm7 = vcmp.eq.s32.totalorder %v8541_v1, 0  ;;  %v13893_v40 = vld [vmem:[#allocation36_spill] sm:$0xff] }
 0x1b6   : > { %vm2907_vm11 = vcmp.lt.s32.totalorder %v8556_v28, 0  ;;  %v2908_v60 = vsub.s32 0, %v8556_v28  ;;  %vm2404_vm9 = vc.u32 %v2402_v27, %v2398_v62  ;;  %v2782_v30 = vmul.f32 %v2781_v37, %v2777_v18 }
 0x1b7   : > { %v2789_v38 = vmul.f32 %v2788_v17, %v2777_v18  ;;  %vm2795_vm10 = vcmp.lt.s32.totalorder %v8541_v1, 2  ;;  %v8569_v32 = vsel %vm2372_vm3, %v2375_v13, %v2377_v6  ;;  %v2405_v11 = vsel %vm2404_vm9, 1, %v13856_v34 }
 0x1b8   : > { %vm2792_vm12 = vweird.f32 %v7514_v56  ;;  %v2909_v14 = vsel %vm2907_vm11, %v2908_v60, %v8556_v28  ;;  %v2928_v52 = vsub.s32 4, %v2904_v4  ;;  %v2407_v15 = vadd.s32 %v2405_v11, %v2403_v42 }
 0x1b9   : > { %v2416_v41 = vmul.u32 %v2412_v53, %v2389_v23  ;;  %v2783_v12 = vadd.f32 1.0, %v2782_v30  ;;  %v2790_v39 = vadd.f32 1.0, %v2789_v38  ;;  %vm8576_vm13 = vcmp.le.f32.partialorder %v2804_v9, 0.7853982 }
 0x1ba   : > { %v2910_v20 = vclz %v2909_v14  ;;  %v2418_v8 = vshll.u32 %v8561_v36, 16  ;;  %vm2799_vm14 = vcmp.eq.s32.totalorder %v8541_v1, 2  ;;  %v2898_v61 = vadd.s32 %v8484_v21, %v8474_v47 }
 0x1bb   : > { %v2397_v31 = vshrl.u32 %v2393_v44, 16  ;;  %v2414_v5 = vmul.u32 %v2412_v53, %v2388_v43  ;;  %v2791_v3 = vmul.f32 %v2790_v39, %v8520_v7  ;;  %v2800_v26 = vxor.u32 2147483648, %v2783_v12 }
 0x1bc   : > { %v7057_v45 = vadd.s32 4294967294, %v2910_v20  ;;  %v2432_v9 = vmul.u32 %v8495_v25, %v8569_v32  ;;  %v8589_v2 = vsel %vm2806_vm0, %v2928_v52, %v2904_v4  ;;  %v2417_v10 = vmul.u32 %v2413_v19, %v2389_v23  ;;  %v13894_v52 = vld [vmem:[#allocation76_spill] sm:$0xff]  ;;  %v13901_v25 = vld [vmem:[#allocation78_spill] sm:$0xff] }
 0x1bd   : > { %v2408_v48 = vadd.s32 %v2407_v15, %v2397_v31  ;;  %vm2422_vm15 = vc.u32 %v2414_v5, %v2418_v8  ;;  %v2797_v13 = vxor.u32 2147483648, %v2791_v3  ;;  %v2420_v6 = vshll.u32 %v2416_v41, 16 }
 0x1be   : > { %vm7058_vm2 = vcmp.lt.s32.totalorder %v7057_v45, 0  ;;  %v2423_v47 = vsel %vm2422_vm15, 1, %v13856_v34  ;;  %v2801_v21 = vsel %vm2799_vm14, %v2800_v26, %v2791_v3  ;;  %v2424_v43 = vadd.s32 %v2418_v8, %v2414_v5  ;;  %v13896_v26 = vld [vmem:[#allocation71_spill] sm:$0xff] }
 0x1bf   : > { %v2913_v7 = vsel %vm7058_vm2, 0, %v7057_v45  ;;  %v2425_v44 = vadd.s32 %v2423_v47, %v2417_v10  ;;  %v2798_v50 = vsel %vm2796_vm7, %v2783_v12, %v2797_v13  ;;  %v2494_v27 = vand.u32 2147483647, %v13893_v40  ;;  %v13895_v12 = vld [vmem:[#allocation84_spill] sm:$0xff] }
 0x1c0   : > { %v2914_v49 = vsub.s32 32, %v2913_v7  ;;  %v2918_v4 = vsub.s32 4294967266, %v2913_v7  ;;  %v2802_v23 = vsel %vm2795_vm10, %v2798_v50, %v2801_v21  ;;  %v2915_v19 = vshll.u32 %v8556_v28, %v2913_v7 }
 0x1c1   : > { %v2399_v62 = vshrl.u32 %v8548_v16, 16  ;;  %vm2426_vm4 = vc.u32 %v2424_v43, %v2420_v6  ;;  %v2803_v63 = vsel %vm2792_vm12, nan, %v2802_v23  ;;  %v2931_v42 = vsel %vm8576_vm13, 0, %v8589_v2 }
 0x1c2   : > { %v2916_v53 = vshrl.u32 %v2898_v61, %v2914_v49  ;;  %v2919_v37 = vadd.s32 127, %v2918_v4  ;;  %v2427_v17 = vsel %vm2426_vm4, 1, %v13856_v34  ;;  %3688 = vmatpush.msra.mxu2 %v2803_v63  ;;  %v2419_v1 = vshrl.u32 %v8561_v36, 16 }
 0x1c3   : > { %v8607_v60 = vadd.s32 %v2408_v48, %v2399_v62  ;;  %v2429_v28 = vadd.s32 %v2427_v17, %v2425_v44  ;;  %v2421_v38 = vshrl.u32 %v2416_v41, 16  ;;  %v2501_v56 = vand.u32 8388607, %v2494_v27  ;;  %v13898_v44 = vld [vmem:[#allocation77_spill] sm:$0xff]  ;;  %v13900_v62 = vld [vmem:[#allocation80_spill] sm:$0xff] }
 0x1c4   : > { %v2917_v30 = vor.u32 %v2916_v53, %v2915_v19  ;;  %v2920_v16 = vshll.u32 %v2919_v37, 23  ;;  %v2428_v11 = vadd.s32 %v2424_v43, %v2420_v6  ;;  %v2511_v15 = vshll.u32 %v13855_v59, %v13894_v52  ;;  %v13897_v43 = vld [vmem:[#allocation74_spill] sm:$0xff]  ;;  %v13899_v19 = vld [vmem:[#allocation75_spill] sm:$0xff] }
 0x1c5   : > { %v2430_v14 = vadd.s32 %v2429_v28, %v2419_v1  ;;  %v2512_v39 = vshrl.u32 %v13857_v55, %v13895_v12  ;;  %v2502_v8 = vor.u32 8388608, %v2501_v56  ;;  %v2514_v36 = vshll.u32 %v13857_v55, %v13894_v52 }
 0x1c6   : > { %v2921_v20 = vor.u32 4788187, %v2920_v16  ;;  %v2515_v61 = vshrl.u32 %v13858_v0, %v13895_v12  ;;  %v2517_v5 = vshll.u32 %v13858_v0, %v13894_v52  ;;  %v2518_v3 = vshrl.u32 %v13803_v46, %v13895_v12 }
 0x1c7   : > { %v2431_v41 = vadd.s32 %v2430_v14, %v2421_v38  ;;  %v8620_v31 = vor.u32 %v2512_v39, %v2511_v15  ;;  %vm2064_vm5 = vcmp.lt.s32.totalorder %v13896_v26, 4  ;;  %v2924_v2 = vcvt.s32.f32 %v2917_v30 }
 0x1c8   : > { %v2922_v45 = vand.u32 2147483647, %v2921_v20  ;;  %vm2434_vm6 = vc.u32 %v8607_v60, %v2428_v11  ;;  %v8628_v48 = vor.u32 %v2515_v61, %v2514_v36  ;;  %v2519_v13 = vor.u32 %v2518_v3, %v2517_v5 }
 0x1c9   : > { %v2435_v10 = vadd.s32 1, %v2431_v41  ;;  %vm2526_vm3 = vcmp.lt.s32.totalorder %v13888_v57, 1  ;;  %vm2528_vm8 = vcmp.lt.s32.totalorder %v13888_v57, 3  ;;  %v8640_v7 = vshll.u32 %v2502_v8, 8 }
 0x1ca   : > { %v2925_v6 = vmul.f32 %v2924_v2, %v2922_v45  ;;  %v2534_v47 = vsel %vm2526_vm3, %v8620_v31, %v8628_v48  ;;  %v2540_v21 = vsel %vm2528_vm8, %v8404_v33, %v8539_v51  ;;  %v8644_v50 = vor.u32 %v13898_v44, %v13897_v43 }
 0x1cb   : > { %v2436_v49 = vsel %vm2434_vm6, %v2435_v10, %v2431_v41  ;;  %v2536_v4 = vsel %vm2528_vm8, %v2519_v13, %v8512_v24  ;;  %v2538_v23 = vsel %vm2526_vm3, %v8628_v48, %v2519_v13  ;;  %v2060_v63 = vor.u32 %v13900_v62, %v13899_v19 }
 0x1cc   : > { %v2926_v53 = vxor.u32 2147483648, %v2925_v6  ;;  %v2437_v33 = vadd.s32 %v2436_v49, %v2432_v9  ;;  %vm2527_vm7 = vcmp.lt.s32.totalorder %v13888_v57, 2  ;;  %v2948_v51 = vadd.s32 3, %v2931_v42  ;;  %v13902_v9 = vld [vmem:[#allocation69_spill] sm:$0xff] }
 0x1cd   : > { %v8660_v37 = vsel %vm2527_vm7, %v2534_v47, %v2536_v4  ;;  %v2541_v24 = vsel %vm2527_vm7, %v2538_v23, %v2540_v21  ;;  %v2543_v17 = vand.u32 65535, %v8640_v7  ;;  %v8669_v32 = vshrl.u32 %v13868_v54, %v13901_v25 }
 0x1ce   : > { %v2927_v1 = vsel %vm2806_vm0, %v2926_v53, %v2925_v6  ;;  %v2438_v28 = vadd.s32 536870912, %v2437_v33  ;;  %v2545_v30 = vand.u32 65535, %v2541_v24  ;;  %v2546_v16 = vshrl.u32 %v2541_v24, 16 }
 0x1cf   : > { %v8673_v42 = vshll.u32 %v13868_v54, %v13902_v9  ;;  %v2930_v38 = vsel %vm8576_vm13, %v13874_v35, %v2927_v1  ;;  %v2544_v56 = vshrl.u32 %v8640_v7, 16  ;;  %v8681_v14 = vshrl.u32 %v13870_v29, %v13901_v25 }
 0x1d0   : > { %v2932_v52 = vmul.f32 %v2930_v38, %v2930_v38  ;;  %v8683_v15 = vshrl.u32 %v2438_v28, 30  ;;  %v2548_v39 = vmul.u32 %v2546_v16, %v2543_v17  ;;  %v8688_v20 = vsel %vm2064_vm5, %v8644_v50, 920167782 }
 0x1d1   : > { %v8692_v8 = vsel %vm2064_vm5, %v2060_v63, 1326507024  ;;  %v8694_v18 = vmul.u32 %v2545_v30, %v2544_v56  ;;  %v2568_v36 = vshrl.u32 %v8660_v37, 16  ;;  %v8697_v5 = vand.u32 3, %v2948_v51 }
 0x1d2   : > { %v2933_v61 = vmul.f32 -0.001358992, %v2932_v52  ;;  %v2940_v41 = vmul.f32 -0.00019511016, %v2932_v52  ;;  %v2440_v3 = vshll.u32 %v8683_v15, 30  ;;  %v2433_v45 = vadd.s32 %v2428_v11, %v8607_v60 }
 0x1d3   : > { %v2547_v2 = vmul.u32 %v2545_v30, %v2543_v17  ;;  %v2551_v10 = vshll.u32 %v2548_v39, 16  ;;  %v2567_v6 = vand.u32 65535, %v8660_v37  ;;  %v2550_v44 = vmul.u32 %v2546_v16, %v2544_v56 }
 0x1d4   : > { %v2934_v47 = vadd.f32 0.041655596, %v2933_v61  ;;  %v2941_v21 = vadd.f32 0.008332121, %v2940_v41  ;;  %v8702_v43 = vsub.s32 %v2437_v33, %v2440_v3  ;;  %v2553_v49 = vshll.u32 %v8694_v18, 16 }
 0x1d5   : > { %vm2555_vm0 = vc.u32 %v2547_v2, %v2551_v10  ;;  %v2557_v4 = vadd.s32 %v2551_v10, %v2547_v2  ;;  %v8705_v23 = vmul.u32 %v2568_v36, %v2543_v17  ;;  %v2510_v11 = vshrl.u32 %v13855_v59, %v13895_v12 }
 0x1d6   : > { %v2935_v19 = vmul.f32 %v2934_v47, %v2932_v52  ;;  %v2942_v62 = vmul.f32 %v2941_v21, %v2932_v52  ;;  %vm2442_vm11 = vcmp.lt.s32.totalorder %v8702_v43, 0  ;;  %v2443_v60 = vsub.s32 0, %v8702_v43 }
 0x1d7   : > { %v2531_v63 = vsel %vm2529_vm1, %v2519_v13, 2102212464  ;;  %v2556_v53 = vsel %vm2555_vm0, 1, %v13856_v34  ;;  %vm2559_vm9 = vc.u32 %v2557_v4, %v2553_v49  ;;  %vm2951_vm10 = vcmp.eq.s32.totalorder %v8697_v5, 0 }
 0x1d8   : > { %v2936_v33 = vadd.f32 -0.4999988, %v2935_v19  ;;  %v2943_v51 = vadd.f32 -0.16666654, %v2942_v62  ;;  %v2444_v37 = vsel %vm2442_vm11, %v2443_v60, %v8702_v43  ;;  %v2558_v24 = vadd.s32 %v2556_v53, %v2550_v44 }
 0x1d9   : > { %vm2954_vm12 = vcmp.eq.s32.totalorder %v8697_v5, 2  ;;  %v2445_v1 = vclz %v2444_v37  ;;  %v2552_v28 = vshrl.u32 %v2548_v39, 16  ;;  %v2560_v30 = vsel %vm2559_vm9, 1, %v13856_v34 }
 0x1da   : > { %v2573_v12 = vshll.u32 %v8705_v23, 16  ;;  %v2937_v16 = vmul.f32 %v2936_v33, %v2932_v52  ;;  %v2944_v13 = vmul.f32 %v2943_v51, %v2932_v52  ;;  %vm2950_vm1 = vcmp.lt.s32.totalorder %v8697_v5, 2 }
 0x1db   : > { %v2562_v61 = vadd.s32 %v2560_v30, %v2558_v24  ;;  %v2571_v41 = vmul.u32 %v2567_v6, %v2544_v56  ;;  %vm2947_vm13 = vweird.f32 %v13874_v35  ;;  %v7048_v3 = vadd.s32 4294967294, %v2445_v1  ;;  %v13903_v24 = vld [vmem:[#allocation18_spill] sm:$0xff]  ;;  %v13904_v35 = vld [vmem:[#allocation68_spill] sm:$0xff] }
 0x1dc   : > { %v2530_v2 = vsel %vm2526_vm3, %v2510_v11, %v8620_v31  ;;  %v2532_v39 = vsel %vm2528_vm8, %v8628_v48, %v2531_v63  ;;  %v2569_v10 = vmul.u32 %v2567_v6, %v2543_v17  ;;  %v2938_v47 = vadd.f32 1.0, %v2937_v16 }
 0x1dd   : > { %v2945_v21 = vadd.f32 1.0, %v2944_v13  ;;  %v2554_v52 = vshrl.u32 %v8694_v18, 16  ;;  %v2563_v44 = vadd.s32 %v2562_v61, %v2552_v28  ;;  %vm7049_vm14 = vcmp.lt.s32.totalorder %v7048_v3, 0 }
 0x1de   : > { %v2572_v49 = vmul.u32 %v2568_v36, %v2544_v56  ;;  %vm2577_vm15 = vc.u32 %v2569_v10, %v2573_v12  ;;  %v2579_v4 = vadd.s32 %v2573_v12, %v2569_v10  ;;  %v2955_v62 = vxor.u32 2147483648, %v2938_v47 }
 0x1df   : > { %v2946_v19 = vmul.f32 %v2945_v21, %v2930_v38  ;;  %v2448_v60 = vsel %vm7049_vm14, 0, %v7048_v3  ;;  %v2575_v53 = vshll.u32 %v2571_v41, 16  ;;  %v2574_v11 = vshrl.u32 %v8705_v23, 16 }
 0x1e0   : > { %v2449_v33 = vsub.s32 32, %v2448_v60  ;;  %v2453_v31 = vsub.s32 4294967266, %v2448_v60  ;;  %v2578_v48 = vsel %vm2577_vm15, 1, %v13856_v34  ;;  %v8730_v6 = vadd.s32 %v2563_v44, %v2554_v52  ;;  %v13905_v44 = vld [vmem:[#allocation63_spill] sm:$0xff] }
 0x1e1   : > { %v2952_v17 = vxor.u32 2147483648, %v2946_v19  ;;  %v2580_v63 = vadd.s32 %v2578_v48, %v2572_v49  ;;  %vm2581_vm2 = vc.u32 %v2579_v4, %v2575_v53  ;;  %v2450_v18 = vshll.u32 %v8702_v43, %v2448_v60  ;;  %v13906_v60 = vld [vmem:[#allocation72_spill] sm:$0xff] }
 0x1e2   : > { %v2451_v56 = vshrl.u32 %v2433_v45, %v2449_v33  ;;  %v2454_v36 = vadd.s32 127, %v2453_v31  ;;  %v2582_v38 = vsel %vm2581_vm2, 1, %v13856_v34  ;;  %v2956_v37 = vsel %vm2954_vm12, %v2955_v62, %v2946_v19 }
 0x1e3   : > { %v2953_v51 = vsel %vm2951_vm10, %v2938_v47, %v2952_v17  ;;  %v2584_v23 = vadd.s32 %v2582_v38, %v2580_v63  ;;  %v2029_v1 = vand.u32 2147483647, %v13903_v24  ;;  %vm2341_vm4 = vcmp.lt.s32.totalorder %v13885_v58, 0 }
 0x1e4   : > { %v2957_v28 = vsel %vm2950_vm1, %v2953_v51, %v2956_v37  ;;  %v2452_v30 = vor.u32 %v2451_v56, %v2450_v18  ;;  %v2455_v43 = vshll.u32 %v2454_v36, 23  ;;  %v2576_v12 = vshrl.u32 %v2571_v41, 16 }
 0x1e5   : > { %v2958_v45 = vsel %vm2947_vm13, nan, %v2957_v28  ;;  %v8744_v16 = vadd.s32 %v2579_v4, %v2575_v53  ;;  %v2585_v13 = vadd.s32 %v2584_v23, %v2574_v11  ;;  %v2463_v3 = vsub.s32 4, %v8683_v15 }
 0x1e6   : > { %3735 = vmatpush.msra.mxu3 %v2958_v45  ;;  %v2456_v61 = vor.u32 4788187, %v2455_v43  ;;  %v2533_v10 = vsel %vm2527_vm7, %v2530_v2, %v2532_v39  ;;  %v2036_v5 = vand.u32 8388607, %v2029_v1  ;;  %v2459_v47 = vcvt.s32.f32 %v2452_v30 }
 0x1e7   : > { %v2586_v21 = vadd.s32 %v2585_v13, %v2576_v12  ;;  %vm2589_vm6 = vc.u32 %v8730_v6, %v8744_v16  ;;  %v2047_v41 = vshrl.u32 %v13857_v55, %v13904_v35  ;;  %v2046_v49 = vshll.u32 %v13855_v59, %v13905_v44 }
 0x1e8   : > { %v2457_v52 = vand.u32 2147483647, %v2456_v61  ;;  %v2049_v4 = vshll.u32 %v13857_v55, %v13905_v44  ;;  %v2050_v57 = vshrl.u32 %v13858_v0, %v13904_v35  ;;  %v2037_v39 = vor.u32 8388608, %v2036_v5 }
 0x1e9   : > { %v2590_v2 = vadd.s32 1, %v2586_v21  ;;  %v2052_v19 = vshll.u32 %v13858_v0, %v13905_v44  ;;  %v2053_v62 = vshrl.u32 %v13803_v46, %v13904_v35  ;;  %vm2219_vm3 = vcmp.lt.s32.totalorder %v13906_v60, 4 }
 0x1ea   : > { %v2460_v53 = vmul.f32 %v2459_v47, %v2457_v52  ;;  %v2464_v33 = vsel %vm2341_vm4, %v2463_v3, %v8683_v15  ;;  %v2587_v31 = vmul.u32 %v8640_v7, %v2533_v10  ;;  %v8770_v11 = vor.u32 %v2050_v57, %v2049_v4  ;;  %v13907_v15 = vld [vmem:[#allocation79_spill] sm:$0xff] }
 0x1eb   : > { %v2591_v48 = vsel %vm2589_vm6, %v2590_v2, %v2586_v21  ;;  %v8772_v17 = vor.u32 %v2047_v41, %v2046_v49  ;;  %v2054_v63 = vor.u32 %v2053_v62, %v2052_v19  ;;  %vm2063_vm8 = vcmp.lt.s32.totalorder %v13896_v26, 3  ;;  %v13909_v21 = vld [vmem:[#allocation65_spill] sm:$0xff] }
 0x1ec   : > { %v2461_v18 = vxor.u32 2147483648, %v2460_v53  ;;  %v2592_v56 = vadd.s32 %v2591_v48, %v2587_v31  ;;  %vm2061_vm7 = vcmp.lt.s32.totalorder %v13896_v26, 1  ;;  %v2075_v36 = vsel %vm2063_vm8, %v8644_v50, %v8692_v8 }
 0x1ed   : > { %v8782_v7 = vor.u32 %v8669_v32, %v13907_v15  ;;  %vm2340_vm0 = vcmp.le.f32.partialorder %v2339_v22, 0.7853982  ;;  %v2073_v38 = vsel %vm2061_vm7, %v8770_v11, %v2054_v63  ;;  %v8789_v51 = vshll.u32 %v2037_v39, 8 }
 0x1ee   : > { %v2462_v37 = vsel %vm2341_vm4, %v2461_v18, %v2460_v53  ;;  %v2466_v23 = vsel %vm2340_vm0, 0, %v2464_v33  ;;  %v2593_v28 = vadd.s32 536870912, %v2592_v56  ;;  %vm2062_vm11 = vcmp.lt.s32.totalorder %v13896_v26, 2 }
 0x1ef   : > { %v8795_v50 = vsel %vm2340_vm0, %v13885_v58, %v2462_v37  ;;  %v2069_v22 = vsel %vm2061_vm7, %v8772_v17, %v8770_v11  ;;  %v2071_v32 = vsel %vm2063_vm8, %v2054_v63, %v8688_v20  ;;  %v2076_v8 = vsel %vm2062_vm11, %v2073_v38, %v2075_v36 }
 0x1f0   : > { %v2215_v30 = vor.u32 %v8681_v14, %v8673_v42  ;;  %v2467_v43 = vmul.f32 %v8795_v50, %v8795_v50  ;;  %v8810_v45 = vshrl.u32 %v2593_v28, 30  ;;  %v2080_v12 = vand.u32 65535, %v2076_v8  ;;  %v13908_v14 = vld [vmem:[#allocation60_spill] sm:$0xff] }
 0x1f1   : > { %v2483_v13 = vadd.s32 3, %v2466_v23  ;;  %v2078_v61 = vand.u32 65535, %v8789_v51  ;;  %v8814_v3 = vshrl.u32 %v8789_v51, 16  ;;  %v2081_v10 = vshrl.u32 %v2076_v8, 16 }
 0x1f2   : > { %v2468_v20 = vmul.f32 -0.001358992, %v2467_v43  ;;  %v2475_v5 = vmul.f32 -0.00019511016, %v2467_v43  ;;  %v2595_v47 = vshll.u32 %v8810_v45, 30  ;;  %v2072_v42 = vsel %vm2062_vm11, %v2069_v22, %v2071_v32 }
 0x1f3   : > { %v1750_v41 = vor.u32 %v13909_v21, %v13908_v14  ;;  %v8824_v52 = vsel %vm2219_vm3, %v8782_v7, 920167782  ;;  %v2083_v44 = vmul.u32 %v2081_v10, %v2078_v61  ;;  %v8827_v49 = vmul.u32 %v2080_v12, %v8814_v3 }
 0x1f4   : > { %v8831_v4 = vsel %vm2219_vm3, %v2215_v30, 1326507024  ;;  %v2469_v57 = vadd.f32 0.041655596, %v2468_v20  ;;  %v2476_v2 = vadd.f32 0.008332121, %v2475_v5  ;;  %v8833_v39 = vsub.s32 %v2592_v56, %v2595_v47 }
 0x1f5   : > { %v2484_v19 = vand.u32 3, %v2483_v13  ;;  %v2082_v62 = vmul.u32 %v2080_v12, %v2078_v61  ;;  %v2086_v53 = vshll.u32 %v2083_v44, 16  ;;  %v2103_v33 = vshrl.u32 %v2072_v42, 16 }
 0x1f6   : > { %v2470_v31 = vmul.f32 %v2469_v57, %v2467_v43  ;;  %v2477_v48 = vmul.f32 %v2476_v2, %v2467_v43  ;;  %vm2597_vm9 = vcmp.lt.s32.totalorder %v8833_v39, 0  ;;  %v2598_v18 = vsub.s32 0, %v8833_v39 }
 0x1f7   : > { %v2085_v36 = vmul.u32 %v2081_v10, %v8814_v3  ;;  %v2088_v15 = vshll.u32 %v8827_v49, 16  ;;  %vm2090_vm10 = vc.u32 %v2082_v62, %v2086_v53  ;;  %v2092_v38 = vadd.s32 %v2086_v53, %v2082_v62 }
 0x1f8   : > { %v2471_v37 = vadd.f32 -0.4999988, %v2470_v31  ;;  %v2478_v23 = vadd.f32 -0.16666654, %v2477_v48  ;;  %v2599_v56 = vsel %vm2597_vm9, %v2598_v18, %v8833_v39  ;;  %v2091_v28 = vsel %vm2090_vm10, 1, %v13856_v34 }
 0x1f9   : > { %vm2486_vm12 = vcmp.eq.s32.totalorder %v2484_v19, 0  ;;  %v2600_v22 = vclz %v2599_v56  ;;  %v2093_v32 = vadd.s32 %v2091_v28, %v2085_v36  ;;  %vm2094_vm1 = vc.u32 %v2092_v38, %v2088_v15 }
 0x1fa   : > { %v2102_v8 = vand.u32 65535, %v2072_v42  ;;  %v2472_v30 = vmul.f32 %v2471_v37, %v2467_v43  ;;  %v2479_v12 = vmul.f32 %v2478_v23, %v2467_v43  ;;  %vm2485_vm13 = vcmp.lt.s32.totalorder %v2484_v19, 2 }
 0x1fb   : > { %v2066_v13 = vsel %vm2064_vm5, %v2054_v63, 2102212464  ;;  %v2095_v10 = vsel %vm2094_vm1, 1, %v13856_v34  ;;  %vm2482_vm14 = vweird.f32 %v13885_v58  ;;  %vm2489_vm15 = vcmp.eq.s32.totalorder %v2484_v19, 2 }
 0x1fc   : > { %v2588_v20 = vadd.s32 %v8744_v16, %v8730_v6  ;;  %v7051_v5 = vadd.s32 4294967294, %v2600_v22  ;;  %v2045_v47 = vshrl.u32 %v13855_v59, %v13904_v35  ;;  %v2473_v57 = vadd.f32 1.0, %v2472_v30 }
 0x1fd   : > { %v2480_v42 = vadd.f32 1.0, %v2479_v12  ;;  %v2097_v2 = vadd.s32 %v2095_v10, %v2093_v32  ;;  %v2105_v43 = vmul.u32 %v2103_v33, %v2078_v61  ;;  %v2067_v62 = vsel %vm2063_vm8, %v8770_v11, %v2066_v13  ;;  %v13910_v32 = vld [vmem:[#allocation25_spill] sm:$0xff] }
 0x1fe   : > { %vm7052_vm2 = vcmp.lt.s32.totalorder %v7051_v5, 0  ;;  %v2065_v63 = vsel %vm2061_vm7, %v2045_v47, %v8772_v17  ;;  %v2106_v53 = vmul.u32 %v2102_v8, %v8814_v3  ;;  %v2490_v16 = vxor.u32 2147483648, %v2473_v57 }
 0x1ff   : > { %v2481_v6 = vmul.f32 %v2480_v42, %v8795_v50  ;;  %v2603_v31 = vsel %vm7052_vm2, 0, %v7051_v5  ;;  %v2087_v35 = vshrl.u32 %v2083_v44, 16  ;;  %v2104_v36 = vmul.u32 %v2102_v8, %v2078_v61 }
 0x200   : > { %v2604_v48 = vsub.s32 32, %v2603_v31  ;;  %v2608_v18 = vsub.s32 4294967266, %v2603_v31  ;;  %v2108_v15 = vshll.u32 %v2105_v43, 16  ;;  %v2605_v37 = vshll.u32 %v8833_v39, %v2603_v31 }
 0x201   : > { %v2487_v38 = vxor.u32 2147483648, %v2481_v6  ;;  %v2098_v23 = vadd.s32 %v2097_v2, %v2087_v35  ;;  %v2107_v17 = vmul.u32 %v2103_v33, %v8814_v3  ;;  %v2491_v56 = vsel %vm2489_vm15, %v2490_v16, %v2481_v6 }
 0x202   : > { %vm2496_vm5 = vcmp.lt.s32.totalorder %v13893_v40, 0  ;;  %v2606_v11 = vshrl.u32 %v2588_v20, %v2604_v48  ;;  %v2609_v28 = vadd.s32 127, %v2608_v18  ;;  %v2110_v50 = vshll.u32 %v2106_v53, 16 }
 0x203   : > { %v2488_v22 = vsel %vm2486_vm12, %v2473_v57, %v2487_v38  ;;  %vm2112_vm4 = vc.u32 %v2104_v36, %v2108_v15  ;;  %v2114_v44 = vadd.s32 %v2108_v15, %v2104_v36  ;;  %v2184_v61 = vand.u32 2147483647, %v13910_v32 }
 0x204   : > { %v2492_v8 = vsel %vm2485_vm13, %v2488_v22, %v2491_v56  ;;  %v2607_v30 = vor.u32 %v2606_v11, %v2605_v37  ;;  %v2610_v39 = vshll.u32 %v2609_v28, 23  ;;  %v2113_v12 = vsel %vm2112_vm4, 1, %v13856_v34 }
 0x205   : > { %v2493_v3 = vsel %vm2482_vm14, nan, %v2492_v8  ;;  %v2089_v33 = vshrl.u32 %v8827_v49, 16  ;;  %v2115_v13 = vadd.s32 %v2113_v12, %v2107_v17  ;;  %vm2116_vm6 = vc.u32 %v2114_v44, %v2110_v50 }
 0x206   : > { %3689 = vmatpush.msra.mxu2 %v2493_v3  ;;  %v2611_v10 = vor.u32 4788187, %v2610_v39  ;;  %v2618_v20 = vsub.s32 4, %v8810_v45  ;;  %v2068_v5 = vsel %vm2062_vm11, %v2065_v63, %v2067_v62  ;;  %v2117_v19 = vsel %vm2116_vm6, 1, %v13856_v34 }
 0x207   : > { %v8872_v47 = vadd.s32 %v2098_v23, %v2089_v33  ;;  %v2109_v57 = vshrl.u32 %v2105_v43, 16  ;;  %v2111_v42 = vshrl.u32 %v2106_v53, 16  ;;  %v2119_v2 = vadd.s32 %v2117_v19, %v2115_v13  ;;  %v13911_v43 = vld [vmem:[#allocation57_spill] sm:$0xff]  ;;  %v13914_v19 = vld [vmem:[#allocation70_spill] sm:$0xff] }
 0x208   : > { %v2612_v58 = vand.u32 2147483647, %v2611_v10  ;;  %v2614_v6 = vcvt.s32.f32 %v2607_v30  ;;  %v8874_v16 = vadd.s32 %v2114_v44, %v2110_v50  ;;  %v2191_v49 = vand.u32 8388607, %v2184_v61 }
 0x209   : > { %v2120_v31 = vadd.s32 %v2119_v2, %v2109_v57  ;;  %v2202_v35 = vshrl.u32 %v13857_v55, %v13901_v25  ;;  %v2204_v26 = vshll.u32 %v13857_v55, %v13902_v9  ;;  %v2205_v63 = vshrl.u32 %v13858_v0, %v13901_v25 }
 0x20a   : > { %vm1754_vm8 = vcmp.lt.s32.totalorder %v13911_v43, 4  ;;  %v2615_v62 = vmul.f32 %v2614_v6, %v2612_v58  ;;  %v2201_v53 = vshll.u32 %v13855_v59, %v13902_v9  ;;  %v2207_v48 = vshll.u32 %v13858_v0, %v13902_v9 }
 0x20b   : > { %v2208_v18 = vshrl.u32 %v13803_v46, %v13901_v25  ;;  %v2619_v36 = vsel %vm2496_vm5, %v2618_v20, %v8810_v45  ;;  %v2121_v15 = vadd.s32 %v2120_v31, %v2111_v42  ;;  %vm2124_vm7 = vc.u32 %v8872_v47, %v8874_v16 }
 0x20c   : > { %v2206_v38 = vor.u32 %v2205_v63, %v2204_v26  ;;  %v2616_v37 = vxor.u32 2147483648, %v2615_v62  ;;  %v2203_v23 = vor.u32 %v2202_v35, %v2201_v53  ;;  %vm2218_vm0 = vcmp.lt.s32.totalorder %v13906_v60, 3 }
 0x20d   : > { %v2209_v17 = vor.u32 %v2208_v18, %v2207_v48  ;;  %v2125_v56 = vadd.s32 1, %v2121_v15  ;;  %v2192_v11 = vor.u32 8388608, %v2191_v49  ;;  %vm2216_vm11 = vcmp.lt.s32.totalorder %v13906_v60, 1 }
 0x20e   : > { %v2230_v9 = vsel %vm2218_vm0, %v8782_v7, %v8831_v4  ;;  %vm8904_vm9 = vcmp.le.f32.partialorder %v2494_v27, 0.7853982  ;;  %v2617_v28 = vsel %vm2496_vm5, %v2616_v37, %v2615_v62  ;;  %v2122_v50 = vmul.u32 %v8789_v51, %v2068_v5 }
 0x20f   : > { %v2228_v22 = vsel %vm2216_vm11, %v2206_v38, %v2209_v17  ;;  %v8916_v44 = vsel %vm8904_vm9, %v13893_v40, %v2617_v28  ;;  %v2621_v7 = vsel %vm8904_vm9, 0, %v2619_v36  ;;  %v2126_v27 = vsel %vm2124_vm7, %v2125_v56, %v2121_v15 }
 0x210   : > { %vm2217_vm10 = vcmp.lt.s32.totalorder %v13906_v60, 2  ;;  %v2622_v51 = vmul.f32 %v8916_v44, %v8916_v44  ;;  %v2127_v4 = vadd.s32 %v2126_v27, %v2122_v50  ;;  %v2224_v8 = vsel %vm2216_vm11, %v2203_v23, %v2206_v38 }
 0x211   : > { %v2231_v30 = vsel %vm2217_vm10, %v2228_v22, %v2230_v9  ;;  %v2226_v39 = vsel %vm2218_vm0, %v2209_v17, %v8824_v52  ;;  %v8933_v12 = vshll.u32 %v2192_v11, 8  ;;  %v2638_v20 = vadd.s32 3, %v2621_v7 }
 0x212   : > { %v2235_v3 = vand.u32 65535, %v2231_v30  ;;  %v2236_v33 = vshrl.u32 %v2231_v30, 16  ;;  %v2623_v13 = vmul.f32 -0.001358992, %v2622_v51  ;;  %v2630_v10 = vmul.f32 -0.00019511016, %v2622_v51 }
 0x213   : > { %v2128_v5 = vadd.s32 536870912, %v2127_v4  ;;  %v8938_v57 = vsel %vm1754_vm8, %v13914_v19, 920167782  ;;  %v8945_v42 = vsel %vm1754_vm8, %v1750_v41, 1326507024  ;;  %v2233_v52 = vand.u32 65535, %v8933_v12 }
 0x214   : > { %v2234_v2 = vshrl.u32 %v8933_v12, 16  ;;  %v2624_v58 = vadd.f32 0.041655596, %v2623_v13  ;;  %v2631_v6 = vadd.f32 0.008332121, %v2630_v10  ;;  %v2227_v31 = vsel %vm2217_vm10, %v2224_v8, %v2226_v39 }
 0x215   : > { %v8949_v49 = vshrl.u32 %v2128_v5, 30  ;;  %v2200_v35 = vshrl.u32 %v13855_v59, %v13901_v25  ;;  %v2221_v14 = vsel %vm2219_vm3, %v2209_v17, 2102212464  ;;  %v2238_v21 = vmul.u32 %v2236_v33, %v2233_v52 }
 0x216   : > { %v8957_v41 = vmul.u32 %v2235_v3, %v2234_v2  ;;  %v2625_v26 = vmul.f32 %v2624_v58, %v2622_v51  ;;  %v2632_v63 = vmul.f32 %v2631_v6, %v2622_v51  ;;  %v2639_v62 = vand.u32 3, %v2638_v20 }
 0x217   : > { %v2130_v53 = vshll.u32 %v8949_v49, 30  ;;  %v2220_v48 = vsel %vm2216_vm11, %v2200_v35, %v2203_v23  ;;  %v2237_v18 = vmul.u32 %v2235_v3, %v2233_v52  ;;  %v2241_v36 = vshll.u32 %v2238_v21, 16 }
 0x218   : > { %v2258_v15 = vshrl.u32 %v2227_v31, 16  ;;  %v2626_v37 = vadd.f32 -0.4999988, %v2625_v26  ;;  %v2633_v56 = vadd.f32 -0.16666654, %v2632_v63  ;;  %v2222_v17 = vsel %vm2218_vm0, %v2206_v38, %v2221_v14 }
 0x219   : > { %v8962_v25 = vsub.s32 %v2127_v4, %v2130_v53  ;;  %v2240_v11 = vmul.u32 %v2236_v33, %v2234_v2  ;;  %v2243_v9 = vshll.u32 %v8957_v41, 16  ;;  %vm2245_vm3 = vc.u32 %v2237_v18, %v2241_v36 }
 0x21a   : > { %v2247_v45 = vadd.s32 %v2241_v36, %v2237_v18  ;;  %v2627_v28 = vmul.f32 %v2626_v37, %v2622_v51  ;;  %v2634_v50 = vmul.f32 %v2633_v56, %v2622_v51  ;;  %vm2640_vm12 = vcmp.lt.s32.totalorder %v2639_v62, 2 }
 0x21b   : > { %vm2132_vm1 = vcmp.lt.s32.totalorder %v8962_v25, 0  ;;  %v2133_v23 = vsub.s32 0, %v8962_v25  ;;  %vm2637_vm13 = vweird.f32 %v13893_v40  ;;  %v2246_v22 = vsel %vm2245_vm3, 1, %v13856_v34 }
 0x21c   : > { %vm2249_vm14 = vc.u32 %v2247_v45, %v2243_v9  ;;  %v2257_v7 = vand.u32 65535, %v2227_v31  ;;  %v2260_v27 = vmul.u32 %v2258_v15, %v2233_v52  ;;  %v2628_v38 = vadd.f32 1.0, %v2627_v28  ;;  %v13925_v28 = vld [vmem:[#allocation58_spill] sm:$0xff] }
 0x21d   : > { %v2635_v4 = vadd.f32 1.0, %v2634_v50  ;;  %v2134_v8 = vsel %vm2132_vm1, %v2133_v23, %v8962_v25  ;;  %v2248_v30 = vadd.s32 %v2246_v22, %v2240_v11  ;;  %vm2641_vm15 = vcmp.eq.s32.totalorder %v2639_v62, 0 }
 0x21e   : > { %vm2644_vm2 = vcmp.eq.s32.totalorder %v2639_v62, 2  ;;  %vm2031_vm5 = vcmp.lt.s32.totalorder %v13903_v24, 0  ;;  %v2135_v51 = vclz %v2134_v8  ;;  %v2250_v39 = vsel %vm2249_vm14, 1, %v13856_v34 }
 0x21f   : > { %v2636_v3 = vmul.f32 %v2635_v4, %v8916_v44  ;;  %v2645_v33 = vxor.u32 2147483648, %v2628_v38  ;;  %v2123_v13 = vadd.s32 %v8874_v16, %v8872_v47  ;;  %v2252_v10 = vadd.s32 %v2250_v39, %v2248_v30 }
 0x220   : > { %v7042_v20 = vadd.s32 4294967294, %v2135_v51  ;;  %v2153_v5 = vsub.s32 4, %v8949_v49  ;;  %v8980_v58 = vsel %vm2217_vm10, %v2220_v48, %v2222_v17  ;;  %v2261_v6 = vmul.u32 %v2257_v7, %v2234_v2  ;;  %v13915_v17 = vld [vmem:[#allocation10_spill] sm:$0xff]  ;;  %v13919_v51 = vld [vmem:[#allocation59_spill] sm:$0xff] }
 0x221   : > { %v2642_v31 = vxor.u32 2147483648, %v2636_v3  ;;  %v2242_v35 = vshrl.u32 %v2238_v21, 16  ;;  %v2259_v14 = vmul.u32 %v2257_v7, %v2233_v52  ;;  %v2263_v26 = vshll.u32 %v2260_v27, 16 }
 0x222   : > { %v2646_v63 = vsel %vm2644_vm2, %v2645_v33, %v2636_v3  ;;  %vm7043_vm4 = vcmp.lt.s32.totalorder %v7042_v20, 0  ;;  %v2244_v44 = vshrl.u32 %v8957_v41, 16  ;;  %v2262_v53 = vmul.u32 %v2258_v15, %v2234_v2 }
 0x223   : > { %v2643_v47 = vsel %vm2641_vm15, %v2628_v38, %v2642_v31  ;;  %v2138_v16 = vsel %vm7043_vm4, 0, %v7042_v20  ;;  %v2253_v18 = vadd.s32 %v2252_v10, %v2242_v35  ;;  %vm2267_vm6 = vc.u32 %v2259_v14, %v2263_v26  ;;  %v13920_v20 = vld [vmem:[#allocation46_spill] sm:$0xff] }
 0x224   : > { %v2647_v60 = vsel %vm2640_vm12, %v2643_v47, %v2646_v63  ;;  %v2139_v48 = vsub.s32 32, %v2138_v16  ;;  %v2143_v36 = vsub.s32 4294967266, %v2138_v16  ;;  %v2265_v37 = vshll.u32 %v2261_v6, 16 }
 0x225   : > { %v2648_v52 = vsel %vm2637_vm13, nan, %v2647_v60  ;;  %v2268_v21 = vsel %vm2267_vm6, 1, %v13856_v34  ;;  %v2269_v56 = vadd.s32 %v2263_v26, %v2259_v14  ;;  %v1719_v11 = vand.u32 2147483647, %v13915_v17 }
 0x226   : > { %3736 = vmatpush.msra.mxu3 %v2648_v52  ;;  %v2140_v2 = vshll.u32 %v8962_v25, %v2138_v16  ;;  %v2141_v41 = vshrl.u32 %v2123_v13, %v2139_v48  ;;  %v2144_v15 = vadd.s32 127, %v2143_v36  ;;  %v2270_v9 = vadd.s32 %v2268_v21, %v2262_v53  ;;  %v13921_v36 = vld [vmem:[#allocation62_spill] sm:$0xff] }
 0x227   : > { %v2154_v62 = vsel %vm2031_vm5, %v2153_v5, %v8949_v49  ;;  %v2264_v45 = vshrl.u32 %v2260_v27, 16  ;;  %vm2271_vm7 = vc.u32 %v2269_v56, %v2265_v37  ;;  %v1726_v40 = vand.u32 8388607, %v1719_v11  ;;  %v13918_v27 = vld [vmem:[#allocation52_spill] sm:$0xff] }
 0x228   : > { %vm8998_vm0 = vcmp.le.f32.partialorder %v2029_v1, 0.7853982  ;;  %v2142_v50 = vor.u32 %v2141_v41, %v2140_v2  ;;  %v2145_v25 = vshll.u32 %v2144_v15, 23  ;;  %v9002_v23 = vadd.s32 %v2253_v18, %v2244_v44 }
 0x229   : > { %v2272_v22 = vsel %vm2271_vm7, 1, %v13856_v34  ;;  %v2266_v7 = vshrl.u32 %v2261_v6, 16  ;;  %v9005_v38 = vadd.s32 %v2269_v56, %v2265_v37  ;;  %v1736_v4 = vshll.u32 %v13855_v59, %v13918_v27  ;;  %v13922_v37 = vld [vmem:[#allocation67_spill] sm:$0xff] }
 0x22a   : > { %v2274_v49 = vadd.s32 %v2272_v22, %v2270_v9  ;;  %v2146_v8 = vor.u32 4788187, %v2145_v25  ;;  %v1727_v30 = vor.u32 8388608, %v1726_v40  ;;  %v1737_v1 = vshrl.u32 %v13857_v55, %v13919_v51  ;;  %v13923_v40 = vld [vmem:[#allocation56_spill] sm:$0xff] }
 0x22b   : > { %v1739_v39 = vshll.u32 %v13857_v55, %v13918_v27  ;;  %v1740_v33 = vshrl.u32 %v13858_v0, %v13919_v51  ;;  %v1742_v13 = vshll.u32 %v13858_v0, %v13918_v27  ;;  %v1743_v10 = vshrl.u32 %v13803_v46, %v13919_v51 }
 0x22c   : > { %v2275_v3 = vadd.s32 %v2274_v49, %v2264_v45  ;;  %vm1444_vm11 = vcmp.lt.s32.totalorder %v13920_v20, 4  ;;  %v2147_v5 = vand.u32 2147483647, %v2146_v8  ;;  %v2149_v6 = vcvt.s32.f32 %v2142_v50  ;;  %v13924_v49 = vld [vmem:[#allocation53_spill] sm:$0xff] }
 0x22d   : > { %vm2279_vm9 = vc.u32 %v9002_v23, %v9005_v38  ;;  %v9022_v31 = vor.u32 %v1737_v1, %v1736_v4  ;;  %v9024_v14 = vor.u32 %v1740_v33, %v1739_v39  ;;  %v1744_v26 = vor.u32 %v1743_v10, %v1742_v13 }
 0x22e   : > { %v2276_v35 = vadd.s32 %v2275_v3, %v2266_v7  ;;  %vm1753_vm10 = vcmp.lt.s32.totalorder %v13911_v43, 3  ;;  %v2150_v63 = vmul.f32 %v2149_v6, %v2147_v5  ;;  %vm1751_vm3 = vcmp.lt.s32.totalorder %v13911_v43, 1 }
 0x22f   : > { %v1765_v44 = vsel %vm1753_vm10, %v13914_v19, %v8945_v42  ;;  %v9032_v53 = vshll.u32 %v1727_v30, 8  ;;  %vm1752_vm12 = vcmp.lt.s32.totalorder %v13911_v43, 2  ;;  %v1759_v16 = vsel %vm1751_vm3, %v9022_v31, %v9024_v14  ;;  %v13926_v30 = vld [vmem:[#allocation66_spill] sm:$0xff] }
 0x230   : > { %v2280_v47 = vadd.s32 1, %v2276_v35  ;;  %v1761_v18 = vsel %vm1753_vm10, %v1744_v26, %v8938_v57  ;;  %v2151_v60 = vxor.u32 2147483648, %v2150_v63  ;;  %v2277_v48 = vmul.u32 %v8933_v12, %v8980_v58 }
 0x231   : > { %v9046_v19 = vsel %vm1752_vm12, %v1759_v16, %v1761_v18  ;;  %v1763_v42 = vsel %vm1751_vm3, %v9024_v14, %v1744_v26  ;;  %v1905_v52 = vor.u32 %v13922_v37, %v13921_v36  ;;  %v2156_v21 = vsel %vm8998_vm0, 0, %v2154_v62 }
 0x232   : > { %v2281_v57 = vsel %vm2279_vm9, %v2280_v47, %v2276_v35  ;;  %v1766_v12 = vsel %vm1752_vm12, %v1763_v42, %v1765_v44  ;;  %v2152_v58 = vsel %vm2031_vm5, %v2151_v60, %v2150_v63  ;;  %v1768_v2 = vand.u32 65535, %v9032_v53 }
 0x233   : > { %v2282_v56 = vadd.s32 %v2281_v57, %v2277_v48  ;;  %v1770_v41 = vand.u32 65535, %v1766_v12  ;;  %v9066_v15 = vsel %vm8998_vm0, %v13903_v24, %v2152_v58  ;;  %v1769_v9 = vshrl.u32 %v9032_v53, 16 }
 0x234   : > { %v1771_v62 = vshrl.u32 %v1766_v12, 16  ;;  %v1793_v45 = vshrl.u32 %v9046_v19, 16  ;;  %v1900_v50 = vshll.u32 %v13803_v46, %v13923_v40  ;;  %v2157_v25 = vmul.f32 %v9066_v15, %v9066_v15 }
 0x235   : > { %v2173_v22 = vadd.s32 3, %v2156_v21  ;;  %v2283_v7 = vadd.s32 536870912, %v2282_v56  ;;  %v9077_v27 = vsel %vm1444_vm11, %v13924_v49, 920167782  ;;  %vm1909_vm1 = vcmp.lt.s32.totalorder %v13925_v28, 4 }
 0x236   : > { %v1773_v4 = vmul.u32 %v1771_v62, %v1768_v2  ;;  %v9080_v8 = vmul.u32 %v1770_v41, %v1769_v9  ;;  %v9083_v1 = vor.u32 %v13926_v30, %v1900_v50  ;;  %v2158_v39 = vmul.f32 -0.001358992, %v2157_v25 }
 0x237   : > { %v2165_v3 = vmul.f32 -0.00019511016, %v2157_v25  ;;  %v9085_v33 = vshrl.u32 %v2283_v7, 30  ;;  %v9089_v13 = vsel %vm1909_vm1, %v1905_v52, 1326507024  ;;  %v1772_v10 = vmul.u32 %v1770_v41, %v1768_v2 }
 0x238   : > { %v1776_v5 = vshll.u32 %v1773_v4, 16  ;;  %v9091_v6 = vmul.u32 %v1793_v45, %v1768_v2  ;;  %v2159_v35 = vadd.f32 0.041655596, %v2158_v39  ;;  %v9093_v44 = vand.u32 3, %v2173_v22 }
 0x239   : > { %v2166_v63 = vadd.f32 0.008332121, %v2165_v3  ;;  %v2285_v47 = vshll.u32 %v9085_v33, 30  ;;  %v1778_v16 = vshll.u32 %v9080_v8, 16  ;;  %v1792_v60 = vand.u32 65535, %v9046_v19 }
 0x23a   : > { %vm1780_vm13 = vc.u32 %v1772_v10, %v1776_v5  ;;  %v1782_v18 = vadd.s32 %v1776_v5, %v1772_v10  ;;  %v2160_v48 = vmul.f32 %v2159_v35, %v2157_v25  ;;  %v1756_v37 = vsel %vm1754_vm8, %v1744_v26, 2102212464 }
 0x23b   : > { %v2167_v42 = vmul.f32 %v2166_v63, %v2157_v25  ;;  %v9098_v36 = vsub.s32 %v2282_v56, %v2285_v47  ;;  %v1775_v52 = vmul.u32 %v1771_v62, %v1769_v9  ;;  %v1781_v21 = vsel %vm1780_vm13, 1, %v13856_v34 }
 0x23c   : > { %vm1784_vm14 = vc.u32 %v1782_v18, %v1778_v16  ;;  %v1798_v57 = vshll.u32 %v9091_v6, 16  ;;  %v2161_v12 = vadd.f32 -0.4999988, %v2160_v48  ;;  %vm2176_vm2 = vcmp.eq.s32.totalorder %v9093_v44, 0 }
 0x23d   : > { %v2168_v58 = vadd.f32 -0.16666654, %v2167_v42  ;;  %vm2287_vm15 = vcmp.lt.s32.totalorder %v9098_v36, 0  ;;  %v2288_v41 = vsub.s32 0, %v9098_v36  ;;  %vm2179_vm5 = vcmp.eq.s32.totalorder %v9093_v44, 2 }
 0x23e   : > { %v1783_v19 = vadd.s32 %v1781_v21, %v1775_v52  ;;  %v1785_v56 = vsel %vm1784_vm14, 1, %v13856_v34  ;;  %v1794_v26 = vmul.u32 %v1792_v60, %v1768_v2  ;;  %v1796_v62 = vmul.u32 %v1792_v60, %v1769_v9 }
 0x23f   : > { %v2162_v50 = vmul.f32 %v2161_v12, %v2157_v25  ;;  %v2169_v22 = vmul.f32 %v2168_v58, %v2157_v25  ;;  %vm2175_vm8 = vcmp.lt.s32.totalorder %v9093_v44, 2  ;;  %v2289_v7 = vsel %vm2287_vm15, %v2288_v41, %v9098_v36 }
 0x240   : > { %v1777_v30 = vshrl.u32 %v1773_v4, 16  ;;  %vm2172_vm4 = vweird.f32 %v13903_v24  ;;  %v2290_v39 = vclz %v2289_v7  ;;  %v1787_v3 = vadd.s32 %v1785_v56, %v1783_v19 }
 0x241   : > { %v1797_v10 = vmul.u32 %v1793_v45, %v1769_v9  ;;  %vm1802_vm6 = vc.u32 %v1794_v26, %v1798_v57  ;;  %v2163_v5 = vadd.f32 1.0, %v2162_v50  ;;  %v2170_v35 = vadd.f32 1.0, %v2169_v22  ;;  %v13927_v22 = vld [vmem:[#allocation11_spill] sm:$0xff] }
 0x242   : > { %v1803_v63 = vsel %vm1802_vm6, 1, %v13856_v34  ;;  %v1804_v47 = vadd.s32 %v1798_v57, %v1794_v26  ;;  %v2278_v2 = vadd.s32 %v9005_v38, %v9002_v23  ;;  %v7045_v25 = vadd.s32 4294967294, %v2290_v39 }
 0x243   : > { %v1735_v16 = vshrl.u32 %v13855_v59, %v13919_v51  ;;  %v1800_v18 = vshll.u32 %v1796_v62, 16  ;;  %v2171_v4 = vmul.f32 %v2170_v35, %v9066_v15  ;;  %v2180_v60 = vxor.u32 2147483648, %v2163_v5 }
 0x244   : > { %v1788_v48 = vadd.s32 %v1787_v3, %v1777_v30  ;;  %v1805_v42 = vadd.s32 %v1803_v63, %v1797_v10  ;;  %vm7046_vm7 = vcmp.lt.s32.totalorder %v7045_v25, 0  ;;  %v1757_v45 = vsel %vm1753_vm10, %v9024_v14, %v1756_v37 }
 0x245   : > { %v1755_v9 = vsel %vm1751_vm3, %v1735_v16, %v9022_v31  ;;  %vm1806_vm0 = vc.u32 %v1804_v47, %v1800_v18  ;;  %v2177_v23 = vxor.u32 2147483648, %v2171_v4  ;;  %v2293_v38 = vsel %vm7046_vm7, 0, %v7045_v25 }
 0x246   : > { %v2308_v51 = vsub.s32 4, %v9085_v33  ;;  %v1779_v52 = vshrl.u32 %v9080_v8, 16  ;;  %v2294_v15 = vsub.s32 32, %v2293_v38  ;;  %v2298_v21 = vsub.s32 4294967266, %v2293_v38 }
 0x247   : > { %v1799_v57 = vshrl.u32 %v9091_v6, 16  ;;  %v1807_v12 = vsel %vm1806_vm0, 1, %v13856_v34  ;;  %v2178_v31 = vsel %vm2176_vm2, %v2163_v5, %v2177_v23  ;;  %v2181_v58 = vsel %vm2179_vm5, %v2180_v60, %v2171_v4  ;;  %v13930_v5 = vld [vmem:[#allocation61_spill] sm:$0xff]  ;;  %v13931_v23 = vld [vmem:[#allocation48_spill] sm:$0xff] }
 0x248   : > { %v9132_v14 = vadd.s32 %v1788_v48, %v1779_v52  ;;  %v1809_v37 = vadd.s32 %v1807_v12, %v1805_v42  ;;  %v2182_v41 = vsel %vm2175_vm8, %v2178_v31, %v2181_v58  ;;  %v2295_v8 = vshll.u32 %v9098_v36, %v2293_v38  ;;  %v13932_v38 = vld [vmem:[#allocation49_spill] sm:$0xff] }
 0x249   : > { %v2296_v19 = vshrl.u32 %v2278_v2, %v2294_v15  ;;  %v2299_v56 = vadd.s32 127, %v2298_v21  ;;  %v2183_v6 = vsel %vm2172_vm4, nan, %v2182_v41  ;;  %v1801_v26 = vshrl.u32 %v1796_v62, 16 }
 0x24a   : > { %v1810_v50 = vadd.s32 %v1809_v37, %v1799_v57  ;;  %v1874_v7 = vand.u32 2147483647, %v13927_v22  ;;  %3690 = vmatpush.msra.mxu2 %v2183_v6  ;;  %v1758_v3 = vsel %vm1752_vm12, %v1755_v9, %v1757_v45  ;;  %v9142_v10 = vadd.s32 %v1804_v47, %v1800_v18 }
 0x24b   : > { %v2297_v30 = vor.u32 %v2296_v19, %v2295_v8  ;;  %v2300_v39 = vshll.u32 %v2299_v56, 23  ;;  %vm9146_vm9 = vcmp.le.f32.partialorder %v2184_v61, 0.7853982  ;;  %vm2186_vm10 = vcmp.lt.s32.totalorder %v13910_v32, 0 }
 0x24c   : > { %v1811_v24 = vadd.s32 %v1810_v50, %v1801_v26  ;;  %v1881_v36 = vand.u32 8388607, %v1874_v7  ;;  %v2309_v43 = vsel %vm2186_vm10, %v2308_v51, %v9085_v33  ;;  %vm1814_vm3 = vc.u32 %v9132_v14, %v9142_v10 }
 0x24d   : > { %v2301_v62 = vor.u32 4788187, %v2300_v39  ;;  %v1895_v61 = vshrl.u32 %v13858_v0, %v13930_v5  ;;  %v1812_v35 = vmul.u32 %v9032_v53, %v1758_v3  ;;  %v1894_v2 = vshll.u32 %v13857_v55, %v13923_v40 }
 0x24e   : > { %v1815_v63 = vadd.s32 1, %v1811_v24  ;;  %v1882_v47 = vor.u32 8388608, %v1881_v36  ;;  %v2304_v16 = vcvt.s32.f32 %v2297_v30  ;;  %v1897_v18 = vshll.u32 %v13858_v0, %v13923_v40 }
 0x24f   : > { %v2302_v25 = vand.u32 2147483647, %v2301_v62  ;;  %v1898_v33 = vshrl.u32 %v13803_v46, %v13930_v5  ;;  %v2311_v4 = vsel %vm9146_vm9, 0, %v2309_v43  ;;  %v1892_v53 = vshrl.u32 %v13857_v55, %v13930_v5 }
 0x250   : > { %v1816_v60 = vsel %vm1814_vm3, %v1815_v63, %v1811_v24  ;;  %v1896_v48 = vor.u32 %v1895_v61, %v1894_v2  ;;  %vm1908_vm12 = vcmp.lt.s32.totalorder %v13925_v28, 3  ;;  %v13933_v51 = vor.u32 %v13931_v23, %v13932_v38 }
 0x251   : > { %v2305_v42 = vmul.f32 %v2304_v16, %v2302_v25  ;;  %v1817_v9 = vadd.s32 %v1816_v60, %v1812_v35  ;;  %v1899_v45 = vor.u32 %v1898_v33, %v1897_v18  ;;  %v1891_v15 = vshll.u32 %v13855_v59, %v13923_v40 }
 0x252   : > { %v9177_v52 = vsel %vm1444_vm11, %v13933_v51, 1326507024  ;;  %v1920_v21 = vsel %vm1908_vm12, %v9083_v1, %v9089_v13  ;;  %v9185_v57 = vshll.u32 %v1882_v47, 8  ;;  %v2328_v31 = vadd.s32 3, %v2311_v4 }
 0x253   : > { %v2306_v12 = vxor.u32 2147483648, %v2305_v42  ;;  %v1818_v58 = vadd.s32 536870912, %v1817_v9  ;;  %vm1906_vm13 = vcmp.lt.s32.totalorder %v13925_v28, 1  ;;  %v1915_v37 = vsel %vm1909_vm1, %v9083_v1, 920167782 }
 0x254   : > { %v1893_v41 = vor.u32 %v1892_v53, %v1891_v15  ;;  %vm1907_vm14 = vcmp.lt.s32.totalorder %v13925_v28, 2  ;;  %v1918_v40 = vsel %vm1906_vm13, %v1896_v48, %v1899_v45  ;;  %v9199_v56 = vand.u32 65535, %v9185_v57 }
 0x255   : > { %v2307_v13 = vsel %vm2186_vm10, %v2306_v12, %v2305_v42  ;;  %v1819_v8 = vshrl.u32 %v1818_v58, 30  ;;  %v1921_v19 = vsel %vm1907_vm14, %v1918_v40, %v1920_v21  ;;  %v9207_v6 = vshrl.u32 %v9185_v57, 16 }
 0x256   : > { %v9204_v1 = vsel %vm9146_vm9, %v13910_v32, %v2307_v13  ;;  %v1925_v26 = vand.u32 65535, %v1921_v19  ;;  %v1926_v50 = vshrl.u32 %v1921_v19, 16  ;;  %v9211_v39 = vand.u32 3, %v2328_v31 }
 0x257   : > { %v2312_v30 = vmul.f32 %v9204_v1, %v9204_v1  ;;  %v1820_v3 = vshll.u32 %v1819_v8, 30  ;;  %v1911_v24 = vsel %vm1909_vm1, %v1899_v45, 2102212464  ;;  %v1890_v36 = vshrl.u32 %v13855_v59, %v13930_v5 }
 0x258   : > { %v1914_v44 = vsel %vm1906_vm13, %v1893_v41, %v1896_v48  ;;  %v9220_v62 = vmul.u32 %v1926_v50, %v9199_v56  ;;  %v9223_v43 = vmul.u32 %v1925_v26, %v9207_v6  ;;  %vm1721_vm15 = vcmp.lt.s32.totalorder %v13915_v17, 0 }
 0x259   : > { %v2313_v61 = vmul.f32 -0.001358992, %v2312_v30  ;;  %v2320_v35 = vmul.f32 -0.00019511016, %v2312_v30  ;;  %v9226_v63 = vsub.s32 %v1817_v9, %v1820_v3  ;;  %v1916_v47 = vsel %vm1908_vm12, %v1899_v45, %v1915_v37 }
 0x25a   : > { %v1910_v5 = vsel %vm1906_vm13, %v1890_v36, %v1893_v41  ;;  %v1912_v2 = vsel %vm1908_vm12, %v1896_v48, %v1911_v24  ;;  %v1927_v25 = vmul.u32 %v1925_v26, %v9199_v56  ;;  %v1931_v16 = vshll.u32 %v9220_v62, 16 }
 0x25b   : > { %v2314_v18 = vadd.f32 0.041655596, %v2313_v61  ;;  %v2321_v33 = vadd.f32 0.008332121, %v2320_v35  ;;  %vm1822_vm1 = vcmp.lt.s32.totalorder %v9226_v63, 0  ;;  %v1823_v4 = vsub.s32 0, %v9226_v63 }
 0x25c   : > { %v1917_v60 = vsel %vm1907_vm14, %v1914_v44, %v1916_v47  ;;  %v1933_v53 = vshll.u32 %v9223_v43, 16  ;;  %vm1935_vm2 = vc.u32 %v1927_v25, %v1931_v16  ;;  %v1937_v42 = vadd.s32 %v1931_v16, %v1927_v25 }
 0x25d   : > { %v2315_v9 = vmul.f32 %v2314_v18, %v2312_v30  ;;  %v2322_v45 = vmul.f32 %v2321_v33, %v2312_v30  ;;  %v1824_v48 = vsel %vm1822_vm1, %v1823_v4, %v9226_v63  ;;  %v1936_v23 = vsel %vm1935_vm2, 1, %v13856_v34 }
 0x25e   : > { %v1825_v38 = vclz %v1824_v48  ;;  %v1843_v51 = vsub.s32 4, %v1819_v8  ;;  %v1930_v15 = vmul.u32 %v1926_v50, %v9207_v6  ;;  %vm1939_vm5 = vc.u32 %v1937_v42, %v1933_v53  ;;  %v13934_v50 = vld [vmem:[#allocation6_spill] sm:$0xff] }
 0x25f   : > { %v2316_v21 = vadd.f32 -0.4999988, %v2315_v9  ;;  %v2323_v12 = vadd.f32 -0.16666654, %v2322_v45  ;;  %v1947_v31 = vand.u32 65535, %v1917_v60  ;;  %v1948_v58 = vshrl.u32 %v1917_v60, 16 }
 0x260   : > { %vm2331_vm8 = vcmp.eq.s32.totalorder %v9211_v39, 0  ;;  %vm2334_vm4 = vcmp.eq.s32.totalorder %v9211_v39, 2  ;;  %v1813_v37 = vadd.s32 %v9142_v10, %v9132_v14  ;;  %v7036_v41 = vadd.s32 4294967294, %v1825_v38  ;;  %v13937_v53 = vld [vmem:[#allocation54_spill] sm:$0xff] }
 0x261   : > { %v1938_v40 = vadd.s32 %v1936_v23, %v1930_v15  ;;  %v2317_v13 = vmul.f32 %v2316_v21, %v2312_v30  ;;  %v2324_v19 = vmul.f32 %v2323_v12, %v2312_v30  ;;  %vm2330_vm6 = vcmp.lt.s32.totalorder %v9211_v39, 2 }
 0x262   : > { %v1940_v26 = vsel %vm1939_vm5, 1, %v13856_v34  ;;  %v1409_v3 = vand.u32 2147483647, %v13934_v50  ;;  %vm2327_vm7 = vweird.f32 %v13910_v32  ;;  %vm9254_vm0 = vcmp.le.f32.partialorder %v1719_v11, 0.7853982 }
 0x263   : > { %vm7037_vm9 = vcmp.lt.s32.totalorder %v7036_v41, 0  ;;  %v1844_v14 = vsel %vm1721_vm15, %v1843_v51, %v1819_v8  ;;  %v9262_v10 = vsel %vm1907_vm14, %v1910_v5, %v1912_v2  ;;  %v1950_v30 = vmul.u32 %v1948_v58, %v9199_v56 }
 0x264   : > { %v2318_v36 = vadd.f32 1.0, %v2317_v13  ;;  %v2325_v44 = vadd.f32 1.0, %v2324_v19  ;;  %v1828_v61 = vsel %vm7037_vm9, 0, %v7036_v41  ;;  %v1951_v35 = vmul.u32 %v1947_v31, %v9207_v6 }
 0x265   : > { %v1829_v47 = vsub.s32 32, %v1828_v61  ;;  %v1833_v11 = vsub.s32 4294967266, %v1828_v61  ;;  %v1942_v25 = vadd.s32 %v1940_v26, %v1938_v40  ;;  %v1953_v16 = vshll.u32 %v1950_v30, 16 }
 0x266   : > { %v2326_v18 = vmul.f32 %v2325_v44, %v9204_v1  ;;  %v2335_v33 = vxor.u32 2147483648, %v2318_v36  ;;  %v1932_v8 = vshrl.u32 %v9220_v62, 16  ;;  %v1949_v28 = vmul.u32 %v1947_v31, %v9199_v56 }
 0x267   : > { %v1830_v5 = vshll.u32 %v9226_v63, %v1828_v61  ;;  %v1831_v2 = vshrl.u32 %v1813_v37, %v1829_v47  ;;  %v1834_v4 = vadd.s32 127, %v1833_v11  ;;  %v1952_v60 = vmul.u32 %v1948_v58, %v9207_v6  ;;  %v13939_v61 = vld [vmem:[#allocation33_spill] sm:$0xff] }
 0x268   : > { %vm1599_vm10 = vcmp.lt.s32.totalorder %v13937_v53, 4  ;;  %v2332_v42 = vxor.u32 2147483648, %v2326_v18  ;;  %v1955_v9 = vshll.u32 %v1951_v35, 16  ;;  %vm1957_vm3 = vc.u32 %v1949_v28, %v1953_v16 }
 0x269   : > { %v1959_v45 = vadd.s32 %v1953_v16, %v1949_v28  ;;  %v1832_v48 = vor.u32 %v1831_v2, %v1830_v5  ;;  %v1835_v23 = vshll.u32 %v1834_v4, 23  ;;  %v1943_v1 = vadd.s32 %v1942_v25, %v1932_v8 }
 0x26a   : > { %v1958_v38 = vsel %vm1957_vm3, 1, %v13856_v34  ;;  %v2333_v56 = vsel %vm2331_vm8, %v2318_v36, %v2332_v42  ;;  %v2336_v62 = vsel %vm2334_vm4, %v2335_v33, %v2326_v18  ;;  %v1934_v15 = vshrl.u32 %v9223_v43, 16  ;;  %v13938_v36 = vld [vmem:[#allocation42_spill] sm:$0xff]  ;;  %v13940_v18 = vld [vmem:[#allocation55_spill] sm:$0xff] }
 0x26b   : > { %v1960_v63 = vadd.s32 %v1958_v38, %v1952_v60  ;;  %vm1961_vm12 = vc.u32 %v1959_v45, %v1955_v9  ;;  %v2337_v6 = vsel %vm2330_vm6, %v2333_v56, %v2336_v62  ;;  %v1836_v51 = vor.u32 4788187, %v1835_v23 }
 0x26c   : > { %v1962_v21 = vsel %vm1961_vm12, 1, %v13856_v34  ;;  %v2338_v12 = vsel %vm2327_vm7, nan, %v2337_v6  ;;  %v1846_v31 = vsel %vm9254_vm0, 0, %v1844_v14  ;;  %v1954_v58 = vshrl.u32 %v1950_v30, 16 }
 0x26d   : > { %v1964_v37 = vadd.s32 %v1962_v21, %v1960_v63  ;;  %3737 = vmatpush.msra.mxu3 %v2338_v12  ;;  %v1837_v41 = vand.u32 2147483647, %v1836_v51  ;;  %v1839_v40 = vcvt.s32.f32 %v1832_v48  ;;  %v9285_v13 = vadd.s32 %v1943_v1, %v1934_v15 }
 0x26e   : > { %v1956_v39 = vshrl.u32 %v1951_v35, 16  ;;  %v9287_v19 = vadd.s32 %v1959_v45, %v1955_v9  ;;  %v1416_v43 = vand.u32 8388607, %v1409_v3  ;;  %v1427_v32 = vshrl.u32 %v13857_v55, %v13938_v36 }
 0x26f   : > { %v1965_v26 = vadd.s32 %v1964_v37, %v1954_v58  ;;  %v1840_v44 = vmul.f32 %v1839_v40, %v1837_v41  ;;  %v1426_v14 = vshll.u32 %v13855_v59, %v13939_v61  ;;  %v1429_v30 = vshll.u32 %v13857_v55, %v13939_v61 }
 0x270   : > { %v1430_v47 = vshrl.u32 %v13858_v0, %v13938_v36  ;;  %v1417_v11 = vor.u32 8388608, %v1416_v43  ;;  %v1432_v25 = vshll.u32 %v13858_v0, %v13939_v61  ;;  %v1433_v16 = vshrl.u32 %v13803_v46, %v13938_v36 }
 0x271   : > { %v1966_v35 = vadd.s32 %v1965_v26, %v1956_v39  ;;  %v9306_v33 = vsel %vm1599_vm10, %v13940_v18, 920167782  ;;  %v1841_v8 = vxor.u32 2147483648, %v1840_v44  ;;  %v1863_v28 = vadd.s32 3, %v1846_v31 }
 0x272   : > { %vm1969_vm13 = vc.u32 %v9285_v13, %v9287_v19  ;;  %v1428_v2 = vor.u32 %v1427_v32, %v1426_v14  ;;  %v1431_v4 = vor.u32 %v1430_v47, %v1429_v30  ;;  %v1434_v60 = vor.u32 %v1433_v16, %v1432_v25  ;;  %v13942_v32 = vld [vmem:[#allocation51_spill] sm:$0xff] }
 0x273   : > { %v1970_v5 = vadd.s32 1, %v1966_v35  ;;  %v1842_v42 = vsel %vm1721_vm15, %v1841_v8, %v1840_v44  ;;  %v1967_v9 = vmul.u32 %v9185_v57, %v9262_v10  ;;  %v1425_v45 = vshrl.u32 %v13855_v59, %v13938_v36  ;;  %v13941_v36 = vld [vmem:[#allocation50_spill] sm:$0xff] }
 0x274   : > { %vm1443_vm14 = vcmp.lt.s32.totalorder %v13920_v20, 3  ;;  %v1845_v48 = vsel %vm9254_vm0, %v13915_v17, %v1842_v42  ;;  %v9324_v38 = vshll.u32 %v1417_v11, 8  ;;  %vm1441_vm15 = vcmp.lt.s32.totalorder %v13920_v20, 1 }
 0x275   : > { %v1971_v23 = vsel %vm1969_vm13, %v1970_v5, %v1966_v35  ;;  %v1455_v1 = vsel %vm1443_vm14, %v13924_v49, %v9177_v52  ;;  %v1847_v56 = vmul.f32 %v1845_v48, %v1845_v48  ;;  %vm1442_vm1 = vcmp.lt.s32.totalorder %v13920_v20, 2 }
 0x276   : > { %v1972_v62 = vadd.s32 %v1971_v23, %v1967_v9  ;;  %v1446_v57 = vsel %vm1444_vm11, %v1434_v60, 2102212464  ;;  %v1449_v24 = vsel %vm1441_vm15, %v1428_v2, %v1431_v4  ;;  %v1451_v10 = vsel %vm1443_vm14, %v1434_v60, %v9077_v27 }
 0x277   : > { %v1453_v49 = vsel %vm1441_vm15, %v1431_v4, %v1434_v60  ;;  %v1848_v52 = vmul.f32 -0.001358992, %v1847_v56  ;;  %v1855_v63 = vmul.f32 -0.00019511016, %v1847_v56  ;;  %v1458_v15 = vand.u32 65535, %v9324_v38 }
 0x278   : > { %v1973_v6 = vadd.s32 536870912, %v1972_v62  ;;  %v1456_v51 = vsel %vm1442_vm1, %v1453_v49, %v1455_v1  ;;  %v1459_v21 = vshrl.u32 %v9324_v38, 16  ;;  %v1452_v27 = vsel %vm1442_vm1, %v1449_v24, %v1451_v10 }
 0x279   : > { %v1460_v12 = vand.u32 65535, %v1456_v51  ;;  %v1461_v31 = vshrl.u32 %v1456_v51, 16  ;;  %v1849_v58 = vadd.f32 0.041655596, %v1848_v52  ;;  %v1856_v37 = vadd.f32 0.008332121, %v1855_v63 }
 0x27a   : > { %v9341_v41 = vshrl.u32 %v1973_v6, 30  ;;  %v1445_v40 = vsel %vm1441_vm15, %v1425_v45, %v1428_v2  ;;  %v1447_v39 = vsel %vm1443_vm14, %v1431_v4, %v1446_v57  ;;  %v13943_v44 = vor.u32 %v13941_v36, %v13942_v32 }
 0x27b   : > { %v1463_v26 = vmul.u32 %v1461_v31, %v1458_v15  ;;  %v9349_v43 = vmul.u32 %v1460_v12, %v1459_v21  ;;  %v1850_v14 = vmul.f32 %v1849_v58, %v1847_v56  ;;  %v1857_v30 = vmul.f32 %v1856_v37, %v1847_v56 }
 0x27c   : > { %v9356_v61 = vsel %vm1599_vm10, %v13943_v44, 1326507024  ;;  %v1975_v47 = vshll.u32 %v9341_v41, 30  ;;  %v1864_v35 = vand.u32 3, %v1863_v28  ;;  %v1462_v11 = vmul.u32 %v1460_v12, %v1458_v15 }
 0x27d   : > { %v1466_v25 = vshll.u32 %v1463_v26, 16  ;;  %v1483_v16 = vshrl.u32 %v1452_v27, 16  ;;  %v1851_v8 = vadd.f32 -0.4999988, %v1850_v14  ;;  %v1858_v5 = vadd.f32 -0.16666654, %v1857_v30 }
 0x27e   : > { %v9359_v2 = vsub.s32 %v1972_v62, %v1975_v47  ;;  %v9363_v4 = vsel %vm1442_vm1, %v1445_v40, %v1447_v39  ;;  %v1465_v60 = vmul.u32 %v1461_v31, %v1459_v21  ;;  %v1468_v42 = vshll.u32 %v9349_v43, 16 }
 0x27f   : > { %vm1470_vm11 = vc.u32 %v1462_v11, %v1466_v25  ;;  %v1472_v9 = vadd.s32 %v1466_v25, %v1462_v11  ;;  %v1852_v45 = vmul.f32 %v1851_v8, %v1847_v56  ;;  %v1859_v23 = vmul.f32 %v1858_v5, %v1847_v56 }
 0x280   : > { %vm1977_vm2 = vcmp.lt.s32.totalorder %v9359_v2, 0  ;;  %v1978_v28 = vsub.s32 0, %v9359_v2  ;;  %vm1862_vm5 = vweird.f32 %v13915_v17  ;;  %v1471_v1 = vsel %vm1470_vm11, 1, %v13856_v34 }
 0x281   : > { %vm1474_vm8 = vc.u32 %v1472_v9, %v1468_v42  ;;  %v1482_v62 = vand.u32 65535, %v1452_v27  ;;  %v1485_v20 = vmul.u32 %v1483_v16, %v1458_v15  ;;  %v1853_v57 = vadd.f32 1.0, %v1852_v45  ;;  %v13946_v42 = vld [vmem:[#allocation7_spill] sm:$0xff] }
 0x282   : > { %v1860_v24 = vadd.f32 1.0, %v1859_v23  ;;  %v1979_v10 = vsel %vm1977_vm2, %v1978_v28, %v9359_v2  ;;  %v1473_v49 = vadd.s32 %v1471_v1, %v1465_v60  ;;  %vm1865_vm4 = vcmp.lt.s32.totalorder %v1864_v35, 2 }
 0x283   : > { %vm1866_vm6 = vcmp.eq.s32.totalorder %v1864_v35, 0  ;;  %vm1876_vm7 = vcmp.lt.s32.totalorder %v13927_v22, 0  ;;  %v1980_v56 = vclz %v1979_v10  ;;  %v1475_v52 = vsel %vm1474_vm8, 1, %v13856_v34 }
 0x284   : > { %v1861_v63 = vmul.f32 %v1860_v24, %v1845_v48  ;;  %vm1869_vm0 = vcmp.eq.s32.totalorder %v1864_v35, 2  ;;  %v1870_v6 = vxor.u32 2147483648, %v1853_v57  ;;  %v1477_v51 = vadd.s32 %v1475_v52, %v1473_v49 }
 0x285   : > { %v1968_v12 = vadd.s32 %v9287_v19, %v9285_v13  ;;  %v7039_v31 = vadd.s32 4294967294, %v1980_v56  ;;  %v1486_v58 = vmul.u32 %v1482_v62, %v1459_v21  ;;  %v1502_v37 = vmul.u32 %v9324_v38, %v9363_v4  ;;  %v13953_v38 = vld [vmem:[#allocation32_spill] sm:$0xff] }
 0x286   : > { %v1867_v27 = vxor.u32 2147483648, %v1861_v63  ;;  %v1467_v40 = vshrl.u32 %v1463_v26, 16  ;;  %v1484_v39 = vmul.u32 %v1482_v62, %v1458_v15  ;;  %v1488_v36 = vshll.u32 %v1485_v20, 16 }
 0x287   : > { %v1871_v32 = vsel %vm1869_vm0, %v1870_v6, %v1861_v63  ;;  %vm7040_vm9 = vcmp.lt.s32.totalorder %v7039_v31, 0  ;;  %v1998_v44 = vsub.s32 4, %v9341_v41  ;;  %v1487_v48 = vmul.u32 %v1483_v16, %v1459_v21 }
 0x288   : > { %v1868_v14 = vsel %vm1866_vm6, %v1853_v57, %v1867_v27  ;;  %v1983_v30 = vsel %vm7040_vm9, 0, %v7039_v31  ;;  %v1478_v47 = vadd.s32 %v1477_v51, %v1467_v40  ;;  %vm1492_vm3 = vc.u32 %v1484_v39, %v1488_v36  ;;  %v13949_v31 = vld [vmem:[#allocation37_spill] sm:$0xff] }
 0x289   : > { %v1872_v13 = vsel %vm1865_vm4, %v1868_v14, %v1871_v32  ;;  %vm9382_vm12 = vcmp.le.f32.partialorder %v1874_v7, 0.7853982  ;;  %v1984_v15 = vsub.s32 32, %v1983_v30  ;;  %v1988_v26 = vsub.s32 4294967266, %v1983_v30 }
 0x28a   : > { %v1490_v11 = vshll.u32 %v1486_v58, 16  ;;  %v1873_v25 = vsel %vm1862_vm5, nan, %v1872_v13  ;;  %v1985_v21 = vshll.u32 %v9359_v2, %v1983_v30  ;;  %v1493_v16 = vsel %vm1492_vm3, 1, %v13856_v34 }
 0x28b   : > { %v1494_v8 = vadd.s32 %v1488_v36, %v1484_v39  ;;  %3691 = vmatpush.msra.mxu2 %v1873_v25  ;;  %v1986_v35 = vshrl.u32 %v1968_v12, %v1984_v15  ;;  %v1989_v5 = vadd.s32 127, %v1988_v26  ;;  %v1495_v60 = vadd.s32 %v1493_v16, %v1487_v48  ;;  %v13951_v16 = vld [vmem:[#allocation44_spill] sm:$0xff] }
 0x28c   : > { %v1564_v7 = vand.u32 2147483647, %v13946_v42  ;;  %v1999_v9 = vsel %vm1876_vm7, %v1998_v44, %v9341_v41  ;;  %v1469_v45 = vshrl.u32 %v9349_v43, 16  ;;  %v1489_v23 = vshrl.u32 %v1485_v20, 16  ;;  %v13947_v41 = vld [vmem:[#allocation34_spill] sm:$0xff]  ;;  %v13948_v20 = vld [vmem:[#allocation43_spill] sm:$0xff] }
 0x28d   : > { %vm1496_vm13 = vc.u32 %v1494_v8, %v1490_v11  ;;  %v1987_v17 = vor.u32 %v1986_v35, %v1985_v21  ;;  %v1990_v28 = vshll.u32 %v1989_v5, 23  ;;  %v1491_v2 = vshrl.u32 %v1486_v58, 16  ;;  %v13950_v21 = vld [vmem:[#allocation39_spill] sm:$0xff] }
 0x28e   : > { %v1497_v1 = vsel %vm1496_vm13, 1, %v13856_v34  ;;  %v9396_v62 = vadd.s32 %v1478_v47, %v1469_v45  ;;  %v9398_v57 = vadd.s32 %v1494_v8, %v1490_v11  ;;  %v1571_v10 = vand.u32 8388607, %v1564_v7 }
 0x28f   : > { %v1499_v24 = vadd.s32 %v1497_v1, %v1495_v60  ;;  %v1991_v49 = vor.u32 4788187, %v1990_v28  ;;  %v1994_v56 = vcvt.s32.f32 %v1987_v17  ;;  %v1581_v43 = vshll.u32 %v13855_v59, %v13947_v41 }
 0x290   : > { %v1582_v52 = vshrl.u32 %v13857_v55, %v13948_v20  ;;  %v1572_v6 = vor.u32 8388608, %v1571_v10  ;;  %v1584_v51 = vshll.u32 %v13857_v55, %v13947_v41  ;;  %v1585_v12 = vshrl.u32 %v13858_v0, %v13948_v20  ;;  %v13954_v10 = vld [vmem:[#allocation45_spill] sm:$0xff] }
 0x291   : > { %v1500_v63 = vadd.s32 %v1499_v24, %v1489_v23  ;;  %vm1134_vm14 = vcmp.lt.s32.totalorder %v13949_v31, 4  ;;  %v1992_v58 = vand.u32 2147483647, %v1991_v49  ;;  %v1587_v40 = vshll.u32 %v13858_v0, %v13947_v41 }
 0x292   : > { %v9411_v27 = vor.u32 %v1582_v52, %v1581_v43  ;;  %v1588_v39 = vshrl.u32 %v13803_v46, %v13948_v20  ;;  %v2001_v36 = vsel %vm9382_vm12, 0, %v1999_v9  ;;  %vm1504_vm15 = vc.u32 %v9396_v62, %v9398_v57 }
 0x293   : > { %v1501_v32 = vadd.s32 %v1500_v63, %v1491_v2  ;;  %v9421_v44 = vor.u32 %v1585_v12, %v1584_v51  ;;  %v1995_v48 = vmul.f32 %v1994_v56, %v1992_v58  ;;  %vm1596_vm1 = vcmp.lt.s32.totalorder %v13937_v53, 1  ;;  %v13952_v2 = vld [vmem:[#allocation40_spill] sm:$0xff] }
 0x294   : > { %v1589_v14 = vor.u32 %v1588_v39, %v1587_v40  ;;  %vm1598_vm11 = vcmp.lt.s32.totalorder %v13937_v53, 3  ;;  %v9433_v15 = vshll.u32 %v1572_v6, 8  ;;  %vm1597_vm2 = vcmp.lt.s32.totalorder %v13937_v53, 2 }
 0x295   : > { %v1505_v30 = vadd.s32 1, %v1501_v32  ;;  %v1604_v47 = vsel %vm1596_vm1, %v9411_v27, %v9421_v44  ;;  %v1610_v13 = vsel %vm1598_vm11, %v13940_v18, %v9356_v61  ;;  %v1996_v26 = vxor.u32 2147483648, %v1995_v48 }
 0x296   : > { %v1606_v11 = vsel %vm1598_vm11, %v1589_v14, %v9306_v33  ;;  %v1608_v25 = vsel %vm1596_vm1, %v9421_v44, %v1589_v14  ;;  %v1130_v8 = vor.u32 %v13951_v16, %v13950_v21  ;;  %v2018_v35 = vadd.s32 3, %v2001_v36 }
 0x297   : > { %v1506_v18 = vsel %vm1504_vm15, %v1505_v30, %v1501_v32  ;;  %v1611_v61 = vsel %vm1597_vm2, %v1608_v25, %v1610_v13  ;;  %v1997_v5 = vsel %vm1876_vm7, %v1996_v26, %v1995_v48  ;;  %v9456_v60 = vsel %vm1597_vm2, %v1604_v47, %v1606_v11 }
 0x298   : > { %v1507_v33 = vadd.s32 %v1506_v18, %v1502_v37  ;;  %v1613_v9 = vand.u32 65535, %v9433_v15  ;;  %v9462_v45 = vsel %vm9382_vm12, %v13927_v22, %v1997_v5  ;;  %v1614_v23 = vshrl.u32 %v9433_v15, 16 }
 0x299   : > { %v1615_v17 = vand.u32 65535, %v1611_v61  ;;  %v1616_v28 = vshrl.u32 %v1611_v61, 16  ;;  %v9467_v1 = vshrl.u32 %v13868_v54, %v13952_v2  ;;  %v9471_v4 = vshll.u32 %v13868_v54, %v13953_v38 }
 0x29a   : > { %v2002_v37 = vmul.f32 %v9462_v45, %v9462_v45  ;;  %v1508_v24 = vadd.s32 536870912, %v1507_v33  ;;  %v9478_v19 = vsel %vm1134_vm14, %v13954_v10, 920167782  ;;  %v1638_v41 = vshrl.u32 %v9456_v60, 16 }
 0x29b   : > { %v1618_v49 = vmul.u32 %v1616_v28, %v1613_v9  ;;  %v9480_v56 = vmul.u32 %v1615_v17, %v1614_v23  ;;  %v9485_v43 = vshrl.u32 %v13870_v29, %v13952_v2  ;;  %v9491_v51 = vsel %vm1134_vm14, %v1130_v8, 1326507024 }
 0x29c   : > { %v2003_v52 = vmul.f32 -0.001358992, %v2002_v37  ;;  %v2010_v63 = vmul.f32 -0.00019511016, %v2002_v37  ;;  %v9487_v6 = vshrl.u32 %v1508_v24, 30  ;;  %v9493_v12 = vand.u32 3, %v2018_v35 }
 0x29d   : > { %v1617_v58 = vmul.u32 %v1615_v17, %v1613_v9  ;;  %v1621_v40 = vshll.u32 %v1618_v49, 16  ;;  %v1580_v48 = vshrl.u32 %v13855_v59, %v13948_v20  ;;  %v1623_v30 = vshll.u32 %v9480_v56, 16 }
 0x29e   : > { %v2004_v39 = vadd.f32 0.041655596, %v2003_v52  ;;  %v2011_v36 = vadd.f32 0.008332121, %v2010_v63  ;;  %v1510_v32 = vshll.u32 %v9487_v6, 30  ;;  %v9499_v13 = vmul.u32 %v1638_v41, %v1613_v9 }
 0x29f   : > { %vm1625_vm5 = vc.u32 %v1617_v58, %v1621_v40  ;;  %v1627_v47 = vadd.s32 %v1621_v40, %v1617_v58  ;;  %v1637_v21 = vand.u32 65535, %v9456_v60  ;;  %v1503_v16 = vadd.s32 %v9398_v57, %v9396_v62 }
 0x2a0   : > { %v2005_v26 = vmul.f32 %v2004_v39, %v2002_v37  ;;  %v2012_v11 = vmul.f32 %v2011_v36, %v2002_v37  ;;  %v9501_v25 = vsub.s32 %v1507_v33, %v1510_v32  ;;  %v1620_v8 = vmul.u32 %v1616_v28, %v1614_v23 }
 0x2a1   : > { %v1626_v35 = vsel %vm1625_vm5, 1, %v13856_v34  ;;  %vm1629_vm8 = vc.u32 %v1627_v47, %v1623_v30  ;;  %vm2024_vm4 = vcmp.eq.s32.totalorder %v9493_v12, 2  ;;  %vm2021_vm7 = vcmp.eq.s32.totalorder %v9493_v12, 0 }
 0x2a2   : > { %v2006_v20 = vadd.f32 -0.4999988, %v2005_v26  ;;  %v2013_v18 = vadd.f32 -0.16666654, %v2012_v11  ;;  %vm1512_vm6 = vcmp.lt.s32.totalorder %v9501_v25, 0  ;;  %v1513_v61 = vsub.s32 0, %v9501_v25 }
 0x2a3   : > { %v1601_v5 = vsel %vm1599_vm10, %v1589_v14, 2102212464  ;;  %v1628_v33 = vadd.s32 %v1626_v35, %v1620_v8  ;;  %v1630_v62 = vsel %vm1629_vm8, 1, %v13856_v34  ;;  %v1643_v57 = vshll.u32 %v9499_v13, 16 }
 0x2a4   : > { %v2007_v60 = vmul.f32 %v2006_v20, %v2002_v37  ;;  %v2014_v17 = vmul.f32 %v2013_v18, %v2002_v37  ;;  %vm2020_vm0 = vcmp.lt.s32.totalorder %v9493_v12, 2  ;;  %v1514_v28 = vsel %vm1512_vm6, %v1513_v61, %v9501_v25 }
 0x2a5   : > { %v1639_v24 = vmul.u32 %v1637_v21, %v1613_v9  ;;  %vm2017_vm9 = vweird.f32 %v13927_v22  ;;  %v1515_v52 = vclz %v1514_v28  ;;  %v1600_v63 = vsel %vm1596_vm1, %v1580_v48, %v9411_v27  ;;  %v13957_v28 = vld [vmem:[#allocation4_spill] sm:$0xff] }
 0x2a6   : > { %v1632_v14 = vadd.s32 %v1630_v62, %v1628_v33  ;;  %v1641_v58 = vmul.u32 %v1637_v21, %v1614_v23  ;;  %v2008_v40 = vadd.f32 1.0, %v2007_v60  ;;  %v2015_v39 = vadd.f32 1.0, %v2014_v17 }
 0x2a7   : > { %v1622_v36 = vshrl.u32 %v1618_v49, 16  ;;  %vm1647_vm10 = vc.u32 %v1639_v24, %v1643_v57  ;;  %v7030_v32 = vadd.s32 4294967294, %v1515_v52  ;;  %v1602_v37 = vsel %vm1598_vm11, %v9421_v44, %v1601_v5 }
 0x2a8   : > { %v1624_v9 = vshrl.u32 %v9480_v56, 16  ;;  %v1642_v30 = vmul.u32 %v1638_v41, %v1614_v23  ;;  %v2016_v47 = vmul.f32 %v2015_v39, %v9462_v45  ;;  %v2025_v26 = vxor.u32 2147483648, %v2008_v40 }
 0x2a9   : > { %v1633_v11 = vadd.s32 %v1632_v14, %v1622_v36  ;;  %v1648_v27 = vsel %vm1647_vm10, 1, %v13856_v34  ;;  %vm7031_vm3 = vcmp.lt.s32.totalorder %v7030_v32, 0  ;;  %v1645_v48 = vshll.u32 %v1641_v58, 16 }
 0x2aa   : > { %v1649_v21 = vadd.s32 %v1643_v57, %v1639_v24  ;;  %v1650_v8 = vadd.s32 %v1648_v27, %v1642_v30  ;;  %v2022_v49 = vxor.u32 2147483648, %v2016_v47  ;;  %v1518_v35 = vsel %vm7031_vm3, 0, %v7030_v32  ;;  %v13958_v32 = vld [vmem:[#allocation17_spill] sm:$0xff] }
 0x2ab   : > { %v1533_v20 = vsub.s32 4, %v9487_v6  ;;  %v1644_v18 = vshrl.u32 %v9499_v13, 16  ;;  %v2026_v44 = vsel %vm2024_vm4, %v2025_v26, %v2016_v47  ;;  %vm9533_vm12 = vcmp.le.f32.partialorder %v1409_v3, 0.7853982 }
 0x2ac   : > { %v1519_v23 = vsub.s32 32, %v1518_v35  ;;  %v1523_v56 = vsub.s32 4294967266, %v1518_v35  ;;  %vm1651_vm13 = vc.u32 %v1649_v21, %v1645_v48  ;;  %v2023_v41 = vsel %vm2021_vm7, %v2008_v40, %v2022_v49 }
 0x2ad   : > { %v1520_v61 = vshll.u32 %v9501_v25, %v1518_v35  ;;  %v9540_v5 = vadd.s32 %v1633_v11, %v1624_v9  ;;  %v1652_v13 = vsel %vm1651_vm13, 1, %v13856_v34  ;;  %v2027_v33 = vsel %vm2020_vm0, %v2023_v41, %v2026_v44 }
 0x2ae   : > { %v1521_v62 = vshrl.u32 %v1503_v16, %v1519_v23  ;;  %v1524_v3 = vadd.s32 127, %v1523_v56  ;;  %v1654_v57 = vadd.s32 %v1652_v13, %v1650_v8  ;;  %v2028_v60 = vsel %vm2017_vm9, nan, %v2027_v33  ;;  %v13961_v33 = vld [vmem:[#allocation38_spill] sm:$0xff] }
 0x2af   : > { %vm1411_vm15 = vcmp.lt.s32.totalorder %v13934_v50, 0  ;;  %v9548_v17 = vadd.s32 %v1649_v21, %v1645_v48  ;;  %v1099_v24 = vand.u32 2147483647, %v13957_v28  ;;  %3738 = vmatpush.msra.mxu3 %v2028_v60  ;;  %v1646_v14 = vshrl.u32 %v1641_v58, 16  ;;  %v13959_v58 = vld [vmem:[#allocation28_spill] sm:$0xff] }
 0x2b0   : > { %v1522_v25 = vor.u32 %v1521_v62, %v1520_v61  ;;  %v1525_v52 = vshll.u32 %v1524_v3, 23  ;;  %v1655_v40 = vadd.s32 %v1654_v57, %v1644_v18  ;;  %v1534_v12 = vsel %vm1411_vm15, %v1533_v20, %v9487_v6 }
 0x2b1   : > { %v1603_v16 = vsel %vm1597_vm2, %v1600_v63, %v1602_v37  ;;  %vm1659_vm1 = vc.u32 %v9540_v5, %v9548_v17  ;;  %v1106_v22 = vand.u32 8388607, %v1099_v24  ;;  %v1116_v9 = vshll.u32 %v13855_v59, %v13958_v32 }
 0x2b2   : > { %v1526_v39 = vor.u32 4788187, %v1525_v52  ;;  %v1656_v36 = vadd.s32 %v1655_v40, %v1646_v14  ;;  %v1117_v30 = vshrl.u32 %v13857_v55, %v13959_v58  ;;  %v1529_v47 = vcvt.s32.f32 %v1522_v25 }
 0x2b3   : > { %v1107_v26 = vor.u32 8388608, %v1106_v22  ;;  %v1119_v53 = vshll.u32 %v13857_v55, %v13958_v32  ;;  %v1120_v6 = vshrl.u32 %v13858_v0, %v13959_v58  ;;  %v1122_v11 = vshll.u32 %v13858_v0, %v13958_v32 }
 0x2b4   : > { %v1527_v63 = vand.u32 2147483647, %v1526_v39  ;;  %v1660_v37 = vadd.s32 1, %v1656_v36  ;;  %v1123_v27 = vshrl.u32 %v13803_v46, %v13959_v58  ;;  %v1536_v48 = vsel %vm9533_vm12, 0, %v1534_v12 }
 0x2b5   : > { %v1657_v21 = vmul.u32 %v9433_v15, %v1603_v16  ;;  %v1118_v8 = vor.u32 %v1117_v30, %v1116_v9  ;;  %v1121_v49 = vor.u32 %v1120_v6, %v1119_v53  ;;  %vm1133_vm11 = vcmp.lt.s32.totalorder %v13949_v31, 3  ;;  %v13960_v15 = vld [vmem:[#allocation41_spill] sm:$0xff] }
 0x2b6   : > { %v1530_v35 = vmul.f32 %v1529_v47, %v1527_v63  ;;  %v1661_v20 = vsel %vm1659_vm1, %v1660_v37, %v1656_v36  ;;  %v1124_v18 = vor.u32 %v1123_v27, %v1122_v11  ;;  %vm1131_vm2 = vcmp.lt.s32.totalorder %v13949_v31, 1 }
 0x2b7   : > { %v1662_v44 = vadd.s32 %v1661_v20, %v1657_v21  ;;  %v1145_v23 = vsel %vm1133_vm11, %v13954_v10, %v9491_v51  ;;  %v9584_v56 = vshll.u32 %v1107_v26, 8  ;;  %v9588_v41 = vor.u32 %v9467_v1, %v13960_v15 }
 0x2b8   : > { %v1531_v61 = vxor.u32 2147483648, %v1530_v35  ;;  %vm1132_vm5 = vcmp.lt.s32.totalorder %v13949_v31, 2  ;;  %v1143_v13 = vsel %vm1131_vm2, %v1121_v49, %v1124_v18  ;;  %vm1289_vm8 = vcmp.lt.s32.totalorder %v13961_v33, 4 }
 0x2b9   : > { %v1553_v62 = vadd.s32 3, %v1536_v48  ;;  %v1663_v3 = vadd.s32 536870912, %v1662_v44  ;;  %v1146_v57 = vsel %vm1132_vm5, %v1143_v13, %v1145_v23  ;;  %v1139_v1 = vsel %vm1131_vm2, %v1118_v8, %v1121_v49 }
 0x2ba   : > { %v1532_v10 = vsel %vm1411_vm15, %v1531_v61, %v1530_v35  ;;  %v1141_v51 = vsel %vm1133_vm11, %v1124_v18, %v9478_v19  ;;  %v9604_v60 = vand.u32 65535, %v9584_v56  ;;  %v1150_v14 = vand.u32 65535, %v1146_v57 }
 0x2bb   : > { %v1535_v25 = vsel %vm9533_vm12, %v13934_v50, %v1532_v10  ;;  %v9609_v52 = vshrl.u32 %v1663_v3, 30  ;;  %v1151_v40 = vshrl.u32 %v1146_v57, 16  ;;  %v1285_v12 = vor.u32 %v9485_v43, %v9471_v4 }
 0x2bc   : > { %v9616_v16 = vsel %vm1289_vm8, %v9588_v41, 920167782  ;;  %v1537_v19 = vmul.f32 %v1535_v25, %v1535_v25  ;;  %v1115_v22 = vshrl.u32 %v13855_v59, %v13959_v58  ;;  %v1136_v45 = vsel %vm1134_vm14, %v1124_v18, 2102212464 }
 0x2bd   : > { %v1665_v39 = vshll.u32 %v9609_v52, 30  ;;  %v1149_v36 = vshrl.u32 %v9584_v56, 16  ;;  %v1153_v32 = vmul.u32 %v1151_v40, %v9604_v60  ;;  %v9625_v43 = vand.u32 3, %v1553_v62 }
 0x2be   : > { %v1538_v9 = vmul.f32 -0.001358992, %v1537_v19  ;;  %v1545_v4 = vmul.f32 -0.00019511016, %v1537_v19  ;;  %v1142_v30 = vsel %vm1132_vm5, %v1139_v1, %v1141_v51  ;;  %v1135_v58 = vsel %vm1131_vm2, %v1115_v22, %v1118_v8 }
 0x2bf   : > { %v9629_v47 = vsub.s32 %v1662_v44, %v1665_v39  ;;  %v9633_v26 = vmul.u32 %v1150_v14, %v1149_v36  ;;  %v1156_v53 = vshll.u32 %v1153_v32, 16  ;;  %v1137_v37 = vsel %vm1133_vm11, %v1121_v49, %v1136_v45 }
 0x2c0   : > { %v1539_v6 = vadd.f32 0.041655596, %v1538_v9  ;;  %v1546_v63 = vadd.f32 0.008332121, %v1545_v4  ;;  %v1152_v11 = vmul.u32 %v1150_v14, %v9604_v60  ;;  %v1155_v48 = vmul.u32 %v1151_v40, %v1149_v36 }
 0x2c1   : > { %vm1667_vm14 = vcmp.lt.s32.totalorder %v9629_v47, 0  ;;  %v1668_v27 = vsub.s32 0, %v9629_v47  ;;  %v1172_v21 = vand.u32 65535, %v1142_v30  ;;  %v1158_v44 = vshll.u32 %v9633_v26, 16 }
 0x2c2   : > { %v1540_v35 = vmul.f32 %v1539_v6, %v1537_v19  ;;  %v1547_v20 = vmul.f32 %v1546_v63, %v1537_v19  ;;  %vm1160_vm4 = vc.u32 %v1152_v11, %v1156_v53  ;;  %v1162_v8 = vadd.s32 %v1156_v53, %v1152_v11 }
 0x2c3   : > { %v1669_v18 = vsel %vm1667_vm14, %v1668_v27, %v9629_v47  ;;  %v1161_v23 = vsel %vm1160_vm4, 1, %v13856_v34  ;;  %v1173_v15 = vshrl.u32 %v1142_v30, 16  ;;  %v9645_v3 = vsel %vm1289_vm8, %v1285_v12, 1326507024 }
 0x2c4   : > { %v1541_v49 = vadd.f32 -0.4999988, %v1540_v35  ;;  %v1548_v61 = vadd.f32 -0.16666654, %v1547_v20  ;;  %v1670_v13 = vclz %v1669_v18  ;;  %v1163_v62 = vadd.s32 %v1161_v23, %v1155_v48 }
 0x2c5   : > { %vm1556_vm6 = vcmp.eq.s32.totalorder %v9625_v43, 0  ;;  %vm1559_vm7 = vcmp.eq.s32.totalorder %v9625_v43, 2  ;;  %vm1164_vm0 = vc.u32 %v1162_v8, %v1158_v44  ;;  %vm1555_vm9 = vcmp.lt.s32.totalorder %v9625_v43, 2  ;;  %v13962_v8 = vld [vmem:[#allocation5_spill] sm:$0xff] }
 0x2c6   : > { %v1542_v57 = vmul.f32 %v1541_v49, %v1537_v19  ;;  %v1549_v10 = vmul.f32 %v1548_v61, %v1537_v19  ;;  %v7033_v1 = vadd.s32 4294967294, %v1670_v13  ;;  %v1165_v51 = vsel %vm1164_vm0, 1, %v13856_v34 }
 0x2c7   : > { %vm1552_vm10 = vweird.f32 %v13934_v50  ;;  %v1658_v14 = vadd.s32 %v9548_v17, %v9540_v5  ;;  %v9656_v40 = vsel %vm1132_vm5, %v1135_v58, %v1137_v37  ;;  %v1167_v12 = vadd.s32 %v1165_v51, %v1163_v62 }
 0x2c8   : > { %v1175_v22 = vmul.u32 %v1173_v15, %v9604_v60  ;;  %v1543_v39 = vadd.f32 1.0, %v1542_v57  ;;  %v1550_v45 = vadd.f32 1.0, %v1549_v10  ;;  %vm7034_vm3 = vcmp.lt.s32.totalorder %v7033_v1, 0 }
 0x2c9   : > { %v1176_v19 = vmul.u32 %v1172_v21, %v1149_v36  ;;  %v1673_v9 = vsel %vm7034_vm3, 0, %v7033_v1  ;;  %v1157_v4 = vshrl.u32 %v1153_v32, 16  ;;  %v1159_v30 = vshrl.u32 %v9633_v26, 16 }
 0x2ca   : > { %v1178_v53 = vshll.u32 %v1175_v22, 16  ;;  %v1551_v6 = vmul.f32 %v1550_v45, %v1535_v25  ;;  %v1560_v63 = vxor.u32 2147483648, %v1543_v39  ;;  %v1674_v11 = vsub.s32 32, %v1673_v9 }
 0x2cb   : > { %v1174_v5 = vmul.u32 %v1172_v21, %v9604_v60  ;;  %v1675_v31 = vshll.u32 %v9629_v47, %v1673_v9  ;;  %v1678_v17 = vsub.s32 4294967266, %v1673_v9  ;;  %v1168_v58 = vadd.s32 %v1167_v12, %v1157_v4 }
 0x2cc   : > { %v1177_v37 = vmul.u32 %v1173_v15, %v1149_v36  ;;  %v1557_v27 = vxor.u32 2147483648, %v1551_v6  ;;  %v1676_v48 = vshrl.u32 %v1658_v14, %v1674_v11  ;;  %v1180_v35 = vshll.u32 %v1176_v19, 16 }
 0x2cd   : > { %vm1182_vm12 = vc.u32 %v1174_v5, %v1178_v53  ;;  %v1561_v32 = vsel %vm1559_vm7, %v1560_v63, %v1551_v6  ;;  %vm1566_vm13 = vcmp.lt.s32.totalorder %v13946_v42, 0  ;;  %v1679_v26 = vadd.s32 127, %v1678_v17 }
 0x2ce   : > { %v1183_v25 = vsel %vm1182_vm12, 1, %v13856_v34  ;;  %v1184_v20 = vadd.s32 %v1178_v53, %v1174_v5  ;;  %v1558_v60 = vsel %vm1556_vm6, %v1543_v39, %v1557_v27  ;;  %v1677_v47 = vor.u32 %v1676_v48, %v1675_v31  ;;  %v13965_v53 = vld [vmem:[#allocation16_spill] sm:$0xff] }
 0x2cf   : > { %v1185_v21 = vadd.s32 %v1183_v25, %v1177_v37  ;;  %v1254_v36 = vand.u32 2147483647, %v13962_v8  ;;  %v1562_v18 = vsel %vm1555_vm9, %v1558_v60, %v1561_v32  ;;  %v1680_v44 = vshll.u32 %v1679_v26, 23  ;;  %v13967_v32 = vld [vmem:[#allocation29_spill] sm:$0xff]  ;;  %v13968_v60 = vld [vmem:[#allocation22_spill] sm:$0xff] }
 0x2d0   : > { %v1688_v23 = vsub.s32 4, %v9609_v52  ;;  %vm1186_vm15 = vc.u32 %v1184_v20, %v1180_v35  ;;  %v1563_v15 = vsel %vm1552_vm10, nan, %v1562_v18  ;;  %vm9676_vm1 = vcmp.le.f32.partialorder %v1564_v7, 0.7853982 }
 0x2d1   : > { %v9680_v61 = vadd.s32 %v1168_v58, %v1159_v30  ;;  %v1179_v13 = vshrl.u32 %v1175_v22, 16  ;;  %v1187_v62 = vsel %vm1186_vm15, 1, %v13856_v34  ;;  %3692 = vmatpush.msra.mxu2 %v1563_v15  ;;  %v1681_v43 = vor.u32 4788187, %v1680_v44 }
 0x2d2   : > { %v1181_v57 = vshrl.u32 %v1176_v19, 16  ;;  %v9683_v10 = vadd.s32 %v1184_v20, %v1180_v35  ;;  %v1189_v1 = vadd.s32 %v1187_v62, %v1185_v21  ;;  %v1684_v51 = vcvt.s32.f32 %v1677_v47  ;;  %v13966_v35 = vld [vmem:[#allocation20_spill] sm:$0xff]  ;;  %v13969_v47 = vld [vmem:[#allocation30_spill] sm:$0xff] }
 0x2d3   : > { %v1261_v50 = vand.u32 8388607, %v1254_v36  ;;  %v1271_v7 = vshll.u32 %v13855_v59, %v13953_v38  ;;  %v1272_v14 = vshrl.u32 %v13857_v55, %v13952_v2  ;;  %v1682_v12 = vand.u32 2147483647, %v1681_v43  ;;  %v13970_v43 = vld [vmem:[#allocation26_spill] sm:$0xff] }
 0x2d4   : > { %v1190_v22 = vadd.s32 %v1189_v1, %v1179_v13  ;;  %v1274_v39 = vshll.u32 %v13857_v55, %v13953_v38  ;;  %v1275_v45 = vshrl.u32 %v13858_v0, %v13952_v2  ;;  %v1277_v4 = vshll.u32 %v13858_v0, %v13953_v38 }
 0x2d5   : > { %v1262_v19 = vor.u32 8388608, %v1261_v50  ;;  %v9695_v9 = vor.u32 %v1272_v14, %v1271_v7  ;;  %v1278_v30 = vshrl.u32 %v13803_v46, %v13952_v2  ;;  %vm824_vm11 = vcmp.lt.s32.totalorder %v13965_v53, 4 }
 0x2d6   : > { %v1685_v6 = vmul.f32 %v1684_v51, %v1682_v12  ;;  %v1191_v63 = vadd.s32 %v1190_v22, %v1181_v57  ;;  %v1192_v11 = vmul.u32 %v9584_v56, %v9656_v40  ;;  %v9704_v5 = vor.u32 %v1275_v45, %v1274_v39  ;;  %v13971_v57 = vld [vmem:[#allocation31_spill] sm:$0xff] }
 0x2d7   : > { %v1689_v31 = vsel %vm1566_vm13, %v1688_v23, %v9609_v52  ;;  %vm1194_vm2 = vc.u32 %v9680_v61, %v9683_v10  ;;  %v9711_v38 = vor.u32 %v1278_v30, %v1277_v4  ;;  %vm1288_vm5 = vcmp.lt.s32.totalorder %v13961_v33, 3 }
 0x2d8   : > { %v1686_v17 = vxor.u32 2147483648, %v1685_v6  ;;  %v1195_v58 = vadd.s32 1, %v1191_v63  ;;  %vm1286_vm14 = vcmp.lt.s32.totalorder %v13961_v33, 1  ;;  %v1300_v56 = vsel %vm1288_vm5, %v9588_v41, %v9645_v3 }
 0x2d9   : > { %v1294_v52 = vsel %vm1286_vm14, %v9695_v9, %v9704_v5  ;;  %v1296_v40 = vsel %vm1288_vm5, %v9711_v38, %v9616_v16  ;;  %v1298_v37 = vsel %vm1286_vm14, %v9704_v5, %v9711_v38  ;;  %v9731_v27 = vshll.u32 %v1262_v19, 8 }
 0x2da   : > { %v1687_v41 = vsel %vm1566_vm13, %v1686_v17, %v1685_v6  ;;  %v1691_v3 = vsel %vm9676_vm1, 0, %v1689_v31  ;;  %v1196_v48 = vsel %vm1194_vm2, %v1195_v58, %v1191_v63  ;;  %vm1287_vm4 = vcmp.lt.s32.totalorder %v13961_v33, 2  ;;  %v13976_v33 = vld [vmem:[#allocation19_spill] sm:$0xff] }
 0x2db   : > { %v9740_v26 = vor.u32 %v13967_v32, %v13966_v35  ;;  %v9745_v16 = vsel %vm9676_vm1, %v13946_v42, %v1687_v41  ;;  %v1197_v25 = vadd.s32 %v1196_v48, %v1192_v11  ;;  %v1301_v20 = vsel %vm1287_vm4, %v1298_v37, %v1300_v56 }
 0x2dc   : > { %v820_v21 = vor.u32 %v13969_v47, %v13968_v60  ;;  %v1692_v18 = vmul.f32 %v9745_v16, %v9745_v16  ;;  %v9755_v44 = vsel %vm1287_vm4, %v1294_v52, %v1296_v40  ;;  %v1305_v23 = vand.u32 65535, %v1301_v20 }
 0x2dd   : > { %v1708_v15 = vadd.s32 3, %v1691_v3  ;;  %v1198_v13 = vadd.s32 536870912, %v1197_v25  ;;  %v1303_v49 = vand.u32 65535, %v9731_v27  ;;  %v1306_v62 = vshrl.u32 %v1301_v20, 16 }
 0x2de   : > { %v9760_v1 = vor.u32 %v13971_v57, %v13970_v43  ;;  %v1693_v51 = vmul.f32 -0.001358992, %v1692_v18  ;;  %v1700_v50 = vmul.f32 -0.00019511016, %v1692_v18  ;;  %v9763_v7 = vshrl.u32 %v9731_v27, 16 }
 0x2df   : > { %v9768_v14 = vsel %vm824_vm11, %v9740_v26, 920167782  ;;  %v9770_v12 = vshrl.u32 %v1198_v13, 30  ;;  %v1308_v22 = vmul.u32 %v1306_v62, %v1303_v49  ;;  %v1328_v39 = vshrl.u32 %v9755_v44, 16 }
 0x2e0   : > { %v9775_v45 = vsel %vm824_vm11, %v820_v21, 1326507024  ;;  %v1694_v19 = vadd.f32 0.041655596, %v1693_v51  ;;  %v1701_v4 = vadd.f32 0.008332121, %v1700_v50  ;;  %v9778_v30 = vmul.u32 %v1305_v23, %v9763_v7 }
 0x2e1   : > { %v9780_v6 = vand.u32 3, %v1708_v15  ;;  %v1200_v63 = vshll.u32 %v9770_v12, 30  ;;  %v1307_v11 = vmul.u32 %v1305_v23, %v1303_v49  ;;  %v1311_v31 = vshll.u32 %v1308_v22, 16 }
 0x2e2   : > { %v1695_v17 = vmul.f32 %v1694_v19, %v1692_v18  ;;  %v1702_v58 = vmul.f32 %v1701_v4, %v1692_v18  ;;  %v1310_v56 = vmul.u32 %v1306_v62, %v9763_v7  ;;  %v1327_v52 = vand.u32 65535, %v9755_v44 }
 0x2e3   : > { %v9785_v40 = vsub.s32 %v1197_v25, %v1200_v63  ;;  %vm1315_vm6 = vc.u32 %v1307_v11, %v1311_v31  ;;  %v1317_v37 = vadd.s32 %v1311_v31, %v1307_v11  ;;  %v9787_v41 = vmul.u32 %v1328_v39, %v1303_v49 }
 0x2e4   : > { %v1696_v3 = vadd.f32 -0.4999988, %v1695_v17  ;;  %v1703_v48 = vadd.f32 -0.16666654, %v1702_v58  ;;  %v1313_v35 = vshll.u32 %v9778_v30, 16  ;;  %v1316_v32 = vsel %vm1315_vm6, 1, %v13856_v34 }
 0x2e5   : > { %vm1711_vm7 = vcmp.eq.s32.totalorder %v9780_v6, 0  ;;  %vm1714_vm0 = vcmp.eq.s32.totalorder %v9780_v6, 2  ;;  %vm1202_vm9 = vcmp.lt.s32.totalorder %v9785_v40, 0  ;;  %v1203_v20 = vsub.s32 0, %v9785_v40 }
 0x2e6   : > { %v1270_v25 = vshrl.u32 %v13855_v59, %v13952_v2  ;;  %v1318_v60 = vadd.s32 %v1316_v32, %v1310_v56  ;;  %v1697_v47 = vmul.f32 %v1696_v3, %v1692_v18  ;;  %v1704_v21 = vmul.f32 %v1703_v48, %v1692_v18 }
 0x2e7   : > { %vm1710_vm10 = vcmp.lt.s32.totalorder %v9780_v6, 2  ;;  %v1291_v44 = vsel %vm1289_vm8, %v9711_v38, 2102212464  ;;  %vm1319_vm3 = vc.u32 %v1317_v37, %v1313_v35  ;;  %vm1707_vm12 = vweird.f32 %v13946_v42 }
 0x2e8   : > { %v1204_v23 = vsel %vm1202_vm9, %v1203_v20, %v9785_v40  ;;  %v1320_v15 = vsel %vm1319_vm3, 1, %v13856_v34  ;;  %v1331_v13 = vmul.u32 %v1327_v52, %v9763_v7  ;;  %v1333_v2 = vshll.u32 %v9787_v41, 16 }
 0x2e9   : > { %v1698_v62 = vadd.f32 1.0, %v1697_v47  ;;  %v1705_v43 = vadd.f32 1.0, %v1704_v21  ;;  %v1205_v18 = vclz %v1204_v23  ;;  %v1322_v57 = vadd.s32 %v1320_v15, %v1318_v60  ;;  %v13974_v21 = vld [vmem:[#allocation2_spill] sm:$0xff] }
 0x2ea   : > { %v1193_v51 = vadd.s32 %v9683_v10, %v9680_v61  ;;  %v1290_v38 = vsel %vm1286_vm14, %v1270_v25, %v9695_v9  ;;  %v1312_v50 = vshrl.u32 %v1308_v22, 16  ;;  %v1329_v19 = vmul.u32 %v1327_v52, %v1303_v49 }
 0x2eb   : > { %v1706_v4 = vmul.f32 %v1705_v43, %v9745_v16  ;;  %v1715_v63 = vxor.u32 2147483648, %v1698_v62  ;;  %vm1101_vm8 = vcmp.lt.s32.totalorder %v13957_v28, 0  ;;  %v7024_v11 = vadd.s32 4294967294, %v1205_v18  ;;  %v13975_v18 = vld [vmem:[#allocation12_spill] sm:$0xff] }
 0x2ec   : > { %v1292_v31 = vsel %vm1288_vm5, %v9704_v5, %v1291_v44  ;;  %v1323_v17 = vadd.s32 %v1322_v57, %v1312_v50  ;;  %v1335_v58 = vshll.u32 %v1331_v13, 16  ;;  %vm1337_vm13 = vc.u32 %v1329_v19, %v1333_v2 }
 0x2ed   : > { %v1339_v61 = vadd.s32 %v1333_v2, %v1329_v19  ;;  %v1712_v10 = vxor.u32 2147483648, %v1706_v4  ;;  %vm7025_vm15 = vcmp.lt.s32.totalorder %v7024_v11, 0  ;;  %v1223_v9 = vsub.s32 4, %v9770_v12 }
 0x2ee   : > { %v1314_v49 = vshrl.u32 %v9778_v30, 16  ;;  %v1208_v22 = vsel %vm7025_vm15, 0, %v7024_v11  ;;  %v1332_v16 = vmul.u32 %v1328_v39, %v9763_v7  ;;  %v1338_v56 = vsel %vm1337_vm13, 1, %v13856_v34 }
 0x2ef   : > { %vm1341_vm1 = vc.u32 %v1339_v61, %v1335_v58  ;;  %v1713_v52 = vsel %vm1711_vm7, %v1698_v62, %v1712_v10  ;;  %v1716_v5 = vsel %vm1714_vm0, %v1715_v63, %v1706_v4  ;;  %v1209_v37 = vsub.s32 32, %v1208_v22 }
 0x2f0   : > { %v1213_v3 = vsub.s32 4294967266, %v1208_v22  ;;  %v1717_v48 = vsel %vm1710_vm10, %v1713_v52, %v1716_v5  ;;  %v9826_v35 = vadd.s32 %v1323_v17, %v1314_v49  ;;  %v1340_v30 = vadd.s32 %v1338_v56, %v1332_v16  ;;  %v13978_v16 = vld [vmem:[#allocation27_spill] sm:$0xff] }
 0x2f1   : > { %v1342_v32 = vsel %vm1341_vm1, 1, %v13856_v34  ;;  %v1718_v7 = vsel %vm1707_vm12, nan, %v1717_v48  ;;  %v1210_v39 = vshll.u32 %v9785_v40, %v1208_v22  ;;  %v1211_v20 = vshrl.u32 %v1193_v51, %v1209_v37  ;;  %v13979_v56 = vld [vmem:[#allocation35_spill] sm:$0xff] }
 0x2f2   : > { %v1214_v25 = vadd.s32 127, %v1213_v3  ;;  %3739 = vmatpush.msra.mxu3 %v1718_v7  ;;  %vm9834_vm2 = vcmp.le.f32.partialorder %v1099_v24, 0.7853982  ;;  %v1334_v6 = vshrl.u32 %v9787_v41, 16  ;;  %v1344_v47 = vadd.s32 %v1342_v32, %v1340_v30 }
 0x2f3   : > { %v789_v44 = vand.u32 2147483647, %v13974_v21  ;;  %v1212_v23 = vor.u32 %v1211_v20, %v1210_v39  ;;  %v1293_v42 = vsel %vm1287_vm4, %v1290_v38, %v1292_v31  ;;  %v9842_v40 = vadd.s32 %v1339_v61, %v1335_v58  ;;  %v13977_v38 = vld [vmem:[#allocation21_spill] sm:$0xff] }
 0x2f4   : > { %v1215_v15 = vshll.u32 %v1214_v25, 23  ;;  %v1224_v2 = vsel %vm1101_vm8, %v1223_v9, %v9770_v12  ;;  %v1336_v24 = vshrl.u32 %v1331_v13, 16  ;;  %v1345_v62 = vadd.s32 %v1344_v47, %v1334_v6 }
 0x2f5   : > { %v796_v43 = vand.u32 8388607, %v789_v44  ;;  %vm1349_vm5 = vc.u32 %v9826_v35, %v9842_v40  ;;  %v806_v57 = vshll.u32 %v13855_v59, %v13975_v18  ;;  %v807_v51 = vshrl.u32 %v13857_v55, %v13976_v33 }
 0x2f6   : > { %v1216_v41 = vor.u32 4788187, %v1215_v15  ;;  %vm979_vm14 = vcmp.lt.s32.totalorder %v13977_v38, 4  ;;  %v1346_v50 = vadd.s32 %v1345_v62, %v1336_v24  ;;  %v809_v12 = vshll.u32 %v13857_v55, %v13975_v18 }
 0x2f7   : > { %v797_v19 = vor.u32 8388608, %v796_v43  ;;  %v810_v13 = vshrl.u32 %v13858_v0, %v13976_v33  ;;  %v1219_v63 = vcvt.s32.f32 %v1212_v23  ;;  %v812_v11 = vshll.u32 %v13858_v0, %v13975_v18 }
 0x2f8   : > { %v1217_v4 = vand.u32 2147483647, %v1216_v41  ;;  %v813_v31 = vshrl.u32 %v13803_v46, %v13976_v33  ;;  %v1226_v17 = vsel %vm9834_vm2, 0, %v1224_v2  ;;  %v1350_v58 = vadd.s32 1, %v1346_v50 }
 0x2f9   : > { %v808_v61 = vor.u32 %v807_v51, %v806_v57  ;;  %v811_v10 = vor.u32 %v810_v13, %v809_v12  ;;  %v1347_v49 = vmul.u32 %v9731_v27, %v1293_v42  ;;  %vm823_vm4 = vcmp.lt.s32.totalorder %v13965_v53, 3 }
 0x2fa   : > { %v1220_v9 = vmul.f32 %v1219_v63, %v1217_v4  ;;  %v814_v22 = vor.u32 %v813_v31, %v812_v11  ;;  %v975_v52 = vor.u32 %v13979_v56, %v13978_v16  ;;  %v1351_v5 = vsel %vm1349_vm5, %v1350_v58, %v1346_v50 }
 0x2fb   : > { %v835_v37 = vsel %vm823_vm4, %v9740_v26, %v9775_v45  ;;  %v9877_v3 = vshll.u32 %v797_v19, 8  ;;  %v1243_v30 = vadd.s32 3, %v1226_v17  ;;  %v1352_v27 = vadd.s32 %v1351_v5, %v1347_v49 }
 0x2fc   : > { %v1221_v48 = vxor.u32 2147483648, %v1220_v9  ;;  %vm821_vm6 = vcmp.lt.s32.totalorder %v13965_v53, 1  ;;  %vm822_vm7 = vcmp.lt.s32.totalorder %v13965_v53, 2  ;;  %v831_v7 = vsel %vm823_vm4, %v814_v22, %v9768_v14 }
 0x2fd   : > { %v829_v32 = vsel %vm821_vm6, %v808_v61, %v811_v10  ;;  %v833_v39 = vsel %vm821_vm6, %v811_v10, %v814_v22  ;;  %v1353_v45 = vadd.s32 536870912, %v1352_v27  ;;  %v9893_v25 = vand.u32 65535, %v9877_v3 }
 0x2fe   : > { %v1222_v26 = vsel %vm1101_vm8, %v1221_v48, %v1220_v9  ;;  %v836_v20 = vsel %vm822_vm7, %v833_v39, %v835_v37  ;;  %v9901_v14 = vshrl.u32 %v9877_v3, 16  ;;  %v9906_v15 = vsel %vm979_vm14, %v9760_v1, 920167782 }
 0x2ff   : > { %v9898_v6 = vsel %vm9834_vm2, %v13957_v28, %v1222_v26  ;;  %v840_v47 = vand.u32 65535, %v836_v20  ;;  %v841_v23 = vshrl.u32 %v836_v20, 16  ;;  %v9910_v2 = vshrl.u32 %v1353_v45, 30 }
 0x300   : > { %v1227_v42 = vmul.f32 %v9898_v6, %v9898_v6  ;;  %v832_v60 = vsel %vm822_vm7, %v829_v32, %v831_v7  ;;  %v805_v24 = vshrl.u32 %v13855_v59, %v13976_v33  ;;  %v826_v62 = vsel %vm824_vm11, %v814_v22, 2102212464 }
 0x301   : > { %v843_v43 = vmul.u32 %v841_v23, %v9893_v25  ;;  %v9920_v41 = vmul.u32 %v840_v47, %v9901_v14  ;;  %v9922_v51 = vand.u32 3, %v1243_v30  ;;  %v1355_v50 = vshll.u32 %v9910_v2, 30 }
 0x302   : > { %v1228_v18 = vmul.f32 -0.001358992, %v1227_v42  ;;  %v1235_v57 = vmul.f32 -0.00019511016, %v1227_v42  ;;  %v825_v19 = vsel %vm821_vm6, %v805_v24, %v808_v61  ;;  %v842_v12 = vmul.u32 %v840_v47, %v9893_v25 }
 0x303   : > { %v846_v33 = vshll.u32 %v843_v43, 16  ;;  %v863_v13 = vshrl.u32 %v832_v60, 16  ;;  %v9928_v11 = vsub.s32 %v1352_v27, %v1355_v50  ;;  %v827_v31 = vsel %vm823_vm4, %v811_v10, %v826_v62 }
 0x304   : > { %v1229_v4 = vadd.f32 0.041655596, %v1228_v18  ;;  %v1236_v63 = vadd.f32 0.008332121, %v1235_v57  ;;  %v845_v17 = vmul.u32 %v841_v23, %v9901_v14  ;;  %v848_v58 = vshll.u32 %v9920_v41, 16 }
 0x305   : > { %vm850_vm11 = vc.u32 %v842_v12, %v846_v33  ;;  %v852_v9 = vadd.s32 %v846_v33, %v842_v12  ;;  %vm1357_vm0 = vcmp.lt.s32.totalorder %v9928_v11, 0  ;;  %v1358_v61 = vsub.s32 0, %v9928_v11 }
 0x306   : > { %v1230_v49 = vmul.f32 %v1229_v4, %v1227_v42  ;;  %v1237_v22 = vmul.f32 %v1236_v63, %v1227_v42  ;;  %v851_v16 = vsel %vm850_vm11, 1, %v13856_v34  ;;  %v862_v56 = vand.u32 65535, %v832_v60 }
 0x307   : > { %vm854_vm9 = vc.u32 %v852_v9, %v848_v58  ;;  %v9938_v5 = vmul.u32 %v863_v13, %v9893_v25  ;;  %v1359_v48 = vsel %vm1357_vm0, %v1358_v61, %v9928_v11  ;;  %v853_v30 = vadd.s32 %v851_v16, %v845_v17 }
 0x308   : > { %v1231_v10 = vadd.f32 -0.4999988, %v1230_v49  ;;  %v1238_v37 = vadd.f32 -0.16666654, %v1237_v22  ;;  %v9943_v27 = vsel %vm979_vm14, %v975_v52, 1326507024  ;;  %v1360_v32 = vclz %v1359_v48 }
 0x309   : > { %vm1246_vm10 = vcmp.eq.s32.totalorder %v9922_v51, 0  ;;  %v855_v7 = vsel %vm854_vm9, 1, %v13856_v34  ;;  %vm1245_vm3 = vcmp.lt.s32.totalorder %v9922_v51, 2  ;;  %vm1249_vm12 = vcmp.eq.s32.totalorder %v9922_v51, 2  ;;  %v13983_v49 = vld [vmem:[#allocation3_spill] sm:$0xff] }
 0x30a   : > { %v1232_v39 = vmul.f32 %v1231_v10, %v1227_v42  ;;  %v1239_v26 = vmul.f32 %v1238_v37, %v1227_v42  ;;  %v1348_v45 = vadd.s32 %v9842_v40, %v9826_v35  ;;  %vm1242_vm8 = vweird.f32 %v13957_v28 }
 0x30b   : > { %vm1256_vm13 = vcmp.lt.s32.totalorder %v13962_v8, 0  ;;  %v7027_v52 = vadd.s32 4294967294, %v1360_v32  ;;  %v1378_v20 = vsub.s32 4, %v9910_v2  ;;  %v9956_v47 = vsel %vm822_vm7, %v825_v19, %v827_v31 }
 0x30c   : > { %v857_v23 = vadd.s32 %v855_v7, %v853_v30  ;;  %v1233_v42 = vadd.f32 1.0, %v1232_v39  ;;  %v1240_v60 = vadd.f32 1.0, %v1239_v26  ;;  %v866_v24 = vmul.u32 %v862_v56, %v9901_v14 }
 0x30d   : > { %v868_v62 = vshll.u32 %v9938_v5, 16  ;;  %vm7028_vm15 = vcmp.lt.s32.totalorder %v7027_v52, 0  ;;  %v847_v35 = vshrl.u32 %v843_v43, 16  ;;  %v849_v40 = vshrl.u32 %v9920_v41, 16 }
 0x30e   : > { %v864_v18 = vmul.u32 %v862_v56, %v9893_v25  ;;  %v1241_v57 = vmul.f32 %v1240_v60, %v9898_v6  ;;  %v1250_v50 = vxor.u32 2147483648, %v1233_v42  ;;  %v1363_v12 = vsel %vm7028_vm15, 0, %v7027_v52  ;;  %v13982_v6 = vld [vmem:[#allocation15_spill] sm:$0xff]  ;;  %v13984_v52 = vld [vmem:[#allocation14_spill] sm:$0xff] }
 0x30f   : > { %v867_v53 = vmul.u32 %v863_v13, %v9901_v14  ;;  %vm9966_vm1 = vcmp.le.f32.partialorder %v1254_v36, 0.7853982  ;;  %v1364_v33 = vsub.s32 32, %v1363_v12  ;;  %v1368_v4 = vsub.s32 4294967266, %v1363_v12 }
 0x310   : > { %v858_v63 = vadd.s32 %v857_v23, %v847_v35  ;;  %vm872_vm2 = vc.u32 %v864_v18, %v868_v62  ;;  %v1247_v43 = vxor.u32 2147483648, %v1241_v57  ;;  %v870_v41 = vshll.u32 %v866_v24, 16 }
 0x311   : > { %v873_v25 = vsel %vm872_vm2, 1, %v13856_v34  ;;  %v874_v31 = vadd.s32 %v868_v62, %v864_v18  ;;  %vm490_vm5 = vcmp.gt.s32.totalorder %v13982_v6, 0  ;;  %v1365_v17 = vshll.u32 %v9928_v11, %v1363_v12 }
 0x312   : > { %v1366_v14 = vshrl.u32 %v1348_v45, %v1364_v33  ;;  %v1369_v13 = vadd.s32 127, %v1368_v4  ;;  %v875_v58 = vadd.s32 %v873_v25, %v867_v53  ;;  %v1248_v36 = vsel %vm1246_vm10, %v1233_v42, %v1247_v43 }
 0x313   : > { %v1251_v9 = vsel %vm1249_vm12, %v1250_v50, %v1241_v57  ;;  %vm876_vm4 = vc.u32 %v874_v31, %v870_v41  ;;  %v944_v22 = vand.u32 2147483647, %v13983_v49  ;;  %v1379_v37 = vsel %vm1256_vm13, %v1378_v20, %v9910_v2  ;;  %v13985_v2 = vld [vmem:[#allocation23_spill] sm:$0xff] }
 0x314   : > { %v1252_v61 = vsel %vm1245_vm3, %v1248_v36, %v1251_v9  ;;  %v1367_v16 = vor.u32 %v1366_v14, %v1365_v17  ;;  %v1370_v56 = vshll.u32 %v1369_v13, 23  ;;  %v877_v10 = vsel %vm876_vm4, 1, %v13856_v34 }
 0x315   : > { %v1253_v11 = vsel %vm1242_vm8, nan, %v1252_v61  ;;  %v869_v48 = vshrl.u32 %v9938_v5, 16  ;;  %v879_v30 = vadd.s32 %v877_v10, %v875_v58  ;;  %v9987_v7 = vadd.s32 %v858_v63, %v849_v40 }
 0x316   : > { %3693 = vmatpush.msra.mxu2 %v1253_v11  ;;  %v1371_v32 = vor.u32 4788187, %v1370_v56  ;;  %v871_v51 = vshrl.u32 %v866_v24, 16  ;;  %v9989_v39 = vadd.s32 %v874_v31, %v870_v41  ;;  %v1374_v26 = vcvt.s32.f32 %v1367_v16 }
 0x317   : > { %v880_v45 = vadd.s32 %v879_v30, %v869_v48  ;;  %v951_v28 = vand.u32 8388607, %v944_v22  ;;  %v961_v23 = vshll.u32 %v13855_v59, %v13984_v52  ;;  %v962_v5 = vshrl.u32 %v13857_v55, %v13985_v2  ;;  %v13986_v48 = vld [vmem:[#allocation13_spill] sm:$0xff] }
 0x318   : > { %v1372_v42 = vand.u32 2147483647, %v1371_v32  ;;  %v964_v20 = vshll.u32 %v13857_v55, %v13984_v52  ;;  %v965_v60 = vshrl.u32 %v13858_v0, %v13985_v2  ;;  %v1381_v24 = vsel %vm9966_vm1, 0, %v1379_v37 }
 0x319   : > { %v881_v62 = vadd.s32 %v880_v45, %v871_v51  ;;  %v967_v35 = vshll.u32 %v13858_v0, %v13984_v52  ;;  %v968_v40 = vshrl.u32 %v13803_v46, %v13985_v2  ;;  %vm884_vm6 = vc.u32 %v9987_v7, %v9989_v39 }
 0x31a   : > { %v1375_v18 = vmul.f32 %v1374_v26, %v1372_v42  ;;  %v10009_v57 = vor.u32 %v962_v5, %v961_v23  ;;  %v10011_v50 = vor.u32 %v965_v60, %v964_v20  ;;  %v952_v53 = vor.u32 8388608, %v951_v28 }
 0x31b   : > { %v885_v12 = vadd.s32 1, %v881_v62  ;;  %v969_v33 = vor.u32 %v968_v40, %v967_v35  ;;  %vm978_vm7 = vcmp.lt.s32.totalorder %v13977_v38, 3  ;;  %v882_v63 = vmul.u32 %v9877_v3, %v9956_v47 }
 0x31c   : > { %v1376_v4 = vxor.u32 2147483648, %v1375_v18  ;;  %vm976_vm11 = vcmp.lt.s32.totalorder %v13977_v38, 1  ;;  %v990_v43 = vsel %vm978_vm7, %v9760_v1, %v9943_v27  ;;  %v10024_v41 = vsel %vm490_vm5, %v13982_v6, 0 }
 0x31d   : > { %v1398_v25 = vadd.s32 3, %v1381_v24  ;;  %v886_v31 = vsel %vm884_vm6, %v885_v12, %v881_v62  ;;  %v988_v17 = vsel %vm976_vm11, %v10011_v50, %v969_v33  ;;  %vm977_vm0 = vcmp.lt.s32.totalorder %v13977_v38, 2 }
 0x31e   : > { %v1377_v3 = vsel %vm1256_vm13, %v1376_v4, %v1375_v18  ;;  %v887_v47 = vadd.s32 %v886_v31, %v882_v63  ;;  %v984_v1 = vsel %vm976_vm11, %v10009_v57, %v10011_v50  ;;  %v986_v6 = vsel %vm978_vm7, %v969_v33, %v9906_v15 }
 0x31f   : > { %v10039_v27 = vsel %vm9966_vm1, %v13962_v8, %v1377_v3  ;;  %v991_v14 = vsel %vm977_vm0, %v988_v17, %v990_v43  ;;  %v10046_v13 = vshll.u32 %v952_v53, 8  ;;  %v10051_v16 = vand.u32 31, %v10024_v41 }
 0x320   : > { %v1382_v58 = vmul.f32 %v10039_v27, %v10039_v27  ;;  %v888_v36 = vadd.s32 536870912, %v887_v47  ;;  %v995_v9 = vand.u32 65535, %v991_v14  ;;  %v996_v61 = vshrl.u32 %v991_v14, 16 }
 0x321   : > { %v993_v19 = vand.u32 65535, %v10046_v13  ;;  %v994_v56 = vshrl.u32 %v10046_v13, 16  ;;  %v987_v37 = vsel %vm977_vm0, %v984_v1, %v986_v6  ;;  %v10060_v30 = vadd.s32 1, %v13986_v48 }
 0x322   : > { %v1383_v10 = vmul.f32 -0.001358992, %v1382_v58  ;;  %v1390_v15 = vmul.f32 -0.00019511016, %v1382_v58  ;;  %v10055_v11 = vshrl.u32 %v888_v36, 30  ;;  %v10064_v28 = vand.u32 3, %v1398_v25 }
 0x323   : > { %v998_v32 = vmul.u32 %v996_v61, %v993_v19  ;;  %v10062_v51 = vmul.u32 %v995_v9, %v994_v56  ;;  %v10068_v23 = vsub.s32 32, %v10051_v16  ;;  %v997_v42 = vmul.u32 %v995_v9, %v993_v19 }
 0x324   : > { %v1384_v26 = vadd.f32 0.041655596, %v1383_v10  ;;  %v1391_v45 = vadd.f32 0.008332121, %v1390_v15  ;;  %v890_v52 = vshll.u32 %v10055_v11, 30  ;;  %v1018_v20 = vshrl.u32 %v987_v37, 16 }
 0x325   : > { %v1001_v5 = vshll.u32 %v998_v32, 16  ;;  %v1017_v35 = vand.u32 65535, %v987_v37  ;;  %v1000_v40 = vmul.u32 %v996_v61, %v994_v56  ;;  %v1003_v18 = vshll.u32 %v10062_v51, 16 }
 0x326   : > { %v1385_v60 = vmul.f32 %v1384_v26, %v1382_v58  ;;  %v1392_v24 = vmul.f32 %v1391_v45, %v1382_v58  ;;  %v10070_v62 = vsub.s32 %v887_v47, %v890_v52  ;;  %vm1404_vm10 = vcmp.eq.s32.totalorder %v10064_v28, 2 }
 0x327   : > { %vm1005_vm9 = vc.u32 %v997_v42, %v1001_v5  ;;  %v1007_v12 = vadd.s32 %v1001_v5, %v997_v42  ;;  %vm1401_vm12 = vcmp.eq.s32.totalorder %v10064_v28, 0  ;;  %v981_v43 = vsel %vm979_vm14, %v969_v33, 2102212464 }
 0x328   : > { %v1386_v53 = vadd.f32 -0.4999988, %v1385_v60  ;;  %v1393_v4 = vadd.f32 -0.16666654, %v1392_v24  ;;  %vm892_vm3 = vcmp.lt.s32.totalorder %v10070_v62, 0  ;;  %v893_v63 = vsub.s32 0, %v10070_v62 }
 0x329   : > { %v1006_v25 = vsel %vm1005_vm9, 1, %v13856_v34  ;;  %vm1009_vm8 = vc.u32 %v1007_v12, %v1003_v18  ;;  %v10080_v31 = vmul.u32 %v1018_v20, %v993_v19  ;;  %vm1400_vm13 = vcmp.lt.s32.totalorder %v10064_v28, 2 }
 0x32a   : > { %v1387_v17 = vmul.f32 %v1386_v53, %v1382_v58  ;;  %v1394_v3 = vmul.f32 %v1393_v4, %v1382_v58  ;;  %v894_v47 = vsel %vm892_vm3, %v893_v63, %v10070_v62  ;;  %v1008_v1 = vadd.s32 %v1006_v25, %v1000_v40 }
 0x32b   : > { %vm1397_vm15 = vweird.f32 %v13962_v8  ;;  %vm791_vm1 = vcmp.lt.s32.totalorder %v13974_v21, 0  ;;  %v883_v6 = vadd.s32 %v9989_v39, %v9987_v7  ;;  %v895_v33 = vclz %v894_v47  ;;  %v13987_v47 = vld [vmem:[#allocation8_spill] sm:$0xff] }
 0x32c   : > { %v960_v14 = vshrl.u32 %v13855_v59, %v13985_v2  ;;  %v1010_v36 = vsel %vm1009_vm8, 1, %v13856_v34  ;;  %v1388_v9 = vadd.f32 1.0, %v1387_v17  ;;  %v1395_v58 = vadd.f32 1.0, %v1394_v3 }
 0x32d   : > { %v1012_v61 = vadd.s32 %v1010_v36, %v1008_v1  ;;  %v1021_v10 = vmul.u32 %v1017_v35, %v994_v56  ;;  %v7018_v15 = vadd.s32 4294967294, %v895_v33  ;;  %v913_v37 = vsub.s32 4, %v10055_v11 }
 0x32e   : > { %v980_v48 = vsel %vm976_vm11, %v960_v14, %v10009_v57  ;;  %v982_v7 = vsel %vm978_vm7, %v10011_v50, %v981_v43  ;;  %v1396_v39 = vmul.f32 %v1395_v58, %v10039_v27  ;;  %v1405_v2 = vxor.u32 2147483648, %v1388_v9 }
 0x32f   : > { %v1002_v26 = vshrl.u32 %v998_v32, 16  ;;  %v1023_v45 = vshll.u32 %v10080_v31, 16  ;;  %vm7019_vm14 = vcmp.lt.s32.totalorder %v7018_v15, 0  ;;  %v1004_v52 = vshrl.u32 %v10062_v51, 16 }
 0x330   : > { %v1019_v42 = vmul.u32 %v1017_v35, %v993_v19  ;;  %v1022_v5 = vmul.u32 %v1018_v20, %v994_v56  ;;  %v1402_v60 = vxor.u32 2147483648, %v1396_v39  ;;  %v898_v24 = vsel %vm7019_vm14, 0, %v7018_v15 }
 0x331   : > { %v1013_v40 = vadd.s32 %v1012_v61, %v1002_v26  ;;  %v1025_v18 = vshll.u32 %v1021_v10, 16  ;;  %v1406_v57 = vsel %vm1404_vm10, %v1405_v2, %v1396_v39  ;;  %v899_v12 = vsub.s32 32, %v898_v24 }
 0x332   : > { %v903_v50 = vsub.s32 4294967266, %v898_v24  ;;  %vm1027_vm2 = vc.u32 %v1019_v42, %v1023_v45  ;;  %v1403_v27 = vsel %vm1401_vm12, %v1388_v9, %v1402_v60  ;;  %v900_v32 = vshll.u32 %v10070_v62, %v898_v24 }
 0x333   : > { %v1028_v53 = vsel %vm1027_vm2, 1, %v13856_v34  ;;  %v1029_v51 = vadd.s32 %v1023_v45, %v1019_v42  ;;  %v1407_v19 = vsel %vm1400_vm13, %v1403_v27, %v1406_v57  ;;  %v901_v56 = vshrl.u32 %v883_v6, %v899_v12 }
 0x334   : > { %v904_v20 = vadd.s32 127, %v903_v50  ;;  %v1030_v35 = vadd.s32 %v1028_v53, %v1022_v5  ;;  %v1408_v4 = vsel %vm1397_vm15, nan, %v1407_v19  ;;  %v914_v63 = vsel %vm791_vm1, %v913_v37, %v10055_v11 }
 0x335   : > { %v983_v43 = vsel %vm977_vm0, %v980_v48, %v982_v7  ;;  %vm1031_vm5 = vc.u32 %v1029_v51, %v1025_v18  ;;  %3740 = vmatpush.msra.mxu3 %v1408_v4  ;;  %v902_v62 = vor.u32 %v901_v56, %v900_v32  ;;  %v10116_v17 = vadd.s32 %v1013_v40, %v1004_v52 }
 0x336   : > { %v905_v25 = vshll.u32 %v904_v20, 23  ;;  %v1032_v28 = vsel %vm1031_vm5, 1, %v13856_v34  ;;  %vm645_vm4 = vcmp.gt.s32.totalorder %v10060_v30, 0  ;;  %v1024_v8 = vshrl.u32 %v10080_v31, 16 }
 0x337   : > { %v1034_v3 = vadd.s32 %v1032_v28, %v1030_v35  ;;  %v479_v1 = vand.u32 2147483647, %v13987_v47  ;;  %v10123_v11 = vshrl.u32 %v10024_v41, 5  ;;  %vm10127_vm6 = vcmp.le.f32.partialorder %v789_v44, 0.7853982 }
 0x338   : > { %v906_v6 = vor.u32 4788187, %v905_v25  ;;  %v10131_v33 = vadd.s32 %v1029_v51, %v1025_v18  ;;  %v916_v14 = vsel %vm10127_vm6, 0, %v914_v63  ;;  %v1026_v36 = vshrl.u32 %v1021_v10, 16 }
 0x339   : > { %v1035_v31 = vadd.s32 %v1034_v3, %v1024_v8  ;;  %v1037_v9 = vmul.u32 %v10046_v13, %v983_v43  ;;  %v909_v61 = vcvt.s32.f32 %v902_v62  ;;  %v500_v44 = vshrl.u32 %v13858_v0, %v10068_v23 }
 0x33a   : > { %v907_v58 = vand.u32 2147483647, %v906_v6  ;;  %vm1039_vm7 = vc.u32 %v10116_v17, %v10131_v33  ;;  %v486_v15 = vand.u32 8388607, %v479_v1  ;;  %v499_v37 = vshll.u32 %v13857_v55, %v10051_v16 }
 0x33b   : > { %v1036_v41 = vadd.s32 %v1035_v31, %v1026_v36  ;;  %v503_v10 = vshrl.u32 %v13803_v46, %v10068_v23  ;;  %v502_v13 = vshll.u32 %v13858_v0, %v10051_v16  ;;  %v505_v7 = vshll.u32 %v13803_v46, %v10051_v16 }
 0x33c   : > { %v910_v48 = vmul.f32 %v909_v61, %v907_v58  ;;  %v506_v39 = vshrl.u32 %v13868_v54, %v10068_v23  ;;  %v497_v26 = vshrl.u32 %v13857_v55, %v10068_v23  ;;  %v508_v45 = vshll.u32 %v13868_v54, %v10051_v16 }
 0x33d   : > { %v1040_v2 = vadd.s32 1, %v1036_v41  ;;  %v509_v52 = vshrl.u32 %v13870_v29, %v10068_v23  ;;  %v10158_v5 = vor.u32 %v500_v44, %v499_v37  ;;  %v10160_v60 = vor.u32 %v503_v10, %v502_v13 }
 0x33e   : > { %v911_v42 = vxor.u32 2147483648, %v910_v48  ;;  %v507_v24 = vor.u32 %v506_v39, %v505_v7  ;;  %v487_v18 = vor.u32 8388608, %v486_v15  ;;  %v496_v57 = vshll.u32 %v13855_v59, %v10051_v16 }
 0x33f   : > { %v1041_v40 = vsel %vm1039_vm7, %v1040_v2, %v1036_v41  ;;  %v510_v12 = vor.u32 %v509_v52, %v508_v45  ;;  %v10170_v50 = vsel %vm645_vm4, %v10060_v30, 0  ;;  %v933_v32 = vadd.s32 3, %v916_v14 }
 0x340   : > { %v912_v27 = vsel %vm791_vm1, %v911_v42, %v910_v48  ;;  %v1042_v53 = vadd.s32 %v1041_v40, %v1037_v9  ;;  %v10179_v19 = vor.u32 %v497_v26, %v496_v57  ;;  %vm511_vm11 = vcmp.lt.s32.totalorder %v10123_v11, 1 }
 0x341   : > { %v10177_v51 = vsel %vm10127_vm6, %v13974_v21, %v912_v27  ;;  %vm514_vm0 = vcmp.lt.s32.totalorder %v10123_v11, 4  ;;  %v523_v20 = vsel %vm511_vm11, %v10158_v5, %v10160_v60  ;;  %vm512_vm9 = vcmp.lt.s32.totalorder %v10123_v11, 2 }
 0x342   : > { %v917_v16 = vmul.f32 %v10177_v51, %v10177_v51  ;;  %v1043_v30 = vadd.s32 536870912, %v1042_v53  ;;  %v520_v56 = vsel %vm514_vm0, %v507_v24, 920167782  ;;  %vm513_vm10 = vcmp.lt.s32.totalorder %v10123_v11, 3 }
 0x343   : > { %v524_v35 = vsel %vm514_vm0, %v510_v12, 1326507024  ;;  %v10195_v4 = vshll.u32 %v487_v18, 8  ;;  %v10202_v28 = vand.u32 31, %v10170_v50  ;;  %v519_v8 = vsel %vm511_vm11, %v10179_v19, %v10158_v5 }
 0x344   : > { %v918_v63 = vmul.f32 -0.001358992, %v917_v16  ;;  %v925_v43 = vmul.f32 -0.00019511016, %v917_v16  ;;  %v10197_v62 = vshrl.u32 %v1043_v30, 30  ;;  %v525_v25 = vsel %vm513_vm10, %v507_v24, %v524_v35 }
 0x345   : > { %v521_v3 = vsel %vm513_vm10, %v10160_v60, %v520_v56  ;;  %v526_v38 = vsel %vm512_vm9, %v523_v20, %v525_v25  ;;  %v10213_v36 = vand.u32 3, %v933_v32  ;;  %v528_v9 = vand.u32 65535, %v10195_v4 }
 0x346   : > { %v919_v6 = vadd.f32 0.041655596, %v918_v63  ;;  %v926_v14 = vadd.f32 0.008332121, %v925_v43  ;;  %v1045_v31 = vshll.u32 %v10197_v62, 30  ;;  %v10218_v58 = vshrl.u32 %v10195_v4, 16 }
 0x347   : > { %v530_v61 = vand.u32 65535, %v526_v38  ;;  %v531_v44 = vshrl.u32 %v526_v38, 16  ;;  %v522_v10 = vsel %vm512_vm9, %v519_v8, %v521_v3  ;;  %v10225_v48 = vsub.s32 32, %v10202_v28 }
 0x348   : > { %v920_v41 = vmul.f32 %v919_v6, %v917_v16  ;;  %v927_v15 = vmul.f32 %v926_v14, %v917_v16  ;;  %v10220_v37 = vsub.s32 %v1042_v53, %v1045_v31  ;;  %vm936_vm12 = vcmp.eq.s32.totalorder %v10213_v36, 0 }
 0x349   : > { %v533_v13 = vmul.u32 %v531_v44, %v528_v9  ;;  %v10228_v7 = vmul.u32 %v530_v61, %v10218_v58  ;;  %vm939_vm8 = vcmp.eq.s32.totalorder %v10213_v36, 2  ;;  %v1038_v45 = vadd.s32 %v10131_v33, %v10116_v17 }
 0x34a   : > { %v921_v39 = vadd.f32 -0.4999988, %v920_v41  ;;  %v928_v2 = vadd.f32 -0.16666654, %v927_v15  ;;  %vm1047_vm3 = vcmp.lt.s32.totalorder %v10220_v37, 0  ;;  %v1048_v26 = vsub.s32 0, %v10220_v37 }
 0x34b   : > { %v532_v52 = vmul.u32 %v530_v61, %v528_v9  ;;  %v536_v42 = vshll.u32 %v533_v13, 16  ;;  %v552_v24 = vand.u32 65535, %v522_v10  ;;  %vm935_vm13 = vcmp.lt.s32.totalorder %v10213_v36, 2 }
 0x34c   : > { %v922_v40 = vmul.f32 %v921_v39, %v917_v16  ;;  %v929_v18 = vmul.f32 %v928_v2, %v917_v16  ;;  %v1049_v57 = vsel %vm1047_vm3, %v1048_v26, %v10220_v37  ;;  %v553_v12 = vshrl.u32 %v522_v10, 16 }
 0x34d   : > { %vm932_vm15 = vweird.f32 %v13974_v21  ;;  %v1050_v27 = vclz %v1049_v57  ;;  %v535_v32 = vmul.u32 %v531_v44, %v10218_v58  ;;  %v538_v53 = vshll.u32 %v10228_v7, 16 }
 0x34e   : > { %vm540_vm1 = vc.u32 %v532_v52, %v536_v42  ;;  %v923_v30 = vadd.f32 1.0, %v922_v40  ;;  %v930_v17 = vadd.f32 1.0, %v929_v18  ;;  %v542_v56 = vadd.s32 %v536_v42, %v532_v52 }
 0x34f   : > { %v541_v33 = vsel %vm540_vm1, 1, %v13856_v34  ;;  %v7021_v20 = vadd.s32 4294967294, %v1050_v27  ;;  %v1068_v16 = vsub.s32 4, %v10197_v62  ;;  %v495_v35 = vshrl.u32 %v13855_v59, %v10068_v23  ;;  %v13990_v27 = vld [vmem:[#allocation9_spill] sm:$0xff] }
 0x350   : > { %v516_v63 = vsel %vm514_vm0, %v10160_v60, 2102212464  ;;  %v931_v43 = vmul.f32 %v930_v17, %v10177_v51  ;;  %v940_v25 = vxor.u32 2147483648, %v923_v30  ;;  %vm946_vm14 = vcmp.lt.s32.totalorder %v13983_v49, 0 }
 0x351   : > { %v543_v8 = vadd.s32 %v541_v33, %v535_v32  ;;  %vm544_vm2 = vc.u32 %v542_v56, %v538_v53  ;;  %vm7022_vm5 = vcmp.lt.s32.totalorder %v7021_v20, 0  ;;  %v554_v38 = vmul.u32 %v552_v24, %v528_v9 }
 0x352   : > { %v545_v3 = vsel %vm544_vm2, 1, %v13856_v34  ;;  %v555_v6 = vmul.u32 %v553_v12, %v528_v9  ;;  %v937_v14 = vxor.u32 2147483648, %v931_v43  ;;  %v1053_v31 = vsel %vm7022_vm5, 0, %v7021_v20 }
 0x353   : > { %v547_v61 = vadd.s32 %v545_v3, %v543_v8  ;;  %v556_v23 = vmul.u32 %v552_v24, %v10218_v58  ;;  %v1054_v44 = vsub.s32 32, %v1053_v31  ;;  %v1058_v41 = vsub.s32 4294967266, %v1053_v31 }
 0x354   : > { %v537_v60 = vshrl.u32 %v533_v13, 16  ;;  %v539_v51 = vshrl.u32 %v10228_v7, 16  ;;  %v938_v15 = vsel %vm936_vm12, %v923_v30, %v937_v14  ;;  %v941_v10 = vsel %vm939_vm8, %v940_v25, %v931_v43 }
 0x355   : > { %v1055_v39 = vshll.u32 %v10220_v37, %v1053_v31  ;;  %v558_v2 = vshll.u32 %v555_v6, 16  ;;  %v942_v9 = vsel %vm935_vm13, %v938_v15, %v941_v10  ;;  %v1056_v26 = vshrl.u32 %v1038_v45, %v1054_v44 }
 0x356   : > { %v1059_v52 = vadd.s32 127, %v1058_v41  ;;  %v548_v42 = vadd.s32 %v547_v61, %v537_v60  ;;  %v943_v13 = vsel %vm932_vm15, nan, %v942_v9  ;;  %v557_v7 = vmul.u32 %v553_v12, %v10218_v58 }
 0x357   : > { %v560_v24 = vshll.u32 %v556_v23, 16  ;;  %vm562_vm4 = vc.u32 %v554_v38, %v558_v2  ;;  %3694 = vmatpush.msra.mxu2 %v943_v13  ;;  %v1057_v40 = vor.u32 %v1056_v26, %v1055_v39  ;;  %v564_v37 = vadd.s32 %v558_v2, %v554_v38 }
 0x358   : > { %v1060_v18 = vshll.u32 %v1059_v52, 23  ;;  %v563_v57 = vsel %vm562_vm4, 1, %v13856_v34  ;;  %v515_v36 = vsel %vm511_vm11, %v495_v35, %v10179_v19  ;;  %v517_v45 = vsel %vm513_vm10, %v10158_v5, %v516_v63 }
 0x359   : > { %v565_v21 = vadd.s32 %v563_v57, %v557_v7  ;;  %v634_v32 = vand.u32 2147483647, %v13990_v27  ;;  %v1069_v12 = vsel %vm946_vm14, %v1068_v16, %v10197_v62  ;;  %v10274_v53 = vadd.s32 %v548_v42, %v539_v51 }
 0x35a   : > { %v1061_v58 = vor.u32 4788187, %v1060_v18  ;;  %vm566_vm6 = vc.u32 %v564_v37, %v560_v24  ;;  %v10277_v30 = vshrl.u32 %v10170_v50, 5  ;;  %vm10281_vm7 = vcmp.le.f32.partialorder %v944_v22, 0.7853982 }
 0x35b   : > { %v559_v5 = vshrl.u32 %v555_v6, 16  ;;  %v567_v17 = vsel %vm566_vm6, 1, %v13856_v34  ;;  %v1064_v56 = vcvt.s32.f32 %v1057_v40  ;;  %v10286_v20 = vadd.s32 %v564_v37, %v560_v24 }
 0x35c   : > { %v1062_v33 = vand.u32 2147483647, %v1061_v58  ;;  %v569_v62 = vadd.s32 %v567_v17, %v565_v21  ;;  %v1071_v16 = vsel %vm10281_vm7, 0, %v1069_v12  ;;  %v518_v50 = vsel %vm512_vm9, %v515_v36, %v517_v45 }
 0x35d   : > { %v561_v35 = vshrl.u32 %v556_v23, 16  ;;  %v641_v22 = vand.u32 8388607, %v634_v32  ;;  %vm574_vm11 = vc.u32 %v10274_v53, %v10286_v20  ;;  %v655_v25 = vshrl.u32 %v13858_v0, %v10225_v48 }
 0x35e   : > { %v1065_v63 = vmul.f32 %v1064_v56, %v1062_v33  ;;  %v570_v43 = vadd.s32 %v569_v62, %v559_v5  ;;  %v652_v8 = vshrl.u32 %v13857_v55, %v10225_v48  ;;  %v654_v3 = vshll.u32 %v13857_v55, %v10202_v28 }
 0x35f   : > { %v658_v11 = vshrl.u32 %v13803_v46, %v10225_v48  ;;  %v661_v38 = vshrl.u32 %v13868_v54, %v10225_v48  ;;  %v657_v31 = vshll.u32 %v13858_v0, %v10202_v28  ;;  %v660_v61 = vshll.u32 %v13803_v46, %v10202_v28 }
 0x360   : > { %v1066_v6 = vxor.u32 2147483648, %v1065_v63  ;;  %v571_v14 = vadd.s32 %v570_v43, %v561_v35  ;;  %v651_v23 = vshll.u32 %v13855_v59, %v10202_v28  ;;  %v10312_v44 = vor.u32 %v655_v25, %v654_v3 }
 0x361   : > { %v663_v41 = vshll.u32 %v13868_v54, %v10202_v28  ;;  %v664_v60 = vshrl.u32 %v13870_v29, %v10225_v48  ;;  %v10320_v10 = vor.u32 %v658_v11, %v657_v31  ;;  %v662_v39 = vor.u32 %v661_v38, %v660_v61 }
 0x362   : > { %v1067_v51 = vsel %vm946_vm14, %v1066_v6, %v1065_v63  ;;  %v575_v15 = vadd.s32 1, %v571_v14  ;;  %v572_v9 = vmul.u32 %v10195_v4, %v518_v50  ;;  %v642_v26 = vor.u32 8388608, %v641_v22 }
 0x363   : > { %v1070_v2 = vsel %vm10281_vm7, %v13983_v49, %v1067_v51  ;;  %v665_v52 = vor.u32 %v664_v60, %v663_v41  ;;  %v1088_v28 = vadd.s32 3, %v1071_v16  ;;  %v10329_v7 = vor.u32 %v652_v8, %v651_v23 }
 0x364   : > { %v1072_v42 = vmul.f32 %v1070_v2, %v1070_v2  ;;  %v576_v13 = vsel %vm574_vm11, %v575_v15, %v571_v14  ;;  %vm666_vm0 = vcmp.lt.s32.totalorder %v10277_v30, 1  ;;  %vm667_vm9 = vcmp.lt.s32.totalorder %v10277_v30, 2 }
 0x365   : > { %v577_v24 = vadd.s32 %v576_v13, %v572_v9  ;;  %vm669_vm10 = vcmp.lt.s32.totalorder %v10277_v30, 4  ;;  %v678_v57 = vsel %vm666_vm0, %v10312_v44, %v10320_v10  ;;  %vm668_vm3 = vcmp.lt.s32.totalorder %v10277_v30, 3 }
 0x366   : > { %v1073_v40 = vmul.f32 -0.001358992, %v1072_v42  ;;  %v1080_v18 = vmul.f32 -0.00019511016, %v1072_v42  ;;  %v675_v4 = vsel %vm669_vm10, %v662_v39, 920167782  ;;  %v674_v12 = vsel %vm666_vm0, %v10329_v7, %v10312_v44 }
 0x367   : > { %v578_v37 = vadd.s32 536870912, %v577_v24  ;;  %v679_v36 = vsel %vm669_vm10, %v665_v52, 1326507024  ;;  %v10343_v45 = vshll.u32 %v642_v26, 8  ;;  %v676_v17 = vsel %vm668_vm3, %v10320_v10, %v675_v4 }
 0x368   : > { %v1074_v21 = vadd.f32 0.041655596, %v1073_v40  ;;  %v1081_v58 = vadd.f32 0.008332121, %v1080_v18  ;;  %v680_v19 = vsel %vm668_vm3, %v662_v39, %v679_v36  ;;  %v677_v8 = vsel %vm667_vm9, %v674_v12, %v676_v17 }
 0x369   : > { %v10351_v5 = vshrl.u32 %v578_v37, 30  ;;  %v681_v33 = vsel %vm667_vm9, %v678_v57, %v680_v19  ;;  %v683_v56 = vand.u32 65535, %v10343_v45  ;;  %v684_v63 = vshrl.u32 %v10343_v45, 16 }
 0x36a   : > { %v1075_v62 = vmul.f32 %v1074_v21, %v1072_v42  ;;  %v1082_v16 = vmul.f32 %v1081_v58, %v1072_v42  ;;  %v685_v50 = vand.u32 65535, %v681_v33  ;;  %v686_v35 = vshrl.u32 %v681_v33, 16 }
 0x36b   : > { %v580_v22 = vshll.u32 %v10351_v5, 30  ;;  %v1089_v31 = vand.u32 3, %v1088_v28  ;;  %v707_v60 = vand.u32 65535, %v677_v8  ;;  %v708_v9 = vshrl.u32 %v677_v8, 16 }
 0x36c   : > { %v1076_v43 = vadd.f32 -0.4999988, %v1075_v62  ;;  %v1083_v25 = vadd.f32 -0.16666654, %v1082_v16  ;;  %v688_v3 = vmul.u32 %v686_v35, %v683_v56  ;;  %v10363_v38 = vmul.u32 %v685_v50, %v684_v63 }
 0x36d   : > { %v581_v11 = vsub.s32 %v577_v24, %v580_v22  ;;  %v687_v41 = vmul.u32 %v685_v50, %v683_v56  ;;  %v690_v39 = vmul.u32 %v686_v35, %v684_v63  ;;  %vm1087_vm13 = vweird.f32 %v13983_v49 }
 0x36e   : > { %v1077_v6 = vmul.f32 %v1076_v43, %v1072_v42  ;;  %v1084_v14 = vmul.f32 %v1083_v25, %v1072_v42  ;;  %v691_v61 = vshll.u32 %v688_v3, 16  ;;  %v693_v52 = vshll.u32 %v10363_v38, 16 }
 0x36f   : > { %vm582_vm12 = vcmp.lt.s32.totalorder %v581_v11, 0  ;;  %v583_v23 = vsub.s32 0, %v581_v11  ;;  %vm1090_vm15 = vcmp.lt.s32.totalorder %v1089_v31, 2  ;;  %vm1091_vm1 = vcmp.eq.s32.totalorder %v1089_v31, 0 }
 0x370   : > { %v1078_v51 = vadd.f32 1.0, %v1077_v6  ;;  %v1085_v15 = vadd.f32 1.0, %v1084_v14  ;;  %vm695_vm8 = vc.u32 %v687_v41, %v691_v61  ;;  %v697_v13 = vadd.s32 %v691_v61, %v687_v41 }
 0x371   : > { %v584_v26 = vsel %vm582_vm12, %v583_v23, %v581_v11  ;;  %v696_v42 = vsel %vm695_vm8, 1, %v13856_v34  ;;  %vm1094_vm14 = vcmp.eq.s32.totalorder %v1089_v31, 2  ;;  %v573_v37 = vadd.s32 %v10286_v20, %v10274_v53 }
 0x372   : > { %v1086_v24 = vmul.f32 %v1085_v15, %v1070_v2  ;;  %v1095_v40 = vxor.u32 2147483648, %v1078_v51  ;;  %v585_v18 = vclz %v584_v26  ;;  %v698_v28 = vadd.s32 %v696_v42, %v690_v39 }
 0x373   : > { %vm699_vm2 = vc.u32 %v697_v13, %v693_v52  ;;  %v710_v21 = vmul.u32 %v708_v9, %v683_v56  ;;  %v711_v2 = vmul.u32 %v707_v60, %v684_v63  ;;  %v709_v19 = vmul.u32 %v707_v60, %v683_v56 }
 0x374   : > { %v1092_v4 = vxor.u32 2147483648, %v1086_v24  ;;  %v7012_v57 = vadd.s32 4294967294, %v585_v18  ;;  %v700_v36 = vsel %vm699_vm2, 1, %v13856_v34  ;;  %v1096_v12 = vsel %vm1094_vm14, %v1095_v40, %v1086_v24 }
 0x375   : > { %v702_v62 = vadd.s32 %v700_v36, %v698_v28  ;;  %v713_v16 = vshll.u32 %v710_v21, 16  ;;  %v692_v43 = vshrl.u32 %v688_v3, 16  ;;  %v712_v20 = vmul.u32 %v708_v9, %v684_v63 }
 0x376   : > { %v1093_v58 = vsel %vm1091_vm1, %v1078_v51, %v1092_v4  ;;  %vm7013_vm5 = vcmp.lt.s32.totalorder %v7012_v57, 0  ;;  %v715_v25 = vshll.u32 %v711_v2, 16  ;;  %v671_v49 = vsel %vm669_vm10, %v10320_v10, 2102212464 }
 0x377   : > { %v1097_v17 = vsel %vm1090_vm15, %v1093_v58, %v1096_v12  ;;  %v588_v33 = vsel %vm7013_vm5, 0, %v7012_v57  ;;  %vm717_vm4 = vc.u32 %v709_v19, %v713_v16  ;;  %v719_v56 = vadd.s32 %v713_v16, %v709_v19 }
 0x378   : > { %v1098_v50 = vsel %vm1087_vm13, nan, %v1097_v17  ;;  %v589_v35 = vsub.s32 32, %v588_v33  ;;  %v593_v22 = vsub.s32 4294967266, %v588_v33  ;;  %v590_v53 = vshll.u32 %v581_v11, %v588_v33 }
 0x379   : > { %3741 = vmatpush.msra.mxu3 %v1098_v50  ;;  %v718_v14 = vsel %vm717_vm4, 1, %v13856_v34  ;;  %v703_v31 = vadd.s32 %v702_v62, %v692_v43  ;;  %vm721_vm6 = vc.u32 %v719_v56, %v715_v25  ;;  %v650_v3 = vshrl.u32 %v13855_v59, %v10225_v48 }
 0x37a   : > { %v591_v8 = vshrl.u32 %v573_v37, %v589_v35  ;;  %v594_v6 = vadd.s32 127, %v593_v22  ;;  %v720_v61 = vadd.s32 %v718_v14, %v712_v20  ;;  %v694_v63 = vshrl.u32 %v10363_v38, 16 }
 0x37b   : > { %v722_v11 = vsel %vm721_vm6, 1, %v13856_v34  ;;  %v714_v51 = vshrl.u32 %v710_v21, 16  ;;  %v670_v39 = vsel %vm666_vm0, %v650_v3, %v10329_v7  ;;  %v672_v9 = vsel %vm668_vm3, %v10312_v44, %v671_v49 }
 0x37c   : > { %v592_v23 = vor.u32 %v591_v8, %v590_v53  ;;  %v595_v41 = vshll.u32 %v594_v6, 23  ;;  %v724_v15 = vadd.s32 %v722_v11, %v720_v61  ;;  %v704_v10 = vadd.s32 %v703_v31, %v694_v63 }
 0x37d   : > { %v716_v13 = vshrl.u32 %v711_v2, 16  ;;  %v723_v24 = vadd.s32 %v719_v56, %v715_v25  ;;  %v673_v40 = vsel %vm667_vm9, %v670_v39, %v672_v9  ;;  %vm481_vm11 = vcmp.lt.s32.totalorder %v13987_v47, 0 }
 0x37e   : > { %v596_v60 = vor.u32 4788187, %v595_v41  ;;  %v599_v52 = vcvt.s32.f32 %v592_v23  ;;  %v725_v48 = vadd.s32 %v724_v15, %v714_v51  ;;  %v727_v7 = vmul.u32 %v10343_v45, %v673_v40  ;;  %v3579_v40 = vld [vmem:[%s13523_s3] sm:$0xff] }
 0x37f   : > { %vm729_vm7 = vc.u32 %v704_v10, %v723_v24  ;;  %vm10393_vm0 = vcmp.le.f32.partialorder %v479_v1, 0.7853982  ;;  %v603_v57 = vsub.s32 4, %v10351_v5  ;;  %v728_v3 = vadd.s32 %v723_v24, %v704_v10 }
 0x380   : > { %v597_v26 = vand.u32 2147483647, %v596_v60  ;;  %v726_v18 = vadd.s32 %v725_v48, %v716_v13  ;;  %vm622_vm13 = vweird.f32 %v13987_v47  ;;  %vm13755_vm15 = vcmask 654336  }
 0x381   : > { %v604_v58 = vsel %vm481_vm11, %v603_v57, %v10351_v5  ;;  %vm636_vm1 = vcmp.lt.s32.totalorder %v13990_v27, 0  ;;  %vm10415_vm14 = vcmp.le.f32.partialorder %v634_v32, 0.7853982  ;;  %vm777_vm6 = vweird.f32 %v13990_v27 }
 0x382   : > { %v600_v38 = vmul.f32 %v599_v52, %v597_v26  ;;  %v730_v28 = vadd.s32 1, %v726_v18  ;;  %v606_v33 = vsel %vm10393_vm0, 0, %v604_v58 }
 0x383   : > { %v623_v53 = vadd.s32 3, %v606_v33 }
 0x384   : > { %v601_v42 = vxor.u32 2147483648, %v600_v38  ;;  %v731_v37 = vsel %vm729_vm7, %v730_v28, %v726_v18 }
 0x385   : > { %v732_v36 = vadd.s32 %v731_v37, %v727_v7  ;;  %v624_v56 = vand.u32 3, %v623_v53 }
 0x386   : > { %v602_v4 = vsel %vm481_vm11, %v601_v42, %v600_v38 }
 0x387   : > { %v605_v30 = vsel %vm10393_vm0, %v13987_v47, %v602_v4  ;;  %v733_v2 = vadd.s32 536870912, %v732_v36  ;;  %vm625_vm10 = vcmp.lt.s32.totalorder %v624_v56, 2  ;;  %vm626_vm12 = vcmp.eq.s32.totalorder %v624_v56, 0  ;;  %v3580_v47 = vld [vmem:[%s13523_s3 + $0x8] sm:$0xff] }
 0x388   : > { %v607_v21 = vmul.f32 %v605_v30, %v605_v30  ;;  %vm629_vm8 = vcmp.eq.s32.totalorder %v624_v56, 2 }
 0x389   : > { %v734_v19 = vshrl.u32 %v733_v2, 30  ;;  %v3581_v2 = vld [vmem:[%s13523_s3 + $0x10] sm:$0xff] }
 0x38a   : > { %v608_v45 = vmul.f32 -0.001358992, %v607_v21  ;;  %v615_v12 = vmul.f32 -0.00019511016, %v607_v21 }
 0x38b   : > { %v735_v62 = vshll.u32 %v734_v19, 30  ;;  %v758_v4 = vsub.s32 4, %v734_v19 }
 0x38c   : > { %v609_v1 = vadd.f32 0.041655596, %v608_v45  ;;  %v616_v17 = vadd.f32 0.008332121, %v615_v12 }
 0x38d   : > { %v736_v35 = vsub.s32 %v732_v36, %v735_v62 }
 0x38e   : > { %v610_v16 = vmul.f32 %v609_v1, %v607_v21  ;;  %v617_v50 = vmul.f32 %v616_v17, %v607_v21 }
 0x38f   : > { %vm737_vm9 = vcmp.lt.s32.totalorder %v736_v35, 0  ;;  %v738_v20 = vsub.s32 0, %v736_v35 }
 0x390   : > { %v611_v22 = vadd.f32 -0.4999988, %v610_v16  ;;  %v618_v43 = vadd.f32 -0.16666654, %v617_v50 }
 0x391   : > { %v739_v5 = vsel %vm737_vm9, %v738_v20, %v736_v35 }
 0x392   : > { %v612_v25 = vmul.f32 %v611_v22, %v607_v21  ;;  %v619_v8 = vmul.f32 %v618_v43, %v607_v21  ;;  %v740_v31 = vclz %v739_v5  ;;  %v759_v21 = vsel %vm636_vm1, %v758_v4, %v734_v19  ;;  %v3582_v19 = vld [vmem:[%s13523_s3 + $0x18] sm:$0xff] }
 0x393   : > { %v761_v45 = vsel %vm10415_vm14, 0, %v759_v21 }
 0x394   : > { %v613_v6 = vadd.f32 1.0, %v612_v25  ;;  %v620_v14 = vadd.f32 1.0, %v619_v8  ;;  %v7015_v41 = vadd.s32 4294967294, %v740_v31  ;;  %v778_v62 = vadd.s32 3, %v761_v45  ;;  %v3584_v31 = vld [vmem:[%s13523_s3 + $0x28] sm:$0xff] }
 0x396   : > { %v621_v61 = vmul.f32 %v620_v14, %v605_v30  ;;  %v630_v23 = vxor.u32 2147483648, %v613_v6  ;;  %vm7016_vm3 = vcmp.lt.s32.totalorder %v7015_v41, 0  ;;  %v779_v43 = vand.u32 3, %v778_v62  ;;  %v3583_v14 = vld [vmem:[%s13523_s3 + $0x20] sm:$0xff] }
 0x397   : > { %v743_v63 = vsel %vm7016_vm3, 0, %v7015_v41  ;;  %v3588_v41 = vld [vmem:[%s13523_s3 + $0x48] sm:$0xff] }
 0x398   : > { %v627_v49 = vxor.u32 2147483648, %v621_v61  ;;  %v631_v60 = vsel %vm629_vm8, %v630_v23, %v621_v61  ;;  %v744_v51 = vsub.s32 32, %v743_v63  ;;  %v748_v15 = vsub.s32 4294967266, %v743_v63  ;;  %v3586_v61 = vld [vmem:[%s13523_s3 + $0x38] sm:$0xff]  ;;  %v3587_v23 = vld [vmem:[%s13523_s3 + $0x40] sm:$0xff] }
 0x399   : > { %v745_v26 = vshll.u32 %v736_v35, %v743_v63  ;;  %vm781_vm2 = vcmp.eq.s32.totalorder %v779_v43, 0  ;;  %vm784_vm5 = vcmp.eq.s32.totalorder %v779_v43, 2  ;;  %vm780_vm4 = vcmp.lt.s32.totalorder %v779_v43, 2  ;;  %v10468_v63 = vpop.permute.xlu1 %3646 }
 0x39a   : > { %v628_v11 = vsel %vm626_vm12, %v613_v6, %v627_v49  ;;  %v746_v52 = vshrl.u32 %v728_v3, %v744_v51  ;;  %v749_v13 = vadd.s32 127, %v748_v15  ;;  %v10472_v15 = vpop.permute.xlu0 %3636 }
 0x39b   : > { %v632_v39 = vsel %vm625_vm10, %v628_v11, %v631_v60 }
 0x39c   : > { %v633_v9 = vsel %vm622_vm13, nan, %v632_v39  ;;  %v747_v48 = vor.u32 %v746_v52, %v745_v26  ;;  %v750_v38 = vshll.u32 %v749_v13, 23  ;;  %v10476_v26 = vpop.permute.xlu2 %3641 }
 0x39d   : > { %3695 = vmatpush.msra.mxu2 %v633_v9 }
 0x39e   : > { %v751_v10 = vor.u32 4788187, %v750_v38  ;;  %7071 = vmatmul.msk.f32.vlgmr.msra.gmra.mxu2 %vm13755_vm15, %v3579_v40  ;;  %v754_v18 = vcvt.s32.f32 %v747_v48 }
 0x3a0   : > { %v752_v24 = vand.u32 2147483647, %v751_v10 }
 0x3a1   : > { %v10470_v60 = vpop.permute.xlu1 %3631 }
 0x3a2   : > { %v755_v42 = vmul.f32 %v754_v18, %v752_v24  ;;  %v10478_v13 = vpop.permute.xlu0 %3621 }
 0x3a4   : > { %v756_v28 = vxor.u32 2147483648, %v755_v42  ;;  %v10482_v10 = vpop.permute.xlu2 %3626 }
 0x3a6   : > { %v757_v44 = vsel %vm636_vm1, %v756_v28, %v755_v42  ;;  %7072 = vmatmul.msk.f32.gmra.mxu2 %vm13755_vm15, %v3580_v47 }
 0x3a7   : > { %v760_v57 = vsel %vm10415_vm14, %v13990_v27, %v757_v44  ;;  %v3585_v27 = vld [vmem:[%s13523_s3 + $0x30] sm:$0xff] }
 0x3a8   : > { %v762_v37 = vmul.f32 %v760_v57, %v760_v57 }
 0x3a9   : > { %v10474_v9 = vpop.permute.xlu1 %3616 }
 0x3aa   : > { %v763_v30 = vmul.f32 -0.001358992, %v762_v37  ;;  %v770_v36 = vmul.f32 -0.00019511016, %v762_v37  ;;  %v3607_v42 = vpop.permute.xlu0 %3606 }
 0x3ac   : > { %v764_v32 = vadd.f32 0.041655596, %v763_v30  ;;  %v771_v58 = vadd.f32 0.008332121, %v770_v36  ;;  %v3612_v44 = vpop.permute.xlu2 %3611 }
 0x3ae   : > { %v765_v12 = vmul.f32 %v764_v32, %v762_v37  ;;  %v772_v1 = vmul.f32 %v771_v58, %v762_v37  ;;  %7073 = vmatmul.msk.f32.gmra.mxu2 %vm13755_vm15, %v3581_v2 }
 0x3b0   : > { %v766_v17 = vadd.f32 -0.4999988, %v765_v12  ;;  %v773_v33 = vadd.f32 -0.16666654, %v772_v1 }
 0x3b1   : > { %v3602_v38 = vpop.permute.xlu1 %3601 }
 0x3b2   : > { %v767_v16 = vmul.f32 %v766_v17, %v762_v37  ;;  %v774_v50 = vmul.f32 %v773_v33, %v762_v37 }
 0x3b4   : > { %v768_v35 = vadd.f32 1.0, %v767_v16  ;;  %v775_v22 = vadd.f32 1.0, %v774_v50 }
 0x3b6   : > { %v776_v53 = vmul.f32 %v775_v22, %v760_v57  ;;  %v785_v20 = vxor.u32 2147483648, %v768_v35  ;;  %7074 = vmatmul.msk.f32.gmra.mxu2 %vm13755_vm15, %v3582_v19 }
 0x3b8   : > { %v782_v25 = vxor.u32 2147483648, %v776_v53  ;;  %v786_v5 = vsel %vm784_vm5, %v785_v20, %v776_v53 }
 0x3ba   : > { %v783_v8 = vsel %vm781_vm2, %v768_v35, %v782_v25 }
 0x3bb   : > { %v787_v6 = vsel %vm780_vm4, %v783_v8, %v786_v5 }
 0x3bc   : > { %v788_v56 = vsel %vm777_vm6, nan, %v787_v6 }
 0x3bd   : > { %3742 = vmatpush.msra.mxu3 %v788_v56 }
 0x3be   : > { %7081 = vmatmul.msk.f32.vlgmr.msra.gmra.mxu3 %vm13755_vm15, %v3579_v40  ;;  %7075 = vmatmul.msk.f32.gmra.mxu2 %vm13755_vm15, %v3583_v14 }
 0x3c6   : > { %7082 = vmatmul.msk.f32.gmra.mxu3 %vm13755_vm15, %v3580_v47  ;;  %7076 = vmatmul.msk.f32.gmra.mxu2 %vm13755_vm15, %v3584_v31 }
 0x3ce   : > { %7083 = vmatmul.msk.f32.gmra.mxu3 %vm13755_vm15, %v3581_v2  ;;  %7077 = vmatmul.msk.f32.gmra.mxu2 %vm13755_vm15, %v3585_v27 }
 0x3d6   : > { %7084 = vmatmul.msk.f32.gmra.mxu3 %vm13755_vm15, %v3582_v19  ;;  %7078 = vmatmul.msk.f32.gmra.mxu2 %vm13755_vm15, %v3586_v61 }
 0x3de   : > { %7085 = vmatmul.msk.f32.gmra.mxu3 %vm13755_vm15, %v3583_v14  ;;  %7079 = vmatmul.msk.f32.gmra.mxu2 %vm13755_vm15, %v3587_v23 }
 0x3e6   : > { %7086 = vmatmul.msk.f32.gmra.mxu3 %vm13755_vm15, %v3584_v31  ;;  %7080 = vmatmul.msk.f32.gmra.mxu2 %vm13755_vm15, %v3588_v41 }
 0x3ee   : > { %7087 = vmatmul.msk.f32.gmra.mxu3 %vm13755_vm15, %v3585_v27 }
 0x3f6   : > { %7088 = vmatmul.msk.f32.gmra.mxu3 %vm13755_vm15, %v3586_v61 }
 0x3fe   : > { %7089 = vmatmul.msk.f32.gmra.mxu3 %vm13755_vm15, %v3587_v23 }
 0x406   : > { %7090 = vmatmul.msk.f32.gmra.mxu3 %vm13755_vm15, %v3588_v41 }
 0x421   : > { %v3697_v49 = vpop.f32.mrf.mxu2 }
 0x422   : > { %v10480_v40 = vadd.f32 %v3697_v49, %v3602_v38 }
 0x424   : > { %13997 = vst [vmem:[#allocation89_spill] sm:$0xff] %v10480_v40  ;;  %v3777_v24 = vand.u32 2139095040, %v10480_v40 }
 0x426   : > { %v3778_v7 = vshrl.u32 %v3777_v24, 23 }
 0x428   : > { %v7091_v57 = vadd.s32 4294967169, %v3778_v7 }
 0x429   : > { %v3700_v3 = vpop.f32.mrf.mxu2 }
 0x42a   : > { %v10485_v28 = vadd.f32 %v3700_v3, %v3607_v42  ;;  %v3784_v21 = vadd.s32 1, %v7091_v57 }
 0x42c   : > { %13998 = vst [vmem:[#allocation93_spill] sm:$0xff] %v10485_v28  ;;  %v4087_v4 = vand.u32 2139095040, %v10485_v28  ;;  %vm3785_vm7 = vcmp.gt.s32.totalorder %v3784_v21, 0 }
 0x42d   : > { %v3786_v17 = vsel %vm3785_vm7, %v3784_v21, 0 }
 0x42e   : > { %v4088_v30 = vshrl.u32 %v4087_v4, 23  ;;  %v10502_v35 = vand.u32 31, %v3786_v17  ;;  %v10521_v3 = vshrl.u32 %v3786_v17, 5 }
 0x430   : > { %v7097_v45 = vadd.s32 4294967169, %v4088_v30  ;;  %14002 = vst [vmem:[#allocation94_spill] sm:$0xff] %v10502_v35  ;;  %v10510_v5 = vsub.s32 32, %v10502_v35  ;;  %vm13756_vm10 = vcmp.lt.s32.totalorder %v10521_v3, 4 }
 0x431   : > { %v3703_v11 = vpop.f32.mrf.mxu2  ;;  %14008 = vst [vmem:[#allocation87_spill] sm:$0xff] %v10521_v3 }
 0x432   : > { %v10488_v37 = vadd.f32 %v3703_v11, %v3612_v44  ;;  %v4094_v33 = vadd.s32 1, %v7097_v45  ;;  %14005 = vst [vmem:[#allocation85_spill] sm:$0xff] %v10510_v5  ;;  %v3801_v41 = vshrl.u32 %v13868_v54, %v10510_v5 }
 0x434   : > { %13999 = vst [vmem:[#allocation92_spill] sm:$0xff] %v10488_v37  ;;  %v4397_v2 = vand.u32 2139095040, %v10488_v37  ;;  %vm4095_vm11 = vcmp.gt.s32.totalorder %v4094_v33, 0 }
 0x435   : > { %v4096_v14 = vsel %vm4095_vm11, %v4094_v33, 0 }
 0x436   : > { %v4398_v12 = vshrl.u32 %v4397_v2, 23  ;;  %v10515_v27 = vand.u32 31, %v4096_v14  ;;  %v10547_v17 = vshrl.u32 %v4096_v14, 5 }
 0x438   : > { %v7103_v62 = vadd.s32 4294967169, %v4398_v12  ;;  %14007 = vst [vmem:[#allocation90_spill] sm:$0xff] %v10515_v27  ;;  %vm4119_vm12 = vcmp.lt.s32.totalorder %v10547_v17, 4 }
 0x439   : > { %v3706_v51 = vpop.f32.mrf.mxu2  ;;  %14014 = vst [vmem:[#allocation36_spill] sm:$0xff] %v10547_v17 }
 0x43a   : > { %v10494_v58 = vadd.f32 %v3706_v51, %v10474_v9  ;;  %v4404_v53 = vadd.s32 1, %v7103_v62 }
 0x43c   : > { %14000 = vst [vmem:[#allocation47_spill] sm:$0xff] %v10494_v58  ;;  %v4707_v1 = vand.u32 2139095040, %v10494_v58  ;;  %vm4405_vm0 = vcmp.gt.s32.totalorder %v4404_v53, 0 }
 0x43d   : > { %v4406_v51 = vsel %vm4405_vm0, %v4404_v53, 0 }
 0x43e   : > { %v4708_v50 = vshrl.u32 %v4707_v1, 23  ;;  %v10538_v57 = vand.u32 31, %v4406_v51 }
 0x440   : > { %v7109_v8 = vadd.s32 4294967169, %v4708_v50  ;;  %14011 = vst [vmem:[#allocation82_spill] sm:$0xff] %v10538_v57 }
 0x441   : > { %v3744_v39 = vpop.f32.mrf.mxu3  ;;  %v3709_v52 = vpop.f32.mrf.mxu2 }
 0x442   : > { %v10498_v16 = vadd.f32 %v3709_v52, %v10478_v13  ;;  %v10512_v6 = vadd.f32 %v3744_v39, %v3602_v38  ;;  %v4714_v23 = vadd.s32 1, %v7109_v8  ;;  %v3800_v52 = vshll.u32 %v13803_v46, %v10502_v35 }
 0x444   : > { %14001 = vst [vmem:[#allocation81_spill] sm:$0xff] %v10498_v16  ;;  %v5017_v20 = vand.u32 2139095040, %v10498_v16  ;;  %v3932_v49 = vand.u32 2139095040, %v10512_v6  ;;  %vm4715_vm9 = vcmp.gt.s32.totalorder %v4714_v23, 0  ;;  %v10534_v7 = vor.u32 %v3801_v41, %v3800_v52 }
 0x445   : > { %14006 = vst [vmem:[#allocation86_spill] sm:$0xff] %v10512_v6  ;;  %v4716_v45 = vsel %vm4715_vm9, %v4714_v23, 0 }
 0x446   : > { %v5018_v31 = vshrl.u32 %v5017_v20, 23  ;;  %14010 = vst [vmem:[#allocation24_spill] sm:$0xff] %v10534_v7  ;;  %v3933_v4 = vshrl.u32 %v3932_v49, 23  ;;  %v4110_v20 = vshll.u32 %v13803_v46, %v10515_v27  ;;  %v10566_v14 = vand.u32 31, %v4716_v45 }
 0x448   : > { %v7115_v38 = vadd.s32 4294967169, %v5018_v31  ;;  %v7094_v53 = vadd.s32 4294967169, %v3933_v4  ;;  %14018 = vst [vmem:[#allocation74_spill] sm:$0xff] %v10566_v14 }
 0x449   : > { %v3747_v48 = vpop.f32.mrf.mxu3  ;;  %v3712_v18 = vpop.f32.mrf.mxu2 }
 0x44a   : > { %v10504_v43 = vadd.f32 %v3747_v48, %v3607_v42  ;;  %v3804_v48 = vshrl.u32 %v13870_v29, %v10510_v5  ;;  %v10532_v42 = vsub.s32 32, %v10515_v27  ;;  %v10542_v21 = vadd.f32 %v3712_v18, %v10482_v10 }
 0x44b   : > { %v5024_v1 = vadd.s32 1, %v7115_v38  ;;  %v10557_v18 = vsel %vm13756_vm10, %v10534_v7, 920167782 }
 0x44c   : > { %14003 = vst [vmem:[#allocation88_spill] sm:$0xff] %v10504_v43  ;;  %v4242_v56 = vand.u32 2139095040, %v10504_v43  ;;  %v4111_v33 = vshrl.u32 %v13868_v54, %v10532_v42 }
 0x44d   : > { %14009 = vst [vmem:[#allocation91_spill] sm:$0xff] %v10532_v42  ;;  %vm5025_vm3 = vcmp.gt.s32.totalorder %v5024_v1, 0 }
 0x44e   : > { %v4243_v11 = vshrl.u32 %v4242_v56, 23  ;;  %14012 = vst [vmem:[#allocation64_spill] sm:$0xff] %v10542_v21  ;;  %v4113_v56 = vshll.u32 %v13868_v54, %v10515_v27  ;;  %v5026_v4 = vsel %vm5025_vm3, %v5024_v1, 0 }
 0x44f   : > { %14016 = vst [vmem:[#allocation84_spill] sm:$0xff] %v10557_v18 }
 0x450   : > { %v7100_v30 = vadd.s32 4294967169, %v4243_v11  ;;  %v3939_v11 = vadd.s32 1, %v7094_v53 }
 0x451   : > { %v3750_v47 = vpop.f32.mrf.mxu3  ;;  %v10490_v36 = vpop.f32.mrf.mxu2 }
 0x452   : > { %v10507_v25 = vadd.f32 %v3750_v47, %v3612_v44  ;;  %v3803_v44 = vshll.u32 %v13868_v54, %v10502_v35  ;;  %v4249_v8 = vadd.s32 1, %v7100_v30  ;;  %vm3940_vm1 = vcmp.gt.s32.totalorder %v3939_v11, 0 }
 0x454   : > { %14004 = vst [vmem:[#allocation83_spill] sm:$0xff] %v10507_v25  ;;  %v4552_v61 = vand.u32 2139095040, %v10507_v25  ;;  %v3805_v2 = vor.u32 %v3804_v48, %v3803_v44  ;;  %v10580_v48 = vshrl.u32 %v4406_v51, 5  ;;  %vm4250_vm8 = vcmp.gt.s32.totalorder %v4249_v8, 0 }
 0x455   : > { %v10587_v44 = vsub.s32 32, %v10566_v14 }
 0x456   : > { %v4553_v47 = vshrl.u32 %v4552_v61, 23  ;;  %v10576_v61 = vor.u32 %v4111_v33, %v4110_v20  ;;  %14021 = vst [vmem:[#allocation80_spill] sm:$0xff] %v10580_v48  ;;  %v4251_v20 = vsel %vm4250_vm8, %v4249_v8, 0  ;;  %vm4429_vm14 = vcmp.lt.s32.totalorder %v10580_v48, 4 }
 0x457   : > { %14022 = vst [vmem:[#allocation78_spill] sm:$0xff] %v10587_v44  ;;  %v10611_v5 = vand.u32 31, %v4251_v20  ;;  %v10613_v8 = vshrl.u32 %v4716_v45, 5 }
 0x458   : > { %v7106_v62 = vadd.s32 4294967169, %v4553_v47  ;;  %14020 = vst [vmem:[#allocation75_spill] sm:$0xff] %v10576_v61  ;;  %v10599_v53 = vsel %vm4119_vm12, %v10576_v61, 920167782 }
 0x459   : > { %v3753_v32 = vpop.f32.mrf.mxu3  ;;  %v10500_v19 = vpop.f32.mrf.mxu2  ;;  %14023 = vst [vmem:[#allocation69_spill] sm:$0xff] %v10599_v53  ;;  %v10646_v43 = vsub.s32 32, %v10611_v5  ;;  %vm4739_vm2 = vcmp.lt.s32.totalorder %v10613_v8, 4 }
 0x45a   : > { %v10545_v12 = vadd.f32 %v3753_v32, %v10474_v9  ;;  %v4114_v9 = vshrl.u32 %v13870_v29, %v10532_v42  ;;  %v10562_v32 = vsub.s32 32, %v10538_v57  ;;  %v4559_v23 = vadd.s32 1, %v7106_v62  ;;  %14026 = vst [vmem:[#allocation63_spill] sm:$0xff] %v10611_v5 }
 0x45b   : > { %14027 = vst [vmem:[#allocation72_spill] sm:$0xff] %v10613_v8 }
 0x45c   : > { %14013 = vst [vmem:[#allocation73_spill] sm:$0xff] %v10545_v12  ;;  %v4862_v31 = vand.u32 2139095040, %v10545_v12  ;;  %v4115_v52 = vor.u32 %v4114_v9, %v4113_v56  ;;  %v4421_v38 = vshrl.u32 %v13868_v54, %v10562_v32  ;;  %v4424_v33 = vshrl.u32 %v13870_v29, %v10562_v32 }
 0x45d   : > { %14017 = vst [vmem:[#allocation71_spill] sm:$0xff] %v10562_v32  ;;  %v4423_v9 = vshll.u32 %v13868_v54, %v10538_v57  ;;  %vm4560_vm13 = vcmp.gt.s32.totalorder %v4559_v23, 0  ;;  %v10605_v56 = vand.u32 31, %v5026_v4 }
 0x45e   : > { %v4863_v62 = vshrl.u32 %v4862_v31, 23  ;;  %v4561_v7 = vsel %vm4560_vm13, %v4559_v23, 0  ;;  %v10621_v35 = vsel %vm4119_vm12, %v4115_v52, 1326507024  ;;  %14036 = vst [vmem:[#allocation59_spill] sm:$0xff] %v10646_v43 }
 0x45f   : > { %14025 = vst [vmem:[#allocation68_spill] sm:$0xff] %v10605_v56  ;;  %v4425_v18 = vor.u32 %v4424_v33, %v4423_v9  ;;  %v10631_v45 = vand.u32 31, %v4561_v7  ;;  %v10637_v9 = vshrl.u32 %v4251_v20, 5  ;;  %v5043_v53 = vshll.u32 %v13868_v54, %v10605_v56 }
 0x460   : > { %14029 = vst [vmem:[#allocation60_spill] sm:$0xff] %v10621_v35 }
 0x461   : > { %v3756_v22 = vpop.f32.mrf.mxu3  ;;  %v10523_v39 = vpop.f32.mrf.mxu2  ;;  %14032 = vst [vmem:[#allocation57_spill] sm:$0xff] %v10631_v45  ;;  %v10641_v52 = vsel %vm4429_vm14, %v4425_v18, 1326507024  ;;  %v10687_v17 = vshll.u32 %v13803_v46, %v10631_v45 }
 0x462   : > { %v10552_v50 = vadd.f32 %v3756_v22, %v10478_v13  ;;  %v5327_v13 = vand.u32 2139095040, %v10542_v21  ;;  %v10571_v22 = vsel %vm13756_vm10, %v3805_v2, 1326507024  ;;  %v4420_v2 = vshll.u32 %v13803_v46, %v10538_v57  ;;  %14034 = vst [vmem:[#allocation10_spill] sm:$0xff] %v10637_v9 }
 0x463   : > { %14019 = vst [vmem:[#allocation77_spill] sm:$0xff] %v10571_v22  ;;  %v7112_v22 = vadd.s32 4294967169, %v4863_v62 }
 0x464   : > { %14015 = vst [vmem:[#allocation76_spill] sm:$0xff] %v10552_v50  ;;  %v5172_v41 = vand.u32 2139095040, %v10552_v50  ;;  %v5328_v30 = vshrl.u32 %v5327_v13, 23  ;;  %v10603_v13 = vor.u32 %v4421_v38, %v4420_v2  ;;  %v10617_v2 = vsel %vm3940_vm1, %v3939_v11, 0 }
 0x465   : > { %14028 = vst [vmem:[#allocation79_spill] sm:$0xff] %v10617_v2  ;;  %v4734_v11 = vshrl.u32 %v13870_v29, %v10587_v44 }
 0x466   : > { %v5173_v1 = vshrl.u32 %v5172_v41, 23  ;;  %14024 = vst [vmem:[#allocation18_spill] sm:$0xff] %v10603_v13  ;;  %v7121_v6 = vadd.s32 4294967169, %v5328_v30  ;;  %v4730_v41 = vshll.u32 %v13803_v46, %v10566_v14  ;;  %v10626_v23 = vsel %vm4429_vm14, %v10603_v13, 920167782 }
 0x467   : > { %14030 = vst [vmem:[#allocation65_spill] sm:$0xff] %v10626_v23  ;;  %v10629_v30 = vsub.s32 32, %v10605_v56 }
 0x468   : > { %v7118_v38 = vadd.s32 4294967169, %v5173_v1  ;;  %v5334_v62 = vadd.s32 1, %v7121_v6  ;;  %14035 = vst [vmem:[#allocation52_spill] sm:$0xff] %v10641_v52  ;;  %v4869_v1 = vadd.s32 1, %v7112_v22  ;;  %v10651_v6 = vshrl.u32 %v4561_v7, 5 }
 0x469   : > { %v10529_v24 = vpop.f32.mrf.mxu3  ;;  %v3724_v49 = vpop.f32.mrf.mxu2  ;;  %14031 = vst [vmem:[#allocation25_spill] sm:$0xff] %v10629_v30  ;;  %v5041_v20 = vshrl.u32 %v13868_v54, %v10629_v30  ;;  %v5044_v18 = vshrl.u32 %v13870_v29, %v10629_v30  ;;  %v10665_v7 = vshrl.u32 %v5026_v4, 5 }
 0x46a   : > { %v10594_v51 = vadd.f32 %v3724_v49, %v10468_v63  ;;  %v4731_v49 = vshrl.u32 %v13868_v54, %v10587_v44  ;;  %14037 = vst [vmem:[#allocation46_spill] sm:$0xff] %v10651_v6  ;;  %vm5335_vm5 = vcmp.gt.s32.totalorder %v5334_v62, 0  ;;  %vm4870_vm4 = vcmp.gt.s32.totalorder %v4869_v1, 0 }
 0x46b   : > { %14040 = vst [vmem:[#allocation56_spill] sm:$0xff] %v10665_v7  ;;  %v5045_v4 = vor.u32 %v5044_v18, %v5043_v53  ;;  %v5336_v61 = vsel %vm5335_vm5, %v5334_v62, 0  ;;  %v10683_v35 = vadd.f32 %v10529_v24, %v10482_v10  ;;  %vm5049_vm11 = vcmp.lt.s32.totalorder %v10665_v7, 4 }
 0x46c   : > { %v6567_v31 = vand.u32 2139095040, %v10594_v51  ;;  %v10633_v33 = vor.u32 %v4731_v49, %v4730_v41  ;;  %v4733_v49 = vshll.u32 %v13868_v54, %v10566_v14  ;;  %v5179_v41 = vadd.s32 1, %v7118_v38  ;;  %14044 = vst [vmem:[#allocation11_spill] sm:$0xff] %v10687_v17 }
 0x46d   : > { %v5040_v38 = vshll.u32 %v13803_v46, %v10605_v56  ;;  %14043 = vst [vmem:[#allocation66_spill] sm:$0xff] %v10683_v35  ;;  %v10698_v10 = vshrl.u32 %v5336_v61, 5  ;;  %v10700_v24 = vand.u32 31, %v5336_v61  ;;  %v14054_v43 = vand.u32 2147483647, %v10594_v51 }
 0x46e   : > { %v6568_v3 = vshrl.u32 %v6567_v31, 23  ;;  %14033 = vst [vmem:[#allocation70_spill] sm:$0xff] %v10633_v33  ;;  %v4735_v9 = vor.u32 %v4734_v11, %v4733_v49  ;;  %v10663_v2 = vsel %vm4739_vm2, %v10633_v33, 920167782  ;;  %vm5180_vm6 = vcmp.gt.s32.totalorder %v5179_v41, 0 }
 0x46f   : > { %14039 = vst [vmem:[#allocation67_spill] sm:$0xff] %v10663_v2  ;;  %v10677_v11 = vadd.f32 %v10500_v19, %v10472_v15  ;;  %v10679_v49 = vor.u32 %v5041_v20, %v5040_v38  ;;  %v10695_v20 = vsel %vm4870_vm4, %v4869_v1, 0  ;;  %v5181_v53 = vsel %vm5180_vm6, %v5179_v41, 0 }
 0x470   : > { %v7145_v40 = vadd.s32 4294967169, %v6568_v3  ;;  %v10658_v3 = vsub.s32 32, %v10631_v45  ;;  %14046 = vst [vmem:[#allocation48_spill] sm:$0xff] %v10695_v20  ;;  %v10711_v1 = vsel %vm5049_vm11, %v5045_v4, 1326507024  ;;  %v5482_v41 = vand.u32 2139095040, %v10683_v35 }
 0x471   : > { %v10584_v47 = vpop.f32.mrf.mxu3  ;;  %14042 = vst [vmem:[#allocation58_spill] sm:$0xff] %v10679_v49  ;;  %v5947_v38 = vand.u32 2139095040, %v10677_v11  ;;  %v10716_v61 = vshrl.u32 %v5181_v53, 5  ;;  %v10718_v27 = vand.u32 31, %v5181_v53  ;;  %v6571_v25 = vand.u32 8388607, %v14054_v43 }
 0x472   : > { %v6574_v22 = vadd.s32 1, %v7145_v40  ;;  %14038 = vst [vmem:[#allocation62_spill] sm:$0xff] %v10658_v3  ;;  %v10673_v40 = vadd.f32 %v10490_v36, %v10470_v60  ;;  %v10691_v36 = vsel %vm4739_vm2, %v4735_v9, 1326507024  ;;  %v10707_v9 = vsel %vm5049_vm11, %v10679_v49, 920167782 }
 0x473   : > { %14045 = vst [vmem:[#allocation61_spill] sm:$0xff] %v10691_v36  ;;  %v10722_v28 = vadd.f32 %v10584_v47, %v10470_v60  ;;  %v10734_v53 = vsub.s32 32, %v10700_v24  ;;  %v5948_v52 = vshrl.u32 %v5947_v38, 23  ;;  %v10739_v43 = vshll.u32 %v13803_v46, %v10700_v24 }
 0x474   : > { %14041 = vst [vmem:[#allocation53_spill] sm:$0xff] %v10673_v40  ;;  %vm6575_vm7 = vcmp.gt.s32.totalorder %v6574_v22, 0  ;;  %v5637_v18 = vand.u32 2139095040, %v10673_v40  ;;  %v10743_v47 = vadd.f32 %v10523_v39, %v10476_v26  ;;  %v6572_v57 = vor.u32 8388608, %v6571_v25 }
 0x475   : > { %v6576_v42 = vsel %vm6575_vm7, %v6574_v22, 0  ;;  %14047 = vst [vmem:[#allocation49_spill] sm:$0xff] %v10698_v10  ;;  %v5792_v38 = vand.u32 2139095040, %v10722_v28  ;;  %v7133_v39 = vadd.s32 4294967169, %v5948_v52  ;;  %vm6707_vm10 = vweird.f32 %v10594_v51 }
 0x476   : > { %v6578_v62 = vand.u32 31, %v6576_v42  ;;  %14048 = vst [vmem:[#allocation6_spill] sm:$0xff] %v10700_v24  ;;  %v10726_v5 = vshrl.u32 %v6576_v42, 5  ;;  %v5638_v13 = vshrl.u32 %v5637_v18, 23  ;;  %v5483_v42 = vshrl.u32 %v5482_v41, 23 }
 0x477   : > { %14049 = vst [vmem:[#allocation54_spill] sm:$0xff] %v10707_v9  ;;  %v5793_v2 = vshrl.u32 %v5792_v38, 23 }
 0x478   : > { %14050 = vst [vmem:[#allocation42_spill] sm:$0xff] %v10711_v1  ;;  %v10714_v19 = vsub.s32 32, %v6578_v62  ;;  %v6593_v6 = vshll.u32 %v13868_v54, %v6578_v62  ;;  %v6590_v60 = vshll.u32 %v13803_v46, %v6578_v62  ;;  %v6581_v37 = vshll.u32 %v13855_v59, %v6578_v62 }
 0x479   : > { %v10643_v31 = vpop.f32.mrf.mxu3  ;;  %14051 = vst [vmem:[#allocation33_spill] sm:$0xff] %v10716_v61  ;;  %vm6599_vm0 = vcmp.lt.s32.totalorder %v10726_v5, 4  ;;  %v6584_v17 = vshll.u32 %v13857_v55, %v6578_v62  ;;  %v7127_v3 = vadd.s32 4294967169, %v5638_v13  ;;  %vm6596_vm9 = vcmp.lt.s32.totalorder %v10726_v5, 1 }
 0x47a   : > { %14052 = vst [vmem:[#allocation55_spill] sm:$0xff] %v10718_v27  ;;  %v6591_v4 = vshrl.u32 %v13868_v54, %v10714_v19  ;;  %v6594_v23 = vshrl.u32 %v13870_v29, %v10714_v19  ;;  %v6582_v18 = vshrl.u32 %v13857_v55, %v10714_v19  ;;  %v6585_v41 = vshrl.u32 %v13858_v0, %v10714_v19 }
 0x47b   : > { %14053 = vst [vmem:[#allocation50_spill] sm:$0xff] %v10722_v28  ;;  %v6588_v45 = vshrl.u32 %v13803_v46, %v10714_v19  ;;  %vm6598_vm3 = vcmp.lt.s32.totalorder %v10726_v5, 3  ;;  %v10767_v13 = vshll.u32 %v6572_v57, 8  ;;  %v5954_v57 = vadd.s32 1, %v7133_v39 }
 0x47c   : > { %14055 = vst [vmem:[#allocation51_spill] sm:$0xff] %v10734_v53  ;;  %v6595_v48 = vor.u32 %v6594_v23, %v6593_v6  ;;  %v6592_v32 = vor.u32 %v6591_v4, %v6590_v60  ;;  %v10755_v25 = vor.u32 %v6582_v18, %v6581_v37  ;;  %v6257_v6 = vand.u32 2139095040, %v10743_v47 }
 0x47d   : > { %v10758_v4 = vor.u32 %v6585_v41, %v6584_v17  ;;  %v6587_v60 = vshll.u32 %v13858_v0, %v6578_v62  ;;  %v10771_v37 = vshrl.u32 %v13868_v54, %v10734_v53  ;;  %v7124_v18 = vadd.s32 4294967169, %v5483_v42 }
 0x47e   : > { %v6609_v23 = vsel %vm6599_vm0, %v6595_v48, 1326507024  ;;  %v6605_v12 = vsel %vm6599_vm0, %v6592_v32, 920167782  ;;  %v10779_v41 = vadd.s32 1, %v7127_v3  ;;  %v6258_v33 = vshrl.u32 %v6257_v6, 23 }
 0x47f   : > { %v6589_v48 = vor.u32 %v6588_v45, %v6587_v60  ;;  %v6604_v52 = vsel %vm6596_vm9, %v10755_v25, %v10758_v4  ;;  %v6610_v62 = vsel %vm6598_vm3, %v6592_v32, %v6609_v23  ;;  %vm6597_vm8 = vcmp.lt.s32.totalorder %v10726_v5, 2 }
 0x480   : > { %v6613_v42 = vand.u32 65535, %v10767_v13  ;;  %v6614_v38 = vshrl.u32 %v10767_v13, 16  ;;  %v10798_v6 = vshrl.u32 %v13870_v29, %v10734_v53  ;;  %v10800_v8 = vadd.s32 1, %v7124_v18 }
 0x481   : > { %v3768_v22 = vpop.f32.mrf.mxu3  ;;  %v6606_v36 = vsel %vm6598_vm3, %v6589_v48, %v6605_v12  ;;  %v6608_v45 = vsel %vm6596_vm9, %v10758_v4, %v6589_v48  ;;  %vm5645_vm13 = vcmp.gt.s32.totalorder %v10779_v41, 0  ;;  %vm5955_vm1 = vcmp.gt.s32.totalorder %v5954_v57, 0 }
 0x482   : > { %v6607_v32 = vsel %vm6597_vm8, %v6604_v52, %v6606_v36  ;;  %v6611_v3 = vsel %vm6597_vm8, %v6608_v45, %v6610_v62  ;;  %v10807_v52 = vadd.f32 %v10643_v31, %v10472_v15  ;;  %v7139_v14 = vadd.s32 4294967169, %v6258_v33 }
 0x483   : > { %v6615_v39 = vand.u32 65535, %v6611_v3  ;;  %v6616_v23 = vshrl.u32 %v6611_v3, 16  ;;  %v6637_v12 = vand.u32 65535, %v6607_v32  ;;  %v6638_v36 = vshrl.u32 %v6607_v32, 16 }
 0x484   : > { %14056 = vst [vmem:[#allocation7_spill] sm:$0xff] %v10807_v52  ;;  %v6601_v7 = vsel %vm6599_vm0, %v6589_v48, 2102212464 }
 0x485   : > { %v6618_v62 = vmul.u32 %v6616_v23, %v6613_v42  ;;  %v6619_v45 = vmul.u32 %v6615_v39, %v6614_v38  ;;  %v6640_v3 = vmul.u32 %v6638_v36, %v6613_v42  ;;  %v6641_v44 = vmul.u32 %v6637_v12, %v6614_v38 }
 0x486   : > { %v6617_v58 = vmul.u32 %v6615_v39, %v6613_v42  ;;  %v6642_v31 = vmul.u32 %v6638_v36, %v6614_v38  ;;  %v6602_v48 = vsel %vm6598_vm3, %v10758_v4, %v6601_v7  ;;  %vm5490_vm3 = vcmp.gt.s32.totalorder %v10800_v8, 0 }
 0x487   : > { %v6621_v50 = vshll.u32 %v6618_v62, 16  ;;  %v6643_v32 = vshll.u32 %v6640_v3, 16  ;;  %v6623_v61 = vshll.u32 %v6619_v45, 16  ;;  %v6645_v9 = vshll.u32 %v6641_v44, 16 }
 0x489   : > { %v3771_v17 = vpop.f32.mrf.mxu3  ;;  %vm6625_vm5 = vc.u32 %v6617_v58, %v6621_v50  ;;  %v6627_v15 = vadd.s32 %v6621_v50, %v6617_v58  ;;  %v6580_v58 = vshrl.u32 %v13855_v59, %v10714_v19  ;;  %v6622_v50 = vshrl.u32 %v6618_v62, 16 }
 0x48a   : > { %v10788_v60 = vadd.f32 %v3771_v17, %v10468_v63  ;;  %v10803_v63 = vadd.f32 %v3768_v22, %v10476_v26  ;;  %v7130_v17 = vadd.s32 4294967169, %v5793_v2  ;;  %v6620_v22 = vmul.u32 %v6616_v23, %v6614_v38 }
 0x48b   : > { %v6639_v2 = vmul.u32 %v6637_v12, %v6613_v42  ;;  %v6626_v20 = vsel %vm6625_vm5, 1, %v13856_v34  ;;  %vm6629_vm6 = vc.u32 %v6627_v15, %v6623_v61  ;;  %v5646_v19 = vsel %vm5645_vm13, %v10779_v41, 0 }
 0x48c   : > { %v6722_v18 = vand.u32 2139095040, %v10788_v60  ;;  %v6412_v26 = vand.u32 2139095040, %v10803_v63  ;;  %v6628_v33 = vadd.s32 %v6626_v20, %v6620_v22  ;;  %v6630_v42 = vsel %vm6629_vm6, 1, %v13856_v34 }
 0x48d   : > { %vm6647_vm4 = vc.u32 %v6639_v2, %v6643_v32  ;;  %v6649_v49 = vadd.s32 %v6643_v32, %v6639_v2  ;;  %v5799_v36 = vadd.s32 1, %v7130_v17  ;;  %v6644_v20 = vshrl.u32 %v6640_v3, 16 }
 0x48e   : > { %v6723_v1 = vshrl.u32 %v6722_v18, 23  ;;  %v6648_v39 = vsel %vm6647_vm4, 1, %v13856_v34  ;;  %v6632_v38 = vadd.s32 %v6630_v42, %v6628_v33  ;;  %v6264_v18 = vadd.s32 1, %v7139_v14 }
 0x48f   : > { %v6650_v23 = vadd.s32 %v6648_v39, %v6642_v31  ;;  %vm6651_vm7 = vc.u32 %v6649_v49, %v6645_v9  ;;  %v6600_v22 = vsel %vm6596_vm9, %v6580_v58, %v10755_v25  ;;  %v6624_v2 = vshrl.u32 %v6619_v45, 16 }
 0x490   : > { %v6652_v12 = vsel %vm6651_vm7, 1, %v13856_v34  ;;  %v6633_v32 = vadd.s32 %v6632_v38, %v6622_v50  ;;  %v10830_v62 = vsel %vm5955_vm1, %v5954_v57, 0  ;;  %v6646_v14 = vshrl.u32 %v6641_v44, 16 }
 0x491   : > { %v6654_v61 = vadd.s32 %v6652_v12, %v6650_v23  ;;  %v6413_v3 = vshrl.u32 %v6412_v26, 23  ;;  %v7148_v15 = vadd.s32 4294967169, %v6723_v1  ;;  %v10834_v25 = vadd.s32 %v6649_v49, %v6645_v9 }
 0x492   : > { %v10832_v31 = vadd.s32 %v6633_v32, %v6624_v2  ;;  %v6102_v33 = vand.u32 2139095040, %v10807_v52  ;;  %vm6265_vm0 = vcmp.gt.s32.totalorder %v6264_v18, 0  ;;  %v6603_v7 = vsel %vm6597_vm8, %v6600_v22, %v6602_v48 }
 0x493   : > { %v6655_v17 = vadd.s32 %v6654_v61, %v6644_v20  ;;  %v10840_v41 = vsub.s32 32, %v10718_v27  ;;  %v5353_v44 = vshll.u32 %v13868_v54, %v10700_v24  ;;  %v10844_v57 = vand.u32 31, %v5646_v19 }
 0x494   : > { %vm6659_vm9 = vc.u32 %v10832_v31, %v10834_v25  ;;  %vm5800_vm13 = vcmp.gt.s32.totalorder %v5799_v36, 0  ;;  %v10850_v49 = vand.u32 31, %v10830_v62  ;;  %v6266_v9 = vsel %vm6265_vm0, %v6264_v18, 0 }
 0x495   : > { %v6656_v4 = vadd.s32 %v6655_v17, %v6646_v14  ;;  %14057 = vst [vmem:[#allocation34_spill] sm:$0xff] %v10840_v41  ;;  %v7142_v1 = vadd.s32 4294967169, %v6413_v3  ;;  %v6729_v45 = vadd.s32 1, %v7148_v15  ;;  %v6657_v26 = vmul.u32 %v10767_v13, %v6603_v7 }
 0x496   : > { %14058 = vst [vmem:[#allocation43_spill] sm:$0xff] %v10844_v57  ;;  %v10855_v39 = vor.u32 %v10771_v37, %v10739_v43  ;;  %v5355_v42 = vor.u32 %v10798_v6, %v5353_v44  ;;  %v6103_v23 = vshrl.u32 %v6102_v33, 23  ;;  %v10860_v50 = vshll.u32 %v13803_v46, %v10718_v27 }
 0x497   : > { %v6660_v5 = vadd.s32 1, %v6656_v4  ;;  %v10863_v38 = vsub.s32 32, %v10844_v57  ;;  %v5801_v12 = vsel %vm5800_vm13, %v5799_v36, 0  ;;  %vm5359_vm8 = vcmp.lt.s32.totalorder %v10698_v10, 4 }
 0x498   : > { %14059 = vst [vmem:[#allocation37_spill] sm:$0xff] %v10855_v39  ;;  %v10869_v43 = vsel %vm5490_vm3, %v10800_v8, 0  ;;  %v10871_v13 = vshrl.u32 %v5646_v19, 5  ;;  %v10873_v37 = vand.u32 31, %v6266_v9  ;;  %v10876_v6 = vsub.s32 32, %v10850_v49 }
 0x499   : > { %v6661_v58 = vsel %vm6659_vm9, %v6660_v5, %v6656_v4  ;;  %14060 = vst [vmem:[#allocation39_spill] sm:$0xff] %v10860_v50  ;;  %v6419_v20 = vadd.s32 1, %v7142_v1  ;;  %vm6730_vm1 = vcmp.gt.s32.totalorder %v6729_v45, 0  ;;  %v10881_v36 = vsel %vm5359_vm8, %v10855_v39, 920167782 }
 0x49a   : > { %14061 = vst [vmem:[#allocation44_spill] sm:$0xff] %v10863_v38  ;;  %v6662_v18 = vadd.s32 %v6661_v58, %v6657_v26  ;;  %v10885_v22 = vsel %vm5359_vm8, %v5355_v42, 1326507024  ;;  %v10887_v8 = vand.u32 31, %v5801_v12  ;;  %v7136_v48 = vadd.s32 4294967169, %v6103_v23 }
 0x49b   : > { %14062 = vst [vmem:[#allocation40_spill] sm:$0xff] %v10869_v43  ;;  %v10890_v2 = vand.u32 31, %v10869_v43  ;;  %v5661_v32 = vshrl.u32 %v13868_v54, %v10863_v38  ;;  %v10894_v19 = vshrl.u32 %v5801_v12, 5  ;;  %v5660_v17 = vshll.u32 %v13803_v46, %v10844_v57 }
 0x49c   : > { %14063 = vst [vmem:[#allocation32_spill] sm:$0xff] %v10871_v13  ;;  %v6663_v61 = vadd.s32 536870912, %v6662_v18  ;;  %v10902_v3 = vshll.u32 %v13868_v54, %v10844_v57  ;;  %v10905_v15 = vsub.s32 32, %v10873_v37  ;;  %v6731_v33 = vsel %vm6730_vm1, %v6729_v45, 0 }
 0x49d   : > { %14064 = vst [vmem:[#allocation45_spill] sm:$0xff] %v10881_v36  ;;  %vm5669_vm5 = vcmp.lt.s32.totalorder %v10871_v13, 4  ;;  %v5971_v7 = vshrl.u32 %v13868_v54, %v10876_v6  ;;  %vm6420_vm4 = vcmp.gt.s32.totalorder %v6419_v20, 0  ;;  %v10913_v44 = vshrl.u32 %v13870_v29, %v10863_v38 }
 0x49e   : > { %14065 = vst [vmem:[#allocation4_spill] sm:$0xff] %v10885_v22  ;;  %v10896_v14 = vshrl.u32 %v6663_v61, 30  ;;  %v10916_v5 = vsub.s32 32, %v10887_v8  ;;  %v5974_v1 = vshrl.u32 %v13870_v29, %v10876_v6  ;;  %v6109_v26 = vadd.s32 1, %v7136_v48 }
 0x49f   : > { %14066 = vst [vmem:[#allocation17_spill] sm:$0xff] %v10887_v8  ;;  %v10920_v45 = vor.u32 %v5661_v32, %v5660_v17  ;;  %v5970_v42 = vshll.u32 %v13803_v46, %v10850_v49  ;;  %v10924_v23 = vand.u32 31, %v6731_v33  ;;  %v5973_v12 = vshll.u32 %v13868_v54, %v10850_v49 }
 0x4a0   : > { %14067 = vst [vmem:[#allocation28_spill] sm:$0xff] %v10890_v2  ;;  %v6665_v4 = vshll.u32 %v10896_v14, 30  ;;  %v6281_v61 = vshrl.u32 %v13868_v54, %v10905_v15  ;;  %v6284_v30 = vshrl.u32 %v13870_v29, %v10905_v15  ;;  %v6421_v56 = vsel %vm6420_vm4, %v6419_v20, 0 }
 0x4a1   : > { %14068 = vst [vmem:[#allocation41_spill] sm:$0xff] %v10894_v19  ;;  %v10933_v48 = vshrl.u32 %v10830_v62, 5  ;;  %v10935_v32 = vor.u32 %v5971_v7, %v5970_v42  ;;  %v5975_v16 = vor.u32 %v5974_v1, %v5973_v12  ;;  %vm6110_vm7 = vcmp.gt.s32.totalorder %v6109_v26, 0 }
 0x4a2   : > { %14069 = vst [vmem:[#allocation38_spill] sm:$0xff] %v10902_v3  ;;  %v6666_v58 = vsub.s32 %v6662_v18, %v6665_v4  ;;  %v6280_v18 = vshll.u32 %v13803_v46, %v10873_v37  ;;  %v6283_v4 = vshll.u32 %v13868_v54, %v10873_v37  ;;  %v10941_v50 = vshrl.u32 %v6266_v9, 5 }
 0x4a3   : > { %14070 = vst [vmem:[#allocation5_spill] sm:$0xff] %v10913_v44  ;;  %v10943_v27 = vand.u32 31, %v6421_v56  ;;  %v10946_v20 = vsub.s32 32, %v10924_v23  ;;  %v10950_v7 = vshll.u32 %v13803_v46, %v10887_v8  ;;  %v10957_v41 = vsel %vm5669_vm5, %v10920_v45, 920167782 }
 0x4a4   : > { %14071 = vst [vmem:[#allocation16_spill] sm:$0xff] %v10916_v5  ;;  %vm6667_vm6 = vcmp.lt.s32.totalorder %v6666_v58, 0  ;;  %v6668_v17 = vsub.s32 0, %v6666_v58  ;;  %v10952_v1 = vor.u32 %v6281_v61, %v6280_v18  ;;  %v6285_v42 = vor.u32 %v6284_v30, %v6283_v4 }
 0x4a5   : > { %14072 = vst [vmem:[#allocation20_spill] sm:$0xff] %v10920_v45  ;;  %v10961_v9 = vshll.u32 %v13868_v54, %v10887_v8  ;;  %vm5979_vm0 = vcmp.lt.s32.totalorder %v10933_v48, 4  ;;  %vm6289_vm9 = vcmp.lt.s32.totalorder %v10941_v50, 4  ;;  %v10979_v4 = vsub.s32 32, %v10943_v27 }
 0x4a6   : > { %v6669_v62 = vsel %vm6667_vm6, %v6668_v17, %v6666_v58  ;;  %14073 = vst [vmem:[#allocation29_spill] sm:$0xff] %v10950_v7  ;;  %v10964_v17 = vsel %vm6110_vm7, %v6109_v26, 0  ;;  %v10971_v30 = vsel %vm5979_vm0, %v10935_v32, 920167782  ;;  %v10975_v61 = vsel %vm5979_vm0, %v5975_v16, 1326507024 }
 0x4a7   : > { %v6670_v12 = vclz %v6669_v62  ;;  %14074 = vst [vmem:[#allocation22_spill] sm:$0xff] %v10957_v41  ;;  %v6746_v26 = vshrl.u32 %v13868_v54, %v10946_v20  ;;  %v6749_v62 = vshrl.u32 %v13870_v29, %v10946_v20  ;;  %v10986_v35 = vshrl.u32 %v10964_v17, 5 }
 0x4a8   : > { %14075 = vst [vmem:[#allocation30_spill] sm:$0xff] %v10961_v9  ;;  %v10991_v16 = vsel %vm6289_vm9, %v10952_v1, 920167782  ;;  %v6745_v36 = vshll.u32 %v13803_v46, %v10924_v23  ;;  %v6748_v39 = vshll.u32 %v13868_v54, %v10924_v23  ;;  %v6688_v10 = vsub.s32 4, %v10896_v14 }
 0x4a9   : > { %14076 = vst [vmem:[#allocation26_spill] sm:$0xff] %v10971_v30  ;;  %v7146_v18 = vadd.s32 4294967294, %v6670_v12  ;;  %v10995_v12 = vsel %vm6289_vm9, %v6285_v42, 1326507024  ;;  %v11002_v24 = vshrl.u32 %v6731_v33, 5  ;;  %v6658_v53 = vadd.s32 %v10834_v25, %v10832_v31 }
 0x4aa   : > { %v11006_v43 = vshrl.u32 %v6421_v56, 5  ;;  %v6436_v42 = vshrl.u32 %v13868_v54, %v10979_v4  ;;  %v6747_v8 = vor.u32 %v6746_v26, %v6745_v36  ;;  %v6750_v28 = vor.u32 %v6749_v62, %v6748_v39 }
 0x4ab   : > { %vm7147_vm3 = vcmp.lt.s32.totalorder %v7146_v18, 0  ;;  %vm6566_vm13 = vcmp.lt.s32.totalorder %v10594_v51, 0  ;;  %v6435_v33 = vshll.u32 %v13803_v46, %v10943_v27  ;;  %v11015_v31 = vshll.u32 %v13868_v54, %v10943_v27 }
 0x4ac   : > { %v6673_v22 = vsel %vm7147_vm3, 0, %v7146_v18  ;;  %v14077_v56 = vand.u32 2147483647, %v10594_v51  ;;  %v6689_v39 = vsel %vm6566_vm13, %v6688_v10, %v10896_v14  ;;  %vm6754_vm4 = vcmp.lt.s32.totalorder %v11002_v24, 4 }
 0x4ad   : > { %v6674_v21 = vsub.s32 32, %v6673_v22  ;;  %v6678_v2 = vsub.s32 4294967266, %v6673_v22  ;;  %v6675_v19 = vshll.u32 %v6666_v58, %v6673_v22  ;;  %v11031_v22 = vor.u32 %v6436_v42, %v6435_v33 }
 0x4ae   : > { %vm11019_vm1 = vcmp.le.f32.partialorder %v14077_v56, 0.7853982  ;;  %v6764_v58 = vsel %vm6754_vm4, %v6750_v28, 1326507024  ;;  %v13740_v26 = vand.u32 2147483647, %v10788_v60  ;;  %v6736_v14 = vshll.u32 %v13855_v59, %v10924_v23 }
 0x4af   : > { %v6676_v18 = vshrl.u32 %v6658_v53, %v6674_v21  ;;  %v6679_v9 = vadd.s32 127, %v6678_v2  ;;  %v11028_v21 = vshrl.u32 %v13870_v29, %v10979_v4  ;;  %v6760_v2 = vsel %vm6754_vm4, %v6747_v8, 920167782 }
 0x4b0   : > { %v6691_v10 = vsel %vm11019_vm1, 0, %v6689_v39  ;;  %v6726_v42 = vand.u32 8388607, %v13740_v26  ;;  %v6740_v28 = vshrl.u32 %v13858_v0, %v10946_v20  ;;  %v6742_v39 = vshll.u32 %v13858_v0, %v10924_v23 }
 0x4b1   : > { %v6677_v53 = vor.u32 %v6676_v18, %v6675_v19  ;;  %v6680_v36 = vshll.u32 %v6679_v9, 23  ;;  %v6737_v19 = vshrl.u32 %v13857_v55, %v10946_v20  ;;  %v6739_v18 = vshll.u32 %v13857_v55, %v10924_v23 }
 0x4b2   : > { %v6708_v7 = vadd.s32 3, %v6691_v10  ;;  %v6727_v41 = vor.u32 8388608, %v6726_v42  ;;  %vm6753_vm6 = vcmp.lt.s32.totalorder %v11002_v24, 3  ;;  %vm6751_vm7 = vcmp.lt.s32.totalorder %v11002_v24, 1 }
 0x4b3   : > { %v6681_v62 = vor.u32 4788187, %v6680_v36  ;;  %v6684_v9 = vcvt.s32.f32 %v6677_v53  ;;  %v6738_v56 = vor.u32 %v6737_v19, %v6736_v14  ;;  %v6743_v36 = vshrl.u32 %v13803_v46, %v10946_v20 }
 0x4b4   : > { %v6741_v53 = vor.u32 %v6740_v28, %v6739_v18  ;;  %v6765_v57 = vsel %vm6753_vm6, %v6747_v8, %v6764_v58  ;;  %vm6752_vm3 = vcmp.lt.s32.totalorder %v11002_v24, 2  ;;  %v11059_v23 = vshll.u32 %v6727_v41, 8 }
 0x4b5   : > { %v6682_v33 = vand.u32 2147483647, %v6681_v62  ;;  %v6744_v45 = vor.u32 %v6743_v36, %v6742_v39  ;;  %v6735_v62 = vshrl.u32 %v13855_v59, %v10946_v20  ;;  %vm6287_vm15 = vcmp.lt.s32.totalorder %v10941_v50, 2 }
 0x4b6   : > { %v6759_v14 = vsel %vm6751_vm7, %v6738_v56, %v6741_v53  ;;  %v6768_v41 = vand.u32 65535, %v11059_v23  ;;  %v6769_v58 = vshrl.u32 %v11059_v23, 16 }
 0x4b7   : > { %v6685_v26 = vmul.f32 %v6684_v9, %v6682_v33  ;;  %v6756_v10 = vsel %vm6754_vm4, %v6744_v45, 2102212464  ;;  %v6761_v42 = vsel %vm6753_vm6, %v6744_v45, %v6760_v2  ;;  %v6763_v18 = vsel %vm6751_vm7, %v6741_v53, %v6744_v45 }
 0x4b8   : > { %v6755_v28 = vsel %vm6751_vm7, %v6735_v62, %v6738_v56  ;;  %v6757_v9 = vsel %vm6753_vm6, %v6741_v53, %v6756_v10  ;;  %v6762_v33 = vsel %vm6752_vm3, %v6759_v14, %v6761_v42  ;;  %v6766_v8 = vsel %vm6752_vm3, %v6763_v18, %v6765_v57 }
 0x4b9   : > { %v6686_v19 = vxor.u32 2147483648, %v6685_v26  ;;  %v6770_v39 = vand.u32 65535, %v6766_v8  ;;  %v6771_v2 = vshrl.u32 %v6766_v8, 16  ;;  %v6792_v56 = vand.u32 65535, %v6762_v33 }
 0x4ba   : > { %v6793_v36 = vshrl.u32 %v6762_v33, 16  ;;  %v11074_v62 = vand.u32 3, %v6708_v7 }
 0x4bb   : > { %v6687_v20 = vsel %vm6566_vm13, %v6686_v19, %v6685_v26  ;;  %v6774_v14 = vmul.u32 %v6770_v39, %v6769_v58  ;;  %v11079_v26 = vsel %vm6752_vm3, %v6755_v28, %v6757_v9  ;;  %v6772_v19 = vmul.u32 %v6770_v39, %v6768_v41 }
 0x4bc   : > { %v6690_v45 = vsel %vm11019_vm1, %v10594_v51, %v6687_v20  ;;  %v6773_v10 = vmul.u32 %v6771_v2, %v6768_v41  ;;  %v6795_v42 = vmul.u32 %v6793_v36, %v6768_v41  ;;  %v6775_v25 = vmul.u32 %v6771_v2, %v6769_v58 }
 0x4bd   : > { %v6692_v53 = vmul.f32 %v6690_v45, %v6690_v45  ;;  %v6794_v20 = vmul.u32 %v6792_v56, %v6768_v41  ;;  %v6778_v40 = vshll.u32 %v6774_v14, 16  ;;  %v6779_v33 = vshrl.u32 %v6774_v14, 16 }
 0x4be   : > { %v6776_v8 = vshll.u32 %v6773_v10, 16  ;;  %v6796_v5 = vmul.u32 %v6792_v56, %v6769_v58  ;;  %v6777_v13 = vshrl.u32 %v6773_v10, 16  ;;  %v6798_v3 = vshll.u32 %v6795_v42, 16 }
 0x4bf   : > { %v6693_v18 = vmul.f32 -0.001358992, %v6692_v53  ;;  %v6700_v38 = vmul.f32 -0.00019511016, %v6692_v53  ;;  %v6797_v24 = vmul.u32 %v6793_v36, %v6769_v58  ;;  %vm6711_vm6 = vcmp.eq.s32.totalorder %v11074_v62, 0 }
 0x4c0   : > { %vm6780_vm13 = vc.u32 %v6772_v19, %v6776_v8  ;;  %v6782_v57 = vadd.s32 %v6776_v8, %v6772_v19  ;;  %v6800_v28 = vshll.u32 %v6796_v5, 16  ;;  %vm6802_vm1 = vc.u32 %v6794_v20, %v6798_v3 }
 0x4c1   : > { %v6694_v7 = vadd.f32 0.041655596, %v6693_v18  ;;  %v6701_v52 = vadd.f32 0.008332121, %v6700_v38  ;;  %v6781_v44 = vsel %vm6780_vm13, 1, %v13856_v34  ;;  %v6803_v41 = vsel %vm6802_vm1, 1, %v13856_v34 }
 0x4c2   : > { %v6783_v30 = vadd.s32 %v6781_v44, %v6775_v25  ;;  %vm6784_vm4 = vc.u32 %v6782_v57, %v6778_v40  ;;  %v6804_v2 = vadd.s32 %v6798_v3, %v6794_v20  ;;  %v6805_v10 = vadd.s32 %v6803_v41, %v6797_v24 }
 0x4c3   : > { %v6695_v9 = vmul.f32 %v6694_v7, %v6692_v53  ;;  %v6702_v39 = vmul.f32 %v6701_v52, %v6692_v53  ;;  %v6785_v38 = vsel %vm6784_vm4, 1, %v13856_v34  ;;  %v6799_v58 = vshrl.u32 %v6795_v42, 16 }
 0x4c4   : > { %v6787_v19 = vadd.s32 %v6785_v38, %v6783_v30  ;;  %v6801_v36 = vshrl.u32 %v6796_v5, 16  ;;  %vm6806_vm7 = vc.u32 %v6804_v2, %v6800_v28  ;;  %vm6710_vm3 = vcmp.lt.s32.totalorder %v11074_v62, 2 }
 0x4c5   : > { %v6696_v14 = vadd.f32 -0.4999988, %v6695_v9  ;;  %v6703_v56 = vadd.f32 -0.16666654, %v6702_v39  ;;  %v6807_v40 = vsel %vm6806_vm7, 1, %v13856_v34  ;;  %v11087_v44 = vadd.s32 %v6804_v2, %v6800_v28 }
 0x4c6   : > { %v6788_v3 = vadd.s32 %v6787_v19, %v6777_v13  ;;  %v6809_v57 = vadd.s32 %v6807_v40, %v6805_v10  ;;  %v14080_v25 = vand.u32 2147483647, %v10743_v47  ;;  %v6271_v8 = vshll.u32 %v13855_v59, %v10873_v37 }
 0x4c7   : > { %v6697_v52 = vmul.f32 %v6696_v14, %v6692_v53  ;;  %v6704_v18 = vmul.f32 %v6703_v56, %v6692_v53  ;;  %v6272_v5 = vshrl.u32 %v13857_v55, %v10905_v15  ;;  %v6274_v53 = vshll.u32 %v13857_v55, %v10873_v37 }
 0x4c8   : > { %v6261_v20 = vand.u32 8388607, %v14080_v25  ;;  %v6789_v7 = vadd.s32 %v6788_v3, %v6779_v33  ;;  %v6810_v24 = vadd.s32 %v6809_v57, %v6799_v58  ;;  %v6275_v13 = vshrl.u32 %v13858_v0, %v10905_v15 }
 0x4c9   : > { %v6698_v30 = vadd.f32 1.0, %v6697_v52  ;;  %v6705_v42 = vadd.f32 1.0, %v6704_v18  ;;  %v6277_v28 = vshll.u32 %v13858_v0, %v10873_v37  ;;  %v6273_v41 = vor.u32 %v6272_v5, %v6271_v8 }
 0x4ca   : > { %v6278_v2 = vshrl.u32 %v13803_v46, %v10905_v15  ;;  %vm6714_vm13 = vcmp.eq.s32.totalorder %v11074_v62, 2  ;;  %v6811_v14 = vadd.s32 %v6810_v24, %v6801_v36  ;;  %v6812_v56 = vmul.u32 %v11059_v23, %v11079_v26 }
 0x4cb   : > { %v6706_v9 = vmul.f32 %v6705_v42, %v6690_v45  ;;  %v6715_v39 = vxor.u32 2147483648, %v6698_v30  ;;  %v6276_v33 = vor.u32 %v6275_v13, %v6274_v53  ;;  %vm6814_vm1 = vc.u32 %v6789_v7, %v11087_v44 }
 0x4cc   : > { %v6262_v10 = vor.u32 8388608, %v6261_v20  ;;  %v6279_v19 = vor.u32 %v6278_v2, %v6277_v28  ;;  %v6815_v37 = vadd.s32 1, %v6811_v14  ;;  %vm6286_vm4 = vcmp.lt.s32.totalorder %v10941_v50, 1 }
 0x4cd   : > { %v6712_v38 = vxor.u32 2147483648, %v6706_v9  ;;  %v6716_v58 = vsel %vm6714_vm13, %v6715_v39, %v6706_v9  ;;  %vm6288_vm7 = vcmp.lt.s32.totalorder %v10941_v50, 3  ;;  %v6294_v23 = vsel %vm6286_vm4, %v6273_v41, %v6276_v33 }
 0x4ce   : > { %v6296_v26 = vsel %vm6288_vm7, %v6279_v19, %v10991_v16  ;;  %v6816_v52 = vsel %vm6814_vm1, %v6815_v37, %v6811_v14  ;;  %v6440_v40 = vor.u32 %v11028_v21, %v11015_v31  ;;  %v6298_v25 = vsel %vm6286_vm4, %v6276_v33, %v6279_v19 }
 0x4cf   : > { %v6713_v45 = vsel %vm6711_vm6, %v6698_v30, %v6712_v38  ;;  %v6297_v18 = vsel %vm6287_vm15, %v6294_v23, %v6296_v26  ;;  %v6817_v57 = vadd.s32 %v6816_v52, %v6812_v56  ;;  %v6291_v16 = vsel %vm6289_vm9, %v6279_v19, 2102212464 }
 0x4d0   : > { %v6717_v36 = vsel %vm6710_vm3, %v6713_v45, %v6716_v58  ;;  %v6300_v51 = vsel %vm6288_vm7, %v10952_v1, %v10995_v12  ;;  %v11132_v62 = vshll.u32 %v6262_v10, 8  ;;  %v13757_v20 = vand.u32 2147483647, %v10803_v63 }
 0x4d1   : > { %v6718_v3 = vsel %vm6707_vm10, nan, %v6717_v36  ;;  %v6818_v8 = vadd.s32 536870912, %v6817_v57  ;;  %v6270_v31 = vshrl.u32 %v13855_v59, %v10905_v15  ;;  %v6301_v21 = vsel %vm6287_vm15, %v6298_v25, %v6300_v51 }
 0x4d2   : > { %6890 = vmatpush.msrb.mxu0 %v6718_v3  ;;  %v6328_v30 = vshrl.u32 %v6297_v18, 16  ;;  %v6303_v42 = vand.u32 65535, %v11132_v62  ;;  %v6304_v5 = vshrl.u32 %v11132_v62, 16  ;;  %v6305_v53 = vand.u32 65535, %v6301_v21 }
 0x4d3   : > { %v6306_v24 = vshrl.u32 %v6301_v21, 16  ;;  %v11141_v13 = vshrl.u32 %v6818_v8, 30  ;;  %v6290_v1 = vsel %vm6286_vm4, %v6270_v31, %v6273_v41  ;;  %v6292_v12 = vsel %vm6288_vm7, %v6276_v33, %v6291_v16 }
 0x4d4   : > { %v6327_v28 = vand.u32 65535, %v6297_v18  ;;  %v11148_v15 = vand.u32 31, %v10964_v17  ;;  %vm6444_vm10 = vcmp.lt.s32.totalorder %v11006_v43, 4  ;;  %v6309_v39 = vmul.u32 %v6305_v53, %v6304_v5 }
 0x4d5   : > { %v6308_v9 = vmul.u32 %v6306_v24, %v6303_v42  ;;  %v11154_v2 = vsel %vm6444_vm10, %v11031_v22, 920167782  ;;  %v11158_v14 = vsel %vm6444_vm10, %v6440_v40, 1326507024  ;;  %v6820_v41 = vshll.u32 %v11141_v13, 30 }
 0x4d6   : > { %v6330_v56 = vmul.u32 %v6328_v30, %v6303_v42  ;;  %v6813_v33 = vadd.s32 %v11087_v44, %v6789_v7  ;;  %v11164_v17 = vsel %vm6287_vm15, %v6290_v1, %v6292_v12  ;;  %v6307_v38 = vmul.u32 %v6305_v53, %v6303_v42 }
 0x4d7   : > { %v6311_v10 = vshll.u32 %v6308_v9, 16  ;;  %v11166_v19 = vsub.s32 %v6817_v57, %v6820_v41  ;;  %v6310_v58 = vmul.u32 %v6306_v24, %v6304_v5  ;;  %v6331_v37 = vmul.u32 %v6327_v28, %v6304_v5 }
 0x4d8   : > { %v11170_v45 = vand.u32 8388607, %v13757_v20  ;;  %v6313_v23 = vshll.u32 %v6309_v39, 16  ;;  %v6333_v36 = vshll.u32 %v6330_v56, 16  ;;  %vm6721_vm6 = vcmp.lt.s32.totalorder %v10788_v60, 0 }
 0x4d9   : > { %vm6315_vm9 = vc.u32 %v6307_v38, %v6311_v10  ;;  %v6317_v26 = vadd.s32 %v6311_v10, %v6307_v38  ;;  %vm6822_vm3 = vcmp.lt.s32.totalorder %v11166_v19, 0  ;;  %v6823_v50 = vsub.s32 0, %v11166_v19 }
 0x4da   : > { %v6316_v44 = vsel %vm6315_vm9, 1, %v13856_v34  ;;  %v6329_v7 = vmul.u32 %v6327_v28, %v6303_v42  ;;  %v6332_v18 = vmul.u32 %v6328_v30, %v6304_v5  ;;  %v6335_v40 = vshll.u32 %v6331_v37, 16 }
 0x4db   : > { %v6318_v52 = vadd.s32 %v6316_v44, %v6310_v58  ;;  %vm6319_vm15 = vc.u32 %v6317_v26, %v6313_v23  ;;  %v6824_v3 = vsel %vm6822_vm3, %v6823_v50, %v11166_v19  ;;  %v14081_v16 = vand.u32 2147483647, %v10788_v60 }
 0x4dc   : > { %v6320_v57 = vsel %vm6319_vm15, 1, %v13856_v34  ;;  %vm6337_vm13 = vc.u32 %v6329_v7, %v6333_v36  ;;  %v6339_v25 = vadd.s32 %v6333_v36, %v6329_v7  ;;  %v6825_v8 = vclz %v6824_v3 }
 0x4dd   : > { %vm11180_vm1 = vcmp.le.f32.partialorder %v14081_v16, 0.7853982  ;;  %v6312_v31 = vshrl.u32 %v6308_v9, 16  ;;  %v6322_v21 = vadd.s32 %v6320_v57, %v6318_v52  ;;  %v6338_v42 = vsel %vm6337_vm13, 1, %v13856_v34 }
 0x4de   : > { %v6843_v30 = vsub.s32 4, %v11141_v13  ;;  %v6314_v5 = vshrl.u32 %v6309_v39, 16  ;;  %v6340_v53 = vadd.s32 %v6338_v42, %v6332_v18  ;;  %vm6341_vm4 = vc.u32 %v6339_v25, %v6335_v40 }
 0x4df   : > { %v7149_v24 = vadd.s32 4294967294, %v6825_v8  ;;  %v6323_v1 = vadd.s32 %v6322_v21, %v6312_v31  ;;  %v6334_v12 = vshrl.u32 %v6330_v56, 16  ;;  %v6342_v28 = vsel %vm6341_vm4, 1, %v13856_v34 }
 0x4e0   : > { %v6336_v41 = vshrl.u32 %v6331_v37, 16  ;;  %v6344_v38 = vadd.s32 %v6342_v28, %v6340_v53  ;;  %v6427_v10 = vshrl.u32 %v13857_v55, %v10979_v4  ;;  %v6430_v9 = vshrl.u32 %v13858_v0, %v10979_v4 }
 0x4e1   : > { %vm7150_vm7 = vcmp.lt.s32.totalorder %v7149_v24, 0  ;;  %v6324_v58 = vadd.s32 %v6323_v1, %v6314_v5  ;;  %v6426_v39 = vshll.u32 %v13855_v59, %v10943_v27  ;;  %v6433_v23 = vshrl.u32 %v13803_v46, %v10979_v4 }
 0x4e2   : > { %v6828_v26 = vsel %vm7150_vm7, 0, %v7149_v24  ;;  %v6345_v56 = vadd.s32 %v6344_v38, %v6334_v12  ;;  %v6429_v37 = vshll.u32 %v13857_v55, %v10943_v27  ;;  %v6432_v36 = vshll.u32 %v13858_v0, %v10943_v27 }
 0x4e3   : > { %v6829_v50 = vsub.s32 32, %v6828_v26  ;;  %v6833_v44 = vsub.s32 4294967266, %v6828_v26  ;;  %v6844_v7 = vsel %vm6721_vm6, %v6843_v30, %v11141_v13  ;;  %v6343_v52 = vadd.s32 %v6339_v25, %v6335_v40 }
 0x4e4   : > { %v6346_v18 = vadd.s32 %v6345_v56, %v6336_v41  ;;  %v11202_v3 = vor.u32 %v6427_v10, %v6426_v39  ;;  %v11204_v57 = vor.u32 %v6430_v9, %v6429_v37  ;;  %v6434_v16 = vor.u32 %v6433_v23, %v6432_v36 }
 0x4e5   : > { %v6830_v8 = vshll.u32 %v11166_v19, %v6828_v26  ;;  %v6831_v31 = vshrl.u32 %v6813_v33, %v6829_v50  ;;  %v6834_v21 = vadd.s32 127, %v6833_v44  ;;  %vm6349_vm9 = vc.u32 %v6324_v58, %v6343_v52 }
 0x4e6   : > { %v6846_v27 = vsel %vm11180_vm1, 0, %v6844_v7  ;;  %v6347_v42 = vmul.u32 %v11132_v62, %v11164_v17  ;;  %v6350_v5 = vadd.s32 1, %v6346_v18  ;;  %v6417_v13 = vor.u32 8388608, %v11170_v45 }
 0x4e7   : > { %v6832_v40 = vor.u32 %v6831_v31, %v6830_v8  ;;  %v6835_v25 = vshll.u32 %v6834_v21, 23  ;;  %vm6441_vm3 = vcmp.lt.s32.totalorder %v11006_v43, 1  ;;  %vm6443_vm15 = vcmp.lt.s32.totalorder %v11006_v43, 3 }
 0x4e8   : > { %v11215_v19 = vsub.s32 32, %v11148_v15  ;;  %v6351_v33 = vsel %vm6349_vm9, %v6350_v5, %v6346_v18  ;;  %v6449_v30 = vsel %vm6441_vm3, %v11202_v3, %v11204_v57  ;;  %v6451_v62 = vsel %vm6443_vm15, %v6434_v16, %v11154_v2 }
 0x4e9   : > { %v6836_v17 = vor.u32 4788187, %v6835_v25  ;;  %v6863_v45 = vadd.s32 3, %v6846_v27  ;;  %v6352_v53 = vadd.s32 %v6351_v33, %v6347_v42  ;;  %vm6442_vm13 = vcmp.lt.s32.totalorder %v11006_v43, 2 }
 0x4ea   : > { %v6839_v24 = vcvt.s32.f32 %v6832_v40  ;;  %v6453_v1 = vsel %vm6441_vm3, %v11204_v57, %v6434_v16  ;;  %v6455_v12 = vsel %vm6443_vm15, %v11031_v22, %v11158_v14  ;;  %v11232_v28 = vshll.u32 %v6417_v13, 8 }
 0x4eb   : > { %v6837_v41 = vand.u32 2147483647, %v6836_v17  ;;  %v6353_v38 = vadd.s32 536870912, %v6352_v53  ;;  %v6452_v2 = vsel %vm6442_vm13, %v6449_v30, %v6451_v62  ;;  %v6456_v10 = vsel %vm6442_vm13, %v6453_v1, %v6455_v12 }
 0x4ec   : > { %v6458_v9 = vand.u32 65535, %v11232_v28  ;;  %v6459_v39 = vshrl.u32 %v11232_v28, 16  ;;  %v6460_v23 = vand.u32 65535, %v6456_v10  ;;  %v6461_v26 = vshrl.u32 %v6456_v10, 16 }
 0x4ed   : > { %v11242_v56 = vshll.u32 %v13803_v46, %v11148_v15  ;;  %v11246_v22 = vshll.u32 %v13868_v54, %v11148_v15  ;;  %v6840_v14 = vmul.f32 %v6839_v24, %v6837_v41  ;;  %v11248_v37 = vshrl.u32 %v6353_v38, 30 }
 0x4ee   : > { %v11252_v36 = vshrl.u32 %v13868_v54, %v11215_v19  ;;  %v6463_v50 = vmul.u32 %v6461_v26, %v6458_v9  ;;  %v11254_v44 = vmul.u32 %v6460_v23, %v6459_v39  ;;  %v6483_v7 = vshrl.u32 %v6452_v2, 16 }
 0x4ef   : > { %v11258_v18 = vshrl.u32 %v13870_v29, %v11215_v19  ;;  %v6841_v8 = vxor.u32 2147483648, %v6840_v14  ;;  %v6355_v31 = vshll.u32 %v11248_v37, 30  ;;  %v6425_v21 = vshrl.u32 %v13855_v59, %v10979_v4 }
 0x4f0   : > { %v11263_v27 = vand.u32 3, %v6863_v45  ;;  %v6348_v42 = vadd.s32 %v6343_v52, %v6324_v58  ;;  %v6462_v5 = vmul.u32 %v6460_v23, %v6458_v9  ;;  %v6466_v13 = vshll.u32 %v6463_v50, 16 }
 0x4f1   : > { %v6842_v40 = vsel %vm6721_vm6, %v6841_v8, %v6840_v14  ;;  %v11267_v25 = vsub.s32 %v6352_v53, %v6355_v31  ;;  %v6468_v33 = vshll.u32 %v11254_v44, 16  ;;  %v6482_v30 = vand.u32 65535, %v6452_v2 }
 0x4f2   : > { %v11273_v62 = vsel %vm11180_vm1, %v10788_v60, %v6842_v40  ;;  %vm6470_vm4 = vc.u32 %v6462_v5, %v6466_v13  ;;  %v6472_v4 = vadd.s32 %v6466_v13, %v6462_v5  ;;  %v11275_v17 = vmul.u32 %v6483_v7, %v6458_v9 }
 0x4f3   : > { %v6847_v58 = vmul.f32 %v11273_v62, %v11273_v62  ;;  %vm6357_vm7 = vcmp.lt.s32.totalorder %v11267_v25, 0  ;;  %v6358_v52 = vsub.s32 0, %v11267_v25  ;;  %v11284_v45 = vsel %vm6441_vm3, %v6425_v21, %v11202_v3 }
 0x4f4   : > { %v6446_v51 = vsel %vm6444_vm10, %v6434_v16, 2102212464  ;;  %v6465_v53 = vmul.u32 %v6461_v26, %v6459_v39  ;;  %v6471_v24 = vsel %vm6470_vm4, 1, %v13856_v34  ;;  %vm6474_vm6 = vc.u32 %v6472_v4, %v6468_v33 }
 0x4f5   : > { %v6848_v1 = vmul.f32 -0.001358992, %v6847_v58  ;;  %v6855_v12 = vmul.f32 -0.00019511016, %v6847_v58  ;;  %v6359_v41 = vsel %vm6357_vm7, %v6358_v52, %v11267_v25  ;;  %v6486_v38 = vmul.u32 %v6482_v30, %v6459_v39 }
 0x4f6   : > { %v6360_v2 = vclz %v6359_v41  ;;  %v6473_v10 = vadd.s32 %v6471_v24, %v6465_v53  ;;  %v6475_v23 = vsel %vm6474_vm6, 1, %v13856_v34  ;;  %v6488_v14 = vshll.u32 %v11275_v17, 16 }
 0x4f7   : > { %v6849_v3 = vadd.f32 0.041655596, %v6848_v1  ;;  %v6856_v8 = vadd.f32 0.008332121, %v6855_v12  ;;  %v6378_v31 = vsub.s32 4, %v11248_v37  ;;  %v6447_v16 = vsel %vm6443_vm15, %v11204_v57, %v6446_v51 }
 0x4f8   : > { %v7140_v26 = vadd.s32 4294967294, %v6360_v2  ;;  %v6467_v21 = vshrl.u32 %v6463_v50, 16  ;;  %v6477_v5 = vadd.s32 %v6475_v23, %v6473_v10  ;;  %v6484_v13 = vmul.u32 %v6482_v30, %v6458_v9 }
 0x4f9   : > { %v6850_v40 = vmul.f32 %v6849_v3, %v6847_v58  ;;  %v6857_v33 = vmul.f32 %v6856_v8, %v6847_v58  ;;  %v6487_v4 = vmul.u32 %v6483_v7, %v6459_v39  ;;  %v6490_v52 = vshll.u32 %v6486_v38, 16 }
 0x4fa   : > { %vm6256_vm10 = vcmp.lt.s32.totalorder %v10743_v47, 0  ;;  %vm7141_vm1 = vcmp.lt.s32.totalorder %v7140_v26, 0  ;;  %v6478_v53 = vadd.s32 %v6477_v5, %v6467_v21  ;;  %vm6492_vm9 = vc.u32 %v6484_v13, %v6488_v14 }
 0x4fb   : > { %v6494_v24 = vadd.s32 %v6488_v14, %v6484_v13  ;;  %v6851_v1 = vadd.f32 -0.4999988, %v6850_v40  ;;  %v6858_v12 = vadd.f32 -0.16666654, %v6857_v33  ;;  %v6363_v41 = vsel %vm7141_vm1, 0, %v7140_v26 }
 0x4fc   : > { %v6493_v20 = vsel %vm6492_vm9, 1, %v13856_v34  ;;  %v6364_v57 = vsub.s32 32, %v6363_v41  ;;  %v6368_v51 = vsub.s32 4294967266, %v6363_v41  ;;  %v6469_v50 = vshrl.u32 %v11254_v44, 16 }
 0x4fd   : > { %v6489_v9 = vshrl.u32 %v11275_v17, 16  ;;  %v6852_v30 = vmul.f32 %v6851_v1, %v6847_v58  ;;  %v6859_v39 = vmul.f32 %v6858_v12, %v6847_v58  ;;  %vm6865_vm3 = vcmp.lt.s32.totalorder %v11263_v27, 2 }
 0x4fe   : > { %v14084_v7 = vand.u32 2147483647, %v10743_v47  ;;  %v6495_v10 = vadd.s32 %v6493_v20, %v6487_v4  ;;  %vm6496_vm4 = vc.u32 %v6494_v24, %v6490_v52  ;;  %vm6862_vm7 = vweird.f32 %v10788_v60 }
 0x4ff   : > { %v6365_v23 = vshll.u32 %v11267_v25, %v6363_v41  ;;  %v6366_v14 = vshrl.u32 %v6348_v42, %v6364_v57  ;;  %v6369_v44 = vadd.s32 127, %v6368_v51  ;;  %v6497_v17 = vsel %vm6496_vm4, 1, %v13856_v34 }
 0x500   : > { %vm11303_vm15 = vcmp.le.f32.partialorder %v14084_v7, 0.7853982  ;;  %v6853_v3 = vadd.f32 1.0, %v6852_v30  ;;  %v6860_v58 = vadd.f32 1.0, %v6859_v39  ;;  %v11310_v8 = vadd.s32 %v6478_v53, %v6469_v50 }
 0x501   : > { %v6499_v26 = vadd.s32 %v6497_v17, %v6495_v10  ;;  %v6367_v21 = vor.u32 %v6366_v14, %v6365_v23  ;;  %v6370_v5 = vshll.u32 %v6369_v44, 23  ;;  %v6491_v13 = vshrl.u32 %v6486_v38, 16 }
 0x502   : > { %v11312_v40 = vadd.s32 %v6494_v24, %v6490_v52  ;;  %v6861_v20 = vmul.f32 %v6860_v58, %v11273_v62  ;;  %v6870_v33 = vxor.u32 2147483648, %v6853_v3  ;;  %v5944_v25 = vand.u32 2147483647, %v10677_v11 }
 0x503   : > { %v6500_v4 = vadd.s32 %v6499_v26, %v6489_v9  ;;  %vm6866_vm6 = vcmp.eq.s32.totalorder %v11263_v27, 0  ;;  %vm6869_vm1 = vcmp.eq.s32.totalorder %v11263_v27, 2  ;;  %v6371_v42 = vor.u32 4788187, %v6370_v5 }
 0x504   : > { %v6448_v53 = vsel %vm6442_vm13, %v11284_v45, %v6447_v16  ;;  %v6867_v1 = vxor.u32 2147483648, %v6861_v20  ;;  %v6379_v38 = vsel %vm6256_vm10, %v6378_v31, %v11248_v37  ;;  %vm6504_vm9 = vc.u32 %v11310_v8, %v11312_v40 }
 0x505   : > { %v6501_v52 = vadd.s32 %v6500_v4, %v6491_v13  ;;  %v6871_v62 = vsel %vm6869_vm1, %v6870_v33, %v6861_v20  ;;  %v6372_v24 = vand.u32 2147483647, %v6371_v42  ;;  %v6374_v12 = vcvt.s32.f32 %v6367_v21  ;;  %v14087_v42 = vld [vmem:[#allocation26_spill] sm:$0xff] }
 0x506   : > { %v5951_v41 = vand.u32 8388607, %v5944_v25  ;;  %v6868_v57 = vsel %vm6866_vm6, %v6853_v3, %v6867_v1  ;;  %v5962_v43 = vshrl.u32 %v13857_v55, %v10876_v6  ;;  %v5965_v45 = vshrl.u32 %v13858_v0, %v10876_v6  ;;  %v14088_v1 = vld [vmem:[#allocation5_spill] sm:$0xff] }
 0x507   : > { %v6505_v51 = vadd.s32 1, %v6501_v52  ;;  %v6872_v37 = vsel %vm6865_vm3, %v6868_v57, %v6871_v62  ;;  %v6375_v31 = vmul.f32 %v6374_v12, %v6372_v24  ;;  %v6381_v16 = vsel %vm11303_vm15, 0, %v6379_v38  ;;  %v14091_v38 = vld [vmem:[#allocation32_spill] sm:$0xff] }
 0x508   : > { %v6502_v50 = vmul.u32 %v11232_v28, %v6448_v53  ;;  %v6873_v9 = vsel %vm6862_vm7, nan, %v6872_v37  ;;  %v5961_v39 = vshll.u32 %v13855_v59, %v10850_v49  ;;  %v5964_v7 = vshll.u32 %v13857_v55, %v10850_v49 }
 0x509   : > { %v6506_v30 = vsel %vm6504_vm9, %v6505_v51, %v6501_v52  ;;  %6910 = vmatpush.msrb.mxu1 %v6873_v9  ;;  %v6376_v10 = vxor.u32 2147483648, %v6375_v31  ;;  %v5967_v23 = vshll.u32 %v13858_v0, %v10850_v49  ;;  %v5968_v14 = vshrl.u32 %v13803_v46, %v10876_v6 }
 0x50a   : > { %v6507_v27 = vadd.s32 %v6506_v30, %v6502_v50  ;;  %vm6134_vm13 = vcmp.lt.s32.totalorder %v10986_v35, 4  ;;  %v5952_v60 = vor.u32 8388608, %v5951_v41  ;;  %v5963_v28 = vor.u32 %v5962_v43, %v5961_v39 }
 0x50b   : > { %v5966_v44 = vor.u32 %v5965_v45, %v5964_v7  ;;  %v11350_v17 = vor.u32 %v11252_v36, %v11242_v56  ;;  %v6377_v3 = vsel %vm6256_vm10, %v6376_v10, %v6375_v31  ;;  %v5969_v26 = vor.u32 %v5968_v14, %v5967_v23 }
 0x50c   : > { %v6508_v58 = vadd.s32 536870912, %v6507_v27  ;;  %v6130_v49 = vor.u32 %v11258_v18, %v11246_v22  ;;  %v11359_v21 = vsel %vm11303_vm15, %v10743_v47, %v6377_v3  ;;  %v6398_v5 = vadd.s32 3, %v6381_v16 }
 0x50d   : > { %vm5978_vm3 = vcmp.lt.s32.totalorder %v10933_v48, 3  ;;  %v6382_v56 = vmul.f32 %v11359_v21, %v11359_v21  ;;  %vm5976_vm10 = vcmp.lt.s32.totalorder %v10933_v48, 1  ;;  %vm5977_vm4 = vcmp.lt.s32.totalorder %v10933_v48, 2 }
 0x50e   : > { %v11364_v36 = vshrl.u32 %v6508_v58, 30  ;;  %v5990_v22 = vsel %vm5978_vm3, %v10935_v32, %v10975_v61  ;;  %v5984_v18 = vsel %vm5976_vm10, %v5963_v28, %v5966_v44  ;;  %v5988_v2 = vsel %vm5976_vm10, %v5966_v44, %v5969_v26  ;;  %v14089_v32 = vld [vmem:[#allocation38_spill] sm:$0xff] }
 0x50f   : > { %v11376_v13 = vshll.u32 %v5952_v60, 8  ;;  %v6383_v20 = vmul.f32 -0.001358992, %v6382_v56  ;;  %v6390_v33 = vmul.f32 -0.00019511016, %v6382_v56  ;;  %v5986_v53 = vsel %vm5978_vm3, %v5969_v26, %v14087_v42 }
 0x510   : > { %v6510_v4 = vshll.u32 %v11364_v36, 30  ;;  %v14090_v61 = vor.u32 %v14088_v1, %v14089_v32  ;;  %v11392_v62 = vsel %vm6134_vm13, %v11350_v17, 920167782  ;;  %v11396_v24 = vsel %vm6134_vm13, %v6130_v49, 1326507024 }
 0x511   : > { %v5991_v12 = vsel %vm5977_vm4, %v5988_v2, %v5990_v22  ;;  %v6384_v41 = vadd.f32 0.041655596, %v6383_v20  ;;  %v6391_v57 = vadd.f32 0.008332121, %v6390_v33  ;;  %v11400_v51 = vand.u32 3, %v6398_v5 }
 0x512   : > { %v11387_v52 = vsel %vm5669_vm5, %v14090_v61, 1326507024  ;;  %v11402_v43 = vsub.s32 %v6507_v27, %v6510_v4  ;;  %v5987_v45 = vsel %vm5977_vm4, %v5984_v18, %v5986_v53  ;;  %v5993_v37 = vand.u32 65535, %v11376_v13 }
 0x513   : > { %v5995_v31 = vand.u32 65535, %v5991_v12  ;;  %v5996_v16 = vshrl.u32 %v5991_v12, 16  ;;  %v6385_v50 = vmul.f32 %v6384_v41, %v6382_v56  ;;  %v6392_v9 = vmul.f32 %v6391_v57, %v6382_v56 }
 0x514   : > { %vm6512_vm15 = vcmp.lt.s32.totalorder %v11402_v43, 0  ;;  %v6513_v30 = vsub.s32 0, %v11402_v43  ;;  %v6503_v39 = vadd.s32 %v11312_v40, %v11310_v8  ;;  %v5960_v7 = vshrl.u32 %v13855_v59, %v10876_v6 }
 0x515   : > { %v5994_v10 = vshrl.u32 %v11376_v13, 16  ;;  %v5998_v27 = vmul.u32 %v5996_v16, %v5993_v37  ;;  %v6386_v23 = vadd.f32 -0.4999988, %v6385_v50  ;;  %v6393_v14 = vadd.f32 -0.16666654, %v6392_v9 }
 0x516   : > { %v6514_v60 = vsel %vm6512_vm15, %v6513_v30, %v11402_v43  ;;  %v5981_v3 = vsel %vm5979_vm0, %v5969_v26, 2102212464  ;;  %vm6401_vm7 = vcmp.eq.s32.totalorder %v11400_v51, 0  ;;  %vm6404_vm6 = vcmp.eq.s32.totalorder %v11400_v51, 2 }
 0x517   : > { %v6515_v58 = vclz %v6514_v60  ;;  %v11419_v49 = vmul.u32 %v5995_v31, %v5994_v10  ;;  %v6001_v8 = vshll.u32 %v5998_v27, 16  ;;  %v6018_v40 = vshrl.u32 %v5987_v45, 16 }
 0x518   : > { %v6387_v6 = vmul.f32 %v6386_v23, %v6382_v56  ;;  %v6394_v5 = vmul.f32 %v6393_v14, %v6382_v56  ;;  %vm6400_vm1 = vcmp.lt.s32.totalorder %v11400_v51, 2  ;;  %v5980_v22 = vsel %vm5976_vm10, %v5960_v7, %v5963_v28 }
 0x519   : > { %v5997_v18 = vmul.u32 %v5995_v31, %v5993_v37  ;;  %vm6397_vm9 = vweird.f32 %v10743_v47  ;;  %v7143_v26 = vadd.s32 4294967294, %v6515_v58  ;;  %v5982_v2 = vsel %vm5978_vm3, %v5966_v44, %v5981_v3 }
 0x51a   : > { %v6000_v20 = vmul.u32 %v5996_v16, %v5994_v10  ;;  %v6017_v33 = vand.u32 65535, %v5987_v45  ;;  %v6388_v4 = vadd.f32 1.0, %v6387_v6  ;;  %v6395_v42 = vadd.f32 1.0, %v6394_v5 }
 0x51b   : > { %vm6005_vm0 = vc.u32 %v5997_v18, %v6001_v8  ;;  %v6007_v53 = vadd.s32 %v6001_v8, %v5997_v18  ;;  %vm7144_vm15 = vcmp.lt.s32.totalorder %v7143_v26, 0  ;;  %v6003_v56 = vshll.u32 %v11419_v49, 16 }
 0x51c   : > { %v6006_v1 = vsel %vm6005_vm0, 1, %v13856_v34  ;;  %v6020_v32 = vmul.u32 %v6018_v40, %v5993_v37  ;;  %v6396_v28 = vmul.f32 %v6395_v42, %v11359_v21  ;;  %v6405_v61 = vxor.u32 2147483648, %v6388_v4 }
 0x51d   : > { %v6518_v12 = vsel %vm7144_vm15, 0, %v7143_v26  ;;  %v6008_v41 = vadd.s32 %v6006_v1, %v6000_v20  ;;  %v6002_v44 = vshrl.u32 %v5998_v27, 16  ;;  %vm6009_vm3 = vc.u32 %v6007_v53, %v6003_v56 }
 0x51e   : > { %v6519_v57 = vsub.s32 32, %v6518_v12  ;;  %v6523_v31 = vsub.s32 4294967266, %v6518_v12  ;;  %v6402_v45 = vxor.u32 2147483648, %v6396_v28  ;;  %v6010_v16 = vsel %vm6009_vm3, 1, %v13856_v34 }
 0x51f   : > { %v6019_v50 = vmul.u32 %v6017_v33, %v5993_v37  ;;  %v6021_v9 = vmul.u32 %v6017_v33, %v5994_v10  ;;  %v6520_v30 = vshll.u32 %v11402_v43, %v6518_v12  ;;  %v6012_v14 = vadd.s32 %v6010_v16, %v6008_v41 }
 0x520   : > { %v6521_v7 = vshrl.u32 %v6503_v39, %v6519_v57  ;;  %v6524_v23 = vadd.s32 127, %v6523_v31  ;;  %v6403_v21 = vsel %vm6401_vm7, %v6388_v4, %v6402_v45  ;;  %v6406_v60 = vsel %vm6404_vm6, %v6405_v61, %v6396_v28 }
 0x521   : > { %v6022_v3 = vmul.u32 %v6018_v40, %v5994_v10  ;;  %v6023_v58 = vshll.u32 %v6020_v32, 16  ;;  %v6407_v27 = vsel %vm6400_vm1, %v6403_v21, %v6406_v60  ;;  %v6025_v37 = vshll.u32 %v6021_v9, 16  ;;  %v14095_v40 = vld [vmem:[#allocation7_spill] sm:$0xff] }
 0x522   : > { %v6522_v8 = vor.u32 %v6521_v7, %v6520_v30  ;;  %v6525_v6 = vshll.u32 %v6524_v23, 23  ;;  %v6408_v43 = vsel %vm6397_vm9, nan, %v6407_v27  ;;  %v6013_v39 = vadd.s32 %v6012_v14, %v6002_v44 }
 0x523   : > { %vm6027_vm10 = vc.u32 %v6019_v50, %v6023_v58  ;;  %v6029_v5 = vadd.s32 %v6023_v58, %v6019_v50  ;;  %6891 = vmatpush.msrb.mxu0 %v6408_v43  ;;  %v14092_v18 = vand.u32 2147483647, %v10803_v63  ;;  %vm6411_vm6 = vcmp.lt.s32.totalorder %v10803_v63, 0 }
 0x524   : > { %v6526_v51 = vor.u32 4788187, %v6525_v6  ;;  %v6028_v10 = vsel %vm6027_vm10, 1, %v13856_v34  ;;  %v6099_v20 = vand.u32 2147483647, %v14095_v40  ;;  %v6533_v47 = vsub.s32 4, %v11364_v36 }
 0x525   : > { %vm11442_vm7 = vcmp.le.f32.partialorder %v14092_v18, 0.7853982  ;;  %v6004_v33 = vshrl.u32 %v11419_v49, 16  ;;  %v6030_v4 = vadd.s32 %v6028_v10, %v6022_v3  ;;  %vm6031_vm1 = vc.u32 %v6029_v5, %v6025_v37 }
 0x526   : > { %v6527_v42 = vand.u32 2147483647, %v6526_v51  ;;  %v6529_v53 = vcvt.s32.f32 %v6522_v8  ;;  %v5983_v56 = vsel %vm5977_vm4, %v5980_v22, %v5982_v2  ;;  %v6032_v1 = vsel %vm6031_vm1, 1, %v13856_v34 }
 0x527   : > { %v11454_v28 = vadd.s32 %v6013_v39, %v6004_v33  ;;  %v6024_v61 = vshrl.u32 %v6020_v32, 16  ;;  %v6026_v12 = vshrl.u32 %v6021_v9, 16  ;;  %v6034_v41 = vadd.s32 %v6032_v1, %v6030_v4 }
 0x528   : > { %v6530_v57 = vmul.f32 %v6529_v53, %v6527_v42  ;;  %v11456_v31 = vadd.s32 %v6029_v5, %v6025_v37  ;;  %v6106_v49 = vand.u32 8388607, %v6099_v20  ;;  %v6117_v44 = vshrl.u32 %v13857_v55, %v11215_v19 }
 0x529   : > { %v6035_v45 = vadd.s32 %v6034_v41, %v6024_v61  ;;  %v6116_v48 = vshll.u32 %v13855_v59, %v11148_v15  ;;  %v6119_v22 = vshll.u32 %v13857_v55, %v11148_v15  ;;  %v6120_v2 = vshrl.u32 %v13858_v0, %v11215_v19 }
 0x52a   : > { %v6531_v32 = vxor.u32 2147483648, %v6530_v57  ;;  %v6534_v16 = vsel %vm6411_vm6, %v6533_v47, %v11364_v36  ;;  %v6122_v50 = vshll.u32 %v13858_v0, %v11148_v15  ;;  %v6123_v9 = vshrl.u32 %v13803_v46, %v11215_v19  ;;  %v14096_v47 = vld [vmem:[#allocation16_spill] sm:$0xff] }
 0x52b   : > { %v6036_v30 = vadd.s32 %v6035_v45, %v6026_v12  ;;  %vm6039_vm4 = vc.u32 %v11454_v28, %v11456_v31  ;;  %v6118_v7 = vor.u32 %v6117_v44, %v6116_v48  ;;  %v6121_v23 = vor.u32 %v6120_v2, %v6119_v22 }
 0x52c   : > { %v6532_v14 = vsel %vm6411_vm6, %v6531_v32, %v6530_v57  ;;  %v6107_v21 = vor.u32 8388608, %v6106_v49  ;;  %v6124_v60 = vor.u32 %v6123_v9, %v6122_v50  ;;  %vm6133_vm9 = vcmp.lt.s32.totalorder %v10986_v35, 3 }
 0x52d   : > { %v6535_v15 = vsel %vm11442_vm7, %v10803_v63, %v6532_v14  ;;  %v6040_v36 = vadd.s32 1, %v6036_v30  ;;  %vm6131_vm0 = vcmp.lt.s32.totalorder %v10986_v35, 1  ;;  %v6145_v3 = vsel %vm6133_vm9, %v11350_v17, %v11396_v24 }
 0x52e   : > { %v6537_v58 = vmul.f32 %v6535_v15, %v6535_v15  ;;  %v6037_v27 = vmul.u32 %v11376_v13, %v5983_v56  ;;  %vm6132_vm15 = vcmp.lt.s32.totalorder %v10986_v35, 2  ;;  %v6143_v8 = vsel %vm6131_vm0, %v6121_v23, %v6124_v60 }
 0x52f   : > { %v6536_v6 = vsel %vm11442_vm7, 0, %v6534_v16  ;;  %v6041_v37 = vsel %vm6039_vm4, %v6040_v36, %v6036_v30  ;;  %v6139_v43 = vsel %vm6131_vm0, %v6118_v7, %v6121_v23  ;;  %v6146_v17 = vsel %vm6132_vm15, %v6143_v8, %v6145_v3 }
 0x530   : > { %v6538_v24 = vmul.f32 -0.001358992, %v6537_v58  ;;  %v6545_v13 = vmul.f32 -0.00019511016, %v6537_v58  ;;  %v6042_v39 = vadd.s32 %v6041_v37, %v6037_v27  ;;  %v6136_v5 = vsel %vm6134_vm13, %v6124_v60, 2102212464 }
 0x531   : > { %v6141_v18 = vsel %vm6133_vm9, %v6124_v60, %v11392_v62  ;;  %v11506_v26 = vshll.u32 %v6107_v21, 8  ;;  %v6150_v51 = vand.u32 65535, %v6146_v17  ;;  %v6151_v10 = vshrl.u32 %v6146_v17, 16 }
 0x532   : > { %v11510_v33 = vshrl.u32 %v13868_v54, %v14096_v47  ;;  %v6539_v4 = vadd.f32 0.041655596, %v6538_v24  ;;  %v6546_v42 = vadd.f32 0.008332121, %v6545_v13  ;;  %v6043_v53 = vadd.s32 536870912, %v6042_v39 }
 0x533   : > { %v6553_v56 = vadd.s32 3, %v6536_v6  ;;  %v6115_v1 = vshrl.u32 %v13855_v59, %v11215_v19  ;;  %v6148_v61 = vand.u32 65535, %v11506_v26  ;;  %v6149_v12 = vshrl.u32 %v11506_v26, 16 }
 0x534   : > { %v6540_v62 = vmul.f32 %v6539_v4, %v6537_v58  ;;  %v6547_v41 = vmul.f32 %v6546_v42, %v6537_v58  ;;  %v11516_v57 = vshrl.u32 %v6043_v53, 30  ;;  %v6142_v49 = vsel %vm6132_vm15, %v6139_v43, %v6141_v18 }
 0x535   : > { %v6135_v44 = vsel %vm6131_vm0, %v6115_v1, %v6118_v7  ;;  %v6137_v45 = vsel %vm6133_vm9, %v6121_v23, %v6136_v5  ;;  %v6153_v48 = vmul.u32 %v6151_v10, %v6148_v61  ;;  %v11524_v22 = vmul.u32 %v6150_v51, %v6149_v12 }
 0x536   : > { %v11528_v19 = vshrl.u32 %v13870_v29, %v14096_v47  ;;  %v6541_v2 = vadd.f32 -0.4999988, %v6540_v62  ;;  %v6548_v32 = vadd.f32 -0.16666654, %v6547_v41  ;;  %v6045_v16 = vshll.u32 %v11516_v57, 30 }
 0x537   : > { %v6554_v50 = vand.u32 3, %v6553_v56  ;;  %v6152_v9 = vmul.u32 %v6150_v51, %v6148_v61  ;;  %v6156_v30 = vshll.u32 %v6153_v48, 16  ;;  %v6173_v14 = vshrl.u32 %v6142_v49, 16  ;;  %v14097_v56 = vld [vmem:[#allocation53_spill] sm:$0xff] }
 0x538   : > { %v6542_v21 = vmul.f32 %v6541_v2, %v6537_v58  ;;  %v6549_v7 = vmul.f32 %v6548_v32, %v6537_v58  ;;  %v11531_v60 = vsub.s32 %v6042_v39, %v6045_v16  ;;  %v11535_v23 = vsel %vm6132_vm15, %v6135_v44, %v6137_v45 }
 0x539   : > { %vm6552_vm13 = vweird.f32 %v10803_v63  ;;  %v6155_v36 = vmul.u32 %v6151_v10, %v6149_v12  ;;  %v6158_v3 = vshll.u32 %v11524_v22, 16  ;;  %vm6160_vm3 = vc.u32 %v6152_v9, %v6156_v30 }
 0x53a   : > { %v6162_v27 = vadd.s32 %v6156_v30, %v6152_v9  ;;  %v6543_v8 = vadd.f32 1.0, %v6542_v21  ;;  %v6550_v6 = vadd.f32 1.0, %v6549_v7  ;;  %vm6047_vm10 = vcmp.lt.s32.totalorder %v11531_v60, 0 }
 0x53b   : > { %v6048_v37 = vsub.s32 0, %v11531_v60  ;;  %v6161_v58 = vsel %vm6160_vm3, 1, %v13856_v34  ;;  %v6172_v43 = vand.u32 65535, %v6142_v49  ;;  %v6175_v35 = vmul.u32 %v6173_v14, %v6148_v61 }
 0x53c   : > { %vm6164_vm7 = vc.u32 %v6162_v27, %v6158_v3  ;;  %v6551_v17 = vmul.f32 %v6550_v6, %v6535_v15  ;;  %v6560_v24 = vxor.u32 2147483648, %v6543_v8  ;;  %v6163_v39 = vadd.s32 %v6161_v58, %v6155_v36  ;;  %v14100_v6 = vld [vmem:[#allocation44_spill] sm:$0xff] }
 0x53d   : > { %v6049_v13 = vsel %vm6047_vm10, %v6048_v37, %v11531_v60  ;;  %vm6555_vm6 = vcmp.lt.s32.totalorder %v6554_v50, 2  ;;  %vm6556_vm1 = vcmp.eq.s32.totalorder %v6554_v50, 0  ;;  %vm5946_vm4 = vcmp.lt.s32.totalorder %v10677_v11, 0 }
 0x53e   : > { %v6050_v5 = vclz %v6049_v13  ;;  %v6165_v18 = vsel %vm6164_vm7, 1, %v13856_v34  ;;  %v6557_v51 = vxor.u32 2147483648, %v6551_v17  ;;  %vm6559_vm9 = vcmp.eq.s32.totalorder %v6554_v50, 2 }
 0x53f   : > { %v6038_v10 = vadd.s32 %v11456_v31, %v11454_v28  ;;  %v6192_v4 = vmul.u32 %v11506_v26, %v11535_v23  ;;  %v6174_v42 = vmul.u32 %v6172_v43, %v6148_v61  ;;  %v6176_v53 = vmul.u32 %v6172_v43, %v6149_v12 }
 0x540   : > { %v7134_v15 = vadd.s32 4294967294, %v6050_v5  ;;  %v5634_v1 = vand.u32 2147483647, %v14097_v56  ;;  %v6558_v62 = vsel %vm6556_vm1, %v6543_v8, %v6557_v51  ;;  %v6561_v41 = vsel %vm6559_vm9, %v6560_v24, %v6551_v17  ;;  %v14101_v17 = vld [vmem:[#allocation43_spill] sm:$0xff] }
 0x541   : > { %v6167_v49 = vadd.s32 %v6165_v18, %v6163_v39  ;;  %v6178_v44 = vshll.u32 %v6175_v35, 16  ;;  %v6562_v45 = vsel %vm6555_vm6, %v6558_v62, %v6561_v41  ;;  %v6068_v2 = vsub.s32 4, %v11516_v57 }
 0x542   : > { %vm7135_vm0 = vcmp.lt.s32.totalorder %v7134_v15, 0  ;;  %v6157_v32 = vshrl.u32 %v6153_v48, 16  ;;  %v6563_v28 = vsel %vm6552_vm13, nan, %v6562_v45  ;;  %v6177_v16 = vmul.u32 %v6173_v14, %v6149_v12 }
 0x543   : > { %v6053_v31 = vsel %vm7135_vm0, 0, %v7134_v15  ;;  %vm6182_vm15 = vc.u32 %v6174_v42, %v6178_v44  ;;  %6911 = vmatpush.msrb.mxu1 %v6563_v28  ;;  %v6159_v30 = vshrl.u32 %v11524_v22, 16  ;;  %v6180_v50 = vshll.u32 %v6176_v53, 16 }
 0x544   : > { %v6054_v61 = vsub.s32 32, %v6053_v31  ;;  %v6058_v9 = vsub.s32 4294967266, %v6053_v31  ;;  %v6183_v21 = vsel %vm6182_vm15, 1, %v13856_v34  ;;  %v6168_v7 = vadd.s32 %v6167_v49, %v6157_v32 }
 0x545   : > { %v6184_v36 = vadd.s32 %v6178_v44, %v6174_v42  ;;  %v6185_v3 = vadd.s32 %v6183_v21, %v6177_v16  ;;  %v6055_v27 = vshll.u32 %v11531_v60, %v6053_v31  ;;  %v5641_v63 = vand.u32 8388607, %v5634_v1 }
 0x546   : > { %v6056_v48 = vshrl.u32 %v6038_v10, %v6054_v61  ;;  %v6059_v8 = vadd.s32 127, %v6058_v9  ;;  %vm11561_vm13 = vcmp.le.f32.partialorder %v5944_v25, 0.7853982  ;;  %v6069_v22 = vsel %vm5946_vm4, %v6068_v2, %v11516_v57  ;;  %v14102_v2 = vld [vmem:[#allocation20_spill] sm:$0xff]  ;;  %v14103_v9 = vld [vmem:[#allocation22_spill] sm:$0xff] }
 0x547   : > { %v6179_v14 = vshrl.u32 %v6175_v35, 16  ;;  %vm6186_vm3 = vc.u32 %v6184_v36, %v6180_v50  ;;  %v5652_v60 = vshrl.u32 %v13857_v55, %v14100_v6  ;;  %v5651_v24 = vshll.u32 %v13855_v59, %v14101_v17 }
 0x548   : > { %v6057_v37 = vor.u32 %v6056_v48, %v6055_v27  ;;  %v6060_v58 = vshll.u32 %v6059_v8, 23  ;;  %v6187_v43 = vsel %vm6186_vm3, 1, %v13856_v34  ;;  %v11573_v25 = vadd.s32 %v6168_v7, %v6159_v30  ;;  %v14105_v48 = vld [vmem:[#allocation30_spill] sm:$0xff] }
 0x549   : > { %v6181_v13 = vshrl.u32 %v6176_v53, 16  ;;  %v6189_v39 = vadd.s32 %v6187_v43, %v6185_v3  ;;  %v5642_v5 = vor.u32 8388608, %v5641_v63  ;;  %v5653_v51 = vor.u32 %v5652_v60, %v5651_v24  ;;  %v14104_v3 = vld [vmem:[#allocation29_spill] sm:$0xff] }
 0x54a   : > { %v6061_v18 = vor.u32 4788187, %v6060_v58  ;;  %v5654_v57 = vshll.u32 %v13857_v55, %v14101_v17  ;;  %v5655_v35 = vshrl.u32 %v13858_v0, %v14100_v6  ;;  %v11579_v10 = vadd.s32 %v6184_v36, %v6180_v50  ;;  %v14106_v24 = vld [vmem:[#allocation41_spill] sm:$0xff] }
 0x54b   : > { %v6190_v15 = vadd.s32 %v6189_v39, %v6179_v14  ;;  %v5657_v42 = vshll.u32 %v13858_v0, %v14101_v17  ;;  %v5658_v62 = vshrl.u32 %v13803_v46, %v14100_v6  ;;  %v6064_v41 = vcvt.s32.f32 %v6057_v37 }
 0x54c   : > { %v6062_v53 = vand.u32 2147483647, %v6061_v18  ;;  %v5656_v49 = vor.u32 %v5655_v35, %v5654_v57  ;;  %vm5668_vm10 = vcmp.lt.s32.totalorder %v14091_v38, 3  ;;  %vm5666_vm7 = vcmp.lt.s32.totalorder %v14091_v38, 1 }
 0x54d   : > { %v6191_v44 = vadd.s32 %v6190_v15, %v6181_v13  ;;  %v5659_v45 = vor.u32 %v5658_v62, %v5657_v42  ;;  %v5680_v32 = vsel %vm5668_vm10, %v14102_v2, %v11387_v52  ;;  %vm6194_vm6 = vc.u32 %v11573_v25, %v11579_v10 }
 0x54e   : > { %v6065_v28 = vmul.f32 %v6064_v41, %v6062_v53  ;;  %v5674_v31 = vsel %vm5666_vm7, %v5653_v51, %v5656_v49  ;;  %v11595_v16 = vshll.u32 %v5642_v5, 8  ;;  %vm5667_vm1 = vcmp.lt.s32.totalorder %v14091_v38, 2 }
 0x54f   : > { %v6195_v61 = vadd.s32 1, %v6191_v44  ;;  %v5676_v30 = vsel %vm5668_vm10, %v5659_v45, %v14103_v9  ;;  %v5678_v21 = vsel %vm5666_vm7, %v5656_v49, %v5659_v45  ;;  %v6071_v7 = vsel %vm11561_vm13, 0, %v6069_v22 }
 0x550   : > { %v6066_v52 = vxor.u32 2147483648, %v6065_v28  ;;  %v11607_v50 = vsel %vm5667_vm1, %v5674_v31, %v5676_v30  ;;  %v5681_v36 = vsel %vm5667_vm1, %v5678_v21, %v5680_v32  ;;  %v11613_v27 = vor.u32 %v11510_v33, %v14104_v3 }
 0x551   : > { %v5820_v8 = vor.u32 %v11528_v19, %v14105_v48  ;;  %v6196_v63 = vsel %vm6194_vm6, %v6195_v61, %v6191_v44  ;;  %v5683_v14 = vand.u32 65535, %v11595_v16  ;;  %v5685_v37 = vand.u32 65535, %v5681_v36 }
 0x552   : > { %v6067_v22 = vsel %vm5946_vm4, %v6066_v52, %v6065_v28  ;;  %v6197_v60 = vadd.s32 %v6196_v63, %v6192_v4  ;;  %v5686_v58 = vshrl.u32 %v5681_v36, 16  ;;  %v6088_v43 = vadd.s32 3, %v6071_v7 }
 0x553   : > { %v11626_v33 = vsel %vm11561_vm13, %v10677_v11, %v6067_v22  ;;  %v5684_v19 = vshrl.u32 %v11595_v16, 16  ;;  %v5708_v17 = vshrl.u32 %v11607_v50, 16  ;;  %vm5824_vm9 = vcmp.lt.s32.totalorder %v14106_v24, 4 }
 0x554   : > { %v6072_v13 = vmul.f32 %v11626_v33, %v11626_v33  ;;  %v6198_v39 = vadd.s32 536870912, %v6197_v60  ;;  %v5688_v26 = vmul.u32 %v5686_v58, %v5683_v14  ;;  %v11636_v23 = vsel %vm5824_vm9, %v11613_v27, 920167782 }
 0x555   : > { %v11640_v4 = vsel %vm5824_vm9, %v5820_v8, 1326507024  ;;  %v5650_v12 = vshrl.u32 %v13855_v59, %v14100_v6  ;;  %v11644_v5 = vmul.u32 %v5685_v37, %v5684_v19  ;;  %v11648_v42 = vand.u32 3, %v6088_v43 }
 0x556   : > { %v6073_v18 = vmul.f32 -0.001358992, %v6072_v13  ;;  %v6080_v57 = vmul.f32 -0.00019511016, %v6072_v13  ;;  %v11646_v35 = vshrl.u32 %v6198_v39, 30  ;;  %v5691_v15 = vshll.u32 %v5688_v26, 16 }
 0x557   : > { %v5671_v62 = vsel %vm5669_vm5, %v5659_v45, 2102212464  ;;  %v5687_v53 = vmul.u32 %v5685_v37, %v5683_v14  ;;  %v11652_v41 = vmul.u32 %v5708_v17, %v5683_v14  ;;  %v5670_v6 = vsel %vm5666_vm7, %v5650_v12, %v5653_v51 }
 0x558   : > { %v6074_v44 = vadd.f32 0.041655596, %v6073_v18  ;;  %v6081_v2 = vadd.f32 0.008332121, %v6080_v57  ;;  %v6200_v32 = vshll.u32 %v11646_v35, 30  ;;  %v5693_v28 = vshll.u32 %v11644_v5, 16 }
 0x559   : > { %vm5695_vm4 = vc.u32 %v5687_v53, %v5691_v15  ;;  %v5697_v31 = vadd.s32 %v5691_v15, %v5687_v53  ;;  %v5707_v61 = vand.u32 65535, %v11607_v50  ;;  %v5672_v45 = vsel %vm5668_vm10, %v5656_v49, %v5671_v62 }
 0x55a   : > { %v6075_v9 = vmul.f32 %v6074_v44, %v6072_v13  ;;  %v6082_v30 = vmul.f32 %v6081_v2, %v6072_v13  ;;  %v11659_v21 = vsub.s32 %v6197_v60, %v6200_v32  ;;  %v5690_v52 = vmul.u32 %v5686_v58, %v5684_v19 }
 0x55b   : > { %v5696_v7 = vsel %vm5695_vm4, 1, %v13856_v34  ;;  %vm5699_vm5 = vc.u32 %v5697_v31, %v5693_v28  ;;  %v5713_v36 = vshll.u32 %v11652_v41, 16  ;;  %vm6091_vm15 = vcmp.eq.s32.totalorder %v11648_v42, 0 }
 0x55c   : > { %v6076_v51 = vadd.f32 -0.4999988, %v6075_v9  ;;  %v6083_v3 = vadd.f32 -0.16666654, %v6082_v30  ;;  %vm6202_vm0 = vcmp.lt.s32.totalorder %v11659_v21, 0  ;;  %v6203_v48 = vsub.s32 0, %v11659_v21 }
 0x55d   : > { %vm6094_vm13 = vcmp.eq.s32.totalorder %v11648_v42, 2  ;;  %v5698_v50 = vadd.s32 %v5696_v7, %v5690_v52  ;;  %v5700_v8 = vsel %vm5699_vm5, 1, %v13856_v34  ;;  %v5709_v49 = vmul.u32 %v5707_v61, %v5683_v14 }
 0x55e   : > { %v5711_v63 = vmul.u32 %v5707_v61, %v5684_v19  ;;  %v6077_v22 = vmul.f32 %v6076_v51, %v6072_v13  ;;  %v6084_v60 = vmul.f32 %v6083_v3, %v6072_v13  ;;  %vm6090_vm3 = vcmp.lt.s32.totalorder %v11648_v42, 2 }
 0x55f   : > { %v6204_v37 = vsel %vm6202_vm0, %v6203_v48, %v11659_v21  ;;  %v5692_v58 = vshrl.u32 %v5688_v26, 16  ;;  %vm6087_vm10 = vweird.f32 %v10677_v11  ;;  %v5702_v39 = vadd.s32 %v5700_v8, %v5698_v50 }
 0x560   : > { %v6205_v43 = vclz %v6204_v37  ;;  %v5712_v12 = vmul.u32 %v5708_v17, %v5684_v19  ;;  %vm5717_vm7 = vc.u32 %v5709_v49, %v5713_v36  ;;  %v6078_v18 = vadd.f32 1.0, %v6077_v22 }
 0x561   : > { %v6085_v57 = vadd.f32 1.0, %v6084_v60  ;;  %v5718_v15 = vsel %vm5717_vm7, 1, %v13856_v34  ;;  %v5719_v62 = vadd.s32 %v5713_v36, %v5709_v49  ;;  %v6193_v14 = vadd.s32 %v11579_v10, %v11573_v25 }
 0x562   : > { %v7137_v13 = vadd.s32 4294967294, %v6205_v43  ;;  %v5673_v53 = vsel %vm5667_vm1, %v5670_v6, %v5672_v45  ;;  %v5715_v44 = vshll.u32 %v5711_v63, 16  ;;  %v6095_v2 = vxor.u32 2147483648, %v6078_v18 }
 0x563   : > { %v6086_v26 = vmul.f32 %v6085_v57, %v11626_v33  ;;  %v5703_v32 = vadd.s32 %v5702_v39, %v5692_v58  ;;  %v5720_v28 = vadd.s32 %v5718_v15, %v5712_v12  ;;  %v6223_v19 = vsub.s32 4, %v11646_v35  ;;  %v14109_v33 = vld [vmem:[#allocation50_spill] sm:$0xff]  ;;  %v14110_v58 = vld [vmem:[#allocation17_spill] sm:$0xff] }
 0x564   : > { %vm7138_vm6 = vcmp.lt.s32.totalorder %v7137_v13, 0  ;;  %v5694_v17 = vshrl.u32 %v11644_v5, 16  ;;  %vm5721_vm4 = vc.u32 %v5719_v62, %v5715_v44  ;;  %vm11683_vm5 = vcmp.le.f32.partialorder %v6099_v20, 0.7853982 }
 0x565   : > { %v6092_v31 = vxor.u32 2147483648, %v6086_v26  ;;  %v6208_v38 = vsel %vm7138_vm6, 0, %v7137_v13  ;;  %v5714_v10 = vshrl.u32 %v11652_v41, 16  ;;  %v5789_v6 = vand.u32 2147483647, %v14109_v33 }
 0x566   : > { %v6209_v61 = vsub.s32 32, %v6208_v38  ;;  %v6213_v9 = vsub.s32 4294967266, %v6208_v38  ;;  %v5716_v30 = vshrl.u32 %v5711_v63, 16  ;;  %v5722_v45 = vsel %vm5721_vm4, 1, %v13856_v34 }
 0x567   : > { %v6093_v5 = vsel %vm6091_vm15, %v6078_v18, %v6092_v31  ;;  %v6096_v52 = vsel %vm6094_vm13, %v6095_v2, %v6086_v26  ;;  %v11694_v20 = vadd.s32 %v5703_v32, %v5694_v17  ;;  %v5724_v7 = vadd.s32 %v5722_v45, %v5720_v28  ;;  %v14112_v31 = vld [vmem:[#allocation28_spill] sm:$0xff] }
 0x568   : > { %v6097_v36 = vsel %vm6090_vm3, %v6093_v5, %v6096_v52  ;;  %v6210_v41 = vshll.u32 %v11659_v21, %v6208_v38  ;;  %v6211_v51 = vshrl.u32 %v6193_v14, %v6209_v61  ;;  %v6214_v3 = vadd.s32 127, %v6213_v9 }
 0x569   : > { %v6098_v48 = vsel %vm6087_vm10, nan, %v6097_v36  ;;  %v11701_v50 = vadd.s32 %v5719_v62, %v5715_v44  ;;  %v5725_v8 = vadd.s32 %v5724_v7, %v5714_v10  ;;  %v5796_v49 = vand.u32 8388607, %v5789_v6 }
 0x56a   : > { %6892 = vmatpush.msrb.mxu0 %v6098_v48  ;;  %vm6101_vm1 = vcmp.lt.s32.totalorder %v14095_v40, 0  ;;  %v6212_v63 = vor.u32 %v6211_v51, %v6210_v41  ;;  %v6215_v22 = vshll.u32 %v6214_v3, 23  ;;  %v5727_v42 = vmul.u32 %v11595_v16, %v5673_v53 }
 0x56b   : > { %v6224_v21 = vsel %vm6101_vm1, %v6223_v19, %v11646_v35  ;;  %v5726_v60 = vadd.s32 %v5725_v8, %v5716_v30  ;;  %vm5729_vm0 = vc.u32 %v11694_v20, %v11701_v50  ;;  %v5807_v11 = vshrl.u32 %v13857_v55, %v14096_v47  ;;  %v14111_v19 = vld [vmem:[#allocation40_spill] sm:$0xff] }
 0x56c   : > { %v6216_v37 = vor.u32 4788187, %v6215_v22  ;;  %v5806_v43 = vshll.u32 %v13855_v59, %v14110_v58  ;;  %v5809_v39 = vshll.u32 %v13857_v55, %v14110_v58  ;;  %v5810_v16 = vshrl.u32 %v13858_v0, %v14096_v47 }
 0x56d   : > { %v5730_v12 = vadd.s32 1, %v5726_v60  ;;  %v5797_v18 = vor.u32 8388608, %v5796_v49  ;;  %v5812_v35 = vshll.u32 %v13858_v0, %v14110_v58  ;;  %v5813_v57 = vshrl.u32 %v13803_v46, %v14096_v47 }
 0x56e   : > { %v6217_v15 = vand.u32 2147483647, %v6216_v37  ;;  %v6219_v62 = vcvt.s32.f32 %v6212_v63  ;;  %v6226_v14 = vsel %vm11683_vm5, 0, %v6224_v21  ;;  %v11726_v13 = vor.u32 %v5810_v16, %v5809_v39 }
 0x56f   : > { %v5731_v53 = vsel %vm5729_vm0, %v5730_v12, %v5726_v60  ;;  %v11728_v44 = vor.u32 %v5807_v11, %v5806_v43  ;;  %v5814_v26 = vor.u32 %v5813_v57, %v5812_v35  ;;  %vm5823_vm15 = vcmp.lt.s32.totalorder %v14106_v24, 3 }
 0x570   : > { %v6220_v2 = vmul.f32 %v6219_v62, %v6217_v15  ;;  %v5732_v32 = vadd.s32 %v5731_v53, %v5727_v42  ;;  %vm5821_vm13 = vcmp.lt.s32.totalorder %v14106_v24, 1  ;;  %v5835_v28 = vsel %vm5823_vm15, %v11613_v27, %v11640_v4 }
 0x571   : > { %v11737_v17 = vshrl.u32 %v14111_v19, 5  ;;  %v11740_v38 = vsub.s32 32, %v14112_v31  ;;  %v5833_v10 = vsel %vm5821_vm13, %v11726_v13, %v5814_v26  ;;  %v11745_v61 = vshll.u32 %v5797_v18, 8 }
 0x572   : > { %v11749_v9 = vshll.u32 %v13803_v46, %v14112_v31  ;;  %v6221_v30 = vxor.u32 2147483648, %v6220_v2  ;;  %v5733_v45 = vadd.s32 536870912, %v5732_v32  ;;  %vm5822_vm3 = vcmp.lt.s32.totalorder %v14106_v24, 2 }
 0x573   : > { %v6243_v27 = vadd.s32 3, %v6226_v14  ;;  %v5829_v4 = vsel %vm5821_vm13, %v11728_v44, %v11726_v13  ;;  %v5831_v5 = vsel %vm5823_vm15, %v5814_v26, %v11636_v23  ;;  %v5836_v52 = vsel %vm5822_vm3, %v5833_v10, %v5835_v28 }
 0x574   : > { %v6222_v7 = vsel %vm6101_vm1, %v6221_v30, %v6220_v2  ;;  %v11763_v36 = vshrl.u32 %v5733_v45, 30  ;;  %v5840_v41 = vand.u32 65535, %v5836_v52  ;;  %v5841_v51 = vshrl.u32 %v5836_v52, 16 }
 0x575   : > { %v11767_v3 = vshll.u32 %v13868_v54, %v14112_v31  ;;  %v11772_v48 = vsel %vm11683_vm5, %v14095_v40, %v6222_v7  ;;  %v5838_v23 = vand.u32 65535, %v11745_v61  ;;  %v5839_v8 = vshrl.u32 %v11745_v61, 16 }
 0x576   : > { %v11778_v49 = vshrl.u32 %v13868_v54, %v11740_v38  ;;  %v6227_v63 = vmul.f32 %v11772_v48, %v11772_v48  ;;  %v5735_v22 = vshll.u32 %v11763_v36, 30  ;;  %v5832_v42 = vsel %vm5822_vm3, %v5829_v4, %v5831_v5 }
 0x577   : > { %v11787_v25 = vshrl.u32 %v13870_v29, %v11740_v38  ;;  %v11789_v21 = vand.u32 3, %v6243_v27  ;;  %v5843_v60 = vmul.u32 %v5841_v51, %v5838_v23  ;;  %v11791_v11 = vmul.u32 %v5840_v41, %v5839_v8 }
 0x578   : > { %v6228_v37 = vmul.f32 -0.001358992, %v6227_v63  ;;  %v6235_v58 = vmul.f32 -0.00019511016, %v6227_v63  ;;  %v11793_v43 = vsub.s32 %v5732_v32, %v5735_v22  ;;  %v5826_v39 = vsel %vm5824_vm9, %v5814_v26, 2102212464 }
 0x579   : > { %v5842_v16 = vmul.u32 %v5840_v41, %v5838_v23  ;;  %v5846_v12 = vshll.u32 %v5843_v60, 16  ;;  %v5862_v18 = vand.u32 65535, %v5832_v42  ;;  %v5863_v35 = vshrl.u32 %v5832_v42, 16 }
 0x57a   : > { %v6229_v57 = vadd.f32 0.041655596, %v6228_v37  ;;  %v6236_v15 = vadd.f32 0.008332121, %v6235_v58  ;;  %vm5737_vm10 = vcmp.lt.s32.totalorder %v11793_v43, 0  ;;  %v5738_v62 = vsub.s32 0, %v11793_v43 }
 0x57b   : > { %v5845_v14 = vmul.u32 %v5841_v51, %v5839_v8  ;;  %v5848_v53 = vshll.u32 %v11791_v11, 16  ;;  %vm5850_vm7 = vc.u32 %v5842_v16, %v5846_v12  ;;  %v5852_v2 = vadd.s32 %v5846_v12, %v5842_v16 }
 0x57c   : > { %v6230_v32 = vmul.f32 %v6229_v57, %v6227_v63  ;;  %v6237_v28 = vmul.f32 %v6236_v15, %v6227_v63  ;;  %v5739_v19 = vsel %vm5737_vm10, %v5738_v62, %v11793_v43  ;;  %v5851_v26 = vsel %vm5850_vm7, 1, %v13856_v34 }
 0x57d   : > { %v5740_v10 = vclz %v5739_v19  ;;  %v5805_v30 = vshrl.u32 %v13855_v59, %v14096_v47  ;;  %v5853_v45 = vadd.s32 %v5851_v26, %v5845_v14  ;;  %vm5854_vm9 = vc.u32 %v5852_v2, %v5848_v53 }
 0x57e   : > { %v6231_v27 = vadd.f32 -0.4999988, %v6230_v32  ;;  %v6238_v4 = vadd.f32 -0.16666654, %v6237_v28  ;;  %v5855_v5 = vsel %vm5854_vm9, 1, %v13856_v34  ;;  %v5865_v52 = vmul.u32 %v5863_v35, %v5838_v23 }
 0x57f   : > { %vm6246_vm6 = vcmp.eq.s32.totalorder %v11789_v21, 0  ;;  %vm6249_vm4 = vcmp.eq.s32.totalorder %v11789_v21, 2  ;;  %v5728_v7 = vadd.s32 %v11701_v50, %v11694_v20  ;;  %v7128_v41 = vadd.s32 4294967294, %v5740_v10 }
 0x580   : > { %v5825_v51 = vsel %vm5821_vm13, %v5805_v30, %v11728_v44  ;;  %v5827_v47 = vsel %vm5823_vm15, %v11726_v13, %v5826_v39  ;;  %v6232_v22 = vmul.f32 %v6231_v27, %v6227_v63  ;;  %v6239_v42 = vmul.f32 %v6238_v4, %v6227_v63 }
 0x581   : > { %vm6245_vm5 = vcmp.lt.s32.totalorder %v11789_v21, 2  ;;  %v5857_v37 = vadd.s32 %v5855_v5, %v5853_v45  ;;  %v5866_v58 = vmul.u32 %v5862_v18, %v5839_v8  ;;  %vm6242_vm1 = vweird.f32 %v14095_v40 }
 0x582   : > { %vm7129_vm0 = vcmp.lt.s32.totalorder %v7128_v41, 0  ;;  %v5758_v20 = vsub.s32 4, %v11763_v36  ;;  %v5847_v50 = vshrl.u32 %v5843_v60, 16  ;;  %v5868_v16 = vshll.u32 %v5865_v52, 16 }
 0x583   : > { %v6233_v12 = vadd.f32 1.0, %v6232_v22  ;;  %v6240_v57 = vadd.f32 1.0, %v6239_v42  ;;  %v5743_v44 = vsel %vm7129_vm0, 0, %v7128_v41  ;;  %v5864_v15 = vmul.u32 %v5862_v18, %v5838_v23  ;;  %v14113_v23 = vld [vmem:[#allocation64_spill] sm:$0xff] }
 0x584   : > { %v5744_v62 = vsub.s32 32, %v5743_v44  ;;  %v5748_v14 = vsub.s32 4294967266, %v5743_v44  ;;  %v5858_v13 = vadd.s32 %v5857_v37, %v5847_v50  ;;  %v5867_v39 = vmul.u32 %v5863_v35, %v5839_v8 }
 0x585   : > { %v6241_v63 = vmul.f32 %v6240_v57, %v11772_v48  ;;  %v6250_v53 = vxor.u32 2147483648, %v6233_v12  ;;  %v5745_v2 = vshll.u32 %v11793_v43, %v5743_v44  ;;  %v5870_v32 = vshll.u32 %v5866_v58, 16  ;;  %v14116_v57 = vld [vmem:[#allocation51_spill] sm:$0xff] }
 0x586   : > { %v5746_v28 = vshrl.u32 %v5728_v7, %v5744_v62  ;;  %v5749_v19 = vadd.s32 127, %v5748_v14  ;;  %vm5872_vm15 = vc.u32 %v5864_v15, %v5868_v16  ;;  %v5874_v26 = vadd.s32 %v5868_v16, %v5864_v15  ;;  %v14117_v14 = vld [vmem:[#allocation6_spill] sm:$0xff] }
 0x587   : > { %v6247_v60 = vxor.u32 2147483648, %v6241_v63  ;;  %v5849_v10 = vshrl.u32 %v11791_v11, 16  ;;  %v5873_v30 = vsel %vm5872_vm15, 1, %v13856_v34  ;;  %v5324_v18 = vand.u32 2147483647, %v14113_v23 }
 0x588   : > { %vm11825_vm13 = vcmp.le.f32.partialorder %v5634_v1, 0.7853982  ;;  %v5747_v48 = vor.u32 %v5746_v28, %v5745_v2  ;;  %v5750_v43 = vshll.u32 %v5749_v19, 23  ;;  %v5875_v35 = vadd.s32 %v5873_v30, %v5867_v39  ;;  %v14118_v19 = vld [vmem:[#allocation49_spill] sm:$0xff] }
 0x589   : > { %vm5876_vm10 = vc.u32 %v5874_v26, %v5870_v32  ;;  %v6248_v45 = vsel %vm6246_vm6, %v6233_v12, %v6247_v60  ;;  %v6251_v11 = vsel %vm6249_vm4, %v6250_v53, %v6241_v63  ;;  %v5869_v27 = vshrl.u32 %v5865_v52, 16  ;;  %v14120_v30 = vld [vmem:[#allocation37_spill] sm:$0xff] }
 0x58a   : > { %v5877_v4 = vsel %vm5876_vm10, 1, %v13856_v34  ;;  %v6252_v5 = vsel %vm6245_vm5, %v6248_v45, %v6251_v11  ;;  %v5751_v1 = vor.u32 4788187, %v5750_v43  ;;  %v11836_v7 = vadd.s32 %v5858_v13, %v5849_v10  ;;  %v14119_v10 = vld [vmem:[#allocation4_spill] sm:$0xff] }
 0x58b   : > { %v5879_v41 = vadd.s32 %v5877_v4, %v5875_v35  ;;  %v6253_v22 = vsel %vm6242_vm1, nan, %v6252_v5  ;;  %vm5636_vm7 = vcmp.lt.s32.totalorder %v14097_v56, 0  ;;  %v5871_v42 = vshrl.u32 %v5866_v58, 16  ;;  %v14121_v4 = vld [vmem:[#allocation45_spill] sm:$0xff] }
 0x58c   : > { %v11841_v37 = vadd.s32 %v5874_v26, %v5870_v32  ;;  %6912 = vmatpush.msrb.mxu1 %v6253_v22  ;;  %v5752_v50 = vand.u32 2147483647, %v5751_v1  ;;  %v5754_v52 = vcvt.s32.f32 %v5747_v48  ;;  %v5331_v21 = vand.u32 8388607, %v5324_v18 }
 0x58d   : > { %v5880_v16 = vadd.s32 %v5879_v41, %v5869_v27  ;;  %v5759_v12 = vsel %vm5636_vm7, %v5758_v20, %v11763_v36  ;;  %v5828_v40 = vsel %vm5822_vm3, %v5825_v51, %v5827_v47  ;;  %v5342_v44 = vshrl.u32 %v13857_v55, %v14116_v57 }
 0x58e   : > { %v5345_v58 = vshrl.u32 %v13858_v0, %v14116_v57  ;;  %v5755_v15 = vmul.f32 %v5754_v52, %v5752_v50  ;;  %vm5884_vm9 = vc.u32 %v11836_v7, %v11841_v37  ;;  %v5344_v13 = vshll.u32 %v13857_v55, %v14117_v14 }
 0x58f   : > { %v5881_v62 = vadd.s32 %v5880_v16, %v5871_v42  ;;  %v5332_v39 = vor.u32 8388608, %v5331_v21  ;;  %v5341_v36 = vshll.u32 %v13855_v59, %v14117_v14  ;;  %v5347_v24 = vshll.u32 %v13858_v0, %v14117_v14 }
 0x590   : > { %v5348_v51 = vshrl.u32 %v13803_v46, %v14116_v57  ;;  %vm5514_vm3 = vcmp.lt.s32.totalorder %v11737_v17, 4  ;;  %v5756_v47 = vxor.u32 2147483648, %v5755_v15  ;;  %v5882_v20 = vmul.u32 %v11745_v61, %v5828_v40 }
 0x591   : > { %v5885_v63 = vadd.s32 1, %v5881_v62  ;;  %v11866_v53 = vor.u32 %v5345_v58, %v5344_v13  ;;  %v5761_v2 = vsel %vm11825_vm13, 0, %v5759_v12  ;;  %v11870_v32 = vor.u32 %v5342_v44, %v5341_v36 }
 0x592   : > { %v5349_v28 = vor.u32 %v5348_v51, %v5347_v24  ;;  %vm5358_vm6 = vcmp.lt.s32.totalorder %v14118_v19, 3  ;;  %v11875_v26 = vor.u32 %v11778_v49, %v11749_v9  ;;  %v5757_v60 = vsel %vm5636_vm7, %v5756_v47, %v5755_v15 }
 0x593   : > { %v5886_v61 = vsel %vm5884_vm9, %v5885_v63, %v5881_v62  ;;  %v5370_v48 = vsel %vm5358_vm6, %v14120_v30, %v14119_v10  ;;  %v11889_v43 = vsel %vm11825_vm13, %v14097_v56, %v5757_v60  ;;  %vm5356_vm4 = vcmp.lt.s32.totalorder %v14118_v19, 1 }
 0x594   : > { %v5887_v35 = vadd.s32 %v5886_v61, %v5882_v20  ;;  %v11892_v9 = vshll.u32 %v5332_v39, 8  ;;  %v5762_v49 = vmul.f32 %v11889_v43, %v11889_v43  ;;  %v5778_v45 = vadd.s32 3, %v5761_v2 }
 0x595   : > { %vm5357_vm5 = vcmp.lt.s32.totalorder %v14118_v19, 2  ;;  %v5368_v11 = vsel %vm5356_vm4, %v11866_v53, %v5349_v28  ;;  %v5364_v8 = vsel %vm5356_vm4, %v11870_v32, %v11866_v53  ;;  %v5366_v5 = vsel %vm5358_vm6, %v5349_v28, %v14121_v4 }
 0x596   : > { %v5888_v27 = vadd.s32 536870912, %v5887_v35  ;;  %v5371_v1 = vsel %vm5357_vm5, %v5368_v11, %v5370_v48  ;;  %v5510_v41 = vor.u32 %v11787_v25, %v11767_v3  ;;  %v5763_v22 = vmul.f32 -0.001358992, %v5762_v49 }
 0x597   : > { %v5770_v42 = vmul.f32 -0.00019511016, %v5762_v49  ;;  %v5375_v50 = vand.u32 65535, %v5371_v1  ;;  %v5373_v16 = vand.u32 65535, %v11892_v9  ;;  %v5374_v21 = vshrl.u32 %v11892_v9, 16 }
 0x598   : > { %v11911_v52 = vshrl.u32 %v5888_v27, 30  ;;  %v5376_v12 = vshrl.u32 %v5371_v1, 16  ;;  %v5764_v40 = vadd.f32 0.041655596, %v5763_v22  ;;  %v11915_v58 = vand.u32 3, %v5778_v45 }
 0x599   : > { %v5771_v44 = vadd.f32 0.008332121, %v5770_v42  ;;  %v5367_v15 = vsel %vm5357_vm5, %v5364_v8, %v5366_v5  ;;  %v11922_v3 = vsel %vm5514_vm3, %v11875_v26, 920167782  ;;  %v11925_v14 = vmul.u32 %v5375_v50, %v5374_v21 }
 0x59a   : > { %v5890_v25 = vshll.u32 %v11911_v52, 30  ;;  %v5378_v62 = vmul.u32 %v5376_v12, %v5373_v16  ;;  %v11929_v13 = vsel %vm5514_vm3, %v5510_v41, 1326507024  ;;  %v5765_v39 = vmul.f32 %v5764_v40, %v5762_v49 }
 0x59b   : > { %v5772_v36 = vmul.f32 %v5771_v44, %v5762_v49  ;;  %v5340_v24 = vshrl.u32 %v13855_v59, %v14116_v57  ;;  %v5377_v47 = vmul.u32 %v5375_v50, %v5373_v16  ;;  %v5398_v63 = vshrl.u32 %v5367_v15, 16 }
 0x59c   : > { %v11933_v51 = vsub.s32 %v5887_v35, %v5890_v25  ;;  %v5381_v20 = vshll.u32 %v5378_v62, 16  ;;  %v5766_v2 = vadd.f32 -0.4999988, %v5765_v39  ;;  %vm5784_vm1 = vcmp.eq.s32.totalorder %v11915_v58, 2 }
 0x59d   : > { %v5773_v60 = vadd.f32 -0.16666654, %v5772_v36  ;;  %v5361_v61 = vsel %vm5359_vm8, %v5349_v28, 2102212464  ;;  %v5380_v10 = vmul.u32 %v5376_v12, %v5374_v21  ;;  %vm5781_vm0 = vcmp.eq.s32.totalorder %v11915_v58, 0 }
 0x59e   : > { %vm5892_vm15 = vcmp.lt.s32.totalorder %v11933_v51, 0  ;;  %v5893_v30 = vsub.s32 0, %v11933_v51  ;;  %v5383_v57 = vshll.u32 %v11925_v14, 16  ;;  %vm5385_vm13 = vc.u32 %v5377_v47, %v5381_v20 }
 0x59f   : > { %v5767_v48 = vmul.f32 %v5766_v2, %v5762_v49  ;;  %v5774_v35 = vmul.f32 %v5773_v60, %v5762_v49  ;;  %vm5780_vm10 = vcmp.lt.s32.totalorder %v11915_v58, 2  ;;  %v5386_v45 = vsel %vm5385_vm13, 1, %v13856_v34  ;;  %v14124_v58 = vld [vmem:[#allocation66_spill] sm:$0xff] }
 0x5a0   : > { %v5387_v11 = vadd.s32 %v5381_v20, %v5377_v47  ;;  %vm5777_vm7 = vweird.f32 %v14097_v56  ;;  %v5894_v28 = vsel %vm5892_vm15, %v5893_v30, %v11933_v51  ;;  %v5388_v27 = vadd.s32 %v5386_v45, %v5380_v10 }
 0x5a1   : > { %v5397_v8 = vand.u32 65535, %v5367_v15  ;;  %v5400_v4 = vmul.u32 %v5398_v63, %v5373_v16  ;;  %v5768_v5 = vadd.f32 1.0, %v5767_v48  ;;  %v5775_v1 = vadd.f32 1.0, %v5774_v35 }
 0x5a2   : > { %v5895_v41 = vclz %v5894_v28  ;;  %vm5389_vm8 = vc.u32 %v5387_v11, %v5383_v57  ;;  %v5883_v22 = vadd.s32 %v11841_v37, %v11836_v7  ;;  %v5360_v49 = vsel %vm5356_vm4, %v5340_v24, %v11870_v32 }
 0x5a3   : > { %v5362_v42 = vsel %vm5358_vm6, %v11866_v53, %v5361_v61  ;;  %v5390_v50 = vsel %vm5389_vm8, 1, %v13856_v34  ;;  %v5776_v12 = vmul.f32 %v5775_v1, %v11889_v43  ;;  %v5785_v40 = vxor.u32 2147483648, %v5768_v5 }
 0x5a4   : > { %v7131_v44 = vadd.s32 4294967294, %v5895_v41  ;;  %v5392_v15 = vadd.s32 %v5390_v50, %v5388_v27  ;;  %v5382_v25 = vshrl.u32 %v5378_v62, 16  ;;  %v5399_v39 = vmul.u32 %v5397_v8, %v5373_v16 }
 0x5a5   : > { %v5401_v36 = vmul.u32 %v5397_v8, %v5374_v21  ;;  %v5403_v47 = vshll.u32 %v5400_v4, 16  ;;  %v5782_v7 = vxor.u32 2147483648, %v5776_v12  ;;  %v5913_v37 = vsub.s32 4, %v11911_v52 }
 0x5a6   : > { %vm7132_vm9 = vcmp.lt.s32.totalorder %v7131_v44, 0  ;;  %v5402_v32 = vmul.u32 %v5398_v63, %v5374_v21  ;;  %v5786_v24 = vsel %vm5784_vm1, %v5785_v40, %v5776_v12  ;;  %v5393_v20 = vadd.s32 %v5392_v15, %v5382_v25 }
 0x5a7   : > { %v5898_v53 = vsel %vm7132_vm9, 0, %v7131_v44  ;;  %vm5407_vm6 = vc.u32 %v5399_v39, %v5403_v47  ;;  %v5783_v43 = vsel %vm5781_vm0, %v5768_v5, %v5782_v7  ;;  %v5405_v62 = vshll.u32 %v5401_v36, 16 }
 0x5a8   : > { %v5899_v2 = vsub.s32 32, %v5898_v53  ;;  %v5903_v60 = vsub.s32 4294967266, %v5898_v53  ;;  %v5787_v16 = vsel %vm5780_vm10, %v5783_v43, %v5786_v24  ;;  %vm11965_vm4 = vcmp.le.f32.partialorder %v5789_v6, 0.7853982 }
 0x5a9   : > { %v5900_v21 = vshll.u32 %v11933_v51, %v5898_v53  ;;  %v5408_v63 = vsel %vm5407_vm6, 1, %v13856_v34  ;;  %v5409_v10 = vadd.s32 %v5403_v47, %v5399_v39  ;;  %v5788_v30 = vsel %vm5777_vm7, nan, %v5787_v16  ;;  %v14125_v16 = vld [vmem:[#allocation34_spill] sm:$0xff] }
 0x5aa   : > { %v5901_v57 = vshrl.u32 %v5883_v22, %v5899_v2  ;;  %v5904_v48 = vadd.s32 127, %v5903_v60  ;;  %v5410_v35 = vadd.s32 %v5408_v63, %v5402_v32  ;;  %6893 = vmatpush.msrb.mxu0 %v5788_v30  ;;  %vm5791_vm1 = vcmp.lt.s32.totalorder %v14109_v33, 0 }
 0x5ab   : > { %v5363_v6 = vsel %vm5357_vm5, %v5360_v49, %v5362_v42  ;;  %vm5411_vm0 = vc.u32 %v5409_v10, %v5405_v62  ;;  %v5479_v45 = vand.u32 2147483647, %v14124_v58  ;;  %v5384_v28 = vshrl.u32 %v11925_v14, 16 }
 0x5ac   : > { %v5902_v11 = vor.u32 %v5901_v57, %v5900_v21  ;;  %v5905_v51 = vshll.u32 %v5904_v48, 23  ;;  %v5412_v27 = vsel %vm5411_vm0, 1, %v13856_v34  ;;  %v5914_v56 = vsel %vm5791_vm1, %v5913_v37, %v11911_v52 }
 0x5ad   : > { %v5404_v8 = vshrl.u32 %v5400_v4, 16  ;;  %v5406_v5 = vshrl.u32 %v5401_v36, 16  ;;  %v5414_v1 = vadd.s32 %v5412_v27, %v5410_v35  ;;  %v5394_v22 = vadd.s32 %v5393_v20, %v5384_v28 }
 0x5ae   : > { %v5906_v41 = vor.u32 4788187, %v5905_v51  ;;  %v5413_v19 = vadd.s32 %v5409_v10, %v5405_v62  ;;  %v5486_v49 = vand.u32 8388607, %v5479_v45  ;;  %v5909_v42 = vcvt.s32.f32 %v5902_v11 }
 0x5af   : > { %v5415_v50 = vadd.s32 %v5414_v1, %v5404_v8  ;;  %v5496_v14 = vshll.u32 %v13855_v59, %v14112_v31  ;;  %v5497_v12 = vshrl.u32 %v13857_v55, %v11740_v38  ;;  %v5499_v52 = vshll.u32 %v13857_v55, %v14112_v31 }
 0x5b0   : > { %v5907_v40 = vand.u32 2147483647, %v5906_v41  ;;  %v5487_v44 = vor.u32 8388608, %v5486_v49  ;;  %v5500_v4 = vshrl.u32 %v13858_v0, %v11740_v38  ;;  %v5502_v39 = vshll.u32 %v13858_v0, %v14112_v31 }
 0x5b1   : > { %v5416_v15 = vadd.s32 %v5415_v50, %v5406_v5  ;;  %v11992_v25 = vor.u32 %v5497_v12, %v5496_v14  ;;  %v5503_v36 = vshrl.u32 %v13803_v46, %v11740_v38  ;;  %v5916_v7 = vsel %vm11965_vm4, 0, %v5914_v56  ;;  %v14127_v56 = vld [vmem:[#allocation39_spill] sm:$0xff] }
 0x5b2   : > { %v5910_v47 = vmul.f32 %v5909_v42, %v5907_v40  ;;  %vm5419_vm5 = vc.u32 %v5394_v22, %v5413_v19  ;;  %v12000_v37 = vor.u32 %v5500_v4, %v5499_v52  ;;  %vm5511_vm15 = vcmp.lt.s32.totalorder %v11737_v17, 1 }
 0x5b3   : > { %v5420_v32 = vadd.s32 1, %v5416_v15  ;;  %v5504_v24 = vor.u32 %v5503_v36, %v5502_v39  ;;  %vm5513_vm13 = vcmp.lt.s32.totalorder %v11737_v17, 3  ;;  %v5417_v20 = vmul.u32 %v11892_v9, %v5363_v6 }
 0x5b4   : > { %v5911_v53 = vxor.u32 2147483648, %v5910_v47  ;;  %v5519_v31 = vsel %vm5511_vm15, %v11992_v25, %v12000_v37  ;;  %v5525_v43 = vsel %vm5513_vm13, %v11875_v26, %v11929_v13  ;;  %v12019_v9 = vshll.u32 %v5487_v44, 8  ;;  %v14126_v26 = vld [vmem:[#allocation55_spill] sm:$0xff] }
 0x5b5   : > { %v5421_v2 = vsel %vm5419_vm5, %v5420_v32, %v5416_v15  ;;  %v5521_v60 = vsel %vm5513_vm13, %v5504_v24, %v11922_v3  ;;  %v5523_v62 = vsel %vm5511_vm15, %v12000_v37, %v5504_v24  ;;  %v5196_v21 = vshrl.u32 %v13868_v54, %v14125_v16 }
 0x5b6   : > { %v5912_v63 = vsel %vm5791_vm1, %v5911_v53, %v5910_v47  ;;  %v5422_v10 = vadd.s32 %v5421_v2, %v5417_v20  ;;  %vm5512_vm10 = vcmp.lt.s32.totalorder %v11737_v17, 2  ;;  %v12028_v13 = vshll.u32 %v13868_v54, %v14126_v26 }
 0x5b7   : > { %v12033_v3 = vsel %vm11965_vm4, %v14109_v33, %v5912_v63  ;;  %v5933_v30 = vadd.s32 3, %v5916_v7  ;;  %v5526_v57 = vsel %vm5512_vm10, %v5523_v62, %v5525_v43  ;;  %v12041_v6 = vsel %vm5512_vm10, %v5519_v31, %v5521_v60 }
 0x5b8   : > { %v5917_v48 = vmul.f32 %v12033_v3, %v12033_v3  ;;  %v5423_v35 = vadd.s32 536870912, %v5422_v10  ;;  %v5530_v11 = vand.u32 65535, %v5526_v57  ;;  %v12045_v51 = vshrl.u32 %v13870_v29, %v14125_v16 }
 0x5b9   : > { %v5528_v61 = vand.u32 65535, %v12019_v9  ;;  %v12049_v28 = vshrl.u32 %v12019_v9, 16  ;;  %v5531_v27 = vshrl.u32 %v5526_v57, 16  ;;  %v12052_v8 = vor.u32 %v5196_v21, %v14127_v56 }
 0x5ba   : > { %v5918_v5 = vmul.f32 -0.001358992, %v5917_v48  ;;  %v5925_v1 = vmul.f32 -0.00019511016, %v5917_v48  ;;  %v5424_v41 = vshrl.u32 %v5423_v35, 30  ;;  %v12054_v49 = vand.u32 3, %v5933_v30 }
 0x5bb   : > { %v5533_v42 = vmul.u32 %v5531_v27, %v5528_v61  ;;  %v12057_v50 = vmul.u32 %v5530_v11, %v12049_v28  ;;  %v5553_v14 = vshrl.u32 %v12041_v6, 16  ;;  %v12060_v44 = vadd.s32 %v5413_v19, %v5394_v22 }
 0x5bc   : > { %v5919_v12 = vadd.f32 0.041655596, %v5918_v5  ;;  %v5926_v40 = vadd.f32 0.008332121, %v5925_v1  ;;  %v5425_v52 = vshll.u32 %v5424_v41, 30  ;;  %v5495_v4 = vshrl.u32 %v13855_v59, %v11740_v38 }
 0x5bd   : > { %v5532_v15 = vmul.u32 %v5530_v11, %v5528_v61  ;;  %v5536_v39 = vshll.u32 %v5533_v42, 16  ;;  %v5552_v36 = vand.u32 65535, %v12041_v6  ;;  %vm5326_vm7 = vcmp.lt.s32.totalorder %v14113_v23, 0 }
 0x5be   : > { %v5920_v47 = vmul.f32 %v5919_v12, %v5917_v48  ;;  %v5927_v7 = vmul.f32 %v5926_v40, %v5917_v48  ;;  %v12066_v32 = vsub.s32 %v5422_v10, %v5425_v52  ;;  %v5535_v53 = vmul.u32 %v5531_v27, %v12049_v28 }
 0x5bf   : > { %vm5939_vm8 = vcmp.eq.s32.totalorder %v12054_v49, 2  ;;  %v5538_v22 = vshll.u32 %v12057_v50, 16  ;;  %vm5540_vm9 = vc.u32 %v5532_v15, %v5536_v39  ;;  %v5542_v19 = vadd.s32 %v5536_v39, %v5532_v15 }
 0x5c0   : > { %v12071_v20 = vmul.u32 %v5553_v14, %v5528_v61  ;;  %v5921_v38 = vadd.f32 -0.4999988, %v5920_v47  ;;  %v5928_v31 = vadd.f32 -0.16666654, %v5927_v7  ;;  %vm5427_vm6 = vcmp.lt.s32.totalorder %v12066_v32, 0 }
 0x5c1   : > { %v5428_v43 = vsub.s32 0, %v12066_v32  ;;  %vm5936_vm4 = vcmp.eq.s32.totalorder %v12054_v49, 0  ;;  %v5448_v2 = vsub.s32 4, %v5424_v41  ;;  %v5516_v60 = vsel %vm5514_vm3, %v5504_v24, 2102212464 }
 0x5c2   : > { %v5541_v62 = vsel %vm5540_vm9, 1, %v13856_v34  ;;  %vm5544_vm1 = vc.u32 %v5542_v19, %v5538_v22  ;;  %v5922_v21 = vmul.f32 %v5921_v38, %v5917_v48  ;;  %v5929_v63 = vmul.f32 %v5928_v31, %v5917_v48  ;;  %v14130_v38 = vld [vmem:[#allocation81_spill] sm:$0xff] }
 0x5c3   : > { %vm5935_vm0 = vcmp.lt.s32.totalorder %v12054_v49, 2  ;;  %v5429_v10 = vsel %vm5427_vm6, %v5428_v43, %v12066_v32  ;;  %v5543_v30 = vadd.s32 %v5541_v62, %v5535_v53  ;;  %vm5932_vm5 = vweird.f32 %v14109_v33 }
 0x5c4   : > { %v5430_v57 = vclz %v5429_v10  ;;  %v5537_v35 = vshrl.u32 %v5533_v42, 16  ;;  %v5545_v6 = vsel %vm5544_vm1, 1, %v13856_v34  ;;  %v5556_v11 = vmul.u32 %v5552_v36, %v12049_v28 }
 0x5c5   : > { %v5923_v27 = vadd.f32 1.0, %v5922_v21  ;;  %v5930_v24 = vadd.f32 1.0, %v5929_v63  ;;  %v5547_v56 = vadd.s32 %v5545_v6, %v5543_v30  ;;  %v5558_v5 = vshll.u32 %v12071_v20, 16  ;;  %v14131_v6 = vld [vmem:[#allocation68_spill] sm:$0xff] }
 0x5c6   : > { %vm12087_vm3 = vcmp.le.f32.partialorder %v5324_v18, 0.7853982  ;;  %v7122_v1 = vadd.s32 4294967294, %v5430_v57  ;;  %v5515_v42 = vsel %vm5511_vm15, %v5495_v4, %v11992_v25  ;;  %v5517_v12 = vsel %vm5513_vm13, %v12000_v37, %v5516_v60 }
 0x5c7   : > { %v5554_v40 = vmul.u32 %v5552_v36, %v5528_v61  ;;  %v5931_v52 = vmul.f32 %v5930_v24, %v12033_v3  ;;  %v5940_v15 = vxor.u32 2147483648, %v5923_v27  ;;  %v5539_v39 = vshrl.u32 %v12057_v50, 16 }
 0x5c8   : > { %v5548_v47 = vadd.s32 %v5547_v56, %v5537_v35  ;;  %vm7123_vm9 = vcmp.lt.s32.totalorder %v7122_v1, 0  ;;  %v5449_v18 = vsel %vm5326_vm7, %v5448_v2, %v5424_v41  ;;  %v5557_v7 = vmul.u32 %v5553_v14, %v12049_v28  ;;  %v14132_v56 = vld [vmem:[#allocation25_spill] sm:$0xff] }
 0x5c9   : > { %vm5562_vm6 = vc.u32 %v5554_v40, %v5558_v5  ;;  %v5937_v53 = vxor.u32 2147483648, %v5931_v52  ;;  %v5941_v25 = vsel %vm5939_vm8, %v5940_v15, %v5931_v52  ;;  %v5433_v4 = vsel %vm7123_vm9, 0, %v7122_v1 }
 0x5ca   : > { %v5560_v37 = vshll.u32 %v5556_v11, 16  ;;  %v5434_v61 = vsub.s32 32, %v5433_v4  ;;  %v5438_v36 = vsub.s32 4294967266, %v5433_v4  ;;  %v12104_v3 = vadd.s32 %v5548_v47, %v5539_v39  ;;  %v14133_v47 = vld [vmem:[#allocation56_spill] sm:$0xff] }
 0x5cb   : > { %v5563_v50 = vsel %vm5562_vm6, 1, %v13856_v34  ;;  %v5938_v22 = vsel %vm5936_vm4, %v5923_v27, %v5937_v53  ;;  %v5564_v19 = vadd.s32 %v5558_v5, %v5554_v40  ;;  %v5014_v28 = vand.u32 2147483647, %v14130_v38 }
 0x5cc   : > { %v5565_v41 = vadd.s32 %v5563_v50, %v5557_v7  ;;  %v5942_v14 = vsel %vm5935_vm0, %v5938_v22, %v5941_v25  ;;  %v5435_v31 = vshll.u32 %v12066_v32, %v5433_v4  ;;  %v5436_v43 = vshrl.u32 %v12060_v44, %v5434_v61  ;;  %v14134_v61 = vld [vmem:[#allocation42_spill] sm:$0xff] }
 0x5cd   : > { %v5439_v2 = vadd.s32 127, %v5438_v36  ;;  %v5943_v60 = vsel %vm5932_vm5, nan, %v5942_v14  ;;  %v5518_v62 = vsel %vm5512_vm10, %v5515_v42, %v5517_v12  ;;  %vm5566_vm15 = vc.u32 %v5564_v19, %v5560_v37  ;;  %v14135_v36 = vld [vmem:[#allocation58_spill] sm:$0xff] }
 0x5ce   : > { %v12118_v21 = vadd.s32 %v5564_v19, %v5560_v37  ;;  %6913 = vmatpush.msrb.mxu1 %v5943_v60  ;;  %v5437_v63 = vor.u32 %v5436_v43, %v5435_v31  ;;  %v5567_v49 = vsel %vm5566_vm15, 1, %v13856_v34  ;;  %v5021_v32 = vand.u32 8388607, %v5014_v28  ;;  %v14136_v19 = vld [vmem:[#allocation54_spill] sm:$0xff] }
 0x5cf   : > { %v5440_v10 = vshll.u32 %v5439_v2, 23  ;;  %v5451_v44 = vsel %vm12087_vm3, 0, %v5449_v18  ;;  %v5559_v33 = vshrl.u32 %v12071_v20, 16  ;;  %v5561_v30 = vshrl.u32 %v5556_v11, 16 }
 0x5d0   : > { %v5569_v57 = vadd.s32 %v5567_v49, %v5565_v41  ;;  %vm5574_vm13 = vc.u32 %v12104_v3, %v12118_v21  ;;  %v5022_v35 = vor.u32 8388608, %v5021_v32  ;;  %v5031_v27 = vshll.u32 %v13855_v59, %v14131_v6 }
 0x5d1   : > { %v5441_v17 = vor.u32 4788187, %v5440_v10  ;;  %v5032_v5 = vshrl.u32 %v13857_v55, %v14132_v56  ;;  %v5034_v1 = vshll.u32 %v13857_v55, %v14131_v6  ;;  %v5035_v20 = vshrl.u32 %v13858_v0, %v14132_v56 }
 0x5d2   : > { %v5570_v24 = vadd.s32 %v5569_v57, %v5559_v33  ;;  %v5444_v42 = vcvt.s32.f32 %v5437_v63  ;;  %v5037_v12 = vshll.u32 %v13858_v0, %v14131_v6  ;;  %v5038_v40 = vshrl.u32 %v13803_v46, %v14132_v56 }
 0x5d3   : > { %v5442_v11 = vand.u32 2147483647, %v5441_v17  ;;  %v12140_v15 = vor.u32 %v5032_v5, %v5031_v27  ;;  %v12142_v39 = vor.u32 %v5035_v20, %v5034_v1  ;;  %vm5046_vm10 = vcmp.lt.s32.totalorder %v14133_v47, 1 }
 0x5d4   : > { %v5571_v52 = vadd.s32 %v5570_v24, %v5561_v30  ;;  %v5039_v7 = vor.u32 %v5038_v40, %v5037_v12  ;;  %vm5048_vm8 = vcmp.lt.s32.totalorder %v14133_v47, 3  ;;  %v12146_v53 = vshll.u32 %v5022_v35, 8  ;;  %v14138_v30 = vld [vmem:[#allocation33_spill] sm:$0xff] }
 0x5d5   : > { %v5445_v18 = vmul.f32 %v5444_v42, %v5442_v11  ;;  %v5572_v25 = vmul.u32 %v12019_v9, %v5518_v62  ;;  %v5054_v37 = vsel %vm5046_vm10, %v12140_v15, %v12142_v39  ;;  %v5060_v50 = vsel %vm5048_vm8, %v14135_v36, %v14134_v61 }
 0x5d6   : > { %v5575_v4 = vadd.s32 1, %v5571_v52  ;;  %vm5047_vm4 = vcmp.lt.s32.totalorder %v14133_v47, 2  ;;  %v5056_v41 = vsel %vm5048_vm8, %v5039_v7, %v14136_v19  ;;  %v5058_v9 = vsel %vm5046_vm10, %v12142_v39, %v5039_v7 }
 0x5d7   : > { %v5446_v22 = vxor.u32 2147483648, %v5445_v18  ;;  %v5200_v14 = vor.u32 %v12045_v51, %v12028_v13  ;;  %v5468_v31 = vadd.s32 3, %v5451_v44  ;;  %v5061_v2 = vsel %vm5047_vm4, %v5058_v9, %v5060_v50  ;;  %v14137_v44 = vld [vmem:[#allocation48_spill] sm:$0xff] }
 0x5d8   : > { %v5576_v43 = vsel %vm5574_vm13, %v5575_v4, %v5571_v52  ;;  %v12175_v63 = vsel %vm5047_vm4, %v5054_v37, %v5056_v41  ;;  %v5063_v10 = vand.u32 65535, %v12146_v53  ;;  %v12184_v51 = vshrl.u32 %v12146_v53, 16 }
 0x5d9   : > { %v5447_v60 = vsel %vm5326_vm7, %v5446_v22, %v5445_v18  ;;  %v5577_v62 = vadd.s32 %v5576_v43, %v5572_v25  ;;  %v5065_v49 = vand.u32 65535, %v5061_v2  ;;  %v5066_v32 = vshrl.u32 %v5061_v2, 16 }
 0x5da   : > { %v12181_v13 = vsel %vm12087_vm3, %v14113_v23, %v5447_v60  ;;  %v12187_v33 = vshrl.u32 %v14137_v44, 5  ;;  %vm5204_vm7 = vcmp.lt.s32.totalorder %v14138_v30, 4  ;;  %v5088_v27 = vshrl.u32 %v12175_v63, 16 }
 0x5db   : > { %v5452_v57 = vmul.f32 %v12181_v13, %v12181_v13  ;;  %v5578_v17 = vadd.s32 536870912, %v5577_v62  ;;  %v12195_v48 = vsel %vm5204_vm7, %v12052_v8, 920167782  ;;  %v5068_v35 = vmul.u32 %v5066_v32, %v5063_v10 }
 0x5dc   : > { %v12198_v6 = vmul.u32 %v5065_v49, %v12184_v51  ;;  %v12202_v24 = vand.u32 31, %v14137_v44  ;;  %v12208_v11 = vsel %vm5204_vm7, %v5200_v14, 1326507024  ;;  %v12210_v42 = vand.u32 3, %v5468_v31 }
 0x5dd   : > { %v5453_v5 = vmul.f32 -0.001358992, %v5452_v57  ;;  %v5460_v1 = vmul.f32 -0.00019511016, %v5452_v57  ;;  %v12204_v20 = vshrl.u32 %v5578_v17, 30  ;;  %v5067_v12 = vmul.u32 %v5065_v49, %v5063_v10 }
 0x5de   : > { %v5071_v40 = vshll.u32 %v5068_v35, 16  ;;  %v12214_v25 = vadd.s32 %v12118_v21, %v12104_v3  ;;  %v5073_v37 = vshll.u32 %v12198_v6, 16  ;;  %v12218_v36 = vmul.u32 %v5088_v27, %v5063_v10 }
 0x5df   : > { %v5454_v52 = vadd.f32 0.041655596, %v5453_v5  ;;  %v5461_v18 = vadd.f32 0.008332121, %v5460_v1  ;;  %v5580_v4 = vshll.u32 %v12204_v20, 30  ;;  %v5087_v41 = vand.u32 65535, %v12175_v63 }
 0x5e0   : > { %vm5075_vm1 = vc.u32 %v5067_v12, %v5071_v40  ;;  %v5077_v61 = vadd.s32 %v5071_v40, %v5067_v12  ;;  %v5030_v9 = vshrl.u32 %v13855_v59, %v14132_v56  ;;  %v5070_v3 = vmul.u32 %v5066_v32, %v12184_v51 }
 0x5e1   : > { %v5455_v50 = vmul.f32 %v5454_v52, %v5452_v57  ;;  %v5462_v22 = vmul.f32 %v5461_v18, %v5452_v57  ;;  %v12220_v19 = vsub.s32 %v5577_v62, %v5580_v4  ;;  %v5076_v21 = vsel %vm5075_vm1, 1, %v13856_v34 }
 0x5e2   : > { %vm5079_vm0 = vc.u32 %v5077_v61, %v5073_v37  ;;  %vm5474_vm5 = vcmp.eq.s32.totalorder %v12210_v42, 2  ;;  %vm5471_vm9 = vcmp.eq.s32.totalorder %v12210_v42, 0  ;;  %v5051_v2 = vsel %vm5049_vm11, %v5039_v7, 2102212464 }
 0x5e3   : > { %v5456_v14 = vadd.f32 -0.4999988, %v5455_v50  ;;  %v5463_v31 = vadd.f32 -0.16666654, %v5462_v22  ;;  %vm5582_vm3 = vcmp.lt.s32.totalorder %v12220_v19, 0  ;;  %v5583_v43 = vsub.s32 0, %v12220_v19 }
 0x5e4   : > { %v5078_v60 = vadd.s32 %v5076_v21, %v5070_v3  ;;  %v5080_v56 = vsel %vm5079_vm0, 1, %v13856_v34  ;;  %v5093_v62 = vshll.u32 %v12218_v36, 16  ;;  %vm5470_vm6 = vcmp.lt.s32.totalorder %v12210_v42, 2 }
 0x5e5   : > { %v5457_v63 = vmul.f32 %v5456_v14, %v5452_v57  ;;  %v5464_v49 = vmul.f32 %v5463_v31, %v5452_v57  ;;  %v5584_v32 = vsel %vm5582_vm3, %v5583_v43, %v12220_v19  ;;  %v5089_v44 = vmul.u32 %v5087_v41, %v5063_v10 }
 0x5e6   : > { %vm5467_vm15 = vweird.f32 %v14113_v23  ;;  %v5585_v17 = vclz %v5584_v32  ;;  %v5050_v5 = vsel %vm5046_vm10, %v5030_v9, %v12140_v15  ;;  %v5082_v7 = vadd.s32 %v5080_v56, %v5078_v60 }
 0x5e7   : > { %v5091_v1 = vmul.u32 %v5087_v41, %v12184_v51  ;;  %v5458_v12 = vadd.f32 1.0, %v5457_v63  ;;  %v5465_v40 = vadd.f32 1.0, %v5464_v49  ;;  %v5072_v52 = vshrl.u32 %v5068_v35, 16  ;;  %v14141_v49 = vld [vmem:[#allocation76_spill] sm:$0xff] }
 0x5e8   : > { %vm5097_vm11 = vc.u32 %v5089_v44, %v5093_v62  ;;  %vm5481_vm13 = vcmp.lt.s32.totalorder %v14124_v58, 0  ;;  %v7125_v57 = vadd.s32 4294967294, %v5585_v17  ;;  %v5052_v10 = vsel %vm5048_vm8, %v12142_v39, %v5051_v2 }
 0x5e9   : > { %v5074_v18 = vshrl.u32 %v12198_v6, 16  ;;  %v5092_v4 = vmul.u32 %v5088_v27, %v12184_v51  ;;  %v5466_v15 = vmul.f32 %v5465_v40, %v12181_v13  ;;  %v5475_v37 = vxor.u32 2147483648, %v5458_v12 }
 0x5ea   : > { %v5083_v61 = vadd.s32 %v5082_v7, %v5072_v52  ;;  %v5098_v50 = vsel %vm5097_vm11, 1, %v13856_v34  ;;  %vm7126_vm10 = vcmp.lt.s32.totalorder %v7125_v57, 0  ;;  %v5095_v35 = vshll.u32 %v5091_v1, 16 }
 0x5eb   : > { %v5099_v22 = vadd.s32 %v5093_v62, %v5089_v44  ;;  %v5100_v41 = vadd.s32 %v5098_v50, %v5092_v4  ;;  %v5472_v9 = vxor.u32 2147483648, %v5466_v15  ;;  %v5588_v3 = vsel %vm7126_vm10, 0, %v7125_v57 }
 0x5ec   : > { %v5603_v21 = vsub.s32 4, %v12204_v20  ;;  %v5094_v39 = vshrl.u32 %v12218_v36, 16  ;;  %v5476_v6 = vsel %vm5474_vm5, %v5475_v37, %v5466_v15  ;;  %v5589_v51 = vsub.s32 32, %v5588_v3 }
 0x5ed   : > { %v5593_v27 = vsub.s32 4294967266, %v5588_v3  ;;  %vm5101_vm8 = vc.u32 %v5099_v22, %v5095_v35  ;;  %v5473_v13 = vsel %vm5471_vm9, %v5458_v12, %v5472_v9  ;;  %v5590_v14 = vshll.u32 %v12220_v19, %v5588_v3 }
 0x5ee   : > { %v12257_v31 = vadd.s32 %v5083_v61, %v5074_v18  ;;  %v5102_v43 = vsel %vm5101_vm8, 1, %v13856_v34  ;;  %v5477_v2 = vsel %vm5470_vm6, %v5473_v13, %v5476_v6  ;;  %v5591_v36 = vshrl.u32 %v12214_v25, %v5589_v51 }
 0x5ef   : > { %v5594_v60 = vadd.s32 127, %v5593_v27  ;;  %v5104_v56 = vadd.s32 %v5102_v43, %v5100_v41  ;;  %v5478_v62 = vsel %vm5467_vm15, nan, %v5477_v2  ;;  %vm12267_vm1 = vcmp.le.f32.partialorder %v5479_v45, 0.7853982 }
 0x5f0   : > { %v12271_v19 = vadd.s32 %v5099_v22, %v5095_v35  ;;  %v5169_v32 = vand.u32 2147483647, %v14141_v49  ;;  %6894 = vmatpush.msrb.mxu0 %v5478_v62  ;;  %v5592_v42 = vor.u32 %v5591_v36, %v5590_v14  ;;  %v5096_v17 = vshrl.u32 %v5091_v1, 16 }
 0x5f1   : > { %v5595_v44 = vshll.u32 %v5594_v60, 23  ;;  %v5105_v25 = vadd.s32 %v5104_v56, %v5094_v39  ;;  %v5604_v23 = vsel %vm5481_vm13, %v5603_v21, %v12204_v20  ;;  %v5053_v7 = vsel %vm5047_vm4, %v5050_v5, %v5052_v10 }
 0x5f2   : > { %vm5109_vm0 = vc.u32 %v12257_v31, %v12271_v19  ;;  %v5176_v45 = vand.u32 8388607, %v5169_v32  ;;  %v5186_v52 = vshll.u32 %v13855_v59, %v14126_v26  ;;  %v5187_v1 = vshrl.u32 %v13857_v55, %v14125_v16 }
 0x5f3   : > { %v5596_v12 = vor.u32 4788187, %v5595_v44  ;;  %v5106_v40 = vadd.s32 %v5105_v25, %v5096_v17  ;;  %v5599_v57 = vcvt.s32.f32 %v5592_v42  ;;  %v5189_v47 = vshll.u32 %v13857_v55, %v14126_v26 }
 0x5f4   : > { %v5177_v18 = vor.u32 8388608, %v5176_v45  ;;  %v5190_v20 = vshrl.u32 %v13858_v0, %v14125_v16  ;;  %v5192_v4 = vshll.u32 %v13858_v0, %v14126_v26  ;;  %v5193_v15 = vshrl.u32 %v13803_v46, %v14125_v16 }
 0x5f5   : > { %v5597_v5 = vand.u32 2147483647, %v5596_v12  ;;  %v5110_v10 = vadd.s32 1, %v5106_v40  ;;  %v5606_v37 = vsel %vm12267_vm1, 0, %v5604_v23  ;;  %v5107_v61 = vmul.u32 %v12146_v53, %v5053_v7 }
 0x5f6   : > { %v5188_v50 = vor.u32 %v5187_v1, %v5186_v52  ;;  %v5191_v35 = vor.u32 %v5190_v20, %v5189_v47  ;;  %v5194_v9 = vor.u32 %v5193_v15, %v5192_v4  ;;  %vm5203_vm4 = vcmp.lt.s32.totalorder %v14138_v30, 3 }
 0x5f7   : > { %v5600_v22 = vmul.f32 %v5599_v57, %v5597_v5  ;;  %v5111_v41 = vsel %vm5109_vm0, %v5110_v10, %v5106_v40  ;;  %vm5201_vm5 = vcmp.lt.s32.totalorder %v14138_v30, 1  ;;  %v5215_v26 = vsel %vm5203_vm4, %v12052_v8, %v12208_v11 }
 0x5f8   : > { %v5112_v3 = vadd.s32 %v5111_v41, %v5107_v61  ;;  %v12307_v21 = vshll.u32 %v5177_v18, 8  ;;  %v12310_v53 = vsub.s32 32, %v12202_v24  ;;  %vm5202_vm3 = vcmp.lt.s32.totalorder %v14138_v30, 2 }
 0x5f9   : > { %v5601_v39 = vxor.u32 2147483648, %v5600_v22  ;;  %v5213_v6 = vsel %vm5201_vm5, %v5191_v35, %v5194_v9  ;;  %v12317_v51 = vshll.u32 %v13803_v46, %v12202_v24  ;;  %v5623_v27 = vadd.s32 3, %v5606_v37 }
 0x5fa   : > { %v5113_v13 = vadd.s32 536870912, %v5112_v3  ;;  %v5216_v8 = vsel %vm5202_vm3, %v5213_v6, %v5215_v26  ;;  %v5209_v14 = vsel %vm5201_vm5, %v5188_v50, %v5191_v35  ;;  %v5211_v43 = vsel %vm5203_vm4, %v5194_v9, %v12195_v48 }
 0x5fb   : > { %v5602_v11 = vsel %vm5481_vm13, %v5601_v39, %v5600_v22  ;;  %v12329_v2 = vand.u32 65535, %v12307_v21  ;;  %v5220_v56 = vand.u32 65535, %v5216_v8  ;;  %v5221_v62 = vshrl.u32 %v5216_v8, 16 }
 0x5fc   : > { %v5605_v36 = vsel %vm12267_vm1, %v14124_v58, %v5602_v11  ;;  %v12334_v60 = vshrl.u32 %v5113_v13, 30  ;;  %v12338_v42 = vshrl.u32 %v13868_v54, %v12310_v53  ;;  %v12342_v44 = vshll.u32 %v13868_v54, %v12202_v24 }
 0x5fd   : > { %v5607_v48 = vmul.f32 %v5605_v36, %v5605_v36  ;;  %v5185_v17 = vshrl.u32 %v13855_v59, %v14125_v16  ;;  %v5206_v63 = vsel %vm5204_vm7, %v5194_v9, 2102212464  ;;  %v5219_v23 = vshrl.u32 %v12307_v21, 16 }
 0x5fe   : > { %v5115_v25 = vshll.u32 %v12334_v60, 30  ;;  %v5223_v7 = vmul.u32 %v5221_v62, %v12329_v2  ;;  %v12351_v40 = vand.u32 3, %v5623_v27  ;;  %v5212_v52 = vsel %vm5202_vm3, %v5209_v14, %v5211_v43 }
 0x5ff   : > { %v5608_v45 = vmul.f32 -0.001358992, %v5607_v48  ;;  %v5615_v12 = vmul.f32 -0.00019511016, %v5607_v48  ;;  %v5205_v16 = vsel %vm5201_vm5, %v5185_v17, %v5188_v50  ;;  %v12359_v57 = vmul.u32 %v5220_v56, %v5219_v23 }
 0x600   : > { %v12355_v1 = vsub.s32 %v5112_v3, %v5115_v25  ;;  %v5226_v18 = vshll.u32 %v5223_v7, 16  ;;  %v5207_v5 = vsel %vm5203_vm4, %v5191_v35, %v5206_v63  ;;  %v5222_v10 = vmul.u32 %v5220_v56, %v12329_v2 }
 0x601   : > { %v5609_v47 = vadd.f32 0.041655596, %v5608_v45  ;;  %v5616_v20 = vadd.f32 0.008332121, %v5615_v12  ;;  %v5225_v15 = vmul.u32 %v5221_v62, %v5219_v23  ;;  %v5242_v37 = vand.u32 65535, %v5212_v52 }
 0x602   : > { %vm5117_vm7 = vcmp.lt.s32.totalorder %v12355_v1, 0  ;;  %v5118_v4 = vsub.s32 0, %v12355_v1  ;;  %vm5230_vm9 = vc.u32 %v5222_v10, %v5226_v18  ;;  %v5232_v50 = vadd.s32 %v5226_v18, %v5222_v10 }
 0x603   : > { %v5610_v61 = vmul.f32 %v5609_v47, %v5607_v48  ;;  %v5617_v22 = vmul.f32 %v5616_v20, %v5607_v48  ;;  %v5228_v9 = vshll.u32 %v12359_v57, 16  ;;  %v5231_v3 = vsel %vm5230_vm9, 1, %v13856_v34 }
 0x604   : > { %v5119_v41 = vsel %vm5117_vm7, %v5118_v4, %v12355_v1  ;;  %v5243_v26 = vshrl.u32 %v5212_v52, 16  ;;  %v5233_v27 = vadd.s32 %v5231_v3, %v5225_v15  ;;  %v12371_v13 = vshrl.u32 %v13870_v29, %v12310_v53 }
 0x605   : > { %v5611_v35 = vadd.f32 -0.4999988, %v5610_v61  ;;  %v5618_v39 = vadd.f32 -0.16666654, %v5617_v22  ;;  %v5120_v6 = vclz %v5119_v41  ;;  %vm5626_vm6 = vcmp.eq.s32.totalorder %v12351_v40, 0  ;;  %v14142_v41 = vld [vmem:[#allocation47_spill] sm:$0xff] }
 0x606   : > { %vm5629_vm15 = vcmp.eq.s32.totalorder %v12351_v40, 2  ;;  %vm5234_vm11 = vc.u32 %v5232_v50, %v5228_v9  ;;  %vm5625_vm13 = vcmp.lt.s32.totalorder %v12351_v40, 2  ;;  %vm5622_vm10 = vweird.f32 %v14124_v58 }
 0x607   : > { %v5612_v8 = vmul.f32 %v5611_v35, %v5607_v48  ;;  %v5619_v11 = vmul.f32 %v5618_v39, %v5607_v48  ;;  %v7116_v14 = vadd.s32 4294967294, %v5120_v6  ;;  %v5235_v43 = vsel %vm5234_vm11, 1, %v13856_v34 }
 0x608   : > { %v5108_v56 = vadd.s32 %v12271_v19, %v12257_v31  ;;  %v12382_v62 = vsel %vm5202_vm3, %v5205_v16, %v5207_v5  ;;  %v5237_v17 = vadd.s32 %v5235_v43, %v5233_v27  ;;  %v5245_v25 = vmul.u32 %v5243_v26, %v12329_v2 }
 0x609   : > { %v5613_v63 = vadd.f32 1.0, %v5612_v8  ;;  %v5620_v45 = vadd.f32 1.0, %v5619_v11  ;;  %vm7117_vm8 = vcmp.lt.s32.totalorder %v7116_v14, 0  ;;  %v5246_v48 = vmul.u32 %v5242_v37, %v5219_v23 }
 0x60a   : > { %v5123_v12 = vsel %vm7117_vm8, 0, %v7116_v14  ;;  %v5227_v52 = vshrl.u32 %v5223_v7, 16  ;;  %v5229_v18 = vshrl.u32 %v12359_v57, 16  ;;  %v5248_v47 = vshll.u32 %v5245_v25, 16 }
 0x60b   : > { %v5621_v20 = vmul.f32 %v5620_v45, %v5605_v36  ;;  %v5630_v10 = vxor.u32 2147483648, %v5613_v63  ;;  %v5124_v4 = vsub.s32 32, %v5123_v12  ;;  %v5244_v31 = vmul.u32 %v5242_v37, %v12329_v2 }
 0x60c   : > { %v5125_v30 = vshll.u32 %v12355_v1, %v5123_v12  ;;  %v5128_v19 = vsub.s32 4294967266, %v5123_v12  ;;  %v5238_v16 = vadd.s32 %v5237_v17, %v5227_v52  ;;  %v5247_v5 = vmul.u32 %v5243_v26, %v5219_v23  ;;  %v14145_v17 = vld [vmem:[#allocation74_spill] sm:$0xff] }
 0x60d   : > { %v5627_v15 = vxor.u32 2147483648, %v5621_v20  ;;  %v5126_v61 = vshrl.u32 %v5108_v56, %v5124_v4  ;;  %v5250_v22 = vshll.u32 %v5246_v48, 16  ;;  %vm5252_vm1 = vc.u32 %v5244_v31, %v5248_v47 }
 0x60e   : > { %v5631_v7 = vsel %vm5629_vm15, %v5630_v10, %v5621_v20  ;;  %vm5016_vm0 = vcmp.lt.s32.totalorder %v14130_v38, 0  ;;  %v5129_v57 = vadd.s32 127, %v5128_v19  ;;  %v5253_v36 = vsel %vm5252_vm1, 1, %v13856_v34 }
 0x60f   : > { %v5254_v50 = vadd.s32 %v5248_v47, %v5244_v31  ;;  %v5628_v2 = vsel %vm5626_vm6, %v5613_v63, %v5627_v15  ;;  %v5127_v1 = vor.u32 %v5126_v61, %v5125_v30  ;;  %v5255_v37 = vadd.s32 %v5253_v36, %v5247_v5  ;;  %v14146_v63 = vld [vmem:[#allocation78_spill] sm:$0xff]  ;;  %v14147_v15 = vld [vmem:[#allocation72_spill] sm:$0xff] }
 0x610   : > { %v4704_v23 = vand.u32 2147483647, %v14142_v41  ;;  %v5632_v9 = vsel %vm5625_vm13, %v5628_v2, %v5631_v7  ;;  %v5130_v3 = vshll.u32 %v5129_v57, 23  ;;  %v5138_v26 = vsub.s32 4, %v12334_v60  ;;  %v14148_v7 = vld [vmem:[#allocation61_spill] sm:$0xff]  ;;  %v14149_v57 = vld [vmem:[#allocation70_spill] sm:$0xff] }
 0x611   : > { %vm5256_vm4 = vc.u32 %v5254_v50, %v5250_v22  ;;  %v5633_v35 = vsel %vm5622_vm10, nan, %v5632_v9  ;;  %vm12402_vm5 = vcmp.le.f32.partialorder %v5014_v28, 0.7853982  ;;  %v12406_v6 = vadd.s32 %v5238_v16, %v5229_v18 }
 0x612   : > { %v5249_v27 = vshrl.u32 %v5245_v25, 16  ;;  %v5257_v8 = vsel %vm5256_vm4, 1, %v13856_v34  ;;  %6914 = vmatpush.msrb.mxu1 %v5633_v35  ;;  %v5131_v40 = vor.u32 4788187, %v5130_v3  ;;  %v5251_v11 = vshrl.u32 %v5246_v48, 16 }
 0x613   : > { %v12409_v14 = vadd.s32 %v5254_v50, %v5250_v22  ;;  %v5259_v43 = vadd.s32 %v5257_v8, %v5255_v37  ;;  %v5134_v56 = vcvt.s32.f32 %v5127_v1  ;;  %v4711_v58 = vand.u32 8388607, %v4704_v23 }
 0x614   : > { %v4721_v28 = vshll.u32 %v13855_v59, %v14145_v17  ;;  %v4722_v45 = vshrl.u32 %v13857_v55, %v14146_v63  ;;  %v5132_v12 = vand.u32 2147483647, %v5131_v40  ;;  %v4724_v52 = vshll.u32 %v13857_v55, %v14145_v17 }
 0x615   : > { %v5260_v25 = vadd.s32 %v5259_v43, %v5249_v27  ;;  %v4725_v48 = vshrl.u32 %v13858_v0, %v14146_v63  ;;  %v4712_v18 = vor.u32 8388608, %v4711_v58  ;;  %v4727_v20 = vshll.u32 %v13858_v0, %v14145_v17 }
 0x616   : > { %v12421_v47 = vor.u32 %v4722_v45, %v4721_v28  ;;  %v4728_v10 = vshrl.u32 %v13803_v46, %v14146_v63  ;;  %v5135_v4 = vmul.f32 %v5134_v56, %v5132_v12  ;;  %v5262_v30 = vmul.u32 %v12307_v21, %v12382_v62  ;;  %v14150_v62 = vld [vmem:[#allocation67_spill] sm:$0xff] }
 0x617   : > { %v5261_v31 = vadd.s32 %v5260_v25, %v5251_v11  ;;  %v12429_v19 = vor.u32 %v4725_v48, %v4724_v52  ;;  %v5139_v16 = vsel %vm5016_vm0, %v5138_v26, %v12334_v60  ;;  %vm5264_vm3 = vc.u32 %v12406_v6, %v12409_v14 }
 0x618   : > { %v12436_v5 = vor.u32 %v4728_v10, %v4727_v20  ;;  %vm4738_vm7 = vcmp.lt.s32.totalorder %v14147_v15, 3  ;;  %v5136_v61 = vxor.u32 2147483648, %v5135_v4  ;;  %vm4736_vm9 = vcmp.lt.s32.totalorder %v14147_v15, 1 }
 0x619   : > { %v5265_v22 = vadd.s32 1, %v5261_v31  ;;  %v4750_v21 = vsel %vm4738_vm7, %v14149_v57, %v14148_v7  ;;  %v4744_v60 = vsel %vm4736_vm9, %v12421_v47, %v12429_v19  ;;  %v12456_v2 = vshll.u32 %v4712_v18, 8 }
 0x61a   : > { %v4746_v36 = vsel %vm4738_vm7, %v12436_v5, %v14150_v62  ;;  %v4748_v50 = vsel %vm4736_vm9, %v12429_v19, %v12436_v5  ;;  %v5137_v1 = vsel %vm5016_vm0, %v5136_v61, %v5135_v4  ;;  %v5141_v37 = vsel %vm12402_vm5, 0, %v5139_v16 }
 0x61b   : > { %v5266_v9 = vsel %vm5264_vm3, %v5265_v22, %v5261_v31  ;;  %vm4737_vm6 = vcmp.lt.s32.totalorder %v14147_v15, 2  ;;  %v12465_v3 = vor.u32 %v12338_v42, %v12317_v51  ;;  %v12470_v26 = vsel %vm12402_vm5, %v14130_v38, %v5137_v1 }
 0x61c   : > { %v5267_v35 = vadd.s32 %v5266_v9, %v5262_v30  ;;  %v4751_v27 = vsel %vm4737_vm6, %v4748_v50, %v4750_v21  ;;  %v4890_v8 = vor.u32 %v12371_v13, %v12342_v44  ;;  %v5142_v40 = vmul.f32 %v12470_v26, %v12470_v26 }
 0x61d   : > { %v12480_v11 = vsel %vm4737_vm6, %v4744_v60, %v4746_v36  ;;  %v4755_v51 = vand.u32 65535, %v4751_v27  ;;  %v5158_v42 = vadd.s32 3, %v5141_v37  ;;  %v4753_v39 = vand.u32 65535, %v12456_v2 }
 0x61e   : > { %v5268_v43 = vadd.s32 536870912, %v5267_v35  ;;  %v4756_v56 = vshrl.u32 %v4751_v27, 16  ;;  %vm4894_vm15 = vcmp.lt.s32.totalorder %v12187_v33, 4  ;;  %v5143_v58 = vmul.f32 -0.001358992, %v5142_v40 }
 0x61f   : > { %v5150_v17 = vmul.f32 -0.00019511016, %v5142_v40  ;;  %v12485_v28 = vshrl.u32 %v12456_v2, 16  ;;  %v12490_v44 = vsel %vm4894_vm15, %v12465_v3, 920167782  ;;  %v4778_v12 = vshrl.u32 %v12480_v11, 16 }
 0x620   : > { %v12492_v13 = vshrl.u32 %v5268_v43, 30  ;;  %v4758_v45 = vmul.u32 %v4756_v56, %v4753_v39  ;;  %v12497_v25 = vsel %vm4894_vm15, %v4890_v8, 1326507024  ;;  %v5144_v52 = vadd.f32 0.041655596, %v5143_v58 }
 0x621   : > { %v5151_v48 = vadd.f32 0.008332121, %v5150_v17  ;;  %v12500_v18 = vmul.u32 %v4755_v51, %v12485_v28  ;;  %v12502_v20 = vand.u32 3, %v5158_v42  ;;  %v4757_v4 = vmul.u32 %v4755_v51, %v4753_v39 }
 0x622   : > { %v5270_v10 = vshll.u32 %v12492_v13, 30  ;;  %v4761_v31 = vshll.u32 %v4758_v45, 16  ;;  %v5145_v30 = vmul.f32 %v5144_v52, %v5142_v40  ;;  %v4760_v61 = vmul.u32 %v4756_v56, %v12485_v28 }
 0x623   : > { %v5152_v16 = vmul.f32 %v5151_v48, %v5142_v40  ;;  %v4777_v22 = vand.u32 65535, %v12480_v11  ;;  %v12509_v21 = vmul.u32 %v4778_v12, %v4753_v39  ;;  %v4763_v36 = vshll.u32 %v12500_v18, 16 }
 0x624   : > { %v12507_v7 = vsub.s32 %v5267_v35, %v5270_v10  ;;  %vm4765_vm11 = vc.u32 %v4757_v4, %v4761_v31  ;;  %v4767_v57 = vadd.s32 %v4761_v31, %v4757_v4  ;;  %v5146_v60 = vadd.f32 -0.4999988, %v5145_v30 }
 0x625   : > { %v5153_v62 = vadd.f32 -0.16666654, %v5152_v16  ;;  %v4766_v50 = vsel %vm4765_vm11, 1, %v13856_v34  ;;  %vm5161_vm13 = vcmp.eq.s32.totalorder %v12502_v20, 0  ;;  %vm5164_vm10 = vcmp.eq.s32.totalorder %v12502_v20, 2 }
 0x626   : > { %vm5272_vm8 = vcmp.lt.s32.totalorder %v12507_v7, 0  ;;  %v5273_v1 = vsub.s32 0, %v12507_v7  ;;  %v4720_v37 = vshrl.u32 %v13855_v59, %v14146_v63  ;;  %v4768_v9 = vadd.s32 %v4766_v50, %v4760_v61 }
 0x627   : > { %v5147_v35 = vmul.f32 %v5146_v60, %v5142_v40  ;;  %v5154_v27 = vmul.f32 %v5153_v62, %v5142_v40  ;;  %vm5160_vm1 = vcmp.lt.s32.totalorder %v12502_v20, 2  ;;  %v4741_v8 = vsel %vm4739_vm2, %v12436_v5, 2102212464 }
 0x628   : > { %vm4769_vm0 = vc.u32 %v4767_v57, %v4763_v36  ;;  %vm5157_vm4 = vweird.f32 %v14130_v38  ;;  %v5274_v11 = vsel %vm5272_vm8, %v5273_v1, %v12507_v7  ;;  %v4781_v42 = vmul.u32 %v4777_v22, %v12485_v28 }
 0x629   : > { %v4770_v51 = vsel %vm4769_vm0, 1, %v13856_v34  ;;  %v4783_v63 = vshll.u32 %v12509_v21, 16  ;;  %v5148_v43 = vadd.f32 1.0, %v5147_v35  ;;  %v5155_v56 = vadd.f32 1.0, %v5154_v27 }
 0x62a   : > { %v5275_v40 = vclz %v5274_v11  ;;  %v4772_v58 = vadd.s32 %v4770_v51, %v4768_v9  ;;  %v5263_v17 = vadd.s32 %v12409_v14, %v12406_v6  ;;  %v4740_v5 = vsel %vm4736_vm9, %v4720_v37, %v12421_v47 }
 0x62b   : > { %v4762_v52 = vshrl.u32 %v4758_v45, 16  ;;  %v4779_v48 = vmul.u32 %v4777_v22, %v4753_v39  ;;  %v5156_v10 = vmul.f32 %v5155_v56, %v12470_v26  ;;  %v5165_v4 = vxor.u32 2147483648, %v5148_v43 }
 0x62c   : > { %vm5171_vm2 = vcmp.lt.s32.totalorder %v14141_v49, 0  ;;  %v7119_v31 = vadd.s32 4294967294, %v5275_v40  ;;  %v4742_v30 = vsel %vm4738_vm7, %v12429_v19, %v4741_v8  ;;  %v4785_v61 = vshll.u32 %v4781_v42, 16  ;;  %v14153_v8 = vld [vmem:[#allocation73_spill] sm:$0xff] }
 0x62d   : > { %v4773_v16 = vadd.s32 %v4772_v58, %v4762_v52  ;;  %vm4787_vm5 = vc.u32 %v4779_v48, %v4783_v63  ;;  %v4789_v6 = vadd.s32 %v4783_v63, %v4779_v48  ;;  %v5162_v14 = vxor.u32 2147483648, %v5156_v10 }
 0x62e   : > { %vm7120_vm3 = vcmp.lt.s32.totalorder %v7119_v31, 0  ;;  %v5293_v47 = vsub.s32 4, %v12492_v13  ;;  %v4764_v39 = vshrl.u32 %v12500_v18, 16  ;;  %v4782_v26 = vmul.u32 %v4778_v12, %v12485_v28 }
 0x62f   : > { %v5278_v45 = vsel %vm7120_vm3, 0, %v7119_v31  ;;  %v4788_v22 = vsel %vm4787_vm5, 1, %v13856_v34  ;;  %vm4791_vm9 = vc.u32 %v4789_v6, %v4785_v61  ;;  %v5163_v57 = vsel %vm5161_vm13, %v5148_v43, %v5162_v14 }
 0x630   : > { %v5166_v19 = vsel %vm5164_vm10, %v5165_v4, %v5156_v10  ;;  %v5279_v60 = vsub.s32 32, %v5278_v45  ;;  %v5283_v62 = vsub.s32 4294967266, %v5278_v45  ;;  %v12548_v50 = vadd.s32 %v4773_v16, %v4764_v39  ;;  %v14154_v39 = vld [vmem:[#allocation57_spill] sm:$0xff] }
 0x631   : > { %v5167_v36 = vsel %vm5160_vm1, %v5163_v57, %v5166_v19  ;;  %v4790_v18 = vadd.s32 %v4788_v22, %v4782_v26  ;;  %v4792_v1 = vsel %vm4791_vm9, 1, %v13856_v34  ;;  %v5280_v12 = vshll.u32 %v12507_v7, %v5278_v45 }
 0x632   : > { %v5168_v28 = vsel %vm5157_vm4, nan, %v5167_v36  ;;  %v5281_v37 = vshrl.u32 %v5263_v17, %v5279_v60  ;;  %v5284_v9 = vadd.s32 127, %v5283_v62  ;;  %vm12556_vm7 = vcmp.le.f32.partialorder %v5169_v32, 0.7853982 }
 0x633   : > { %6895 = vmatpush.msrb.mxu0 %v5168_v28  ;;  %v4784_v20 = vshrl.u32 %v12509_v21, 16  ;;  %v4794_v27 = vadd.s32 %v4792_v1, %v4790_v18  ;;  %v4859_v11 = vand.u32 2147483647, %v14153_v8  ;;  %v4743_v38 = vsel %vm4737_vm6, %v4740_v5, %v4742_v30 }
 0x634   : > { %v5282_v51 = vor.u32 %v5281_v37, %v5280_v12  ;;  %v5285_v63 = vshll.u32 %v5284_v9, 23  ;;  %v12564_v7 = vadd.s32 %v4789_v6, %v4785_v61  ;;  %v5294_v43 = vsel %vm5171_vm2, %v5293_v47, %v12492_v13  ;;  %v14155_v9 = vld [vmem:[#allocation62_spill] sm:$0xff] }
 0x635   : > { %v4786_v32 = vshrl.u32 %v4781_v42, 16  ;;  %v4795_v56 = vadd.s32 %v4794_v27, %v4784_v20  ;;  %v4866_v40 = vand.u32 8388607, %v4859_v11  ;;  %v4876_v58 = vshll.u32 %v13855_v59, %v12202_v24 }
 0x636   : > { %v5286_v21 = vor.u32 4788187, %v5285_v63  ;;  %vm4799_vm11 = vc.u32 %v12548_v50, %v12564_v7  ;;  %v4877_v15 = vshrl.u32 %v13857_v55, %v12310_v53  ;;  %v4879_v13 = vshll.u32 %v13857_v55, %v12202_v24 }
 0x637   : > { %v4796_v17 = vadd.s32 %v4795_v56, %v4786_v32  ;;  %v4867_v5 = vor.u32 8388608, %v4866_v40  ;;  %v4880_v42 = vshrl.u32 %v13858_v0, %v12310_v53  ;;  %v5289_v48 = vcvt.s32.f32 %v5282_v51 }
 0x638   : > { %v5287_v52 = vand.u32 2147483647, %v5286_v21  ;;  %v4882_v10 = vshll.u32 %v13858_v0, %v12202_v24  ;;  %v4883_v4 = vshrl.u32 %v13803_v46, %v12310_v53  ;;  %v5296_v31 = vsel %vm12556_vm7, 0, %v5294_v43 }
 0x639   : > { %v4800_v30 = vadd.s32 1, %v4796_v17  ;;  %v4878_v16 = vor.u32 %v4877_v15, %v4876_v58  ;;  %v4881_v61 = vor.u32 %v4880_v42, %v4879_v13  ;;  %v4797_v14 = vmul.u32 %v12456_v2, %v4743_v38 }
 0x63a   : > { %v5290_v6 = vmul.f32 %v5289_v48, %v5287_v52  ;;  %v4884_v47 = vor.u32 %v4883_v4, %v4882_v10  ;;  %vm4893_vm6 = vcmp.lt.s32.totalorder %v12187_v33, 3  ;;  %v12591_v45 = vshll.u32 %v13868_v54, %v14154_v39 }
 0x63b   : > { %v4801_v24 = vsel %vm4799_vm11, %v4800_v30, %v4796_v17  ;;  %v4905_v26 = vsel %vm4893_vm6, %v12465_v3, %v12497_v25  ;;  %v12600_v22 = vshll.u32 %v4867_v5, 8  ;;  %v5313_v2 = vadd.s32 3, %v5296_v31 }
 0x63c   : > { %v5291_v57 = vxor.u32 2147483648, %v5290_v6  ;;  %v4802_v19 = vadd.s32 %v4801_v24, %v4797_v14  ;;  %vm4891_vm13 = vcmp.lt.s32.totalorder %v12187_v33, 1  ;;  %vm4892_vm10 = vcmp.lt.s32.totalorder %v12187_v33, 2 }
 0x63d   : > { %v4899_v60 = vsel %vm4891_vm13, %v4878_v16, %v4881_v61  ;;  %v4901_v62 = vsel %vm4893_vm6, %v4884_v47, %v12490_v44  ;;  %v4903_v36 = vsel %vm4891_vm13, %v4881_v61, %v4884_v47  ;;  %v4908_v1 = vand.u32 65535, %v12600_v22 }
 0x63e   : > { %v5292_v3 = vsel %vm5171_vm2, %v5291_v57, %v5290_v6  ;;  %v4803_v25 = vadd.s32 536870912, %v4802_v19  ;;  %v4906_v18 = vsel %vm4892_vm10, %v4903_v36, %v4905_v26  ;;  %v12620_v12 = vshrl.u32 %v12600_v22, 16 }
 0x63f   : > { %v5295_v28 = vsel %vm12556_vm7, %v14141_v49, %v5292_v3  ;;  %v4910_v44 = vand.u32 65535, %v4906_v18  ;;  %v4911_v37 = vshrl.u32 %v4906_v18, 16  ;;  %v4576_v20 = vshrl.u32 %v13868_v54, %v14155_v9 }
 0x640   : > { %v5297_v27 = vmul.f32 %v5295_v28, %v5295_v28  ;;  %v12624_v51 = vshrl.u32 %v4803_v25, 30  ;;  %v4902_v63 = vsel %vm4892_vm10, %v4899_v60, %v4901_v62  ;;  %v4875_v38 = vshrl.u32 %v13855_v59, %v12310_v53 }
 0x641   : > { %v4896_v35 = vsel %vm4894_vm15, %v4884_v47, 2102212464  ;;  %v4913_v43 = vmul.u32 %v4911_v37, %v4908_v1  ;;  %v12633_v32 = vmul.u32 %v4910_v44, %v12620_v12  ;;  %v12635_v21 = vand.u32 3, %v5313_v2 }
 0x642   : > { %v5298_v56 = vmul.f32 -0.001358992, %v5297_v27  ;;  %v5305_v40 = vmul.f32 -0.00019511016, %v5297_v27  ;;  %v4805_v58 = vshll.u32 %v12624_v51, 30  ;;  %v4895_v15 = vsel %vm4891_vm13, %v4875_v38, %v4878_v16 }
 0x643   : > { %v4912_v17 = vmul.u32 %v4910_v44, %v4908_v1  ;;  %v4916_v5 = vshll.u32 %v4913_v43, 16  ;;  %v4933_v13 = vshrl.u32 %v4902_v63, 16  ;;  %v4897_v48 = vsel %vm4893_vm6, %v4881_v61, %v4896_v35 }
 0x644   : > { %v5299_v53 = vadd.f32 0.041655596, %v5298_v56  ;;  %v5306_v42 = vadd.f32 0.008332121, %v5305_v40  ;;  %v12640_v52 = vsub.s32 %v4802_v19, %v4805_v58  ;;  %v4915_v10 = vmul.u32 %v4911_v37, %v12620_v12  ;;  %v14156_v19 = vld [vmem:[#allocation11_spill] sm:$0xff] }
 0x645   : > { %v4918_v4 = vshll.u32 %v12633_v32, 16  ;;  %vm4920_vm15 = vc.u32 %v4912_v17, %v4916_v5  ;;  %v4922_v31 = vadd.s32 %v4916_v5, %v4912_v17  ;;  %v4932_v47 = vand.u32 65535, %v4902_v63 }
 0x646   : > { %v5300_v30 = vmul.f32 %v5299_v53, %v5297_v27  ;;  %v5307_v6 = vmul.f32 %v5306_v42, %v5297_v27  ;;  %vm4807_vm8 = vcmp.lt.s32.totalorder %v12640_v52, 0  ;;  %v4808_v16 = vsub.s32 0, %v12640_v52 }
 0x647   : > { %v4921_v14 = vsel %vm4920_vm15, 1, %v13856_v34  ;;  %vm4924_vm1 = vc.u32 %v4922_v31, %v4918_v4  ;;  %v12649_v24 = vmul.u32 %v4933_v13, %v4908_v1  ;;  %v12653_v60 = vor.u32 %v4576_v20, %v14156_v19 }
 0x648   : > { %v5301_v26 = vadd.f32 -0.4999988, %v5300_v30  ;;  %v5308_v61 = vadd.f32 -0.16666654, %v5307_v6  ;;  %v4809_v57 = vsel %vm4807_vm8, %v4808_v16, %v12640_v52  ;;  %v4923_v2 = vadd.s32 %v4921_v14, %v4915_v10 }
 0x649   : > { %v12657_v62 = vshrl.u32 %v13870_v29, %v14155_v9  ;;  %v4810_v36 = vclz %v4809_v57  ;;  %v4925_v3 = vsel %vm4924_vm1, 1, %v13856_v34  ;;  %vm5315_vm0 = vcmp.lt.s32.totalorder %v12635_v21, 2 }
 0x64a   : > { %v5302_v25 = vmul.f32 %v5301_v26, %v5297_v27  ;;  %v5309_v18 = vmul.f32 %v5308_v61, %v5297_v27  ;;  %vm5316_vm4 = vcmp.eq.s32.totalorder %v12635_v21, 0  ;;  %vm5319_vm2 = vcmp.eq.s32.totalorder %v12635_v21, 2 }
 0x64b   : > { %vm5312_vm5 = vweird.f32 %v14141_v49  ;;  %v4798_v44 = vadd.s32 %v12564_v7, %v12548_v50  ;;  %v7110_v37 = vadd.s32 4294967294, %v4810_v36  ;;  %v12668_v20 = vsel %vm4892_vm10, %v4895_v15, %v4897_v48 }
 0x64c   : > { %v4927_v63 = vadd.s32 %v4925_v3, %v4923_v2  ;;  %v5303_v38 = vadd.f32 1.0, %v5302_v25  ;;  %v5310_v35 = vadd.f32 1.0, %v5309_v18  ;;  %v4936_v27 = vmul.u32 %v4932_v47, %v12620_v12 }
 0x64d   : > { %v4938_v56 = vshll.u32 %v12649_v24, 16  ;;  %vm7111_vm3 = vcmp.lt.s32.totalorder %v7110_v37, 0  ;;  %v4917_v40 = vshrl.u32 %v4913_v43, 16  ;;  %v4919_v58 = vshrl.u32 %v12633_v32, 16 }
 0x64e   : > { %v4934_v17 = vmul.u32 %v4932_v47, %v4908_v1  ;;  %v5311_v5 = vmul.f32 %v5310_v35, %v5295_v28  ;;  %v5320_v53 = vxor.u32 2147483648, %v5303_v38  ;;  %v4813_v50 = vsel %vm7111_vm3, 0, %v7110_v37  ;;  %v14160_v37 = vld [vmem:[#allocation82_spill] sm:$0xff] }
 0x64f   : > { %v4937_v7 = vmul.u32 %v4933_v13, %v12620_v12  ;;  %vm4706_vm9 = vcmp.lt.s32.totalorder %v14142_v41, 0  ;;  %v4814_v33 = vsub.s32 32, %v4813_v50  ;;  %v4818_v15 = vsub.s32 4294967266, %v4813_v50  ;;  %v14157_v13 = vld [vmem:[#allocation92_spill] sm:$0xff] }
 0x650   : > { %v4928_v42 = vadd.s32 %v4927_v63, %v4917_v40  ;;  %vm4942_vm7 = vc.u32 %v4934_v17, %v4938_v56  ;;  %v5317_v48 = vxor.u32 2147483648, %v5311_v5  ;;  %v4940_v10 = vshll.u32 %v4936_v27, 16 }
 0x651   : > { %v4943_v4 = vsel %vm4942_vm7, 1, %v13856_v34  ;;  %v4944_v31 = vadd.s32 %v4938_v56, %v4934_v17  ;;  %v4815_v43 = vshll.u32 %v12640_v52, %v4813_v50  ;;  %v4816_v32 = vshrl.u32 %v4798_v44, %v4814_v33 }
 0x652   : > { %v4819_v1 = vadd.s32 127, %v4818_v15  ;;  %v4945_v28 = vadd.s32 %v4943_v4, %v4937_v7  ;;  %v5318_v30 = vsel %vm5316_vm4, %v5303_v38, %v5317_v48  ;;  %v5321_v12 = vsel %vm5319_vm2, %v5320_v53, %v5311_v5  ;;  %v14161_v38 = vld [vmem:[#allocation71_spill] sm:$0xff]  ;;  %v14164_v4 = vld [vmem:[#allocation18_spill] sm:$0xff] }
 0x653   : > { %vm4946_vm11 = vc.u32 %v4944_v31, %v4940_v10  ;;  %v4394_v6 = vand.u32 2147483647, %v14157_v13  ;;  %v5322_v16 = vsel %vm5315_vm0, %v5318_v30, %v5321_v12  ;;  %vm12686_vm6 = vcmp.le.f32.partialorder %v4704_v23, 0.7853982 }
 0x654   : > { %v4817_v52 = vor.u32 %v4816_v32, %v4815_v43  ;;  %v4820_v47 = vshll.u32 %v4819_v1, 23  ;;  %v4947_v26 = vsel %vm4946_vm11, 1, %v13856_v34  ;;  %v5323_v61 = vsel %vm5312_vm5, nan, %v5322_v16 }
 0x655   : > { %v4828_v57 = vsub.s32 4, %v12624_v51  ;;  %v4939_v2 = vshrl.u32 %v12649_v24, 16  ;;  %v4949_v19 = vadd.s32 %v4947_v26, %v4945_v28  ;;  %6915 = vmatpush.msrb.mxu1 %v5323_v61  ;;  %v12695_v36 = vadd.s32 %v4928_v42, %v4919_v58  ;;  %v14162_v42 = vld [vmem:[#allocation80_spill] sm:$0xff] }
 0x656   : > { %v4821_v21 = vor.u32 4788187, %v4820_v47  ;;  %v4941_v23 = vshrl.u32 %v4936_v27, 16  ;;  %v12697_v3 = vadd.s32 %v4944_v31, %v4940_v10  ;;  %v4824_v25 = vcvt.s32.f32 %v4817_v52  ;;  %v14163_v10 = vld [vmem:[#allocation52_spill] sm:$0xff] }
 0x657   : > { %v4950_v18 = vadd.s32 %v4949_v19, %v4939_v2  ;;  %v4401_v44 = vand.u32 8388607, %v4394_v6  ;;  %v4411_v49 = vshll.u32 %v13855_v59, %v14160_v37  ;;  %v4412_v24 = vshrl.u32 %v13857_v55, %v14161_v38  ;;  %v14166_v2 = vld [vmem:[#allocation46_spill] sm:$0xff] }
 0x658   : > { %v4822_v63 = vand.u32 2147483647, %v4821_v21  ;;  %v4414_v35 = vshll.u32 %v13857_v55, %v14160_v37  ;;  %v4415_v27 = vshrl.u32 %v13858_v0, %v14161_v38  ;;  %v4829_v56 = vsel %vm4706_vm9, %v4828_v57, %v12624_v51 }
 0x659   : > { %v4951_v40 = vadd.s32 %v4950_v18, %v4941_v23  ;;  %v4417_v58 = vshll.u32 %v13858_v0, %v14160_v37  ;;  %v4418_v17 = vshrl.u32 %v13803_v46, %v14161_v38  ;;  %vm4954_vm13 = vc.u32 %v12695_v36, %v12697_v3 }
 0x65a   : > { %v4825_v5 = vmul.f32 %v4824_v25, %v4822_v63  ;;  %v12718_v53 = vor.u32 %v4412_v24, %v4411_v49  ;;  %v12720_v50 = vor.u32 %v4415_v27, %v4414_v35  ;;  %v4402_v33 = vor.u32 8388608, %v4401_v44  ;;  %v14167_v35 = vld [vmem:[#allocation63_spill] sm:$0xff] }
 0x65b   : > { %v4955_v7 = vadd.s32 1, %v4951_v40  ;;  %v4419_v15 = vor.u32 %v4418_v17, %v4417_v58  ;;  %vm4428_vm10 = vcmp.lt.s32.totalorder %v14162_v42, 3  ;;  %v4952_v48 = vmul.u32 %v12600_v22, %v12668_v20 }
 0x65c   : > { %v4826_v51 = vxor.u32 2147483648, %v4825_v5  ;;  %vm4426_vm15 = vcmp.lt.s32.totalorder %v14162_v42, 1  ;;  %v4440_v31 = vsel %vm4428_vm10, %v14164_v4, %v14163_v10  ;;  %v4580_v43 = vor.u32 %v12657_v62, %v12591_v45  ;;  %v14165_v62 = vld [vmem:[#allocation65_spill] sm:$0xff] }
 0x65d   : > { %v4831_v32 = vsel %vm12686_vm6, 0, %v4829_v56  ;;  %v4956_v1 = vsel %vm4954_vm13, %v4955_v7, %v4951_v40  ;;  %v4438_v28 = vsel %vm4426_vm15, %v12720_v50, %v4419_v15  ;;  %vm4427_vm8 = vcmp.lt.s32.totalorder %v14162_v42, 2 }
 0x65e   : > { %v4827_v22 = vsel %vm4706_vm9, %v4826_v51, %v4825_v5  ;;  %v4957_v20 = vadd.s32 %v4956_v1, %v4952_v48  ;;  %v4434_v30 = vsel %vm4426_vm15, %v12718_v53, %v12720_v50  ;;  %v4436_v12 = vsel %vm4428_vm10, %v4419_v15, %v14165_v62 }
 0x65f   : > { %v12747_v45 = vsel %vm12686_vm6, %v14142_v41, %v4827_v22  ;;  %v4441_v16 = vsel %vm4427_vm8, %v4438_v28, %v4440_v31  ;;  %v12754_v52 = vshll.u32 %v4402_v33, 8  ;;  %vm4584_vm1 = vcmp.lt.s32.totalorder %v14166_v2, 4 }
 0x660   : > { %v4832_v47 = vmul.f32 %v12747_v45, %v12747_v45  ;;  %v4958_v26 = vadd.s32 536870912, %v4957_v20  ;;  %v4445_v61 = vand.u32 65535, %v4441_v16  ;;  %v4446_v57 = vshrl.u32 %v4441_v16, 16 }
 0x661   : > { %v4848_v14 = vadd.s32 3, %v4831_v32  ;;  %v4443_v19 = vand.u32 65535, %v12754_v52  ;;  %v4444_v21 = vshrl.u32 %v12754_v52, 16  ;;  %v4437_v44 = vsel %vm4427_vm8, %v4434_v30, %v4436_v12 }
 0x662   : > { %v4833_v23 = vmul.f32 -0.001358992, %v4832_v47  ;;  %v4840_v25 = vmul.f32 -0.00019511016, %v4832_v47  ;;  %v12761_v18 = vshrl.u32 %v4958_v26, 30  ;;  %v12778_v27 = vshll.u32 %v13803_v46, %v14167_v35 }
 0x663   : > { %v12768_v37 = vsel %vm4584_vm1, %v12653_v60, 920167782  ;;  %v12772_v49 = vsel %vm4584_vm1, %v4580_v43, 1326507024  ;;  %v4448_v63 = vmul.u32 %v4446_v57, %v4443_v19  ;;  %v12774_v24 = vmul.u32 %v4445_v61, %v4444_v21 }
 0x664   : > { %v4834_v56 = vadd.f32 0.041655596, %v4833_v23  ;;  %v4841_v40 = vadd.f32 0.008332121, %v4840_v25  ;;  %v4960_v58 = vshll.u32 %v12761_v18, 30  ;;  %v4849_v17 = vand.u32 3, %v4848_v14 }
 0x665   : > { %v4447_v5 = vmul.u32 %v4445_v61, %v4443_v19  ;;  %v4451_v7 = vshll.u32 %v4448_v63, 16  ;;  %v4468_v33 = vshrl.u32 %v4437_v44, 16  ;;  %v4467_v4 = vand.u32 65535, %v4437_v44 }
 0x666   : > { %v4835_v51 = vmul.f32 %v4834_v56, %v4832_v47  ;;  %v4842_v48 = vmul.f32 %v4841_v40, %v4832_v47  ;;  %v12781_v10 = vsub.s32 %v4957_v20, %v4960_v58  ;;  %v4450_v31 = vmul.u32 %v4446_v57, %v4444_v21 }
 0x667   : > { %v4453_v43 = vshll.u32 %v12774_v24, 16  ;;  %vm4455_vm0 = vc.u32 %v4447_v5, %v4451_v7  ;;  %v4457_v32 = vadd.s32 %v4451_v7, %v4447_v5  ;;  %vm4851_vm2 = vcmp.eq.s32.totalorder %v4849_v17, 0 }
 0x668   : > { %v4836_v1 = vadd.f32 -0.4999988, %v4835_v51  ;;  %v4843_v28 = vadd.f32 -0.16666654, %v4842_v48  ;;  %vm4962_vm4 = vcmp.lt.s32.totalorder %v12781_v10, 0  ;;  %v4963_v22 = vsub.s32 0, %v12781_v10 }
 0x669   : > { %v4431_v30 = vsel %vm4429_vm14, %v4419_v15, 2102212464  ;;  %v4456_v62 = vsel %vm4455_vm0, 1, %v13856_v34  ;;  %vm4459_vm5 = vc.u32 %v4457_v32, %v4453_v43  ;;  %v12789_v20 = vmul.u32 %v4468_v33, %v4443_v19 }
 0x66a   : > { %v4837_v12 = vmul.f32 %v4836_v1, %v4832_v47  ;;  %v4844_v16 = vmul.f32 %v4843_v28, %v4832_v47  ;;  %vm4850_vm3 = vcmp.lt.s32.totalorder %v4849_v17, 2  ;;  %v4964_v26 = vsel %vm4962_vm4, %v4963_v22, %v12781_v10 }
 0x66b   : > { %v4458_v61 = vadd.s32 %v4456_v62, %v4450_v31  ;;  %vm4847_vm9 = vweird.f32 %v14142_v41  ;;  %vm4854_vm7 = vcmp.eq.s32.totalorder %v4849_v17, 2  ;;  %v4965_v57 = vclz %v4964_v26  ;;  %v14170_v26 = vld [vmem:[#allocation83_spill] sm:$0xff] }
 0x66c   : > { %v4410_v14 = vshrl.u32 %v13855_v59, %v14161_v38  ;;  %v4460_v15 = vsel %vm4459_vm5, 1, %v13856_v34  ;;  %v4838_v23 = vadd.f32 1.0, %v4837_v12  ;;  %v4845_v25 = vadd.f32 1.0, %v4844_v16 }
 0x66d   : > { %v4462_v44 = vadd.s32 %v4460_v15, %v4458_v61  ;;  %v4471_v56 = vmul.u32 %v4467_v4, %v4444_v21  ;;  %vm4861_vm14 = vcmp.lt.s32.totalorder %v14153_v8, 0  ;;  %v4953_v47 = vadd.s32 %v12697_v3, %v12695_v36 }
 0x66e   : > { %v7113_v40 = vadd.s32 4294967294, %v4965_v57  ;;  %v4430_v58 = vsel %vm4426_vm15, %v4410_v14, %v12718_v53  ;;  %v4432_v38 = vsel %vm4428_vm10, %v12720_v50, %v4431_v30  ;;  %v4846_v5 = vmul.f32 %v4845_v25, %v12747_v45 }
 0x66f   : > { %v4855_v7 = vxor.u32 2147483648, %v4838_v23  ;;  %v4452_v51 = vshrl.u32 %v4448_v63, 16  ;;  %v4473_v48 = vshll.u32 %v12789_v20, 16  ;;  %v4983_v31 = vsub.s32 4, %v12761_v18 }
 0x670   : > { %vm7114_vm11 = vcmp.lt.s32.totalorder %v7113_v40, 0  ;;  %v4469_v43 = vmul.u32 %v4467_v4, %v4443_v19  ;;  %v4472_v36 = vmul.u32 %v4468_v33, %v4444_v21  ;;  %v4852_v3 = vxor.u32 2147483648, %v4846_v5 }
 0x671   : > { %v4968_v32 = vsel %vm7114_vm11, 0, %v7113_v40  ;;  %v4463_v1 = vadd.s32 %v4462_v44, %v4452_v51  ;;  %v4475_v28 = vshll.u32 %v4471_v56, 16  ;;  %v4856_v53 = vsel %vm4854_vm7, %v4855_v7, %v4846_v5 }
 0x672   : > { %v4969_v22 = vsub.s32 32, %v4968_v32  ;;  %v4973_v62 = vsub.s32 4294967266, %v4968_v32  ;;  %vm4477_vm6 = vc.u32 %v4469_v43, %v4473_v48  ;;  %v4853_v50 = vsel %vm4851_vm2, %v4838_v23, %v4852_v3 }
 0x673   : > { %v4970_v45 = vshll.u32 %v12781_v10, %v4968_v32  ;;  %v4478_v63 = vsel %vm4477_vm6, 1, %v13856_v34  ;;  %v4479_v30 = vadd.s32 %v4473_v48, %v4469_v43  ;;  %v4857_v12 = vsel %vm4850_vm3, %v4853_v50, %v4856_v53 }
 0x674   : > { %v4971_v19 = vshrl.u32 %v4953_v47, %v4969_v22  ;;  %v4974_v21 = vadd.s32 127, %v4973_v62  ;;  %v4480_v33 = vadd.s32 %v4478_v63, %v4472_v36  ;;  %v4858_v4 = vsel %vm4847_vm9, nan, %v4857_v12 }
 0x675   : > { %vm12817_vm13 = vcmp.le.f32.partialorder %v4859_v11, 0.7853982  ;;  %v4433_v10 = vsel %vm4427_vm8, %v4430_v58, %v4432_v38  ;;  %vm4481_vm10 = vc.u32 %v4479_v30, %v4475_v28  ;;  %v4549_v61 = vand.u32 2147483647, %v14170_v26  ;;  %6896 = vmatpush.msrb.mxu0 %v4858_v4 }
 0x676   : > { %v4972_v17 = vor.u32 %v4971_v19, %v4970_v45  ;;  %v4975_v57 = vshll.u32 %v4974_v21, 23  ;;  %v4454_v14 = vshrl.u32 %v12774_v24, 16  ;;  %v4482_v41 = vsel %vm4481_vm10, 1, %v13856_v34 }
 0x677   : > { %v4984_v11 = vsel %vm4861_vm14, %v4983_v31, %v12761_v18  ;;  %v4474_v15 = vshrl.u32 %v12789_v20, 16  ;;  %v4476_v23 = vshrl.u32 %v4471_v56, 16  ;;  %v4484_v25 = vadd.s32 %v4482_v41, %v4480_v33 }
 0x678   : > { %v4976_v42 = vor.u32 4788187, %v4975_v57  ;;  %v4464_v44 = vadd.s32 %v4463_v1, %v4454_v14  ;;  %v4483_v47 = vadd.s32 %v4479_v30, %v4475_v28  ;;  %v4556_v40 = vand.u32 8388607, %v4549_v61  ;;  %v14171_v30 = vld [vmem:[#allocation59_spill] sm:$0xff] }
 0x679   : > { %v4979_v58 = vcvt.s32.f32 %v4972_v17  ;;  %v4485_v38 = vadd.s32 %v4484_v25, %v4474_v15  ;;  %v4566_v24 = vshll.u32 %v13855_v59, %v14154_v39  ;;  %v4567_v5 = vshrl.u32 %v13857_v55, %v14155_v9 }
 0x67a   : > { %v4977_v7 = vand.u32 2147483647, %v4976_v42  ;;  %v4557_v18 = vor.u32 8388608, %v4556_v40  ;;  %v4569_v20 = vshll.u32 %v13857_v55, %v14154_v39  ;;  %v4570_v56 = vshrl.u32 %v13858_v0, %v14155_v9 }
 0x67b   : > { %v4486_v51 = vadd.s32 %v4485_v38, %v4476_v23  ;;  %v12840_v48 = vor.u32 %v4567_v5, %v4566_v24  ;;  %v4572_v31 = vshll.u32 %v13858_v0, %v14154_v39  ;;  %v4573_v43 = vshrl.u32 %v13803_v46, %v14155_v9 }
 0x67c   : > { %v4980_v36 = vmul.f32 %v4979_v58, %v4977_v7  ;;  %v4487_v3 = vmul.u32 %v12754_v52, %v4433_v10  ;;  %vm4489_vm15 = vc.u32 %v4464_v44, %v4483_v47  ;;  %v12847_v32 = vor.u32 %v4570_v56, %v4569_v20 }
 0x67d   : > { %v4490_v1 = vadd.s32 1, %v4486_v51  ;;  %v4574_v28 = vor.u32 %v4573_v43, %v4572_v31  ;;  %vm4581_vm8 = vcmp.lt.s32.totalorder %v14166_v2, 1  ;;  %vm4583_vm0 = vcmp.lt.s32.totalorder %v14166_v2, 3 }
 0x67e   : > { %v4981_v53 = vxor.u32 2147483648, %v4980_v36  ;;  %v4986_v22 = vsel %vm12817_vm13, 0, %v4984_v11  ;;  %v4589_v39 = vsel %vm4581_vm8, %v12840_v48, %v12847_v32  ;;  %v4595_v52 = vsel %vm4583_vm0, %v12653_v60, %v12772_v49 }
 0x67f   : > { %v4491_v62 = vsel %vm4489_vm15, %v4490_v1, %v4486_v51  ;;  %v4591_v50 = vsel %vm4583_vm0, %v4574_v28, %v12768_v37  ;;  %v4593_v45 = vsel %vm4581_vm8, %v12847_v32, %v4574_v28  ;;  %v12867_v63 = vshll.u32 %v4557_v18, 8 }
 0x680   : > { %v4266_v12 = vshrl.u32 %v13868_v54, %v14171_v30  ;;  %v4982_v19 = vsel %vm4861_vm14, %v4981_v53, %v4980_v36  ;;  %v4492_v21 = vadd.s32 %v4491_v62, %v4487_v3  ;;  %vm4582_vm4 = vcmp.lt.s32.totalorder %v14166_v2, 2 }
 0x681   : > { %v12876_v60 = vshll.u32 %v13868_v54, %v14167_v35  ;;  %v12881_v37 = vsel %vm12817_vm13, %v14153_v8, %v4982_v19  ;;  %v5003_v49 = vadd.s32 3, %v4986_v22  ;;  %v4596_v33 = vsel %vm4582_vm4, %v4593_v45, %v4595_v52 }
 0x682   : > { %v4987_v4 = vmul.f32 %v12881_v37, %v12881_v37  ;;  %v4493_v10 = vadd.s32 536870912, %v4492_v21  ;;  %v12889_v17 = vsel %vm4582_vm4, %v4589_v39, %v4591_v50  ;;  %v4600_v57 = vand.u32 65535, %v4596_v33 }
 0x683   : > { %v12893_v14 = vshrl.u32 %v13870_v29, %v14171_v30  ;;  %v4598_v16 = vand.u32 65535, %v12867_v63  ;;  %v12897_v41 = vshrl.u32 %v12867_v63, 16  ;;  %v4601_v11 = vshrl.u32 %v4596_v33, 16 }
 0x684   : > { %v12900_v15 = vor.u32 %v4266_v12, %v12778_v27  ;;  %v4988_v23 = vmul.f32 -0.001358992, %v4987_v4  ;;  %v4995_v25 = vmul.f32 -0.00019511016, %v4987_v4  ;;  %v4494_v42 = vshrl.u32 %v4493_v10, 30 }
 0x685   : > { %v12902_v40 = vand.u32 3, %v5003_v49  ;;  %v4603_v58 = vmul.u32 %v4601_v11, %v4598_v16  ;;  %v12905_v38 = vmul.u32 %v4600_v57, %v12897_v41  ;;  %v4623_v24 = vshrl.u32 %v12889_v17, 16 }
 0x686   : > { %v4989_v5 = vadd.f32 0.041655596, %v4988_v23  ;;  %v4996_v7 = vadd.f32 0.008332121, %v4995_v25  ;;  %v12908_v18 = vadd.s32 %v4483_v47, %v4464_v44  ;;  %v4495_v20 = vshll.u32 %v4494_v42, 30 }
 0x687   : > { %v4565_v27 = vshrl.u32 %v13855_v59, %v14155_v9  ;;  %v4602_v56 = vmul.u32 %v4600_v57, %v4598_v16  ;;  %v4606_v51 = vshll.u32 %v4603_v58, 16  ;;  %v4622_v31 = vand.u32 65535, %v12889_v17 }
 0x688   : > { %v4990_v43 = vmul.f32 %v4989_v5, %v4987_v4  ;;  %v4997_v36 = vmul.f32 %v4996_v7, %v4987_v4  ;;  %vm4396_vm2 = vcmp.lt.s32.totalorder %v14157_v13, 0  ;;  %v12914_v3 = vsub.s32 %v4492_v21, %v4495_v20 }
 0x689   : > { %v4605_v1 = vmul.u32 %v4601_v11, %v12897_v41  ;;  %vm5009_vm5 = vcmp.eq.s32.totalorder %v12902_v40, 2  ;;  %v4608_v44 = vshll.u32 %v12905_v38, 16  ;;  %vm4610_vm3 = vc.u32 %v4602_v56, %v4606_v51 }
 0x68a   : > { %v4612_v47 = vadd.s32 %v4606_v51, %v4602_v56  ;;  %v12919_v53 = vmul.u32 %v4623_v24, %v4598_v16  ;;  %v4991_v9 = vadd.f32 -0.4999988, %v4990_v43  ;;  %v4998_v22 = vadd.f32 -0.16666654, %v4997_v36 }
 0x68b   : > { %vm4497_vm9 = vcmp.lt.s32.totalorder %v12914_v3, 0  ;;  %v4498_v39 = vsub.s32 0, %v12914_v3  ;;  %vm5006_vm7 = vcmp.eq.s32.totalorder %v12902_v40, 0  ;;  %v4518_v52 = vsub.s32 4, %v4494_v42 }
 0x68c   : > { %v4586_v62 = vsel %vm4584_vm1, %v4574_v28, 2102212464  ;;  %v4611_v50 = vsel %vm4610_vm3, 1, %v13856_v34  ;;  %vm4614_vm14 = vc.u32 %v4612_v47, %v4608_v44  ;;  %v4992_v45 = vmul.f32 %v4991_v9, %v4987_v4  ;;  %v14174_v9 = vld [vmem:[#allocation93_spill] sm:$0xff] }
 0x68d   : > { %v4999_v12 = vmul.f32 %v4998_v22, %v4987_v4  ;;  %vm5005_vm11 = vcmp.lt.s32.totalorder %v12902_v40, 2  ;;  %v4499_v19 = vsel %vm4497_vm9, %v4498_v39, %v12914_v3  ;;  %v4613_v21 = vadd.s32 %v4611_v50, %v4605_v1 }
 0x68e   : > { %vm5002_vm6 = vweird.f32 %v14153_v8  ;;  %v4500_v49 = vclz %v4499_v19  ;;  %v4607_v33 = vshrl.u32 %v4603_v58, 16  ;;  %v4615_v10 = vsel %vm4614_vm14, 1, %v13856_v34 }
 0x68f   : > { %v4626_v17 = vmul.u32 %v4622_v31, %v12897_v41  ;;  %v4993_v57 = vadd.f32 1.0, %v4992_v45  ;;  %v5000_v28 = vadd.f32 1.0, %v4999_v12  ;;  %v4617_v11 = vadd.s32 %v4615_v10, %v4613_v21  ;;  %v14175_v10 = vld [vmem:[#allocation90_spill] sm:$0xff] }
 0x690   : > { %v4628_v23 = vshll.u32 %v12919_v53, 16  ;;  %vm12935_vm1 = vcmp.le.f32.partialorder %v4394_v6, 0.7853982  ;;  %v7104_v25 = vadd.s32 4294967294, %v4500_v49  ;;  %v4585_v58 = vsel %vm4581_vm8, %v4565_v27, %v12840_v48 }
 0x691   : > { %v4587_v5 = vsel %vm4583_vm0, %v12847_v32, %v4586_v62  ;;  %v4624_v7 = vmul.u32 %v4622_v31, %v4598_v16  ;;  %v5001_v20 = vmul.f32 %v5000_v28, %v12881_v37  ;;  %v5010_v56 = vxor.u32 2147483648, %v4993_v57 }
 0x692   : > { %v4609_v51 = vshrl.u32 %v12905_v38, 16  ;;  %v4618_v43 = vadd.s32 %v4617_v11, %v4607_v33  ;;  %vm7105_vm13 = vcmp.lt.s32.totalorder %v7104_v25, 0  ;;  %v4519_v6 = vsel %vm4396_vm2, %v4518_v52, %v4494_v42  ;;  %v14176_v11 = vld [vmem:[#allocation91_spill] sm:$0xff] }
 0x693   : > { %v4627_v36 = vmul.u32 %v4623_v24, %v12897_v41  ;;  %vm4632_vm10 = vc.u32 %v4624_v7, %v4628_v23  ;;  %v5007_v1 = vxor.u32 2147483648, %v5001_v20  ;;  %v5011_v48 = vsel %vm5009_vm5, %v5010_v56, %v5001_v20 }
 0x694   : > { %v4503_v27 = vsel %vm7105_vm13, 0, %v7104_v25  ;;  %v4630_v32 = vshll.u32 %v4626_v17, 16  ;;  %v12952_v37 = vadd.s32 %v4618_v43, %v4609_v51  ;;  %v4633_v38 = vsel %vm4632_vm10, 1, %v13856_v34  ;;  %v14177_v43 = vld [vmem:[#allocation36_spill] sm:$0xff] }
 0x695   : > { %v4504_v16 = vsub.s32 32, %v4503_v27  ;;  %v4508_v31 = vsub.s32 4294967266, %v4503_v27  ;;  %v5008_v44 = vsel %vm5006_vm7, %v4993_v57, %v5007_v1  ;;  %v4634_v47 = vadd.s32 %v4628_v23, %v4624_v7 }
 0x696   : > { %v4635_v42 = vadd.s32 %v4633_v38, %v4627_v36  ;;  %v4084_v41 = vand.u32 2147483647, %v14174_v9  ;;  %v5012_v24 = vsel %vm5005_vm11, %v5008_v44, %v5011_v48  ;;  %v4505_v22 = vshll.u32 %v12914_v3, %v4503_v27 }
 0x697   : > { %v4506_v39 = vshrl.u32 %v12908_v18, %v4504_v16  ;;  %v4509_v52 = vadd.s32 127, %v4508_v31  ;;  %v5013_v62 = vsel %vm5002_vm6, nan, %v5012_v24  ;;  %v4588_v50 = vsel %vm4582_vm4, %v4585_v58, %v4587_v5  ;;  %v14178_v16 = vld [vmem:[#allocation60_spill] sm:$0xff]  ;;  %v14179_v31 = vld [vmem:[#allocation75_spill] sm:$0xff] }
 0x698   : > { %vm4636_vm15 = vc.u32 %v4634_v47, %v4630_v32  ;;  %v12966_v45 = vadd.s32 %v4634_v47, %v4630_v32  ;;  %6916 = vmatpush.msrb.mxu1 %v5013_v62  ;;  %v4091_v3 = vand.u32 8388607, %v4084_v41  ;;  %v4521_v18 = vsel %vm12935_vm1, 0, %v4519_v6  ;;  %v14180_v47 = vld [vmem:[#allocation69_spill] sm:$0xff] }
 0x699   : > { %v4507_v12 = vor.u32 %v4506_v39, %v4505_v22  ;;  %v4510_v19 = vshll.u32 %v4509_v52, 23  ;;  %v4637_v40 = vsel %vm4636_vm15, 1, %v13856_v34  ;;  %v4629_v8 = vshrl.u32 %v12919_v53, 16 }
 0x69a   : > { %v4631_v21 = vshrl.u32 %v4626_v17, 16  ;;  %v4639_v49 = vadd.s32 %v4637_v40, %v4635_v42  ;;  %vm4644_vm8 = vc.u32 %v12952_v37, %v12966_v45  ;;  %v4092_v33 = vor.u32 8388608, %v4091_v3 }
 0x69b   : > { %v4511_v2 = vor.u32 4788187, %v4510_v19  ;;  %v4101_v57 = vshll.u32 %v13855_v59, %v14175_v10  ;;  %v4102_v23 = vshrl.u32 %v13857_v55, %v14176_v11  ;;  %v4104_v25 = vshll.u32 %v13857_v55, %v14175_v10 }
 0x69c   : > { %v4640_v28 = vadd.s32 %v4639_v49, %v4629_v8  ;;  %v4105_v53 = vshrl.u32 %v13858_v0, %v14176_v11  ;;  %v4514_v58 = vcvt.s32.f32 %v4507_v12  ;;  %v4107_v5 = vshll.u32 %v13858_v0, %v14175_v10 }
 0x69d   : > { %v4512_v17 = vand.u32 2147483647, %v4511_v2  ;;  %v4108_v7 = vshrl.u32 %v13803_v46, %v14176_v11  ;;  %v12988_v56 = vor.u32 %v4102_v23, %v4101_v57  ;;  %vm4116_vm0 = vcmp.lt.s32.totalorder %v14177_v43, 1 }
 0x69e   : > { %v4641_v20 = vadd.s32 %v4640_v28, %v4631_v21  ;;  %v12990_v51 = vor.u32 %v4105_v53, %v4104_v25  ;;  %vm4118_vm4 = vcmp.lt.s32.totalorder %v14177_v43, 3  ;;  %v12994_v1 = vshll.u32 %v4092_v33, 8  ;;  %v14182_v21 = vld [vmem:[#allocation10_spill] sm:$0xff] }
 0x69f   : > { %v4515_v6 = vmul.f32 %v4514_v58, %v4512_v17  ;;  %v4109_v36 = vor.u32 %v4108_v7, %v4107_v5  ;;  %v4642_v48 = vmul.u32 %v12867_v63, %v4588_v50  ;;  %v4130_v38 = vsel %vm4118_vm4, %v14179_v31, %v14178_v16 }
 0x6a0   : > { %v4645_v27 = vadd.s32 1, %v4641_v20  ;;  %v4124_v32 = vsel %vm4116_vm0, %v12988_v56, %v12990_v51  ;;  %vm4117_vm5 = vcmp.lt.s32.totalorder %v14177_v43, 2  ;;  %v4270_v24 = vor.u32 %v12893_v14, %v12876_v60 }
 0x6a1   : > { %v4516_v44 = vxor.u32 2147483648, %v4515_v6  ;;  %v4126_v42 = vsel %vm4118_vm4, %v4109_v36, %v14180_v47  ;;  %v4128_v63 = vsel %vm4116_vm0, %v12990_v51, %v4109_v36  ;;  %v4538_v22 = vadd.s32 3, %v4521_v18  ;;  %v14181_v18 = vld [vmem:[#allocation79_spill] sm:$0xff] }
 0x6a2   : > { %v4646_v39 = vsel %vm4644_vm8, %v4645_v27, %v4641_v20  ;;  %v4131_v52 = vsel %vm4117_vm5, %v4128_v63, %v4130_v38  ;;  %v13023_v12 = vsel %vm4117_vm5, %v4124_v32, %v4126_v42  ;;  %v4133_v19 = vand.u32 65535, %v12994_v1 }
 0x6a3   : > { %v4517_v62 = vsel %vm4396_vm2, %v4516_v44, %v4515_v6  ;;  %v4647_v50 = vadd.s32 %v4646_v39, %v4642_v48  ;;  %v13032_v14 = vshrl.u32 %v12994_v1, 16  ;;  %v4135_v40 = vand.u32 65535, %v4131_v52 }
 0x6a4   : > { %v13029_v60 = vsel %vm12935_vm1, %v14157_v13, %v4517_v62  ;;  %v4136_v3 = vshrl.u32 %v4131_v52, 16  ;;  %v13035_v8 = vshrl.u32 %v14181_v18, 5  ;;  %vm4274_vm2 = vcmp.lt.s32.totalorder %v14182_v21, 4 }
 0x6a5   : > { %v4522_v49 = vmul.f32 %v13029_v60, %v13029_v60  ;;  %v4648_v2 = vadd.s32 536870912, %v4647_v50  ;;  %v13043_v4 = vsel %vm4274_vm2, %v12900_v15, 920167782  ;;  %v13046_v10 = vmul.u32 %v4135_v40, %v13032_v14 }
 0x6a6   : > { %v4138_v33 = vmul.u32 %v4136_v3, %v4133_v19  ;;  %v4158_v57 = vshrl.u32 %v13023_v12, 16  ;;  %v13050_v28 = vand.u32 31, %v14181_v18  ;;  %v13056_v17 = vsel %vm4274_vm2, %v4270_v24, 1326507024 }
 0x6a7   : > { %v4523_v23 = vmul.f32 -0.001358992, %v4522_v49  ;;  %v4530_v25 = vmul.f32 -0.00019511016, %v4522_v49  ;;  %v13052_v53 = vshrl.u32 %v4648_v2, 30  ;;  %v13058_v58 = vand.u32 3, %v4538_v22 }
 0x6a8   : > { %v4137_v5 = vmul.u32 %v4135_v40, %v4133_v19  ;;  %v4141_v7 = vshll.u32 %v4138_v33, 16  ;;  %v13062_v48 = vadd.s32 %v12966_v45, %v12952_v37  ;;  %v4143_v32 = vshll.u32 %v13046_v10, 16 }
 0x6a9   : > { %v4524_v20 = vadd.f32 0.041655596, %v4523_v23  ;;  %v4531_v6 = vadd.f32 0.008332121, %v4530_v25  ;;  %v4650_v27 = vshll.u32 %v13052_v53, 30  ;;  %v13066_v31 = vmul.u32 %v4158_v57, %v4133_v19 }
 0x6aa   : > { %vm4145_vm3 = vc.u32 %v4137_v5, %v4141_v7  ;;  %v4147_v16 = vadd.s32 %v4141_v7, %v4137_v5  ;;  %v4157_v42 = vand.u32 65535, %v13023_v12  ;;  %v4100_v63 = vshrl.u32 %v13855_v59, %v14176_v11 }
 0x6ab   : > { %v4525_v38 = vmul.f32 %v4524_v20, %v4522_v49  ;;  %v4532_v44 = vmul.f32 %v4531_v6, %v4522_v49  ;;  %v13068_v47 = vsub.s32 %v4647_v50, %v4650_v27  ;;  %v4140_v37 = vmul.u32 %v4136_v3, %v13032_v14 }
 0x6ac   : > { %v4146_v45 = vsel %vm4145_vm3, 1, %v13856_v34  ;;  %vm4149_vm9 = vc.u32 %v4147_v16, %v4143_v32  ;;  %vm4544_vm7 = vcmp.eq.s32.totalorder %v13058_v58, 2  ;;  %vm4541_vm11 = vcmp.eq.s32.totalorder %v13058_v58, 0 }
 0x6ad   : > { %v4526_v24 = vadd.f32 -0.4999988, %v4525_v38  ;;  %v4533_v22 = vadd.f32 -0.16666654, %v4532_v44  ;;  %vm4652_vm14 = vcmp.lt.s32.totalorder %v13068_v47, 0  ;;  %v4653_v39 = vsub.s32 0, %v13068_v47 }
 0x6ae   : > { %v4121_v52 = vsel %vm4119_vm12, %v4109_v36, 2102212464  ;;  %v4148_v62 = vadd.s32 %v4146_v45, %v4140_v37  ;;  %v4150_v11 = vsel %vm4149_vm9, 1, %v13856_v34  ;;  %v4163_v50 = vshll.u32 %v13066_v31, 16 }
 0x6af   : > { %v4527_v12 = vmul.f32 %v4526_v24, %v4522_v49  ;;  %v4534_v40 = vmul.f32 %v4533_v22, %v4522_v49  ;;  %vm4540_vm6 = vcmp.lt.s32.totalorder %v13058_v58, 2  ;;  %v4654_v3 = vsel %vm4652_vm14, %v4653_v39, %v13068_v47 }
 0x6b0   : > { %v4159_v18 = vmul.u32 %v4157_v42, %v4133_v19  ;;  %vm4537_vm1 = vweird.f32 %v14157_v13  ;;  %v4655_v2 = vclz %v4654_v3  ;;  %v4120_v23 = vsel %vm4116_vm0, %v4100_v63, %v12988_v56 }
 0x6b1   : > { %v4152_v36 = vadd.s32 %v4150_v11, %v4148_v62  ;;  %v4161_v25 = vmul.u32 %v4157_v42, %v13032_v14  ;;  %v4528_v5 = vadd.f32 1.0, %v4527_v12  ;;  %v4535_v7 = vadd.f32 1.0, %v4534_v40  ;;  %v14185_v40 = vld [vmem:[#allocation88_spill] sm:$0xff] }
 0x6b2   : > { %v4142_v20 = vshrl.u32 %v4138_v33, 16  ;;  %vm4167_vm12 = vc.u32 %v4159_v18, %v4163_v50  ;;  %vm4551_vm13 = vcmp.lt.s32.totalorder %v14170_v26, 0  ;;  %v7107_v49 = vadd.s32 4294967294, %v4655_v2 }
 0x6b3   : > { %v4122_v19 = vsel %vm4118_vm4, %v12990_v51, %v4121_v52  ;;  %v4144_v6 = vshrl.u32 %v13046_v10, 16  ;;  %v4162_v27 = vmul.u32 %v4158_v57, %v13032_v14  ;;  %v4536_v56 = vmul.f32 %v4535_v7, %v13029_v60 }
 0x6b4   : > { %v4545_v32 = vxor.u32 2147483648, %v4528_v5  ;;  %v4153_v16 = vadd.s32 %v4152_v36, %v4142_v20  ;;  %v4168_v38 = vsel %vm4167_vm12, 1, %v13856_v34  ;;  %vm7108_vm10 = vcmp.lt.s32.totalorder %v7107_v49, 0 }
 0x6b5   : > { %v4165_v33 = vshll.u32 %v4161_v25, 16  ;;  %v4169_v44 = vadd.s32 %v4163_v50, %v4159_v18  ;;  %v4170_v42 = vadd.s32 %v4168_v38, %v4162_v27  ;;  %v4542_v63 = vxor.u32 2147483648, %v4536_v56 }
 0x6b6   : > { %v4658_v37 = vsel %vm7108_vm10, 0, %v7107_v49  ;;  %v4673_v45 = vsub.s32 4, %v13052_v53  ;;  %v4164_v51 = vshrl.u32 %v13066_v31, 16  ;;  %v4546_v10 = vsel %vm4544_vm7, %v4545_v32, %v4536_v56 }
 0x6b7   : > { %v4659_v14 = vsub.s32 32, %v4658_v37  ;;  %v4663_v57 = vsub.s32 4294967266, %v4658_v37  ;;  %vm4171_vm15 = vc.u32 %v4169_v44, %v4165_v33  ;;  %v4543_v60 = vsel %vm4541_vm11, %v4528_v5, %v4542_v63 }
 0x6b8   : > { %v4660_v24 = vshll.u32 %v13068_v47, %v4658_v37  ;;  %v13105_v22 = vadd.s32 %v4153_v16, %v4144_v6  ;;  %v4172_v39 = vsel %vm4171_vm15, 1, %v13856_v34  ;;  %v4547_v52 = vsel %vm4540_vm6, %v4543_v60, %v4546_v10 }
 0x6b9   : > { %v4661_v31 = vshrl.u32 %v13062_v48, %v4659_v14  ;;  %v4664_v62 = vadd.s32 127, %v4663_v57  ;;  %v4174_v11 = vadd.s32 %v4172_v39, %v4170_v42  ;;  %v4548_v50 = vsel %vm4537_vm1, nan, %v4547_v52 }
 0x6ba   : > { %vm13115_vm8 = vcmp.le.f32.partialorder %v4549_v61, 0.7853982  ;;  %v13119_v47 = vadd.s32 %v4169_v44, %v4165_v33  ;;  %v4239_v3 = vand.u32 2147483647, %v14185_v40  ;;  %6897 = vmatpush.msrb.mxu0 %v4548_v50  ;;  %v4166_v2 = vshrl.u32 %v4161_v25, 16 }
 0x6bb   : > { %v4662_v58 = vor.u32 %v4661_v31, %v4660_v24  ;;  %v4665_v18 = vshll.u32 %v4664_v62, 23  ;;  %v4175_v48 = vadd.s32 %v4174_v11, %v4164_v51  ;;  %v4674_v13 = vsel %vm4551_vm13, %v4673_v45, %v13052_v53 }
 0x6bc   : > { %v4123_v36 = vsel %vm4117_vm5, %v4120_v23, %v4122_v19  ;;  %vm4179_vm0 = vc.u32 %v13105_v22, %v13119_v47  ;;  %v4246_v61 = vand.u32 8388607, %v4239_v3  ;;  %v4256_v20 = vshll.u32 %v13855_v59, %v14167_v35 }
 0x6bd   : > { %v4666_v5 = vor.u32 4788187, %v4665_v18  ;;  %v4176_v7 = vadd.s32 %v4175_v48, %v4166_v2  ;;  %v4257_v25 = vshrl.u32 %v13857_v55, %v14171_v30  ;;  %v4669_v49 = vcvt.s32.f32 %v4662_v58 }
 0x6be   : > { %v4247_v6 = vor.u32 8388608, %v4246_v61  ;;  %v4259_v43 = vshll.u32 %v13857_v55, %v14167_v35  ;;  %v4260_v53 = vshrl.u32 %v13858_v0, %v14171_v30  ;;  %v4262_v27 = vshll.u32 %v13858_v0, %v14167_v35 }
 0x6bf   : > { %v4667_v23 = vand.u32 2147483647, %v4666_v5  ;;  %v4180_v19 = vadd.s32 1, %v4176_v7  ;;  %v4263_v56 = vshrl.u32 %v13803_v46, %v14171_v30  ;;  %v4676_v32 = vsel %vm13115_vm8, 0, %v4674_v13 }
 0x6c0   : > { %v4177_v16 = vmul.u32 %v12994_v1, %v4123_v36  ;;  %v4258_v38 = vor.u32 %v4257_v25, %v4256_v20  ;;  %v4261_v33 = vor.u32 %v4260_v53, %v4259_v43  ;;  %vm4273_vm4 = vcmp.lt.s32.totalorder %v14182_v21, 3 }
 0x6c1   : > { %v4670_v44 = vmul.f32 %v4669_v49, %v4667_v23  ;;  %v4181_v42 = vsel %vm4179_vm0, %v4180_v19, %v4176_v7  ;;  %v4264_v63 = vor.u32 %v4263_v56, %v4262_v27  ;;  %vm4271_vm5 = vcmp.lt.s32.totalorder %v14182_v21, 1 }
 0x6c2   : > { %v4182_v37 = vadd.s32 %v4181_v42, %v4177_v16  ;;  %v4285_v35 = vsel %vm4273_vm4, %v12900_v15, %v13056_v17  ;;  %v13155_v45 = vshll.u32 %v4247_v6, 8  ;;  %v13158_v1 = vsub.s32 32, %v13050_v28 }
 0x6c3   : > { %v4671_v51 = vxor.u32 2147483648, %v4670_v44  ;;  %vm4272_vm3 = vcmp.lt.s32.totalorder %v14182_v21, 2  ;;  %v4283_v10 = vsel %vm4271_vm5, %v4261_v33, %v4264_v63  ;;  %v13165_v14 = vshll.u32 %v13803_v46, %v13050_v28 }
 0x6c4   : > { %v4693_v57 = vadd.s32 3, %v4676_v32  ;;  %v4183_v60 = vadd.s32 536870912, %v4182_v37  ;;  %v4286_v15 = vsel %vm4272_vm3, %v4283_v10, %v4285_v35  ;;  %v4279_v24 = vsel %vm4271_vm5, %v4258_v38, %v4261_v33 }
 0x6c5   : > { %v4672_v17 = vsel %vm4551_vm13, %v4671_v51, %v4670_v44  ;;  %v4281_v39 = vsel %vm4273_vm4, %v4264_v63, %v13043_v4  ;;  %v13177_v52 = vand.u32 65535, %v13155_v45  ;;  %v4290_v11 = vand.u32 65535, %v4286_v15 }
 0x6c6   : > { %v4675_v31 = vsel %vm13115_vm8, %v14170_v26, %v4672_v17  ;;  %v13182_v62 = vshrl.u32 %v4183_v60, 30  ;;  %v4291_v50 = vshrl.u32 %v4286_v15, 16  ;;  %v13186_v58 = vshrl.u32 %v13868_v54, %v13158_v1 }
 0x6c7   : > { %v13190_v18 = vshll.u32 %v13868_v54, %v13050_v28  ;;  %v4677_v4 = vmul.f32 %v4675_v31, %v4675_v31  ;;  %v4255_v2 = vshrl.u32 %v13855_v59, %v14171_v30  ;;  %v4276_v12 = vsel %vm4274_vm2, %v4264_v63, 2102212464 }
 0x6c8   : > { %v4185_v48 = vshll.u32 %v13182_v62, 30  ;;  %v4289_v13 = vshrl.u32 %v13155_v45, 16  ;;  %v4293_v36 = vmul.u32 %v4291_v50, %v13177_v52  ;;  %v13199_v7 = vand.u32 3, %v4693_v57 }
 0x6c9   : > { %v4678_v61 = vmul.f32 -0.001358992, %v4677_v4  ;;  %v4685_v5 = vmul.f32 -0.00019511016, %v4677_v4  ;;  %v4282_v54 = vsel %vm4272_vm3, %v4279_v24, %v4281_v39  ;;  %v4275_v30 = vsel %vm4271_vm5, %v4255_v2, %v4258_v38 }
 0x6ca   : > { %v13203_v20 = vsub.s32 %v4182_v37, %v4185_v48  ;;  %v13207_v25 = vmul.u32 %v4290_v11, %v4289_v13  ;;  %v4296_v49 = vshll.u32 %v4293_v36, 16  ;;  %v4277_v53 = vsel %vm4273_vm4, %v4261_v33, %v4276_v12 }
 0x6cb   : > { %v4679_v6 = vadd.f32 0.041655596, %v4678_v61  ;;  %v4686_v43 = vadd.f32 0.008332121, %v4685_v5  ;;  %v4292_v23 = vmul.u32 %v4290_v11, %v13177_v52  ;;  %v4295_v27 = vmul.u32 %v4291_v50, %v4289_v13 }
 0x6cc   : > { %vm4187_vm2 = vcmp.lt.s32.totalorder %v13203_v20, 0  ;;  %v4188_v19 = vsub.s32 0, %v13203_v20  ;;  %v4312_v56 = vand.u32 65535, %v4282_v54  ;;  %v4298_v42 = vshll.u32 %v13207_v25, 16 }
 0x6cd   : > { %v4680_v32 = vmul.f32 %v4679_v6, %v4677_v4  ;;  %v4687_v16 = vmul.f32 %v4686_v43, %v4677_v4  ;;  %vm4300_vm9 = vc.u32 %v4292_v23, %v4296_v49  ;;  %v4302_v38 = vadd.s32 %v4296_v49, %v4292_v23 }
 0x6ce   : > { %v4189_v44 = vsel %vm4187_vm2, %v4188_v19, %v13203_v20  ;;  %v4301_v63 = vsel %vm4300_vm9, 1, %v13856_v34  ;;  %v4313_v37 = vshrl.u32 %v4282_v54, 16  ;;  %v13219_v57 = vshrl.u32 %v13870_v29, %v13158_v1 }
 0x6cf   : > { %v4681_v33 = vadd.f32 -0.4999988, %v4680_v32  ;;  %v4688_v35 = vadd.f32 -0.16666654, %v4687_v16  ;;  %v4190_v51 = vclz %v4189_v44  ;;  %v4303_v10 = vadd.s32 %v4301_v63, %v4295_v27  ;;  %v14186_v16 = vld [vmem:[#allocation89_spill] sm:$0xff] }
 0x6d0   : > { %vm4696_vm7 = vcmp.eq.s32.totalorder %v13199_v7, 0  ;;  %vm4699_vm14 = vcmp.eq.s32.totalorder %v13199_v7, 2  ;;  %vm4304_vm11 = vc.u32 %v4302_v38, %v4298_v42  ;;  %vm4695_vm6 = vcmp.lt.s32.totalorder %v13199_v7, 2 }
 0x6d1   : > { %v4682_v60 = vmul.f32 %v4681_v33, %v4677_v4  ;;  %v4689_v15 = vmul.f32 %v4688_v35, %v4677_v4  ;;  %v7098_v17 = vadd.s32 4294967294, %v4190_v51  ;;  %v4305_v24 = vsel %vm4304_vm11, 1, %v13856_v34 }
 0x6d2   : > { %vm4692_vm1 = vweird.f32 %v14170_v26  ;;  %v4178_v39 = vadd.s32 %v13119_v47, %v13105_v22  ;;  %v13230_v29 = vsel %vm4272_vm3, %v4275_v30, %v4277_v53  ;;  %v4307_v11 = vadd.s32 %v4305_v24, %v4303_v10  ;;  %v14189_v24 = vld [vmem:[#allocation94_spill] sm:$0xff] }
 0x6d3   : > { %v4315_v50 = vmul.u32 %v4313_v37, %v13177_v52  ;;  %v4683_v2 = vadd.f32 1.0, %v4682_v60  ;;  %v4690_v48 = vadd.f32 1.0, %v4689_v15  ;;  %vm7099_vm12 = vcmp.lt.s32.totalorder %v7098_v17, 0 }
 0x6d4   : > { %v4316_v4 = vmul.u32 %v4312_v56, %v4289_v13  ;;  %v4193_v12 = vsel %vm7099_vm12, 0, %v7098_v17  ;;  %v4297_v61 = vshrl.u32 %v4293_v36, 16  ;;  %v4299_v5 = vshrl.u32 %v13207_v25, 16 }
 0x6d5   : > { %v4318_v54 = vshll.u32 %v4315_v50, 16  ;;  %v4691_v49 = vmul.f32 %v4690_v48, %v4675_v31  ;;  %v4700_v6 = vxor.u32 2147483648, %v4683_v2  ;;  %v4194_v43 = vsub.s32 32, %v4193_v12 }
 0x6d6   : > { %v4314_v22 = vmul.u32 %v4312_v56, %v13177_v52  ;;  %v4195_v21 = vshll.u32 %v13203_v20, %v4193_v12  ;;  %v4198_v47 = vsub.s32 4294967266, %v4193_v12  ;;  %v4308_v30 = vadd.s32 %v4307_v11, %v4297_v61 }
 0x6d7   : > { %v4317_v53 = vmul.u32 %v4313_v37, %v4289_v13  ;;  %v4697_v23 = vxor.u32 2147483648, %v4691_v49  ;;  %v4196_v19 = vshrl.u32 %v4178_v39, %v4194_v43  ;;  %v4320_v27 = vshll.u32 %v4316_v4, 16  ;;  %v14190_v39 = vld [vmem:[#allocation85_spill] sm:$0xff] }
 0x6d8   : > { %vm4322_vm13 = vc.u32 %v4314_v22, %v4318_v54  ;;  %v4701_v36 = vsel %vm4699_vm14, %v4700_v6, %v4691_v49  ;;  %vm4086_vm10 = vcmp.lt.s32.totalorder %v14174_v9, 0  ;;  %v4199_v25 = vadd.s32 127, %v4198_v47 }
 0x6d9   : > { %v4323_v31 = vsel %vm4322_vm13, 1, %v13856_v34  ;;  %v4324_v32 = vadd.s32 %v4318_v54, %v4314_v22  ;;  %v4698_v52 = vsel %vm4696_vm7, %v4683_v2, %v4697_v23  ;;  %v4197_v20 = vor.u32 %v4196_v19, %v4195_v21  ;;  %v14192_v19 = vld [vmem:[#allocation77_spill] sm:$0xff] }
 0x6da   : > { %v4325_v56 = vadd.s32 %v4323_v31, %v4317_v53  ;;  %v3774_v13 = vand.u32 2147483647, %v14186_v16  ;;  %v4702_v38 = vsel %vm4695_vm6, %v4698_v52, %v4701_v36  ;;  %v4200_v44 = vshll.u32 %v4199_v25, 23 }
 0x6db   : > { %v4208_v42 = vsub.s32 4, %v13182_v62  ;;  %vm4326_vm15 = vc.u32 %v4324_v32, %v4320_v27  ;;  %v4703_v63 = vsel %vm4692_vm1, nan, %v4702_v38  ;;  %vm13250_vm8 = vcmp.le.f32.partialorder %v4084_v41, 0.7853982 }
 0x6dc   : > { %v13254_v33 = vadd.s32 %v4308_v30, %v4299_v5  ;;  %v4319_v35 = vshrl.u32 %v4315_v50, 16  ;;  %v4327_v51 = vsel %vm4326_vm15, 1, %v13856_v34  ;;  %6917 = vmatpush.msrb.mxu1 %v4703_v63  ;;  %v4201_v7 = vor.u32 4788187, %v4200_v44  ;;  %v14191_v30 = vld [vmem:[#allocation87_spill] sm:$0xff] }
 0x6dd   : > { %v4321_v10 = vshrl.u32 %v4316_v4, 16  ;;  %v13257_v60 = vadd.s32 %v4324_v32, %v4320_v27  ;;  %v4329_v15 = vadd.s32 %v4327_v51, %v4325_v56  ;;  %v4204_v17 = vcvt.s32.f32 %v4197_v20  ;;  %v14193_v27 = vld [vmem:[#allocation24_spill] sm:$0xff] }
 0x6de   : > { %v3781_v26 = vand.u32 8388607, %v3774_v13  ;;  %v3791_v41 = vshll.u32 %v13855_v59, %v14189_v24  ;;  %v3792_v11 = vshrl.u32 %v13857_v55, %v14190_v39  ;;  %v4202_v2 = vand.u32 2147483647, %v4201_v7 }
 0x6df   : > { %v4330_v50 = vadd.s32 %v4329_v15, %v4319_v35  ;;  %v3794_v48 = vshll.u32 %v13857_v55, %v14189_v24  ;;  %v3795_v4 = vshrl.u32 %v13858_v0, %v14190_v39  ;;  %v3797_v5 = vshll.u32 %v13858_v0, %v14189_v24 }
 0x6e0   : > { %v3782_v12 = vor.u32 8388608, %v3781_v26  ;;  %v13269_v61 = vor.u32 %v3792_v11, %v3791_v41  ;;  %v3798_v54 = vshrl.u32 %v13803_v46, %v14190_v39  ;;  %v4205_v49 = vmul.f32 %v4204_v17, %v4202_v2 }
 0x6e1   : > { %v4331_v6 = vadd.s32 %v4330_v50, %v4321_v10  ;;  %v4332_v43 = vmul.u32 %v13155_v45, %v13230_v29  ;;  %v13277_v22 = vor.u32 %v3795_v4, %v3794_v48  ;;  %v4209_v21 = vsel %vm4086_vm10, %v4208_v42, %v13182_v62  ;;  %v14194_v29 = vld [vmem:[#allocation84_spill] sm:$0xff] }
 0x6e2   : > { %vm4334_vm0 = vc.u32 %v13254_v33, %v13257_v60  ;;  %v13284_v47 = vor.u32 %v3798_v54, %v3797_v5  ;;  %vm3808_vm4 = vcmp.lt.s32.totalorder %v14191_v30, 3  ;;  %v4206_v53 = vxor.u32 2147483648, %v4205_v49 }
 0x6e3   : > { %v4335_v23 = vadd.s32 1, %v4331_v6  ;;  %vm3806_vm5 = vcmp.lt.s32.totalorder %v14191_v30, 1  ;;  %v3820_v45 = vsel %vm3808_vm4, %v14193_v27, %v14192_v19  ;;  %v13304_v31 = vshll.u32 %v3782_v12, 8 }
 0x6e4   : > { %v3814_v62 = vsel %vm3806_vm5, %v13269_v61, %v13277_v22  ;;  %v3816_v36 = vsel %vm3808_vm4, %v13284_v47, %v14194_v29  ;;  %v3818_v25 = vsel %vm3806_vm5, %v13277_v22, %v13284_v47  ;;  %v4207_v32 = vsel %vm4086_vm10, %v4206_v53, %v4205_v49 }
 0x6e5   : > { %v4211_v52 = vsel %vm13250_vm8, 0, %v4209_v21  ;;  %v4336_v20 = vsel %vm4334_vm0, %v4335_v23, %v4331_v6  ;;  %vm3807_vm3 = vcmp.lt.s32.totalorder %v14191_v30, 2  ;;  %v13313_v56 = vor.u32 %v13186_v58, %v13165_v14 }
 0x6e6   : > { %v4210_v38 = vsel %vm13250_vm8, %v14174_v9, %v4207_v32  ;;  %v4337_v44 = vadd.s32 %v4336_v20, %v4332_v43  ;;  %v3821_v42 = vsel %vm3807_vm3, %v3818_v25, %v3820_v45  ;;  %v3960_v63 = vor.u32 %v13219_v57, %v13190_v18 }
 0x6e7   : > { %v4212_v35 = vmul.f32 %v4210_v38, %v4210_v38  ;;  %v13324_v51 = vsel %vm3807_vm3, %v3814_v62, %v3816_v36  ;;  %v3825_v7 = vand.u32 65535, %v3821_v42  ;;  %v4228_v10 = vadd.s32 3, %v4211_v52 }
 0x6e8   : > { %v4338_v14 = vadd.s32 536870912, %v4337_v44  ;;  %v3823_v58 = vand.u32 65535, %v13304_v31  ;;  %v3826_v15 = vshrl.u32 %v3821_v42, 16  ;;  %vm3964_vm2 = vcmp.lt.s32.totalorder %v13035_v8, 4 }
 0x6e9   : > { %v4213_v37 = vmul.f32 -0.001358992, %v4212_v35  ;;  %v4220_v17 = vmul.f32 -0.00019511016, %v4212_v35  ;;  %v3824_v26 = vshrl.u32 %v13304_v31, 16  ;;  %v3848_v41 = vshrl.u32 %v13324_v51, 16 }
 0x6ea   : > { %v13332_v18 = vsel %vm3964_vm2, %v13313_v56, 920167782  ;;  %v13334_v57 = vshrl.u32 %v4338_v14, 30  ;;  %v3828_v24 = vmul.u32 %v3826_v15, %v3823_v58  ;;  %v13339_v11 = vsel %vm3964_vm2, %v3960_v63, 1326507024 }
 0x6eb   : > { %v4214_v2 = vadd.f32 0.041655596, %v4213_v37  ;;  %v4221_v50 = vadd.f32 0.008332121, %v4220_v17  ;;  %v3829_v48 = vmul.u32 %v3825_v7, %v3824_v26  ;;  %v4229_v4 = vand.u32 3, %v4228_v10 }
 0x6ec   : > { %v4340_v12 = vshll.u32 %v13334_v57, 30  ;;  %v3827_v5 = vmul.u32 %v3825_v7, %v3823_v58  ;;  %v3831_v54 = vshll.u32 %v3828_v24, 16  ;;  %v3830_v43 = vmul.u32 %v3826_v15, %v3824_v26 }
 0x6ed   : > { %v4215_v49 = vmul.f32 %v4214_v2, %v4212_v35  ;;  %v4222_v6 = vmul.f32 %v4221_v50, %v4212_v35  ;;  %v3847_v21 = vand.u32 65535, %v13324_v51  ;;  %v13345_v19 = vmul.u32 %v3848_v41, %v3823_v58 }
 0x6ee   : > { %v13343_v53 = vsub.s32 %v4337_v44, %v4340_v12  ;;  %vm3835_vm9 = vc.u32 %v3827_v5, %v3831_v54  ;;  %v3837_v23 = vadd.s32 %v3831_v54, %v3827_v5  ;;  %v3833_v62 = vshll.u32 %v3829_v48, 16 }
 0x6ef   : > { %v4216_v27 = vadd.f32 -0.4999988, %v4215_v49  ;;  %v4223_v45 = vadd.f32 -0.16666654, %v4222_v6  ;;  %v3836_v29 = vsel %vm3835_vm9, 1, %v13856_v34  ;;  %vm4231_vm7 = vcmp.eq.s32.totalorder %v4229_v4, 0 }
 0x6f0   : > { %vm4234_vm14 = vcmp.eq.s32.totalorder %v4229_v4, 2  ;;  %vm4342_vm11 = vcmp.lt.s32.totalorder %v13343_v53, 0  ;;  %v4343_v36 = vsub.s32 0, %v13343_v53  ;;  %v3838_v25 = vadd.s32 %v3836_v29, %v3830_v43 }
 0x6f1   : > { %v4217_v32 = vmul.f32 %v4216_v27, %v4212_v35  ;;  %v4224_v52 = vmul.f32 %v4223_v45, %v4212_v35  ;;  %vm4230_vm6 = vcmp.lt.s32.totalorder %v4229_v4, 2  ;;  %v3790_v20 = vshrl.u32 %v13855_v59, %v14190_v39  ;;  %v14196_v4 = vld [vmem:[#allocation86_spill] sm:$0xff] }
 0x6f2   : > { %vm3839_vm1 = vc.u32 %v3837_v23, %v3833_v62  ;;  %vm4227_vm12 = vweird.f32 %v14174_v9  ;;  %v4344_v44 = vsel %vm4342_vm11, %v4343_v36, %v13343_v53  ;;  %v3851_v63 = vmul.u32 %v3847_v21, %v3824_v26 }
 0x6f3   : > { %v3840_v42 = vsel %vm3839_vm1, 1, %v13856_v34  ;;  %v3853_v51 = vshll.u32 %v13345_v19, 16  ;;  %v4218_v7 = vadd.f32 1.0, %v4217_v32  ;;  %v4225_v10 = vadd.f32 1.0, %v4224_v52 }
 0x6f4   : > { %v4345_v14 = vclz %v4344_v44  ;;  %v3842_v15 = vadd.s32 %v3840_v42, %v3838_v25  ;;  %v4333_v35 = vadd.s32 %v13257_v60, %v13254_v33  ;;  %vm14195_vm13 = vcmp.lt.s32.totalorder %v14191_v30, 4 }
 0x6f5   : > { %v3811_v39 = vsel %vm14195_vm13, %v13284_v47, 2102212464  ;;  %v3832_v37 = vshrl.u32 %v3828_v24, 16  ;;  %v3849_v17 = vmul.u32 %v3847_v21, %v3823_v58  ;;  %v4226_v2 = vmul.f32 %v4225_v10, %v4210_v38 }
 0x6f6   : > { %v4235_v50 = vxor.u32 2147483648, %v4218_v7  ;;  %v7101_v12 = vadd.s32 4294967294, %v4345_v14  ;;  %v3810_v5 = vsel %vm3806_vm5, %v3790_v20, %v13269_v61  ;;  %v3855_v49 = vshll.u32 %v3851_v63, 16 }
 0x6f7   : > { %v3843_v54 = vadd.s32 %v3842_v15, %v3832_v37  ;;  %vm3857_vm10 = vc.u32 %v3849_v17, %v3853_v51  ;;  %v3859_v6 = vadd.s32 %v3853_v51, %v3849_v17  ;;  %v4232_v43 = vxor.u32 2147483648, %v4226_v2 }
 0x6f8   : > { %vm7102_vm15 = vcmp.lt.s32.totalorder %v7101_v12, 0  ;;  %v3812_v33 = vsel %vm3808_vm4, %v13277_v22, %v3811_v39  ;;  %v3834_v60 = vshrl.u32 %v3829_v48, 16  ;;  %v3852_v58 = vmul.u32 %v3848_v41, %v3824_v26 }
 0x6f9   : > { %v4348_v47 = vsel %vm7102_vm15, 0, %v7101_v12  ;;  %v3858_v38 = vsel %vm3857_vm10, 1, %v13856_v34  ;;  %vm3861_vm8 = vc.u32 %v3859_v6, %v3855_v49  ;;  %v4233_v24 = vsel %vm4231_vm7, %v4218_v7, %v4232_v43 }
 0x6fa   : > { %v4236_v61 = vsel %vm4234_vm14, %v4235_v50, %v4226_v2  ;;  %v4349_v21 = vsub.s32 32, %v4348_v47  ;;  %v4353_v23 = vsub.s32 4294967266, %v4348_v47  ;;  %v13371_v45 = vadd.s32 %v3843_v54, %v3834_v60 }
 0x6fb   : > { %v4237_v27 = vsel %vm4230_vm6, %v4233_v24, %v4236_v61  ;;  %v3860_v62 = vadd.s32 %v3858_v38, %v3852_v58  ;;  %v3862_v29 = vsel %vm3861_vm8, 1, %v13856_v34  ;;  %v4350_v26 = vshll.u32 %v13343_v53, %v4348_v47 }
 0x6fc   : > { %v4238_v22 = vsel %vm4227_vm12, nan, %v4237_v27  ;;  %v4351_v41 = vshrl.u32 %v4333_v35, %v4349_v21  ;;  %v4354_v48 = vadd.s32 127, %v4353_v23  ;;  %vm4241_vm0 = vcmp.lt.s32.totalorder %v14185_v40, 0 }
 0x6fd   : > { %6898 = vmatpush.msrb.mxu0 %v4238_v22  ;;  %v3854_v36 = vshrl.u32 %v13345_v19, 16  ;;  %v3864_v25 = vadd.s32 %v3862_v29, %v3860_v62  ;;  %v3929_v32 = vand.u32 2147483647, %v14196_v4  ;;  %v3813_v44 = vsel %vm3807_vm3, %v3810_v5, %v3812_v33 }
 0x6fe   : > { %v4352_v52 = vor.u32 %v4351_v41, %v4350_v26  ;;  %v4355_v20 = vshll.u32 %v4354_v48, 23  ;;  %v13382_v42 = vadd.s32 %v3859_v6, %v3855_v49  ;;  %v4363_v9 = vsub.s32 4, %v13334_v57 }
 0x6ff   : > { %v3856_v53 = vshrl.u32 %v3851_v63, 16  ;;  %v3865_v51 = vadd.s32 %v3864_v25, %v3854_v36  ;;  %v3936_v7 = vand.u32 8388607, %v3929_v32  ;;  %v3946_v19 = vshll.u32 %v13855_v59, %v13050_v28 }
 0x700   : > { %v4356_v10 = vor.u32 4788187, %v4355_v20  ;;  %vm3869_vm4 = vc.u32 %v13371_v45, %v13382_v42  ;;  %v3947_v30 = vshrl.u32 %v13857_v55, %v13158_v1  ;;  %v3949_v35 = vshll.u32 %v13857_v55, %v13050_v28 }
 0x701   : > { %v3866_v14 = vadd.s32 %v3865_v51, %v3856_v53  ;;  %v3937_v15 = vor.u32 8388608, %v3936_v7  ;;  %v3950_v63 = vshrl.u32 %v13858_v0, %v13158_v1  ;;  %v4359_v37 = vcvt.s32.f32 %v4352_v52 }
 0x702   : > { %v4357_v39 = vand.u32 2147483647, %v4356_v10  ;;  %v3952_v17 = vshll.u32 %v13858_v0, %v13050_v28  ;;  %v3953_v2 = vshrl.u32 %v13803_v46, %v13158_v1  ;;  %v4364_v50 = vsel %vm4241_vm0, %v4363_v9, %v13334_v57 }
 0x703   : > { %v3870_v12 = vadd.s32 1, %v3866_v14  ;;  %v13404_v5 = vor.u32 %v3947_v30, %v3946_v19  ;;  %v13406_v54 = vor.u32 %v3950_v63, %v3949_v35  ;;  %v3867_v49 = vmul.u32 %v13304_v31, %v3813_v44 }
 0x704   : > { %v4360_v55 = vmul.f32 %v4359_v37, %v4357_v39  ;;  %v13409_v6 = vor.u32 %v3953_v2, %v3952_v17  ;;  %vm3963_vm5 = vcmp.lt.s32.totalorder %v13035_v8, 3  ;;  %vm13414_vm3 = vcmp.le.f32.partialorder %v4239_v3, 0.7853982 }
 0x705   : > { %v3871_v0 = vsel %vm3869_vm4, %v3870_v12, %v3866_v14  ;;  %v3975_v28 = vsel %vm3963_vm5, %v13313_v56, %v13339_v11  ;;  %v13425_v31 = vshll.u32 %v3937_v15, 8  ;;  %v4366_v43 = vsel %vm13414_vm3, 0, %v4364_v50 }
 0x706   : > { %v4361_v57 = vxor.u32 2147483648, %v4360_v55  ;;  %v3872_v33 = vadd.s32 %v3871_v0, %v3867_v49  ;;  %vm3961_vm9 = vcmp.lt.s32.totalorder %v13035_v8, 1  ;;  %vm3962_vm7 = vcmp.lt.s32.totalorder %v13035_v8, 2 }
 0x707   : > { %v3969_v3 = vsel %vm3961_vm9, %v13404_v5, %v13406_v54  ;;  %v3971_v56 = vsel %vm3963_vm5, %v13409_v6, %v13332_v18  ;;  %v3973_v11 = vsel %vm3961_vm9, %v13406_v54, %v13409_v6  ;;  %v3978_v38 = vand.u32 65535, %v13425_v31 }
 0x708   : > { %v4362_v60 = vsel %vm4241_vm0, %v4361_v57, %v4360_v55  ;;  %v3873_v47 = vadd.s32 536870912, %v3872_v33  ;;  %v3976_v58 = vsel %vm3962_vm7, %v3973_v11, %v3975_v28  ;;  %v3979_v18 = vshrl.u32 %v13425_v31, 16 }
 0x709   : > { %v4365_v24 = vsel %vm13414_vm3, %v14185_v40, %v4362_v60  ;;  %v3980_v61 = vand.u32 65535, %v3976_v58  ;;  %v3981_v21 = vshrl.u32 %v3976_v58, 16  ;;  %v4383_v27 = vadd.s32 3, %v4366_v43 }
 0x70a   : > { %v4367_v23 = vmul.f32 %v4365_v24, %v4365_v24  ;;  %v13452_v62 = vshrl.u32 %v3873_v47, 30  ;;  %v3972_v29 = vsel %vm3962_vm7, %v3969_v3, %v3971_v56  ;;  %vm4382_vm10 = vweird.f32 %v14185_v40 }
 0x70b   : > { %v3983_v22 = vmul.u32 %v3981_v21, %v3978_v38  ;;  %v13456_v26 = vmul.u32 %v3980_v61, %v3979_v18  ;;  %v3982_v25 = vmul.u32 %v3980_v61, %v3978_v38  ;;  %v4003_v20 = vshrl.u32 %v3972_v29, 16 }
 0x70c   : > { %v4368_v41 = vmul.f32 -0.001358992, %v4367_v23  ;;  %v4375_v48 = vmul.f32 -0.00019511016, %v4367_v23  ;;  %v3875_v36 = vshll.u32 %v13452_v62, 30  ;;  %v4384_v53 = vand.u32 3, %v4383_v27 }
 0x70d   : > { %v3986_v52 = vshll.u32 %v3983_v22, 16  ;;  %v3985_v7 = vmul.u32 %v3981_v21, %v3979_v18  ;;  %v3988_v10 = vshll.u32 %v13456_v26, 16  ;;  %v4002_v63 = vand.u32 65535, %v3972_v29 }
 0x70e   : > { %v4369_v44 = vadd.f32 0.041655596, %v4368_v41  ;;  %v4376_v9 = vadd.f32 0.008332121, %v4375_v48  ;;  %v3876_v51 = vsub.s32 %v3872_v33, %v3875_v36  ;;  %v4005_v39 = vmul.u32 %v4003_v20, %v3978_v38 }
 0x70f   : > { %vm3990_vm14 = vc.u32 %v3982_v25, %v3986_v52  ;;  %v3992_v19 = vadd.s32 %v3986_v52, %v3982_v25  ;;  %vm4385_vm1 = vcmp.lt.s32.totalorder %v4384_v53, 2  ;;  %vm4386_vm12 = vcmp.eq.s32.totalorder %v4384_v53, 0 }
 0x710   : > { %v4370_v30 = vmul.f32 %v4369_v44, %v4367_v23  ;;  %v4377_v14 = vmul.f32 %v4376_v9, %v4367_v23  ;;  %vm3877_vm11 = vcmp.lt.s32.totalorder %v3876_v51, 0  ;;  %v3878_v15 = vsub.s32 0, %v3876_v51 }
 0x711   : > { %v3991_v35 = vsel %vm3990_vm14, 1, %v13856_v34  ;;  %vm3994_vm6 = vc.u32 %v3992_v19, %v3988_v10  ;;  %vm4389_vm13 = vcmp.eq.s32.totalorder %v4384_v53, 2  ;;  %v3868_v0 = vadd.s32 %v13382_v42, %v13371_v45 }
 0x712   : > { %v4371_v37 = vadd.f32 -0.4999988, %v4370_v30  ;;  %v4378_v17 = vadd.f32 -0.16666654, %v4377_v14  ;;  %v3879_v2 = vsel %vm3877_vm11, %v3878_v15, %v3876_v51  ;;  %v3993_v50 = vadd.s32 %v3991_v35, %v3985_v7 }
 0x713   : > { %v3880_v12 = vclz %v3879_v2  ;;  %v3995_v55 = vsel %vm3994_vm6, 1, %v13856_v34  ;;  %v3945_v57 = vshrl.u32 %v13855_v59, %v13158_v1  ;;  %v4006_v56 = vmul.u32 %v4002_v63, %v3979_v18 }
 0x714   : > { %v4372_v49 = vmul.f32 %v4371_v37, %v4367_v23  ;;  %v4379_v46 = vmul.f32 %v4378_v17, %v4367_v23  ;;  %v3997_v43 = vadd.s32 %v3995_v55, %v3993_v50  ;;  %v4008_v11 = vshll.u32 %v4005_v39, 16 }
 0x715   : > { %v7092_v28 = vadd.s32 4294967294, %v3880_v12  ;;  %v3966_v60 = vsel %vm3964_vm2, %v13409_v6, 2102212464  ;;  %v3987_v47 = vshrl.u32 %v3983_v22, 16  ;;  %v4004_v58 = vmul.u32 %v4002_v63, %v3978_v38 }
 0x716   : > { %v4373_v33 = vadd.f32 1.0, %v4372_v49  ;;  %v4380_v3 = vadd.f32 1.0, %v4379_v46  ;;  %v4007_v45 = vmul.u32 %v4003_v20, %v3979_v18  ;;  %v4010_v1 = vshll.u32 %v4006_v56, 16 }
 0x717   : > { %vm7093_vm15 = vcmp.lt.s32.totalorder %v7092_v28, 0  ;;  %v3998_v29 = vadd.s32 %v3997_v43, %v3987_v47  ;;  %vm4012_vm8 = vc.u32 %v4004_v58, %v4008_v11  ;;  %v4014_v48 = vadd.s32 %v4008_v11, %v4004_v58 }
 0x718   : > { %v4381_v61 = vmul.f32 %v4380_v3, %v4365_v24  ;;  %v4390_v21 = vxor.u32 2147483648, %v4373_v33  ;;  %v3883_v23 = vsel %vm7093_vm15, 0, %v7092_v28  ;;  %v4013_v41 = vsel %vm4012_vm8, 1, %v13856_v34 }
 0x719   : > { %v3884_v42 = vsub.s32 32, %v3883_v23  ;;  %v3888_v27 = vsub.s32 4294967266, %v3883_v23  ;;  %v3885_v36 = vshll.u32 %v3876_v51, %v3883_v23  ;;  %v4015_v44 = vadd.s32 %v4013_v41, %v4007_v45 }
 0x71a   : > { %v4387_v59 = vxor.u32 2147483648, %v4381_v61  ;;  %v4391_v38 = vsel %vm4389_vm13, %v4390_v21, %v4381_v61  ;;  %v3989_v24 = vshrl.u32 %v13456_v26, 16  ;;  %vm4016_vm2 = vc.u32 %v4014_v48, %v4010_v1 }
 0x71b   : > { %v3886_v25 = vshrl.u32 %v3868_v0, %v3884_v42  ;;  %v3889_v52 = vadd.s32 127, %v3888_v27  ;;  %v4017_v9 = vsel %vm4016_vm2, 1, %v13856_v34  ;;  %v4009_v51 = vshrl.u32 %v4005_v39, 16 }
 0x71c   : > { %v4388_v6 = vsel %vm4386_vm12, %v4373_v33, %v4387_v59  ;;  %v4019_v10 = vadd.s32 %v4017_v9, %v4015_v44  ;;  %v3965_v30 = vsel %vm3961_vm9, %v3945_v57, %v13404_v5  ;;  %v3967_v26 = vsel %vm3963_vm5, %v13406_v54, %v3966_v60 }
 0x71d   : > { %v4392_v18 = vsel %vm4385_vm1, %v4388_v6, %v4391_v38  ;;  %v3887_v22 = vor.u32 %v3886_v25, %v3885_v36  ;;  %v3890_v20 = vshll.u32 %v3889_v52, 23  ;;  %v3999_v53 = vadd.s32 %v3998_v29, %v3989_v24 }
 0x71e   : > { %v4393_v7 = vsel %vm4382_vm10, nan, %v4392_v18  ;;  %v4011_v14 = vshrl.u32 %v4006_v56, 16  ;;  %v4020_v15 = vadd.s32 %v4019_v10, %v4009_v51  ;;  %v4018_v63 = vadd.s32 %v4014_v48, %v4010_v1 }
 0x71f   : > { %6918 = vmatpush.msrb.mxu1 %v4393_v7  ;;  %v3891_v19 = vor.u32 4788187, %v3890_v20  ;;  %v3894_v34 = vcvt.s32.f32 %v3887_v22  ;;  %v3968_v40 = vsel %vm3962_vm7, %v3965_v30, %v3967_v26  ;;  %vm3776_vm4 = vcmp.lt.s32.totalorder %v14186_v16, 0  ;;  %v6874_v30 = vld [vmem:[%s13525_s5] sm:$0xff] }
 0x720   : > { %v4021_v39 = vadd.s32 %v4020_v15, %v4011_v14  ;;  %vm4024_vm0 = vc.u32 %v3999_v53, %v4018_v63  ;;  %v4022_v5 = vmul.u32 %v13425_v31, %v3968_v40  ;;  %v3898_v54 = vsub.s32 4, %v13452_v62 }
 0x721   : > { %v3892_v35 = vand.u32 2147483647, %v3891_v19  ;;  %vm13491_vm5 = vcmp.le.f32.partialorder %v3774_v13, 0.7853982  ;;  %v4023_v44 = vadd.s32 %v4018_v63, %v3999_v53  ;;  %vm3917_vm11 = vweird.f32 %v14186_v16 }
 0x722   : > { %v4025_v17 = vadd.s32 1, %v4021_v39  ;;  %v3899_v31 = vsel %vm3776_vm4, %v3898_v54, %v13452_v62  ;;  %vm14201_vm1 = vcmask 654336   ;;  %vm3931_vm12 = vcmp.lt.s32.totalorder %v14196_v4, 0 }
 0x723   : > { %v3895_v37 = vmul.f32 %v3894_v34, %v3892_v35  ;;  %v3901_v33 = vsel %vm13491_vm5, 0, %v3899_v31  ;;  %vm3930_vm13 = vcmp.le.f32.partialorder %v3929_v32, 0.7853982  ;;  %vm4072_vm2 = vweird.f32 %v14196_v4 }
 0x724   : > { %v4026_v50 = vsel %vm4024_vm0, %v4025_v17, %v4021_v39  ;;  %v3918_v58 = vadd.s32 3, %v3901_v33  ;;  %vm14202_vm0 = vmmov %vm14201_vm1 }
 0x725   : > { %v3896_v2 = vxor.u32 2147483648, %v3895_v37  ;;  %v4027_v55 = vadd.s32 %v4026_v50, %v4022_v5 }
 0x726   : > { %v3919_v1 = vand.u32 3, %v3918_v58 }
 0x727   : > { %v3897_v8 = vsel %vm3776_vm4, %v3896_v2, %v3895_v37  ;;  %v4028_v0 = vadd.s32 536870912, %v4027_v55 }
 0x728   : > { %v3900_v49 = vsel %vm13491_vm5, %v14186_v16, %v3897_v8  ;;  %vm3921_vm7 = vcmp.eq.s32.totalorder %v3919_v1, 0  ;;  %vm3924_vm14 = vcmp.eq.s32.totalorder %v3919_v1, 2  ;;  %vm3920_vm6 = vcmp.lt.s32.totalorder %v3919_v1, 2 }
 0x729   : > { %v3902_v46 = vmul.f32 %v3900_v49, %v3900_v49  ;;  %v4029_v43 = vshrl.u32 %v4028_v0, 30 }
 0x72b   : > { %v3903_v28 = vmul.f32 -0.001358992, %v3902_v46  ;;  %v3910_v57 = vmul.f32 -0.00019511016, %v3902_v46  ;;  %v4030_v56 = vshll.u32 %v4029_v43, 30  ;;  %v4053_v34 = vsub.s32 4, %v4029_v43 }
 0x72d   : > { %v3904_v13 = vadd.f32 0.041655596, %v3903_v28  ;;  %v3911_v3 = vadd.f32 0.008332121, %v3910_v57  ;;  %v4031_v47 = vsub.s32 %v4027_v55, %v4030_v56  ;;  %v4054_v17 = vsel %vm3931_vm12, %v4053_v34, %v4029_v43 }
 0x72e   : > { %v4056_v54 = vsel %vm3930_vm13, 0, %v4054_v17 }
 0x72f   : > { %v3905_v11 = vmul.f32 %v3904_v13, %v3902_v46  ;;  %v3912_v60 = vmul.f32 %v3911_v3, %v3902_v46  ;;  %vm4032_vm3 = vcmp.lt.s32.totalorder %v4031_v47, 0  ;;  %v4033_v23 = vsub.s32 0, %v4031_v47 }
 0x731   : > { %v3906_v61 = vadd.f32 -0.4999988, %v3905_v11  ;;  %v3913_v21 = vadd.f32 -0.16666654, %v3912_v60  ;;  %v4034_v62 = vsel %vm4032_vm3, %v4033_v23, %v4031_v47  ;;  %v6879_v60 = vpop.permute.xlu2 %6878 }
 0x732   : > { %v4035_v27 = vclz %v4034_v62 }
 0x733   : > { %v3907_v45 = vmul.f32 %v3906_v61, %v3902_v46  ;;  %v3914_v42 = vmul.f32 %v3913_v21, %v3902_v46 }
 0x734   : > { %v7095_v41 = vadd.s32 4294967294, %v4035_v27 }
 0x735   : > { %v3908_v29 = vadd.f32 1.0, %v3907_v45  ;;  %v3915_v59 = vadd.f32 1.0, %v3914_v42 }
 0x736   : > { %vm7096_vm9 = vcmp.lt.s32.totalorder %v7095_v41, 0 }
 0x737   : > { %v3916_v48 = vmul.f32 %v3915_v59, %v3900_v49  ;;  %v3925_v36 = vxor.u32 2147483648, %v3908_v29  ;;  %v4038_v52 = vsel %vm7096_vm9, 0, %v7095_v41  ;;  %v4073_v49 = vadd.s32 3, %v4056_v54 }
 0x738   : > { %v4039_v6 = vsub.s32 32, %v4038_v52  ;;  %v4043_v38 = vsub.s32 4294967266, %v4038_v52  ;;  %v4040_v20 = vshll.u32 %v4031_v47, %v4038_v52 }
 0x739   : > { %v3922_v25 = vxor.u32 2147483648, %v3916_v48  ;;  %v3926_v18 = vsel %vm3924_vm14, %v3925_v36, %v3916_v48  ;;  %v4074_v28 = vand.u32 3, %v4073_v49 }
 0x73a   : > { %v4041_v9 = vshrl.u32 %v4023_v44, %v4039_v6  ;;  %v4044_v7 = vadd.s32 127, %v4043_v38 }
 0x73b   : > { %v3923_v24 = vsel %vm3921_vm7, %v3908_v29, %v3922_v25  ;;  %vm4076_vm10 = vcmp.eq.s32.totalorder %v4074_v28, 0  ;;  %vm4079_vm15 = vcmp.eq.s32.totalorder %v4074_v28, 2  ;;  %vm4075_vm8 = vcmp.lt.s32.totalorder %v4074_v28, 2 }
 0x73c   : > { %v3927_v22 = vsel %vm3920_vm6, %v3923_v24, %v3926_v18  ;;  %v4042_v10 = vor.u32 %v4041_v9, %v4040_v20  ;;  %v4045_v19 = vshll.u32 %v4044_v7, 23 }
 0x73d   : > { %v3928_v51 = vsel %vm3917_vm11, nan, %v3927_v22 }
 0x73e   : > { %6899 = vmatpush.msrb.mxu0 %v3928_v51  ;;  %v4046_v26 = vor.u32 4788187, %v4045_v19  ;;  %v4049_v16 = vcvt.s32.f32 %v4042_v10 }
 0x73f   : > { %7151 = vmatmul.msk.f32.vlgmr.msrb.gmra.mxu0 %vm14201_vm1, %v6874_v30 }
 0x740   : > { %v4047_v53 = vand.u32 2147483647, %v4046_v26 }
 0x742   : > { %v4050_v14 = vmul.f32 %v4049_v16, %v4047_v53 }
 0x744   : > { %v4051_v15 = vxor.u32 2147483648, %v4050_v14 }
 0x746   : > { %v4052_v35 = vsel %vm3931_vm12, %v4051_v15, %v4050_v14 }
 0x747   : > { %v4055_v63 = vsel %vm3930_vm13, %v14196_v4, %v4052_v35 }
 0x748   : > { %v4057_v40 = vmul.f32 %v4055_v63, %v4055_v63 }
 0x74a   : > { %v4058_v39 = vmul.f32 -0.001358992, %v4057_v40  ;;  %v4065_v37 = vmul.f32 -0.00019511016, %v4057_v40 }
 0x74c   : > { %v4059_v2 = vadd.f32 0.041655596, %v4058_v39  ;;  %v4066_v5 = vadd.f32 0.008332121, %v4065_v37 }
 0x74e   : > { %v4060_v50 = vmul.f32 %v4059_v2, %v4057_v40  ;;  %v4067_v12 = vmul.f32 %v4066_v5, %v4057_v40 }
 0x750   : > { %v4061_v8 = vadd.f32 -0.4999988, %v4060_v50  ;;  %v4068_v55 = vadd.f32 -0.16666654, %v4067_v12 }
 0x752   : > { %v4062_v46 = vmul.f32 %v4061_v8, %v4057_v40  ;;  %v4069_v0 = vmul.f32 %v4068_v55, %v4057_v40 }
 0x754   : > { %v4063_v31 = vadd.f32 1.0, %v4062_v46  ;;  %v4070_v32 = vadd.f32 1.0, %v4069_v0 }
 0x756   : > { %v4071_v57 = vmul.f32 %v4070_v32, %v4055_v63  ;;  %v4080_v33 = vxor.u32 2147483648, %v4063_v31 }
 0x758   : > { %v4077_v13 = vxor.u32 2147483648, %v4071_v57  ;;  %v4081_v3 = vsel %vm4079_vm15, %v4080_v33, %v4071_v57 }
 0x75a   : > { %v4078_v43 = vsel %vm4076_vm10, %v4063_v31, %v4077_v13 }
 0x75b   : > { %v4082_v56 = vsel %vm4075_vm8, %v4078_v43, %v4081_v3 }
 0x75c   : > { %v4083_v11 = vsel %vm4072_vm2, nan, %v4082_v56 }
 0x75d   : > { %6919 = vmatpush.msrb.mxu1 %v4083_v11 }
 0x75e   : > { %7152 = vmatmul.msk.f32.vlgmr.msrb.gmra.mxu1 %vm14202_vm0, %v6874_v30 }
 0x7bc   : > { %v6901_v47 = vpop.f32.mrf.mxu0 }
 0x7bd   : > { %v6902_v58 = vadd.f32 %v6901_v47, %v6879_v60 }
 0x7bf   : > { %6924 = vst [vmem:[%s280_s14] sm:$0xff] %v6902_v58 }
 0x7db   : > { %v6921_v61 = vpop.f32.mrf.mxu1 }
 0x7dc   : > { %v6922_v21 = vadd.f32 %v6921_v61, %v6879_v60 }
 0x7de   : > { %6925 = vst [vmem:[%s280_s14 + $0x8] sm:$0xff] %v6922_v21 }
 0x7df PF: > { %s17_s24 = sadd.s32 1, %s7179_s24  }
 0x7e0   : > { %p14_p4 = scmp.ge.s32.totalorder %s17_s24, 4  }
 0x7e2   :  { %16 = sbr.rel (!%p14_p4) target bundleno = 1 (0x1), region = 78 }

</bundles_post_ra>
